<compile_context>
chip_gen: v6e
topology: v6e:2x2x1
jax: 0.10.0
libtpu: 0.0.40
codegen_flags: <defaults>
</compile_context>

<pallas_src>
import jax
import jax.numpy as jnp
from jax.experimental import pallas as pl
from jax.experimental.pallas import tpu as pltpu

EPS = 1e-5  # nn.BatchNorm2d default eps


# --------------------------------------------------------------------------
# in-kernel helpers
# --------------------------------------------------------------------------
def _pad_into(pad_ref, interior, H, W):
    """Zero the (H+2, W+2, C) VMEM scratch and store `interior` (H, W, C) at
    offset (1, 1, 0).  Fully re-initialised each grid step."""
    pad_ref[...] = jnp.zeros(pad_ref.shape, pad_ref.dtype)
    pad_ref[1:H + 1, 1:W + 1, :] = interior


def _im2col_conv3x3(pad_ref, col_ref, w_ref, H, W):
    """3x3 conv as one MXU matmul: build an (H*W, 9*C) im2col slab in VMEM,
    contract against (9*C, Cout) bf16 weights with f32 accumulation."""
    C = pad_ref.shape[-1]
    for t in range(9):                       # static loop, unrolled at trace
        dy, dx = t // 3, t % 3
        patch = pad_ref[dy:dy + H, dx:dx + W, :].reshape(H * W, C)
        col_ref[:, t * C:(t + 1) * C] = patch
    return jnp.dot(col_ref[...].astype(jnp.bfloat16), w_ref[...],
                   preferred_element_type=jnp.float32)


# --------------------------------------------------------------------------
# pass 1: conv1 -> h1 (pre-BN) + per-image partial BN1 stats
# --------------------------------------------------------------------------
def conv1_kernel(x_ref, w1_ref, h1_ref, sum_ref, ssq_ref, xp_ref, col_ref):
    _, H, W, _ = x_ref.shape
    _pad_into(xp_ref, x_ref[0], H, W)
    h1 = _im2col_conv3x3(xp_ref, col_ref, w1_ref, H, W)      # (H*W, Cout) f32
    h1_ref[0] = h1
    sum_ref[0] = jnp.sum(h1, axis=0, keepdims=True)
    ssq_ref[0] = jnp.sum(h1 * h1, axis=0, keepdims=True)


# --------------------------------------------------------------------------
# pass 2: bn1(scale/shift) + relu + conv2 -> h2 (pre-BN) + partial BN2 stats
# --------------------------------------------------------------------------
def conv2_kernel(h1_ref, sc1_ref, sh1_ref, w2_ref,
                 h2_ref, sum_ref, ssq_ref, hp_ref, col_ref):
    Hp, Wp, Cout = hp_ref.shape
    H, W = Hp - 2, Wp - 2
    a = jnp.maximum(h1_ref[0] * sc1_ref[...] + sh1_ref[...], 0.0)   # bn1+relu
    _pad_into(hp_ref, a.reshape(H, W, Cout), H, W)
    h2 = _im2col_conv3x3(hp_ref, col_ref, w2_ref, H, W)
    h2_ref[0] = h2
    sum_ref[0] = jnp.sum(h2, axis=0, keepdims=True)
    ssq_ref[0] = jnp.sum(h2 * h2, axis=0, keepdims=True)


# --------------------------------------------------------------------------
# pass 3: bn2(scale/shift) + 1x1 downsample + residual add + relu
# --------------------------------------------------------------------------
def residual_kernel(h2_ref, x_ref, wd_ref, bd_ref, sc2_ref, sh2_ref, o_ref):
    _, H, W, Cin = x_ref.shape
    _, HW, Cout = h2_ref.shape
    y = h2_ref[0] * sc2_ref[...] + sh2_ref[...]                      # bn2
    xc = x_ref[0].reshape(HW, Cin).astype(jnp.bfloat16)
    ds = jnp.dot(xc, wd_ref[...], preferred_element_type=jnp.float32)
    ds = ds + bd_ref[...]
    o_ref[0] = jnp.maximum(y + ds, 0.0).reshape(H, W, Cout)


# --------------------------------------------------------------------------
# wrapper: NCHW in / NCHW out, PyTorch-style params
# --------------------------------------------------------------------------
def _bn_scale_shift(psum, psumsq, count, gamma, beta):
    """Fold training-mode BN (biased variance) into per-channel scale/shift."""
    mean = jnp.sum(psum, axis=(0, 1)) / count
    var = jnp.sum(psumsq, axis=(0, 1)) / count - mean * mean
    scale = gamma * jax.lax.rsqrt(var + EPS)
    shift = beta - mean * scale
    return (scale.reshape(1, -1).astype(jnp.float32),
            shift.reshape(1, -1).astype(jnp.float32))


def basic_block(x_nchw, params):
    N, Cin, H, W = x_nchw.shape
    Cout = params["w1"].shape[0]
    HW = H * W

    x = jnp.transpose(x_nchw, (0, 2, 3, 1)).astype(jnp.float32)     # NHWC

    # OIHW -> (ky, kx, Cin, Cout) -> (9*Cin, Cout); bf16 MXU operands.
    w1 = jnp.transpose(params["w1"], (2, 3, 1, 0)).reshape(9 * Cin, Cout)
    w2 = jnp.transpose(params["w2"], (2, 3, 1, 0)).reshape(9 * Cout, Cout)
    w1 = w1.astype(jnp.bfloat16)
    w2 = w2.astype(jnp.bfloat16)
    wd = jnp.transpose(params["wd"][:, :, 0, 0], (1, 0)).astype(jnp.bfloat16)
    bd = params["bd"].reshape(1, Cout).astype(jnp.float32)
    # NOTE: b1/b2 are intentionally NOT used: a per-channel constant added
    # before a batch-stat BatchNorm is cancelled exactly by the mean subtract.

    grid = (N,)
    cparams = pltpu.CompilerParams(
        dimension_semantics=("parallel",),          # megacore-shardable axis
        vmem_limit_bytes=32 * 1024 * 1024)

    x_spec = pl.BlockSpec((1, H, W, Cin), lambda i: (i, 0, 0, 0))
    row_spec = pl.BlockSpec((1, HW, Cout), lambda i: (i, 0, 0))
    stat_spec = pl.BlockSpec((1, 1, Cout), lambda i: (i, 0, 0))
    vec_spec = pl.BlockSpec((1, Cout), lambda i: (0, 0))             # resident

    # ---- pass 1 -----------------------------------------------------------
    h1, s1, q1 = pl.pallas_call(
        conv1_kernel,
        grid=grid,
        in_specs=[x_spec,
                  pl.BlockSpec((9 * Cin, Cout), lambda i: (0, 0))],
        out_specs=[row_spec, stat_spec, stat_spec],
        out_shape=[jax.ShapeDtypeStruct((N, HW, Cout), jnp.float32),
                   jax.ShapeDtypeStruct((N, 1, Cout), jnp.float32),
                   jax.ShapeDtypeStruct((N, 1, Cout), jnp.float32)],
        scratch_shapes=[pltpu.VMEM((H + 2, W + 2, Cin), jnp.float32),
                        pltpu.VMEM((HW, 9 * Cin), jnp.float32)],
        compiler_params=cparams,
    )(x, w1)

    sc1, sh1 = _bn_scale_shift(s1, q1, N * HW, params["g1"], params["beta1"])

    # ---- pass 2 -----------------------------------------------------------
    h2, s2, q2 = pl.pallas_call(
        conv2_kernel,
        grid=grid,
        in_specs=[row_spec, vec_spec, vec_spec,
                  pl.BlockSpec((9 * Cout, Cout), lambda i: (0, 0))],
        out_specs=[row_spec, stat_spec, stat_spec],
        out_shape=[jax.ShapeDtypeStruct((N, HW, Cout), jnp.float32),
                   jax.ShapeDtypeStruct((N, 1, Cout), jnp.float32),
                   jax.ShapeDtypeStruct((N, 1, Cout), jnp.float32)],
        scratch_shapes=[pltpu.VMEM((H + 2, W + 2, Cout), jnp.float32),
                        pltpu.VMEM((HW, 9 * Cout), jnp.float32)],
        compiler_params=cparams,
    )(h1, sc1, sh1, w2)

    sc2, sh2 = _bn_scale_shift(s2, q2, N * HW, params["g2"], params["beta2"])

    # ---- pass 3 -----------------------------------------------------------
    out_nhwc = pl.pallas_call(
        residual_kernel,
        grid=grid,
        in_specs=[row_spec, x_spec,
                  pl.BlockSpec((Cin, Cout), lambda i: (0, 0)),
                  vec_spec, vec_spec, vec_spec],
        out_specs=pl.BlockSpec((1, H, W, Cout), lambda i: (i, 0, 0, 0)),
        out_shape=jax.ShapeDtypeStruct((N, H, W, Cout), jnp.float32),
        compiler_params=cparams,
    )(h2, x, wd, bd, sc2, sh2)

    return jnp.transpose(out_nhwc, (0, 3, 1, 2))


# --------------------------------------------------------------------------
# pure-JAX reference (matches PyTorch forward in train mode) + params
# --------------------------------------------------------------------------
def ref_basic_block(x, p):
    def conv(x, w, b, pad):
        y = jax.lax.conv_general_dilated(
            x, w, window_strides=(1, 1), padding=[(pad, pad), (pad, pad)],
            dimension_numbers=("NCHW", "OIHW", "NCHW"))
        return y + b[None, :, None, None]

    def bn(x, g, be):
        mean = jnp.mean(x, axis=(0, 2, 3), keepdims=True)
        var = jnp.mean((x - mean) ** 2, axis=(0, 2, 3), keepdims=True)
        return ((x - mean) * jax.lax.rsqrt(var + EPS)
                * g[None, :, None, None] + be[None, :, None, None])

    h = jax.nn.relu(bn(conv(x, p["w1"], p["b1"], 1), p["g1"], p["beta1"]))
    h = bn(conv(h, p["w2"], p["b2"], 1), p["g2"], p["beta2"])
    ds = conv(x, p["wd"], p["bd"], 0)
    return jax.nn.relu(h + ds)


def init_params(key, in_channels, out_channels):
    ks = jax.random.split(key, 6)
    # Kaiming-style scales keep pre-BN activations near unit variance so the
    # BN rescale is ~1 and bf16 MXU rounding is not amplified.
    s1 = 1.0 / (9 * in_channels) ** 0.5
    s2 = (2.0 / (9 * out_channels)) ** 0.5
    sd = 1.0 / in_channels ** 0.5
    return {
        "w1": s1 * jax.random.normal(ks[0], (out_channels, in_channels, 3, 3), jnp.float32),
        "b1": 0.1 * jax.random.normal(ks[1], (out_channels,), jnp.float32),
        "w2": s2 * jax.random.normal(ks[2], (out_channels, out_channels, 3, 3), jnp.float32),
        "b2": 0.1 * jax.random.normal(ks[3], (out_channels,), jnp.float32),
        "wd": sd * jax.random.normal(ks[4], (out_channels, in_channels, 1, 1), jnp.float32),
        "bd": 0.1 * jax.random.normal(ks[5], (out_channels,), jnp.float32),
        "g1": jnp.ones((out_channels,), jnp.float32),
        "beta1": jnp.zeros((out_channels,), jnp.float32),
        "g2": jnp.ones((out_channels,), jnp.float32),
        "beta2": jnp.zeros((out_channels,), jnp.float32),
    }


if __name__ == "__main__":
    key = jax.random.PRNGKey(0)
    k_x, k_p = jax.random.split(key)

    N, Cin, Cout, H, W = 2, 4, 8, 16, 16
    x = jax.random.normal(k_x, (N, Cin, H, W), jnp.float32)
    params = init_params(k_p, Cin, Cout)

    block = jax.jit(basic_block)
    out = jax.block_until_ready(block(x, params))

    ref = jax.block_until_ready(ref_basic_block(x, params))
    assert out.shape == (N, Cout, H, W)
    # Tolerance accounts for bf16 MXU operands (f32 accumulation / BN math).
    assert jnp.allclose(out, ref, rtol=5e-2, atol=5e-2), (
        float(jnp.max(jnp.abs(out - ref))))

    print("KERNEL_OK")
</pallas_src>

<mosaic_0001>
module attributes {stable_mosaic.version = 11 : i64} {
  func.func @conv1_kernel(%arg0: i32, %arg1: memref<1x16x16x4xf32, #tpu.memory_space<vmem>>, %arg2: memref<36x8xbf16, #tpu.memory_space<vmem>>, %arg3: memref<1x256x8xf32, #tpu.memory_space<vmem>>, %arg4: memref<1x1x8xf32, #tpu.memory_space<vmem>>, %arg5: memref<1x1x8xf32, #tpu.memory_space<vmem>>, %arg6: memref<18x18x4xf32, #tpu.memory_space<vmem>>, %arg7: memref<256x36xf32, #tpu.memory_space<vmem>>) attributes {dimension_semantics = [#tpu.dimension_semantics<parallel>], iteration_bounds = array<i64: 2>, scalar_prefetch = 0 : i64, scratch_operands = 2 : i64, tpu.core_type = #tpu.core_type<tc>, window_params = [{transform_indices = @transform_0, window_bounds = array<i64: 1, 16, 16, 4>}, {pipeline_mode = #tpu.pipeline_mode<synchronous>, transform_indices = @transform_1, window_bounds = array<i64: 36, 8>}, {transform_indices = @transform_2, window_bounds = array<i64: 1, 256, 8>}, {transform_indices = @transform_3, window_bounds = array<i64: 1, 1, 8>}, {transform_indices = @transform_4, window_bounds = array<i64: 1, 1, 8>}]} {
    %c0 = arith.constant 0 : index
    %c0_0 = arith.constant 0 : index
    %c0_1 = arith.constant 0 : index
    %c0_2 = arith.constant 0 : index
    %0 = vector.load %arg1[%c0, %c0_0, %c0_1, %c0_2] : memref<1x16x16x4xf32, #tpu.memory_space<vmem>>, vector<1x16x16x4xf32>
    %1 = vector.shape_cast %0 : vector<1x16x16x4xf32> to vector<16x16x4xf32>
    %cst = arith.constant 0.000000e+00 : f32
    %2 = vector.broadcast %cst : f32 to vector<18x18x4xf32>
    %c0_3 = arith.constant 0 : index
    %c0_4 = arith.constant 0 : index
    %c0_5 = arith.constant 0 : index
    %3 = vector.load %arg6[%c0_3, %c0_4, %c0_5] : memref<18x18x4xf32, #tpu.memory_space<vmem>>, vector<18x18x4xf32>
    tpu.vector_store %arg6[%c0_3, %c0_4, %c0_5], %2 {strides = array<i32>} : memref<18x18x4xf32, #tpu.memory_space<vmem>>, vector<18x18x4xf32>,
    %c1 = arith.constant 1 : index
    %c1_6 = arith.constant 1 : index
    %c0_7 = arith.constant 0 : index
    %4 = vector.load %arg6[%c1, %c1_6, %c0_7] : memref<18x18x4xf32, #tpu.memory_space<vmem>>, vector<16x16x4xf32>
    tpu.vector_store %arg6[%c1, %c1_6, %c0_7], %1 {strides = array<i32>} : memref<18x18x4xf32, #tpu.memory_space<vmem>>, vector<16x16x4xf32>,
    %c0_8 = arith.constant 0 : index
    %c0_9 = arith.constant 0 : index
    %c0_10 = arith.constant 0 : index
    %5 = vector.load %arg6[%c0_8, %c0_9, %c0_10] : memref<18x18x4xf32, #tpu.memory_space<vmem>>, vector<16x16x4xf32>
    %6 = vector.shape_cast %5 : vector<16x16x4xf32> to vector<256x4xf32>
    %c0_11 = arith.constant 0 : index
    %c0_12 = arith.constant 0 : index
    %7 = vector.load %arg7[%c0_11, %c0_12] : memref<256x36xf32, #tpu.memory_space<vmem>>, vector<256x4xf32>
    tpu.vector_store %arg7[%c0_11, %c0_12], %6 {strides = array<i32>} : memref<256x36xf32, #tpu.memory_space<vmem>>, vector<256x4xf32>,
    %c0_13 = arith.constant 0 : index
    %c1_14 = arith.constant 1 : index
    %c0_15 = arith.constant 0 : index
    %8 = vector.load %arg6[%c0_13, %c1_14, %c0_15] : memref<18x18x4xf32, #tpu.memory_space<vmem>>, vector<16x16x4xf32>
    %9 = vector.shape_cast %8 : vector<16x16x4xf32> to vector<256x4xf32>
    %c0_16 = arith.constant 0 : index
    %c4 = arith.constant 4 : index
    %10 = vector.load %arg7[%c0_16, %c4] : memref<256x36xf32, #tpu.memory_space<vmem>>, vector<256x4xf32>
    tpu.vector_store %arg7[%c0_16, %c4], %9 {strides = array<i32>} : memref<256x36xf32, #tpu.memory_space<vmem>>, vector<256x4xf32>,
    %c0_17 = arith.constant 0 : index
    %c2 = arith.constant 2 : index
    %c0_18 = arith.constant 0 : index
    %11 = vector.load %arg6[%c0_17, %c2, %c0_18] : memref<18x18x4xf32, #tpu.memory_space<vmem>>, vector<16x16x4xf32>
    %12 = vector.shape_cast %11 : vector<16x16x4xf32> to vector<256x4xf32>
    %c0_19 = arith.constant 0 : index
    %c8 = arith.constant 8 : index
    %13 = vector.load %arg7[%c0_19, %c8] : memref<256x36xf32, #tpu.memory_space<vmem>>, vector<256x4xf32>
    tpu.vector_store %arg7[%c0_19, %c8], %12 {strides = array<i32>} : memref<256x36xf32, #tpu.memory_space<vmem>>, vector<256x4xf32>,
    %c1_20 = arith.constant 1 : index
    %c0_21 = arith.constant 0 : index
    %c0_22 = arith.constant 0 : index
    %14 = vector.load %arg6[%c1_20, %c0_21, %c0_22] : memref<18x18x4xf32, #tpu.memory_space<vmem>>, vector<16x16x4xf32>
    %15 = vector.shape_cast %14 : vector<16x16x4xf32> to vector<256x4xf32>
    %c0_23 = arith.constant 0 : index
    %c12 = arith.constant 12 : index
    %16 = vector.load %arg7[%c0_23, %c12] : memref<256x36xf32, #tpu.memory_space<vmem>>, vector<256x4xf32>
    tpu.vector_store %arg7[%c0_23, %c12], %15 {strides = array<i32>} : memref<256x36xf32, #tpu.memory_space<vmem>>, vector<256x4xf32>,
    %c1_24 = arith.constant 1 : index
    %c1_25 = arith.constant 1 : index
    %c0_26 = arith.constant 0 : index
    %17 = vector.load %arg6[%c1_24, %c1_25, %c0_26] : memref<18x18x4xf32, #tpu.memory_space<vmem>>, vector<16x16x4xf32>
    %18 = vector.shape_cast %17 : vector<16x16x4xf32> to vector<256x4xf32>
    %c0_27 = arith.constant 0 : index
    %c16 = arith.constant 16 : index
    %19 = vector.load %arg7[%c0_27, %c16] : memref<256x36xf32, #tpu.memory_space<vmem>>, vector<256x4xf32>
    tpu.vector_store %arg7[%c0_27, %c16], %18 {strides = array<i32>} : memref<256x36xf32, #tpu.memory_space<vmem>>, vector<256x4xf32>,
    %c1_28 = arith.constant 1 : index
    %c2_29 = arith.constant 2 : index
    %c0_30 = arith.constant 0 : index
    %20 = vector.load %arg6[%c1_28, %c2_29, %c0_30] : memref<18x18x4xf32, #tpu.memory_space<vmem>>, vector<16x16x4xf32>
    %21 = vector.shape_cast %20 : vector<16x16x4xf32> to vector<256x4xf32>
    %c0_31 = arith.constant 0 : index
    %c20 = arith.constant 20 : index
    %22 = vector.load %arg7[%c0_31, %c20] : memref<256x36xf32, #tpu.memory_space<vmem>>, vector<256x4xf32>
    tpu.vector_store %arg7[%c0_31, %c20], %21 {strides = array<i32>} : memref<256x36xf32, #tpu.memory_space<vmem>>, vector<256x4xf32>,
    %c2_32 = arith.constant 2 : index
    %c0_33 = arith.constant 0 : index
    %c0_34 = arith.constant 0 : index
    %23 = vector.load %arg6[%c2_32, %c0_33, %c0_34] : memref<18x18x4xf32, #tpu.memory_space<vmem>>, vector<16x16x4xf32>
    %24 = vector.shape_cast %23 : vector<16x16x4xf32> to vector<256x4xf32>
    %c0_35 = arith.constant 0 : index
    %c24 = arith.constant 24 : index
    %25 = vector.load %arg7[%c0_35, %c24] : memref<256x36xf32, #tpu.memory_space<vmem>>, vector<256x4xf32>
    tpu.vector_store %arg7[%c0_35, %c24], %24 {strides = array<i32>} : memref<256x36xf32, #tpu.memory_space<vmem>>, vector<256x4xf32>,
    %c2_36 = arith.constant 2 : index
    %c1_37 = arith.constant 1 : index
    %c0_38 = arith.constant 0 : index
    %26 = vector.load %arg6[%c2_36, %c1_37, %c0_38] : memref<18x18x4xf32, #tpu.memory_space<vmem>>, vector<16x16x4xf32>
    %27 = vector.shape_cast %26 : vector<16x16x4xf32> to vector<256x4xf32>
    %c0_39 = arith.constant 0 : index
    %c28 = arith.constant 28 : index
    %28 = vector.load %arg7[%c0_39, %c28] : memref<256x36xf32, #tpu.memory_space<vmem>>, vector<256x4xf32>
    tpu.vector_store %arg7[%c0_39, %c28], %27 {strides = array<i32>} : memref<256x36xf32, #tpu.memory_space<vmem>>, vector<256x4xf32>,
    %c2_40 = arith.constant 2 : index
    %c2_41 = arith.constant 2 : index
    %c0_42 = arith.constant 0 : index
    %29 = vector.load %arg6[%c2_40, %c2_41, %c0_42] : memref<18x18x4xf32, #tpu.memory_space<vmem>>, vector<16x16x4xf32>
    %30 = vector.shape_cast %29 : vector<16x16x4xf32> to vector<256x4xf32>
    %c0_43 = arith.constant 0 : index
    %c32 = arith.constant 32 : index
    %31 = vector.load %arg7[%c0_43, %c32] : memref<256x36xf32, #tpu.memory_space<vmem>>, vector<256x4xf32>
    tpu.vector_store %arg7[%c0_43, %c32], %30 {strides = array<i32>} : memref<256x36xf32, #tpu.memory_space<vmem>>, vector<256x4xf32>,
    %c0_44 = arith.constant 0 : index
    %c0_45 = arith.constant 0 : index
    %32 = vector.load %arg7[%c0_44, %c0_45] : memref<256x36xf32, #tpu.memory_space<vmem>>, vector<256x36xf32>
    %33 = arith.truncf %32 : vector<256x36xf32> to vector<256x36xbf16>
    %c0_46 = arith.constant 0 : index
    %c0_47 = arith.constant 0 : index
    %34 = vector.load %arg2[%c0_46, %c0_47] : memref<36x8xbf16, #tpu.memory_space<vmem>>, vector<36x8xbf16>
    %cst_48 = arith.constant dense<0.000000e+00> : vector<256x8xf32>
    %35 = tpu.matmul %33, %34, %cst_48 {dimension_numbers = #tpu.dot_dimension_numbers<[1], [0], [0], [1], [0, 0, 1, 1], [], []>} : vector<256x36xbf16>, vector<36x8xbf16>, vector<256x8xf32> -> vector<256x8xf32>
    %c0_49 = arith.constant 0 : index
    %c0_50 = arith.constant 0 : index
    %c0_51 = arith.constant 0 : index
    %36 = vector.load %arg3[%c0_49, %c0_50, %c0_51] : memref<1x256x8xf32, #tpu.memory_space<vmem>>, vector<1x256x8xf32>
    %37 = vector.shape_cast %36 : vector<1x256x8xf32> to vector<256x8xf32>
    %38 = vector.shape_cast %35 : vector<256x8xf32> to vector<1x256x8xf32>
    tpu.vector_store %arg3[%c0_49, %c0_50, %c0_51], %38 {strides = array<i32>} : memref<1x256x8xf32, #tpu.memory_space<vmem>>, vector<1x256x8xf32>,
    %cst_52 = arith.constant dense<0.000000e+00> : vector<8xf32>
    %39 = vector.multi_reduction <add>, %35, %cst_52 [0] : vector<256x8xf32> to vector<8xf32>
    %40 = vector.shape_cast %39 : vector<8xf32> to vector<1x8xf32>
    %c0_53 = arith.constant 0 : index
    %c0_54 = arith.constant 0 : index
    %c0_55 = arith.constant 0 : index
    %41 = vector.load %arg4[%c0_53, %c0_54, %c0_55] : memref<1x1x8xf32, #tpu.memory_space<vmem>>, vector<1x1x8xf32>
    %42 = vector.shape_cast %41 : vector<1x1x8xf32> to vector<1x8xf32>
    %43 = vector.shape_cast %40 : vector<1x8xf32> to vector<1x1x8xf32>
    tpu.vector_store %arg4[%c0_53, %c0_54, %c0_55], %43 {strides = array<i32>} : memref<1x1x8xf32, #tpu.memory_space<vmem>>, vector<1x1x8xf32>,
    %44 = arith.mulf %35, %35 : vector<256x8xf32>
    %cst_56 = arith.constant dense<0.000000e+00> : vector<8xf32>
    %45 = vector.multi_reduction <add>, %44, %cst_56 [0] : vector<256x8xf32> to vector<8xf32>
    %46 = vector.shape_cast %45 : vector<8xf32> to vector<1x8xf32>
    %c0_57 = arith.constant 0 : index
    %c0_58 = arith.constant 0 : index
    %c0_59 = arith.constant 0 : index
    %47 = vector.load %arg5[%c0_57, %c0_58, %c0_59] : memref<1x1x8xf32, #tpu.memory_space<vmem>>, vector<1x1x8xf32>
    %48 = vector.shape_cast %47 : vector<1x1x8xf32> to vector<1x8xf32>
    %49 = vector.shape_cast %46 : vector<1x8xf32> to vector<1x1x8xf32>
    tpu.vector_store %arg5[%c0_57, %c0_58, %c0_59], %49 {strides = array<i32>} : memref<1x1x8xf32, #tpu.memory_space<vmem>>, vector<1x1x8xf32>,
    return
  }
  func.func @transform_0(%arg0: i32) -> (i32, i32, i32, i32) {
    %c0_i32 = arith.constant 0 : i32
    %c0_i32_0 = arith.constant 0 : i32
    %c0_i32_1 = arith.constant 0 : i32
    %c0_i32_2 = arith.constant 0 : i32
    return %arg0, %c0_i32, %c0_i32_0, %c0_i32_1 : i32, i32, i32, i32
  }
  func.func @transform_1(%arg0: i32) -> (i32, i32) {
    %c0_i32 = arith.constant 0 : i32
    %c0_i32_0 = arith.constant 0 : i32
    %c0_i32_1 = arith.constant 0 : i32
    return %c0_i32, %c0_i32_0 : i32, i32
  }
  func.func @transform_2(%arg0: i32) -> (i32, i32, i32) {
    %c0_i32 = arith.constant 0 : i32
    %c0_i32_0 = arith.constant 0 : i32
    %c0_i32_1 = arith.constant 0 : i32
    return %arg0, %c0_i32, %c0_i32_0 : i32, i32, i32
  }
  func.func @transform_3(%arg0: i32) -> (i32, i32, i32) {
    %c0_i32 = arith.constant 0 : i32
    %c0_i32_0 = arith.constant 0 : i32
    %c0_i32_1 = arith.constant 0 : i32
    return %arg0, %c0_i32, %c0_i32_0 : i32, i32, i32
  }
  func.func @transform_4(%arg0: i32) -> (i32, i32, i32) {
    %c0_i32 = arith.constant 0 : i32
    %c0_i32_0 = arith.constant 0 : i32
    %c0_i32_1 = arith.constant 0 : i32
    return %arg0, %c0_i32, %c0_i32_0 : i32, i32, i32
  }
}

module attributes {stable_mosaic.version = 11 : i64} {
  func.func @conv2_kernel(%arg0: i32, %arg1: memref<1x256x8xf32, #tpu.memory_space<vmem>>, %arg2: memref<1x8xf32, #tpu.memory_space<vmem>>, %arg3: memref<1x8xf32, #tpu.memory_space<vmem>>, %arg4: memref<72x8xbf16, #tpu.memory_space<vmem>>, %arg5: memref<1x256x8xf32, #tpu.memory_space<vmem>>, %arg6: memref<1x1x8xf32, #tpu.memory_space<vmem>>, %arg7: memref<1x1x8xf32, #tpu.memory_space<vmem>>, %arg8: memref<18x18x8xf32, #tpu.memory_space<vmem>>, %arg9: memref<256x72xf32, #tpu.memory_space<vmem>>) attributes {dimension_semantics = [#tpu.dimension_semantics<parallel>], iteration_bounds = array<i64: 2>, scalar_prefetch = 0 : i64, scratch_operands = 2 : i64, tpu.core_type = #tpu.core_type<tc>, window_params = [{transform_indices = @transform_0, window_bounds = array<i64: 1, 256, 8>}, {pipeline_mode = #tpu.pipeline_mode<synchronous>, transform_indices = @transform_1, window_bounds = array<i64: 1, 8>}, {pipeline_mode = #tpu.pipeline_mode<synchronous>, transform_indices = @transform_2, window_bounds = array<i64: 1, 8>}, {pipeline_mode = #tpu.pipeline_mode<synchronous>, transform_indices = @transform_3, window_bounds = array<i64: 72, 8>}, {transform_indices = @transform_4, window_bounds = array<i64: 1, 256, 8>}, {transform_indices = @transform_5, window_bounds = array<i64: 1, 1, 8>}, {transform_indices = @transform_6, window_bounds = array<i64: 1, 1, 8>}]} {
    %c0 = arith.constant 0 : index
    %c0_0 = arith.constant 0 : index
    %c0_1 = arith.constant 0 : index
    %0 = vector.load %arg1[%c0, %c0_0, %c0_1] : memref<1x256x8xf32, #tpu.memory_space<vmem>>, vector<1x256x8xf32>
    %1 = vector.shape_cast %0 : vector<1x256x8xf32> to vector<256x8xf32>
    %c0_2 = arith.constant 0 : index
    %c0_3 = arith.constant 0 : index
    %2 = vector.load %arg2[%c0_2, %c0_3] : memref<1x8xf32, #tpu.memory_space<vmem>>, vector<1x8xf32>
    %3 = vector.broadcast %2 : vector<1x8xf32> to vector<256x8xf32>
    %4 = arith.mulf %1, %3 : vector<256x8xf32>
    %c0_4 = arith.constant 0 : index
    %c0_5 = arith.constant 0 : index
    %5 = vector.load %arg3[%c0_4, %c0_5] : memref<1x8xf32, #tpu.memory_space<vmem>>, vector<1x8xf32>
    %6 = vector.broadcast %5 : vector<1x8xf32> to vector<256x8xf32>
    %7 = arith.addf %4, %6 : vector<256x8xf32>
    %cst = arith.constant 0.000000e+00 : f32
    %8 = vector.broadcast %cst : f32 to vector<256x8xf32>
    %9 = arith.maximumf %7, %8 : vector<256x8xf32>
    %10 = vector.shape_cast %9 : vector<256x8xf32> to vector<16x16x8xf32>
    %cst_6 = arith.constant 0.000000e+00 : f32
    %11 = vector.broadcast %cst_6 : f32 to vector<18x18x8xf32>
    %c0_7 = arith.constant 0 : index
    %c0_8 = arith.constant 0 : index
    %c0_9 = arith.constant 0 : index
    %12 = vector.load %arg8[%c0_7, %c0_8, %c0_9] : memref<18x18x8xf32, #tpu.memory_space<vmem>>, vector<18x18x8xf32>
    tpu.vector_store %arg8[%c0_7, %c0_8, %c0_9], %11 {strides = array<i32>} : memref<18x18x8xf32, #tpu.memory_space<vmem>>, vector<18x18x8xf32>,
    %c1 = arith.constant 1 : index
    %c1_10 = arith.constant 1 : index
    %c0_11 = arith.constant 0 : index
    %13 = vector.load %arg8[%c1, %c1_10, %c0_11] : memref<18x18x8xf32, #tpu.memory_space<vmem>>, vector<16x16x8xf32>
    tpu.vector_store %arg8[%c1, %c1_10, %c0_11], %10 {strides = array<i32>} : memref<18x18x8xf32, #tpu.memory_space<vmem>>, vector<16x16x8xf32>,
    %c0_12 = arith.constant 0 : index
    %c0_13 = arith.constant 0 : index
    %c0_14 = arith.constant 0 : index
    %14 = vector.load %arg8[%c0_12, %c0_13, %c0_14] : memref<18x18x8xf32, #tpu.memory_space<vmem>>, vector<16x16x8xf32>
    %15 = vector.shape_cast %14 : vector<16x16x8xf32> to vector<256x8xf32>
    %c0_15 = arith.constant 0 : index
    %c0_16 = arith.constant 0 : index
    %16 = vector.load %arg9[%c0_15, %c0_16] : memref<256x72xf32, #tpu.memory_space<vmem>>, vector<256x8xf32>
    tpu.vector_store %arg9[%c0_15, %c0_16], %15 {strides = array<i32>} : memref<256x72xf32, #tpu.memory_space<vmem>>, vector<256x8xf32>,
    %c0_17 = arith.constant 0 : index
    %c1_18 = arith.constant 1 : index
    %c0_19 = arith.constant 0 : index
    %17 = vector.load %arg8[%c0_17, %c1_18, %c0_19] : memref<18x18x8xf32, #tpu.memory_space<vmem>>, vector<16x16x8xf32>
    %18 = vector.shape_cast %17 : vector<16x16x8xf32> to vector<256x8xf32>
    %c0_20 = arith.constant 0 : index
    %c8 = arith.constant 8 : index
    %19 = vector.load %arg9[%c0_20, %c8] : memref<256x72xf32, #tpu.memory_space<vmem>>, vector<256x8xf32>
    tpu.vector_store %arg9[%c0_20, %c8], %18 {strides = array<i32>} : memref<256x72xf32, #tpu.memory_space<vmem>>, vector<256x8xf32>,
    %c0_21 = arith.constant 0 : index
    %c2 = arith.constant 2 : index
    %c0_22 = arith.constant 0 : index
    %20 = vector.load %arg8[%c0_21, %c2, %c0_22] : memref<18x18x8xf32, #tpu.memory_space<vmem>>, vector<16x16x8xf32>
    %21 = vector.shape_cast %20 : vector<16x16x8xf32> to vector<256x8xf32>
    %c0_23 = arith.constant 0 : index
    %c16 = arith.constant 16 : index
    %22 = vector.load %arg9[%c0_23, %c16] : memref<256x72xf32, #tpu.memory_space<vmem>>, vector<256x8xf32>
    tpu.vector_store %arg9[%c0_23, %c16], %21 {strides = array<i32>} : memref<256x72xf32, #tpu.memory_space<vmem>>, vector<256x8xf32>,
    %c1_24 = arith.constant 1 : index
    %c0_25 = arith.constant 0 : index
    %c0_26 = arith.constant 0 : index
    %23 = vector.load %arg8[%c1_24, %c0_25, %c0_26] : memref<18x18x8xf32, #tpu.memory_space<vmem>>, vector<16x16x8xf32>
    %24 = vector.shape_cast %23 : vector<16x16x8xf32> to vector<256x8xf32>
    %c0_27 = arith.constant 0 : index
    %c24 = arith.constant 24 : index
    %25 = vector.load %arg9[%c0_27, %c24] : memref<256x72xf32, #tpu.memory_space<vmem>>, vector<256x8xf32>
    tpu.vector_store %arg9[%c0_27, %c24], %24 {strides = array<i32>} : memref<256x72xf32, #tpu.memory_space<vmem>>, vector<256x8xf32>,
    %c1_28 = arith.constant 1 : index
    %c1_29 = arith.constant 1 : index
    %c0_30 = arith.constant 0 : index
    %26 = vector.load %arg8[%c1_28, %c1_29, %c0_30] : memref<18x18x8xf32, #tpu.memory_space<vmem>>, vector<16x16x8xf32>
    %27 = vector.shape_cast %26 : vector<16x16x8xf32> to vector<256x8xf32>
    %c0_31 = arith.constant 0 : index
    %c32 = arith.constant 32 : index
    %28 = vector.load %arg9[%c0_31, %c32] : memref<256x72xf32, #tpu.memory_space<vmem>>, vector<256x8xf32>
    tpu.vector_store %arg9[%c0_31, %c32], %27 {strides = array<i32>} : memref<256x72xf32, #tpu.memory_space<vmem>>, vector<256x8xf32>,
    %c1_32 = arith.constant 1 : index
    %c2_33 = arith.constant 2 : index
    %c0_34 = arith.constant 0 : index
    %29 = vector.load %arg8[%c1_32, %c2_33, %c0_34] : memref<18x18x8xf32, #tpu.memory_space<vmem>>, vector<16x16x8xf32>
    %30 = vector.shape_cast %29 : vector<16x16x8xf32> to vector<256x8xf32>
    %c0_35 = arith.constant 0 : index
    %c40 = arith.constant 40 : index
    %31 = vector.load %arg9[%c0_35, %c40] : memref<256x72xf32, #tpu.memory_space<vmem>>, vector<256x8xf32>
    tpu.vector_store %arg9[%c0_35, %c40], %30 {strides = array<i32>} : memref<256x72xf32, #tpu.memory_space<vmem>>, vector<256x8xf32>,
    %c2_36 = arith.constant 2 : index
    %c0_37 = arith.constant 0 : index
    %c0_38 = arith.constant 0 : index
    %32 = vector.load %arg8[%c2_36, %c0_37, %c0_38] : memref<18x18x8xf32, #tpu.memory_space<vmem>>, vector<16x16x8xf32>
    %33 = vector.shape_cast %32 : vector<16x16x8xf32> to vector<256x8xf32>
    %c0_39 = arith.constant 0 : index
    %c48 = arith.constant 48 : index
    %34 = vector.load %arg9[%c0_39, %c48] : memref<256x72xf32, #tpu.memory_space<vmem>>, vector<256x8xf32>
    tpu.vector_store %arg9[%c0_39, %c48], %33 {strides = array<i32>} : memref<256x72xf32, #tpu.memory_space<vmem>>, vector<256x8xf32>,
    %c2_40 = arith.constant 2 : index
    %c1_41 = arith.constant 1 : index
    %c0_42 = arith.constant 0 : index
    %35 = vector.load %arg8[%c2_40, %c1_41, %c0_42] : memref<18x18x8xf32, #tpu.memory_space<vmem>>, vector<16x16x8xf32>
    %36 = vector.shape_cast %35 : vector<16x16x8xf32> to vector<256x8xf32>
    %c0_43 = arith.constant 0 : index
    %c56 = arith.constant 56 : index
    %37 = vector.load %arg9[%c0_43, %c56] : memref<256x72xf32, #tpu.memory_space<vmem>>, vector<256x8xf32>
    tpu.vector_store %arg9[%c0_43, %c56], %36 {strides = array<i32>} : memref<256x72xf32, #tpu.memory_space<vmem>>, vector<256x8xf32>,
    %c2_44 = arith.constant 2 : index
    %c2_45 = arith.constant 2 : index
    %c0_46 = arith.constant 0 : index
    %38 = vector.load %arg8[%c2_44, %c2_45, %c0_46] : memref<18x18x8xf32, #tpu.memory_space<vmem>>, vector<16x16x8xf32>
    %39 = vector.shape_cast %38 : vector<16x16x8xf32> to vector<256x8xf32>
    %c0_47 = arith.constant 0 : index
    %c64 = arith.constant 64 : index
    %40 = vector.load %arg9[%c0_47, %c64] : memref<256x72xf32, #tpu.memory_space<vmem>>, vector<256x8xf32>
    tpu.vector_store %arg9[%c0_47, %c64], %39 {strides = array<i32>} : memref<256x72xf32, #tpu.memory_space<vmem>>, vector<256x8xf32>,
    %c0_48 = arith.constant 0 : index
    %c0_49 = arith.constant 0 : index
    %41 = vector.load %arg9[%c0_48, %c0_49] : memref<256x72xf32, #tpu.memory_space<vmem>>, vector<256x72xf32>
    %42 = arith.truncf %41 : vector<256x72xf32> to vector<256x72xbf16>
    %c0_50 = arith.constant 0 : index
    %c0_51 = arith.constant 0 : index
    %43 = vector.load %arg4[%c0_50, %c0_51] : memref<72x8xbf16, #tpu.memory_space<vmem>>, vector<72x8xbf16>
    %cst_52 = arith.constant dense<0.000000e+00> : vector<256x8xf32>
    %44 = tpu.matmul %42, %43, %cst_52 {dimension_numbers = #tpu.dot_dimension_numbers<[1], [0], [0], [1], [0, 0, 1, 1], [], []>} : vector<256x72xbf16>, vector<72x8xbf16>, vector<256x8xf32> -> vector<256x8xf32>
    %c0_53 = arith.constant 0 : index
    %c0_54 = arith.constant 0 : index
    %c0_55 = arith.constant 0 : index
    %45 = vector.load %arg5[%c0_53, %c0_54, %c0_55] : memref<1x256x8xf32, #tpu.memory_space<vmem>>, vector<1x256x8xf32>
    %46 = vector.shape_cast %45 : vector<1x256x8xf32> to vector<256x8xf32>
    %47 = vector.shape_cast %44 : vector<256x8xf32> to vector<1x256x8xf32>
    tpu.vector_store %arg5[%c0_53, %c0_54, %c0_55], %47 {strides = array<i32>} : memref<1x256x8xf32, #tpu.memory_space<vmem>>, vector<1x256x8xf32>,
    %cst_56 = arith.constant dense<0.000000e+00> : vector<8xf32>
    %48 = vector.multi_reduction <add>, %44, %cst_56 [0] : vector<256x8xf32> to vector<8xf32>
    %49 = vector.shape_cast %48 : vector<8xf32> to vector<1x8xf32>
    %c0_57 = arith.constant 0 : index
    %c0_58 = arith.constant 0 : index
    %c0_59 = arith.constant 0 : index
    %50 = vector.load %arg6[%c0_57, %c0_58, %c0_59] : memref<1x1x8xf32, #tpu.memory_space<vmem>>, vector<1x1x8xf32>
    %51 = vector.shape_cast %50 : vector<1x1x8xf32> to vector<1x8xf32>
    %52 = vector.shape_cast %49 : vector<1x8xf32> to vector<1x1x8xf32>
    tpu.vector_store %arg6[%c0_57, %c0_58, %c0_59], %52 {strides = array<i32>} : memref<1x1x8xf32, #tpu.memory_space<vmem>>, vector<1x1x8xf32>,
    %53 = arith.mulf %44, %44 : vector<256x8xf32>
    %cst_60 = arith.constant dense<0.000000e+00> : vector<8xf32>
    %54 = vector.multi_reduction <add>, %53, %cst_60 [0] : vector<256x8xf32> to vector<8xf32>
    %55 = vector.shape_cast %54 : vector<8xf32> to vector<1x8xf32>
    %c0_61 = arith.constant 0 : index
    %c0_62 = arith.constant 0 : index
    %c0_63 = arith.constant 0 : index
    %56 = vector.load %arg7[%c0_61, %c0_62, %c0_63] : memref<1x1x8xf32, #tpu.memory_space<vmem>>, vector<1x1x8xf32>
    %57 = vector.shape_cast %56 : vector<1x1x8xf32> to vector<1x8xf32>
    %58 = vector.shape_cast %55 : vector<1x8xf32> to vector<1x1x8xf32>
    tpu.vector_store %arg7[%c0_61, %c0_62, %c0_63], %58 {strides = array<i32>} : memref<1x1x8xf32, #tpu.memory_space<vmem>>, vector<1x1x8xf32>,
    return
  }
  func.func @transform_0(%arg0: i32) -> (i32, i32, i32) {
    %c0_i32 = arith.constant 0 : i32
    %c0_i32_0 = arith.constant 0 : i32
    %c0_i32_1 = arith.constant 0 : i32
    return %arg0, %c0_i32, %c0_i32_0 : i32, i32, i32
  }
  func.func @transform_1(%arg0: i32) -> (i32, i32) {
    %c0_i32 = arith.constant 0 : i32
    %c0_i32_0 = arith.constant 0 : i32
    %c0_i32_1 = arith.constant 0 : i32
    return %c0_i32, %c0_i32_0 : i32, i32
  }
  func.func @transform_2(%arg0: i32) -> (i32, i32) {
    %c0_i32 = arith.constant 0 : i32
    %c0_i32_0 = arith.constant 0 : i32
    %c0_i32_1 = arith.constant 0 : i32
    return %c0_i32, %c0_i32_0 : i32, i32
  }
  func.func @transform_3(%arg0: i32) -> (i32, i32) {
    %c0_i32 = arith.constant 0 : i32
    %c0_i32_0 = arith.constant 0 : i32
    %c0_i32_1 = arith.constant 0 : i32
    return %c0_i32, %c0_i32_0 : i32, i32
  }
  func.func @transform_4(%arg0: i32) -> (i32, i32, i32) {
    %c0_i32 = arith.constant 0 : i32
    %c0_i32_0 = arith.constant 0 : i32
    %c0_i32_1 = arith.constant 0 : i32
    return %arg0, %c0_i32, %c0_i32_0 : i32, i32, i32
  }
  func.func @transform_5(%arg0: i32) -> (i32, i32, i32) {
    %c0_i32 = arith.constant 0 : i32
    %c0_i32_0 = arith.constant 0 : i32
    %c0_i32_1 = arith.constant 0 : i32
    return %arg0, %c0_i32, %c0_i32_0 : i32, i32, i32
  }
  func.func @transform_6(%arg0: i32) -> (i32, i32, i32) {
    %c0_i32 = arith.constant 0 : i32
    %c0_i32_0 = arith.constant 0 : i32
    %c0_i32_1 = arith.constant 0 : i32
    return %arg0, %c0_i32, %c0_i32_0 : i32, i32, i32
  }
}

module attributes {stable_mosaic.version = 11 : i64} {
  func.func @residual_kernel(%arg0: i32, %arg1: memref<1x256x8xf32, #tpu.memory_space<vmem>>, %arg2: memref<1x16x16x4xf32, #tpu.memory_space<vmem>>, %arg3: memref<4x8xbf16, #tpu.memory_space<vmem>>, %arg4: memref<1x8xf32, #tpu.memory_space<vmem>>, %arg5: memref<1x8xf32, #tpu.memory_space<vmem>>, %arg6: memref<1x8xf32, #tpu.memory_space<vmem>>, %arg7: memref<1x16x16x8xf32, #tpu.memory_space<vmem>>) attributes {dimension_semantics = [#tpu.dimension_semantics<parallel>], iteration_bounds = array<i64: 2>, scalar_prefetch = 0 : i64, scratch_operands = 0 : i64, tpu.core_type = #tpu.core_type<tc>, window_params = [{transform_indices = @transform_0, window_bounds = array<i64: 1, 256, 8>}, {transform_indices = @transform_1, window_bounds = array<i64: 1, 16, 16, 4>}, {pipeline_mode = #tpu.pipeline_mode<synchronous>, transform_indices = @transform_2, window_bounds = array<i64: 4, 8>}, {pipeline_mode = #tpu.pipeline_mode<synchronous>, transform_indices = @transform_3, window_bounds = array<i64: 1, 8>}, {pipeline_mode = #tpu.pipeline_mode<synchronous>, transform_indices = @transform_4, window_bounds = array<i64: 1, 8>}, {pipeline_mode = #tpu.pipeline_mode<synchronous>, transform_indices = @transform_5, window_bounds = array<i64: 1, 8>}, {transform_indices = @transform_6, window_bounds = array<i64: 1, 16, 16, 8>}]} {
    %c0 = arith.constant 0 : index
    %c0_0 = arith.constant 0 : index
    %c0_1 = arith.constant 0 : index
    %0 = vector.load %arg1[%c0, %c0_0, %c0_1] : memref<1x256x8xf32, #tpu.memory_space<vmem>>, vector<1x256x8xf32>
    %1 = vector.shape_cast %0 : vector<1x256x8xf32> to vector<256x8xf32>
    %c0_2 = arith.constant 0 : index
    %c0_3 = arith.constant 0 : index
    %2 = vector.load %arg5[%c0_2, %c0_3] : memref<1x8xf32, #tpu.memory_space<vmem>>, vector<1x8xf32>
    %3 = vector.broadcast %2 : vector<1x8xf32> to vector<256x8xf32>
    %4 = arith.mulf %1, %3 : vector<256x8xf32>
    %c0_4 = arith.constant 0 : index
    %c0_5 = arith.constant 0 : index
    %5 = vector.load %arg6[%c0_4, %c0_5] : memref<1x8xf32, #tpu.memory_space<vmem>>, vector<1x8xf32>
    %6 = vector.broadcast %5 : vector<1x8xf32> to vector<256x8xf32>
    %7 = arith.addf %4, %6 : vector<256x8xf32>
    %c0_6 = arith.constant 0 : index
    %c0_7 = arith.constant 0 : index
    %c0_8 = arith.constant 0 : index
    %c0_9 = arith.constant 0 : index
    %8 = vector.load %arg2[%c0_6, %c0_7, %c0_8, %c0_9] : memref<1x16x16x4xf32, #tpu.memory_space<vmem>>, vector<1x16x16x4xf32>
    %9 = vector.shape_cast %8 : vector<1x16x16x4xf32> to vector<16x16x4xf32>
    %10 = vector.shape_cast %9 : vector<16x16x4xf32> to vector<256x4xf32>
    %11 = arith.truncf %10 : vector<256x4xf32> to vector<256x4xbf16>
    %c0_10 = arith.constant 0 : index
    %c0_11 = arith.constant 0 : index
    %12 = vector.load %arg3[%c0_10, %c0_11] : memref<4x8xbf16, #tpu.memory_space<vmem>>, vector<4x8xbf16>
    %cst = arith.constant dense<0.000000e+00> : vector<256x8xf32>
    %13 = tpu.matmul %11, %12, %cst {dimension_numbers = #tpu.dot_dimension_numbers<[1], [0], [0], [1], [0, 0, 1, 1], [], []>} : vector<256x4xbf16>, vector<4x8xbf16>, vector<256x8xf32> -> vector<256x8xf32>
    %c0_12 = arith.constant 0 : index
    %c0_13 = arith.constant 0 : index
    %14 = vector.load %arg4[%c0_12, %c0_13] : memref<1x8xf32, #tpu.memory_space<vmem>>, vector<1x8xf32>
    %15 = vector.broadcast %14 : vector<1x8xf32> to vector<256x8xf32>
    %16 = arith.addf %13, %15 : vector<256x8xf32>
    %17 = arith.addf %7, %16 : vector<256x8xf32>
    %cst_14 = arith.constant 0.000000e+00 : f32
    %18 = vector.broadcast %cst_14 : f32 to vector<256x8xf32>
    %19 = arith.maximumf %17, %18 : vector<256x8xf32>
    %20 = vector.shape_cast %19 : vector<256x8xf32> to vector<16x16x8xf32>
    %c0_15 = arith.constant 0 : index
    %c0_16 = arith.constant 0 : index
    %c0_17 = arith.constant 0 : index
    %c0_18 = arith.constant 0 : index
    %21 = vector.load %arg7[%c0_15, %c0_16, %c0_17, %c0_18] : memref<1x16x16x8xf32, #tpu.memory_space<vmem>>, vector<1x16x16x8xf32>
    %22 = vector.shape_cast %21 : vector<1x16x16x8xf32> to vector<16x16x8xf32>
    %23 = vector.shape_cast %20 : vector<16x16x8xf32> to vector<1x16x16x8xf32>
    tpu.vector_store %arg7[%c0_15, %c0_16, %c0_17, %c0_18], %23 {strides = array<i32>} : memref<1x16x16x8xf32, #tpu.memory_space<vmem>>, vector<1x16x16x8xf32>,
    return
  }
  func.func @transform_0(%arg0: i32) -> (i32, i32, i32) {
    %c0_i32 = arith.constant 0 : i32
    %c0_i32_0 = arith.constant 0 : i32
    %c0_i32_1 = arith.constant 0 : i32
    return %arg0, %c0_i32, %c0_i32_0 : i32, i32, i32
  }
  func.func @transform_1(%arg0: i32) -> (i32, i32, i32, i32) {
    %c0_i32 = arith.constant 0 : i32
    %c0_i32_0 = arith.constant 0 : i32
    %c0_i32_1 = arith.constant 0 : i32
    %c0_i32_2 = arith.constant 0 : i32
    return %arg0, %c0_i32, %c0_i32_0, %c0_i32_1 : i32, i32, i32, i32
  }
  func.func @transform_2(%arg0: i32) -> (i32, i32) {
    %c0_i32 = arith.constant 0 : i32
    %c0_i32_0 = arith.constant 0 : i32
    %c0_i32_1 = arith.constant 0 : i32
    return %c0_i32, %c0_i32_0 : i32, i32
  }
  func.func @transform_3(%arg0: i32) -> (i32, i32) {
    %c0_i32 = arith.constant 0 : i32
    %c0_i32_0 = arith.constant 0 : i32
    %c0_i32_1 = arith.constant 0 : i32
    return %c0_i32, %c0_i32_0 : i32, i32
  }
  func.func @transform_4(%arg0: i32) -> (i32, i32) {
    %c0_i32 = arith.constant 0 : i32
    %c0_i32_0 = arith.constant 0 : i32
    %c0_i32_1 = arith.constant 0 : i32
    return %c0_i32, %c0_i32_0 : i32, i32
  }
  func.func @transform_5(%arg0: i32) -> (i32, i32) {
    %c0_i32 = arith.constant 0 : i32
    %c0_i32_0 = arith.constant 0 : i32
    %c0_i32_1 = arith.constant 0 : i32
    return %c0_i32, %c0_i32_0 : i32, i32
  }
  func.func @transform_6(%arg0: i32) -> (i32, i32, i32, i32) {
    %c0_i32 = arith.constant 0 : i32
    %c0_i32_0 = arith.constant 0 : i32
    %c0_i32_1 = arith.constant 0 : i32
    %c0_i32_2 = arith.constant 0 : i32
    return %arg0, %c0_i32, %c0_i32_0, %c0_i32_1 : i32, i32, i32, i32
  }
}

</mosaic_0001>

<bundles_post_ra>
// kernel: basic_block.5
= control target key start
LH: loop header
LB: loop body
LE: loop exit
PB: predicated region body
PF: predicated region fallthrough
CT: control target
= control target key end

     0   :  { %s958_s21 = smov 0   ;;  %s1298_s0 = inlined_call_operand.vmem [shape: f32[2,256,8], index: 0, kind: input, shape index: {}]   ;;  %s1299_s1 = inlined_call_operand.vmem [shape: f32[2,16,16,4], index: 1, kind: input, shape index: {}]   ;;  %s1300_s2 = inlined_call_operand.vmem [shape: bf16[4,8], index: 2, kind: input, shape index: {}]   ;;  %s1301_s3 = inlined_call_operand.vmem [shape: f32[1,8], index: 3, kind: input, shape index: {}]   ;;  %s1302_s4 = inlined_call_operand.vmem [shape: f32[1,8], index: 4, kind: input, shape index: {}]   ;;  %s1303_s5 = inlined_call_operand.vmem [shape: f32[1,8], index: 5, kind: input, shape index: {}]   ;;  %s1304_s6 = inlined_call_operand.vmem [shape: f32[2,16,16,8], index: 6, kind: output, shape index: {}]  }
   0x1 LB: > { %s817_s22 = sadd.s32 4294967295, %s921_s21   ;;  %p821_p0 = scmp.ge.s32.totalorder %s921_s21, 1  ;;  %s921_s21 = sphi %s958_s21, %s16_s21  }
   0x2   : > { %p222_p1 = scmp.lt.s32.totalorder %s921_s21, 3 }
   0x4   : > { %p223_p2 = pnand %p821_p0, %p222_p1 }
   0x5   : > { %p257_p3 = scmp.lt.s32.totalorder (!%p223_p2), %s817_s22, 1 }
   0x6   : > { %226 = sbr.rel (%p223_p2) target bundleno = 249 (0xf9), region = 44 }
   0xb   : > { %v431_v0 = vld [vmem:[%s1300_s2] sm:$0x3]  ;;  %vm488_vm0 = vcmask 1041408   ;;  %s1306_s22 = smov (!%p257_p3, %s817_s22), 1  ;;  %vm439_vm1 = vcmask 31744   ;;  %vm717_vm2 = vcmask 64512  }
   0xc   : > { %905 = vmatprep.subr.msk.bf16.mxu0 %vm488_vm0, %v431_v0  ;;  %906 = vmatprep.subr.msk.bf16.mxu1 %vm488_vm0, %v431_v0  ;;  %v490_v1 = vsel %vm488_vm0, %v431_v0, 0  ;;  %s969_s25 = sshll.u32 %s1306_s22, 8  ;;  %v1035_v51 = vld [vmem:[%s1302_s4] ss:$0 sm:$0xff] }
   0xd   : > { %870 = vmatpush3.bf16.msra.mxu0 %v490_v1  ;;  %904 = vmatpush3.bf16.msra.mxu1 %v490_v1  ;;  %s975_s28 = scalar_lea.vmem %s1299_s1, %s969_s25  ;;  %s1029_s7 = scalar_lea.vmem %s1298_s0, %s969_s25  ;;  %v1046_v58 = vld [vmem:[%s1303_s5] ss:$0 sm:$0xff] }
   0xe   : > { %v383_v2 = vld [vmem:[%s975_s28] sm:$0xff]  ;;  %v384_v3 = vld [vmem:[%s975_s28 + $0x8] sm:$0xff]  ;;  %v385_v7 = vld [vmem:[%s975_s28 + $0x10] sm:$0xff]  ;;  %s1127_s16 = scalar_lea.vmem %s1304_s6, %s969_s25 }
   0xf   : > { %v399_v4 = vld [vmem:[%s975_s28 + $0x80] sm:$0xff]  ;;  %v415_v5 = vpack.c.bf16 %v384_v3, %v383_v2  ;;  %v400_v6 = vld [vmem:[%s975_s28 + $0x88] sm:$0xff]  ;;  %v386_v8 = vld [vmem:[%s975_s28 + $0x18] sm:$0xff] }
  0x10   : > { %v423_v9 = vpack.c.bf16 %v400_v6, %v399_v4  ;;  %v416_v10 = vpack.c.bf16 %v386_v8, %v385_v7  ;;  %v401_v11 = vld [vmem:[%s975_s28 + $0x90] sm:$0xff]  ;;  %v402_v12 = vld [vmem:[%s975_s28 + $0x98] sm:$0xff]  ;;  %v387_v13 = vld [vmem:[%s975_s28 + $0x20] sm:$0xff] }
  0x11   : > { %871 = vmatprep.mubr.msk.bf16.mxu0 %vm439_vm1, %v415_v5  ;;  %v424_v14 = vpack.c.bf16 %v402_v12, %v401_v11  ;;  %v388_v15 = vld [vmem:[%s975_s28 + $0x28] sm:$0xff]  ;;  %v403_v16 = vld [vmem:[%s975_s28 + $0xa0] sm:$0xff]  ;;  %v389_v20 = vld [vmem:[%s975_s28 + $0x30] sm:$0xff] }
  0x12   : > { %v404_v17 = vld [vmem:[%s975_s28 + $0xa8] sm:$0xff]  ;;  %887 = vmatprep.mubr.msk.bf16.mxu1 %vm439_vm1, %v423_v9  ;;  %872 = vmatmul.mubr.msk.bf16.vlgmr.msra.gmra.mxu0 %vm439_vm1, %v416_v10  ;;  %v417_v18 = vpack.c.bf16 %v388_v15, %v387_v13  ;;  %v390_v21 = vld [vmem:[%s975_s28 + $0x38] sm:$0xff]  ;;  %v405_v22 = vld [vmem:[%s975_s28 + $0xb0] sm:$0xff] }
  0x13   : > { %v425_v19 = vpack.c.bf16 %v404_v17, %v403_v16  ;;  %888 = vmatmul.mubr.msk.bf16.vlgmr.msra.gmra.mxu1 %vm439_vm1, %v424_v14  ;;  %v406_v23 = vld [vmem:[%s975_s28 + $0xb8] sm:$0xff]  ;;  %v391_v24 = vld [vmem:[%s975_s28 + $0x40] sm:$0xff]  ;;  %v392_v25 = vld [vmem:[%s975_s28 + $0x48] sm:$0xff]  ;;  %v418_v28 = vpack.c.bf16 %v390_v21, %v389_v20 }
  0x14   : > { %875 = vmatprep.mubr.msk.bf16.mxu0 %vm439_vm1, %v417_v18  ;;  %v407_v26 = vld [vmem:[%s975_s28 + $0xc0] sm:$0xff]  ;;  %v408_v27 = vld [vmem:[%s975_s28 + $0xc8] sm:$0xff]  ;;  %v426_v29 = vpack.c.bf16 %v406_v23, %v405_v22  ;;  %v419_v30 = vpack.c.bf16 %v392_v25, %v391_v24  ;;  %v393_v32 = vld [vmem:[%s975_s28 + $0x50] sm:$0xff] }
  0x15   : > { %891 = vmatprep.mubr.msk.bf16.mxu1 %vm439_vm1, %v425_v19  ;;  %v427_v31 = vpack.c.bf16 %v408_v27, %v407_v26  ;;  %v394_v33 = vld [vmem:[%s975_s28 + $0x58] sm:$0xff]  ;;  %v409_v34 = vld [vmem:[%s975_s28 + $0xd0] sm:$0xff]  ;;  %v395_v36 = vld [vmem:[%s975_s28 + $0x60] sm:$0xff] }
  0x16   : > { %v410_v35 = vld [vmem:[%s975_s28 + $0xd8] sm:$0xff]  ;;  %v396_v37 = vld [vmem:[%s975_s28 + $0x68] sm:$0xff]  ;;  %v411_v38 = vld [vmem:[%s975_s28 + $0xe0] sm:$0xff]  ;;  %v420_v40 = vpack.c.bf16 %v394_v33, %v393_v32 }
  0x17   : > { %v412_v39 = vld [vmem:[%s975_s28 + $0xe8] sm:$0xff]  ;;  %v428_v41 = vpack.c.bf16 %v410_v35, %v409_v34  ;;  %v421_v42 = vpack.c.bf16 %v396_v37, %v395_v36  ;;  %v397_v44 = vld [vmem:[%s975_s28 + $0x70] sm:$0xff]  ;;  %v398_v45 = vld [vmem:[%s975_s28 + $0x78] sm:$0xff] }
  0x18   : > { %v429_v43 = vpack.c.bf16 %v412_v39, %v411_v38  ;;  %v413_v46 = vld [vmem:[%s975_s28 + $0xf0] sm:$0xff]  ;;  %v414_v47 = vld [vmem:[%s975_s28 + $0xf8] sm:$0xff]  ;;  %v422_v48 = vpack.c.bf16 %v398_v45, %v397_v44  ;;  %v273_v53 = vld [vmem:[%s1029_s7] sm:$0xff] }
  0x19   : > { %v430_v49 = vpack.c.bf16 %v414_v47, %v413_v46  ;;  %v275_v50 = vld [vmem:[%s1029_s7 + $0x10] sm:$0xff]  ;;  %v289_v54 = vld [vmem:[%s1029_s7 + $0x80] sm:$0xff]  ;;  %v276_v56 = vld [vmem:[%s1029_s7 + $0x18] sm:$0xff]  ;;  %v312_v60 = vmul.f32 %v1035_v51, %v273_v53 }
  0x1a   : > { %876 = vmatmul.mubr.msk.bf16.gmra.mxu0 %vm439_vm1, %v418_v28  ;;  %v291_v52 = vld [vmem:[%s1029_s7 + $0x90] sm:$0xff]  ;;  %v314_v55 = vmul.f32 %v1035_v51, %v275_v50  ;;  %v292_v57 = vld [vmem:[%s1029_s7 + $0x98] sm:$0xff]  ;;  %v274_v61 = vld [vmem:[%s1029_s7 + $0x8] sm:$0xff]  ;;  %v328_v63 = vmul.f32 %v1035_v51, %v289_v54  ;;  %v315_v2 = vmul.f32 %v1035_v51, %v276_v56 }
  0x1b   : > { %892 = vmatmul.mubr.msk.bf16.gmra.mxu1 %vm439_vm1, %v426_v29  ;;  %879 = vmatprep.mubr.msk.bf16.mxu0 %vm439_vm1, %v419_v30  ;;  %v330_v59 = vmul.f32 %v1035_v51, %v291_v52  ;;  %v290_v62 = vld [vmem:[%s1029_s7 + $0x88] sm:$0xff]  ;;  %v279_v0 = vld [vmem:[%s1029_s7 + $0x30] sm:$0xff]  ;;  %v331_v3 = vmul.f32 %v1035_v51, %v292_v57  ;;  %v277_v4 = vld [vmem:[%s1029_s7 + $0x20] sm:$0xff]  ;;  %v313_v7 = vmul.f32 %v1035_v51, %v274_v61 }
  0x1c   : > { %895 = vmatprep.mubr.msk.bf16.mxu1 %vm439_vm1, %v427_v31  ;;  %v295_v1 = vld [vmem:[%s1029_s7 + $0xb0] sm:$0xff]  ;;  %v293_v5 = vld [vmem:[%s1029_s7 + $0xa0] sm:$0xff]  ;;  %v353_v6 = vadd.f32 %v1046_v58, %v314_v55  ;;  %v329_v8 = vmul.f32 %v1035_v51, %v290_v62  ;;  %v280_v9 = vld [vmem:[%s1029_s7 + $0x38] sm:$0xff]  ;;  %v351_v12 = vadd.f32 %v1046_v58, %v312_v60  ;;  %v318_v13 = vmul.f32 %v1035_v51, %v279_v0 }
  0x1d   : > { %v296_v10 = vld [vmem:[%s1029_s7 + $0xb8] sm:$0xff]  ;;  %v369_v11 = vadd.f32 %v1046_v58, %v330_v59  ;;  %v334_v14 = vmul.f32 %v1035_v51, %v295_v1  ;;  %v278_v15 = vld [vmem:[%s1029_s7 + $0x28] sm:$0xff]  ;;  %v367_v17 = vadd.f32 %v1046_v58, %v328_v63  ;;  %v316_v18 = vmul.f32 %v1035_v51, %v277_v4  ;;  %v283_v20 = vld [vmem:[%s1029_s7 + $0x50] sm:$0xff] }
  0x1e   : > { %v294_v16 = vld [vmem:[%s1029_s7 + $0xa8] sm:$0xff]  ;;  %v332_v19 = vmul.f32 %v1035_v51, %v293_v5  ;;  %v299_v21 = vld [vmem:[%s1029_s7 + $0xd0] sm:$0xff]  ;;  %v1078_v22 = vld [vmem:[%s1301_s3] ss:$0 sm:$0xff]  ;;  %v354_v23 = vadd.f32 %v1046_v58, %v315_v2  ;;  %v370_v24 = vadd.f32 %v1046_v58, %v331_v3  ;;  %v319_v25 = vmul.f32 %v1035_v51, %v280_v9 }
  0x1f   : > { %v335_v26 = vmul.f32 %v1035_v51, %v296_v10  ;;  %v281_v27 = vld [vmem:[%s1029_s7 + $0x40] sm:$0xff]  ;;  %v352_v28 = vadd.f32 %v1046_v58, %v313_v7  ;;  %v1087_v29 = vadd.f32 %v1046_v58, %v329_v8  ;;  %v317_v30 = vmul.f32 %v1035_v51, %v278_v15  ;;  %v284_v60 = vld [vmem:[%s1029_s7 + $0x58] sm:$0xff]  ;;  %v282_v8 = vld [vmem:[%s1029_s7 + $0x48] sm:$0xff] }
  0x20   : > { %v333_v31 = vmul.f32 %v1035_v51, %v294_v16  ;;  %v297_v32 = vld [vmem:[%s1029_s7 + $0xc0] sm:$0xff]  ;;  %v1093_v34 = vadd.f32 %v1046_v58, %v318_v13  ;;  %v1096_v35 = vadd.f32 %v1046_v58, %v334_v14  ;;  %v322_v36 = vmul.f32 %v1035_v51, %v283_v20  ;;  %v300_v2 = vld [vmem:[%s1029_s7 + $0xd8] sm:$0xff]  ;;  %v298_v14 = vld [vmem:[%s1029_s7 + $0xc8] sm:$0xff] }
  0x21   : > { %v338_v37 = vmul.f32 %v1035_v51, %v299_v21  ;;  %v1110_v45 = vadd.f32 %v1046_v58, %v319_v25  ;;  %v1113_v46 = vadd.f32 %v1046_v58, %v335_v26  ;;  %v336_v47 = vmul.f32 %v1035_v51, %v297_v32 }
  0x22   : > { %880 = vmatmul.mubr.msk.bf16.gmra.mxu0 %vm439_vm1, %v420_v40  ;;  %v1102_v40 = vadd.f32 %v1046_v58, %v316_v18  ;;  %v1118_v52 = vadd.f32 %v1046_v58, %v317_v30  ;;  %v1121_v53 = vadd.f32 %v1046_v58, %v333_v31  ;;  %v1131_v57 = vadd.f32 %v1046_v58, %v322_v36 }
  0x23   : > { %896 = vmatmul.mubr.msk.bf16.gmra.mxu1 %vm439_vm1, %v428_v41  ;;  %883 = vmatprep.mubr.msk.bf16.mxu0 %vm439_vm1, %v421_v42  ;;  %v1105_v41 = vadd.f32 %v1046_v58, %v332_v19  ;;  %v320_v42 = vmul.f32 %v1035_v51, %v281_v27  ;;  %v1134_v59 = vadd.f32 %v1046_v58, %v338_v37 }
  0x24   : > { %899 = vmatprep.mubr.msk.bf16.mxu1 %vm439_vm1, %v429_v43  ;;  %v1144_v7 = vadd.f32 %v1046_v58, %v336_v47  ;;  %v323_v13 = vmul.f32 %v1035_v51, %v284_v60  ;;  %v339_v19 = vmul.f32 %v1035_v51, %v300_v2  ;;  %v321_v26 = vmul.f32 %v1035_v51, %v282_v8 }
  0x25   : > { %v1139_v1 = vadd.f32 %v1046_v58, %v320_v42  ;;  %v337_v32 = vmul.f32 %v1035_v51, %v298_v14 }
  0x2a   : > { %884 = vmatmul.mubr.msk.bf16.gmra.mxu0 %vm439_vm1, %v422_v48 }
  0x2b   : > { %900 = vmatmul.mubr.msk.bf16.gmra.mxu1 %vm439_vm1, %v430_v49 }
  0xd2   : > { %v873_v33 = vpop.f32.mrf.mxu0 }
  0xd3   : > { %v535_v38 = vadd.f32 %v873_v33, %v1078_v22  ;;  %v889_v39 = vpop.f32.mrf.mxu1 }
  0xd4   : > { %v599_v43 = vadd.f32 %v889_v39, %v1078_v22  ;;  %v526_v44 = vpop.f32.mrf.mxu0 }
  0xd5   : > { %v655_v48 = vadd.f32 %v535_v38, %v353_v6  ;;  %v527_v49 = vadd.f32 %v1078_v22, %v526_v44  ;;  %v590_v50 = vpop.f32.mrf.mxu1  ;;  %v1170_v38 = vadd.f32 %v1046_v58, %v323_v13  ;;  %v1177_v44 = vadd.f32 %v1046_v58, %v339_v19 }
  0xd6   : > { %v671_v54 = vadd.f32 %v599_v43, %v369_v11  ;;  %v591_v55 = vadd.f32 %v1078_v22, %v590_v50  ;;  %v874_v56 = vpop.f32.mrf.mxu0 }
  0xd7   : > { %v687_v61 = vmax.f32 %v655_v48, 0.0  ;;  %v653_v62 = vadd.f32 %v527_v49, %v351_v12  ;;  %v538_v63 = vadd.f32 %v874_v56, %v1078_v22  ;;  %v890_v0 = vpop.f32.mrf.mxu1 }
  0xd8   : > { %v703_v3 = vmax.f32 %v671_v54, 0.0  ;;  %v669_v4 = vadd.f32 %v591_v55, %v367_v17  ;;  %v602_v5 = vadd.f32 %v890_v0, %v1078_v22  ;;  %v529_v6 = vpop.f32.mrf.mxu0  ;;  %v303_v54 = vld [vmem:[%s1029_s7 + $0xf0] sm:$0xff] }
  0xd9   : > { %720 = vst.msk [vmem:[%s1127_s16 + $0x10] sm:$0xff] %vm717_vm2, %v687_v61  ;;  %v685_v9 = vmax.f32 %v653_v62, 0.0  ;;  %v656_v10 = vadd.f32 %v538_v63, %v354_v23  ;;  %v530_v11 = vadd.f32 %v1078_v22, %v529_v6  ;;  %v593_v12 = vpop.f32.mrf.mxu1  ;;  %v285_v62 = vld [vmem:[%s1029_s7 + $0x60] sm:$0xff] }
  0xda   : > { %736 = vst.msk [vmem:[%s1127_s16 + $0x90] sm:$0xff] %vm717_vm2, %v703_v3  ;;  %v701_v15 = vmax.f32 %v669_v4, 0.0  ;;  %v672_v16 = vadd.f32 %v602_v5, %v370_v24  ;;  %v594_v17 = vadd.f32 %v1078_v22, %v593_v12  ;;  %v877_v18 = vpop.f32.mrf.mxu0  ;;  %v324_v14 = vmul.f32 %v1035_v51, %v285_v62 }
  0xdb   : > { %718 = vst.msk [vmem:[%s1127_s16] sm:$0xff] %vm717_vm2, %v685_v9  ;;  %v688_v20 = vmax.f32 %v656_v10, 0.0  ;;  %v654_v21 = vadd.f32 %v530_v11, %v352_v28  ;;  %v551_v23 = vadd.f32 %v877_v18, %v1078_v22  ;;  %v893_v25 = vpop.f32.mrf.mxu1  ;;  %v342_v10 = vmul.f32 %v1035_v51, %v303_v54 }
  0xdc   : > { %734 = vst.msk [vmem:[%s1127_s16 + $0x80] sm:$0xff] %vm717_vm2, %v701_v15  ;;  %v704_v27 = vmax.f32 %v672_v16, 0.0  ;;  %v670_v24 = vadd.f32 %v594_v17, %v1087_v29  ;;  %v615_v30 = vadd.f32 %v893_v25, %v1078_v22  ;;  %v542_v31 = vpop.f32.mrf.mxu0 }
  0xdd   : > { %721 = vst.msk [vmem:[%s1127_s16 + $0x18] sm:$0xff] %vm717_vm2, %v688_v20  ;;  %v686_v28 = vmax.f32 %v654_v21, 0.0  ;;  %v659_v33 = vadd.f32 %v551_v23, %v1093_v34  ;;  %v543_v36 = vadd.f32 %v1078_v22, %v542_v31  ;;  %v606_v37 = vpop.f32.mrf.mxu1  ;;  %v287_v34 = vld [vmem:[%s1029_s7 + $0x70] sm:$0xff] }
  0xde   : > { %737 = vst.msk [vmem:[%s1127_s16 + $0x98] sm:$0xff] %vm717_vm2, %v704_v27  ;;  %v702_v29 = vmax.f32 %v670_v24, 0.0  ;;  %v675_v39 = vadd.f32 %v615_v30, %v1096_v35  ;;  %v607_v42 = vadd.f32 %v1078_v22, %v606_v37  ;;  %v878_v43 = vpop.f32.mrf.mxu0  ;;  %v1185_v35 = vadd.f32 %v1046_v58, %v321_v26 }
  0xdf   : > { %719 = vst.msk [vmem:[%s1127_s16 + $0x8] sm:$0xff] %vm717_vm2, %v686_v28  ;;  %v691_v47 = vmax.f32 %v659_v33, 0.0  ;;  %v657_v48 = vadd.f32 %v543_v36, %v1102_v40  ;;  %v554_v49 = vadd.f32 %v878_v43, %v1078_v22  ;;  %v894_v50 = vpop.f32.mrf.mxu1  ;;  %v1193_v40 = vadd.f32 %v1046_v58, %v337_v32 }
  0xe0   : > { %735 = vst.msk [vmem:[%s1127_s16 + $0x88] sm:$0xff] %vm717_vm2, %v702_v29  ;;  %v707_v55 = vmax.f32 %v675_v39, 0.0  ;;  %v673_v56 = vadd.f32 %v607_v42, %v1105_v41  ;;  %v618_v60 = vadd.f32 %v894_v50, %v1078_v22  ;;  %v545_v61 = vpop.f32.mrf.mxu0  ;;  %v326_v4 = vmul.f32 %v1035_v51, %v287_v34  ;;  %v301_v41 = vld [vmem:[%s1029_s7 + $0xe0] sm:$0xff]  ;;  %v302_v50 = vld [vmem:[%s1029_s7 + $0xe8] sm:$0xff] }
  0xe1   : > { %724 = vst.msk [vmem:[%s1127_s16 + $0x30] sm:$0xff] %vm717_vm2, %v691_v47  ;;  %v689_v63 = vmax.f32 %v657_v48, 0.0  ;;  %v660_v0 = vadd.f32 %v554_v49, %v1110_v45  ;;  %v546_v2 = vadd.f32 %v1078_v22, %v545_v61  ;;  %v609_v3 = vpop.f32.mrf.mxu1  ;;  %v340_v18 = vmul.f32 %v1035_v51, %v301_v41 }
  0xe2   : > { %740 = vst.msk [vmem:[%s1127_s16 + $0xb0] sm:$0xff] %vm717_vm2, %v707_v55  ;;  %v705_v5 = vmax.f32 %v673_v56, 0.0  ;;  %v676_v6 = vadd.f32 %v618_v60, %v1113_v46  ;;  %v610_v8 = vadd.f32 %v1078_v22, %v609_v3  ;;  %v881_v9 = vpop.f32.mrf.mxu0  ;;  %v365_v23 = vadd.f32 %v1046_v58, %v326_v4 }
  0xe3   : > { %722 = vst.msk [vmem:[%s1127_s16 + $0x20] sm:$0xff] %vm717_vm2, %v689_v63  ;;  %v692_v45 = vmax.f32 %v660_v0, 0.0  ;;  %v658_v11 = vadd.f32 %v546_v2, %v1118_v52  ;;  %v567_v12 = vadd.f32 %v881_v9, %v1078_v22  ;;  %v897_v13 = vpop.f32.mrf.mxu1  ;;  %v381_v24 = vadd.f32 %v1046_v58, %v342_v10 }
  0xe4   : > { %738 = vst.msk [vmem:[%s1127_s16 + $0xa0] sm:$0xff] %vm717_vm2, %v705_v5  ;;  %v708_v46 = vmax.f32 %v676_v6, 0.0  ;;  %v674_v15 = vadd.f32 %v610_v8, %v1121_v53  ;;  %v631_v16 = vadd.f32 %v897_v13, %v1078_v22  ;;  %v558_v17 = vpop.f32.mrf.mxu0  ;;  %v363_v33 = vadd.f32 %v1046_v58, %v324_v14 }
  0xe5   : > { %725 = vst.msk [vmem:[%s1127_s16 + $0x38] sm:$0xff] %vm717_vm2, %v692_v45  ;;  %v690_v52 = vmax.f32 %v658_v11, 0.0  ;;  %v663_v19 = vadd.f32 %v567_v12, %v1131_v57  ;;  %v559_v20 = vadd.f32 %v1078_v22, %v558_v17  ;;  %v622_v21 = vpop.f32.mrf.mxu1  ;;  %v288_v57 = vld [vmem:[%s1029_s7 + $0x78] sm:$0xff]  ;;  %v379_v42 = vadd.f32 %v1046_v58, %v340_v18 }
  0xe6   : > { %741 = vst.msk [vmem:[%s1127_s16 + $0xb8] sm:$0xff] %vm717_vm2, %v708_v46  ;;  %v706_v53 = vmax.f32 %v674_v15, 0.0  ;;  %v679_v25 = vadd.f32 %v631_v16, %v1134_v59  ;;  %v623_v26 = vadd.f32 %v1078_v22, %v622_v21  ;;  %v882_v27 = vpop.f32.mrf.mxu0  ;;  %v304_v59 = vld [vmem:[%s1029_s7 + $0xf8] sm:$0xff]  ;;  %v327_v49 = vmul.f32 %v1035_v51, %v288_v57 }
  0xe7   : > { %723 = vst.msk [vmem:[%s1127_s16 + $0x28] sm:$0xff] %vm717_vm2, %v690_v52  ;;  %v695_v30 = vmax.f32 %v663_v19, 0.0  ;;  %v661_v31 = vadd.f32 %v559_v20, %v1139_v1  ;;  %v570_v32 = vadd.f32 %v882_v27, %v1078_v22  ;;  %v898_v28 = vpop.f32.mrf.mxu1  ;;  %v286_v1 = vld [vmem:[%s1029_s7 + $0x68] sm:$0xff]  ;;  %v343_v60 = vmul.f32 %v1035_v51, %v304_v59 }
  0xe8   : > { %739 = vst.msk [vmem:[%s1127_s16 + $0xa8] sm:$0xff] %vm717_vm2, %v706_v53  ;;  %v711_v36 = vmax.f32 %v679_v25, 0.0  ;;  %v677_v37 = vadd.f32 %v623_v26, %v1144_v7  ;;  %v634_v29 = vadd.f32 %v898_v28, %v1078_v22  ;;  %v561_v39 = vpop.f32.mrf.mxu0  ;;  %v325_v0 = vmul.f32 %v1035_v51, %v286_v1 }
  0xe9   : > { %728 = vst.msk [vmem:[%s1127_s16 + $0x50] sm:$0xff] %vm717_vm2, %v695_v30  ;;  %v693_v43 = vmax.f32 %v661_v31, 0.0  ;;  %v664_v34 = vadd.f32 %v570_v32, %v1170_v38  ;;  %v562_v47 = vadd.f32 %v1078_v22, %v561_v39  ;;  %v625_v48 = vpop.f32.mrf.mxu1  ;;  %v341_v41 = vmul.f32 %v1035_v51, %v302_v50 }
  0xea   : > { %744 = vst.msk [vmem:[%s1127_s16 + $0xd0] sm:$0xff] %vm717_vm2, %v711_v36  ;;  %v709_v7 = vmax.f32 %v677_v37, 0.0  ;;  %v680_v54 = vadd.f32 %v634_v29, %v1177_v44  ;;  %v626_v55 = vadd.f32 %v1078_v22, %v625_v48  ;;  %v885_v56 = vpop.f32.mrf.mxu0  ;;  %v366_v9 = vadd.f32 %v1046_v58, %v327_v49 }
  0xeb   : > { %726 = vst.msk [vmem:[%s1127_s16 + $0x40] sm:$0xff] %vm717_vm2, %v693_v43  ;;  %v696_v38 = vmax.f32 %v664_v34, 0.0  ;;  %v662_v61 = vadd.f32 %v562_v47, %v1185_v35  ;;  %v583_v62 = vadd.f32 %v885_v56, %v1078_v22  ;;  %v901_v63 = vpop.f32.mrf.mxu1  ;;  %v382_v51 = vadd.f32 %v1046_v58, %v343_v60 }
  0xec   : > { %742 = vst.msk [vmem:[%s1127_s16 + $0xc0] sm:$0xff] %vm717_vm2, %v709_v7  ;;  %v712_v44 = vmax.f32 %v680_v54, 0.0  ;;  %v678_v2 = vadd.f32 %v626_v55, %v1193_v40  ;;  %v647_v3 = vadd.f32 %v901_v63, %v1078_v22  ;;  %v574_v4 = vpop.f32.mrf.mxu0  ;;  %v364_v15 = vadd.f32 %v1046_v58, %v325_v0 }
  0xed   : > { %729 = vst.msk [vmem:[%s1127_s16 + $0x58] sm:$0xff] %vm717_vm2, %v696_v38  ;;  %v694_v35 = vmax.f32 %v662_v61, 0.0  ;;  %v667_v5 = vadd.f32 %v583_v62, %v365_v23  ;;  %v575_v6 = vadd.f32 %v1078_v22, %v574_v4  ;;  %v638_v8 = vpop.f32.mrf.mxu1  ;;  %v380_v19 = vadd.f32 %v1046_v58, %v341_v41 }
  0xee   : > { %745 = vst.msk [vmem:[%s1127_s16 + $0xd8] sm:$0xff] %vm717_vm2, %v712_v44  ;;  %v710_v10 = vmax.f32 %v678_v2, 0.0  ;;  %v683_v40 = vadd.f32 %v647_v3, %v381_v24  ;;  %v639_v45 = vadd.f32 %v1078_v22, %v638_v8  ;;  %v886_v11 = vpop.f32.mrf.mxu0 }
  0xef   : > { %727 = vst.msk [vmem:[%s1127_s16 + $0x48] sm:$0xff] %vm717_vm2, %v694_v35  ;;  %v699_v12 = vmax.f32 %v667_v5, 0.0  ;;  %v665_v13 = vadd.f32 %v575_v6, %v363_v33  ;;  %v586_v14 = vadd.f32 %v886_v11, %v1078_v22  ;;  %v902_v46 = vpop.f32.mrf.mxu1 }
  0xf0   : > { %743 = vst.msk [vmem:[%s1127_s16 + $0xc8] sm:$0xff] %vm717_vm2, %v710_v10  ;;  %v715_v16 = vmax.f32 %v683_v40, 0.0  ;;  %v681_v17 = vadd.f32 %v639_v45, %v379_v42  ;;  %v650_v18 = vadd.f32 %v902_v46, %v1078_v22  ;;  %v577_v52 = vpop.f32.mrf.mxu0 }
  0xf1   : > { %732 = vst.msk [vmem:[%s1127_s16 + $0x70] sm:$0xff] %vm717_vm2, %v699_v12  ;;  %v697_v20 = vmax.f32 %v665_v13, 0.0  ;;  %v668_v21 = vadd.f32 %v586_v14, %v366_v9  ;;  %v578_v23 = vadd.f32 %v1078_v22, %v577_v52  ;;  %v641_v53 = vpop.f32.mrf.mxu1 }
  0xf2   : > { %748 = vst.msk [vmem:[%s1127_s16 + $0xf0] sm:$0xff] %vm717_vm2, %v715_v16  ;;  %v713_v25 = vmax.f32 %v681_v17, 0.0  ;;  %v684_v26 = vadd.f32 %v650_v18, %v382_v51  ;;  %v642_v27 = vadd.f32 %v1078_v22, %v641_v53 }
  0xf3   : > { %730 = vst.msk [vmem:[%s1127_s16 + $0x60] sm:$0xff] %vm717_vm2, %v697_v20  ;;  %v700_v58 = vmax.f32 %v668_v21, 0.0  ;;  %v666_v24 = vadd.f32 %v578_v23, %v364_v15 }
  0xf4   : > { %746 = vst.msk [vmem:[%s1127_s16 + $0xe0] sm:$0xff] %vm717_vm2, %v713_v25  ;;  %v716_v57 = vmax.f32 %v684_v26, 0.0  ;;  %v682_v30 = vadd.f32 %v642_v27, %v380_v19 }
  0xf5   : > { %733 = vst.msk [vmem:[%s1127_s16 + $0x78] sm:$0xff] %vm717_vm2, %v700_v58  ;;  %v698_v31 = vmax.f32 %v666_v24, 0.0 }
  0xf6   : > { %749 = vst.msk [vmem:[%s1127_s16 + $0xf8] sm:$0xff] %vm717_vm2, %v716_v57  ;;  %v714_v32 = vmax.f32 %v682_v30, 0.0 }
  0xf7   : > { %731 = vst.msk [vmem:[%s1127_s16 + $0x68] sm:$0xff] %vm717_vm2, %v698_v31 }
  0xf8   : > { %747 = vst.msk [vmem:[%s1127_s16 + $0xe8] sm:$0xff] %vm717_vm2, %v714_v32 }
  0xf9 PF: > { %s16_s21 = sadd.s32 1, %s921_s21  }
  0xfa   : > { %p13_p4 = scmp.ge.s32.totalorder %s16_s21, 4  }
  0xfc   :  { %15 = sbr.rel (!%p13_p4) target bundleno = 1 (0x1), region = 77 }

// kernel: basic_block.3
= control target key start
LH: loop header
LB: loop body
LE: loop exit
PB: predicated region body
PF: predicated region fallthrough
CT: control target
= control target key end

     0   :  { %s2698_s15 = smov 0   ;;  %s3819_s0 = inlined_call_operand.vmem [shape: f32[2,16,16,4], index: 0, kind: input, shape index: {}]   ;;  %s3820_s1 = inlined_call_operand.vmem [shape: bf16[36,8], index: 1, kind: input, shape index: {}]   ;;  %s3821_s2 = inlined_call_operand.vmem [shape: f32[2,256,8], index: 2, kind: output, shape index: {0}]   ;;  %s3822_s3 = inlined_call_operand.vmem [shape: f32[2,1,8], index: 3, kind: output, shape index: {1}]   ;;  %s3823_s4 = inlined_call_operand.vmem [shape: f32[2,1,8], index: 4, kind: output, shape index: {2}]  }
   0x1 LB: > { %s2539_s16 = sadd.s32 4294967295, %s2662_s15   ;;  %p2543_p0 = scmp.ge.s32.totalorder %s2662_s15, 1  ;;  %s2662_s15 = sphi %s2698_s15, %s15_s15  }
   0x2   : > { %p167_p1 = scmp.lt.s32.totalorder %s2662_s15, 3 }
   0x4   : > { %p168_p2 = pnand %p2543_p0, %p167_p1 }
   0x5   : > { %p2708_p3 = scmp.lt.s32.totalorder (!%p168_p2), %s2539_s16, 1  ;;  %s2665_s22 = smov (!%p168_p2), 4  }
   0x6   : > { %171 = sbr.rel (%p168_p2) target bundleno = 901 (0x385), region = 28  ;;  %s2666_s23 = smov (!%p168_p2), 8  }
   0x7   : > { %s2667_s24 = smov (!%p168_p2), 12   ;;  %s2668_s25 = smov (!%p168_p2), 16  }
   0x8   : > { %s2669_s26 = smov (!%p168_p2), 20   ;;  %s2670_s27 = smov (!%p168_p2), 24  }
   0x9   : > { %s2671_s28 = smov (!%p168_p2), 28   ;;  %s2672_s7 = smov (!%p168_p2), 32  }
   0xb   : > { %vm248_vm0 = vcmask 31744   ;;  %vm251_vm1 = vcmask 25600   ;;  %v2664_v0 = vmov 0.0   ;;  %s3826_s16 = smov (!%p2708_p3, %s2539_s16), 1  ;;  %vm561_vm2 = vcmask 64544  }
   0xc   : > { %249 = vst.msk [vmem:[#allocation2] sm:$0xff] %vm248_vm0, %v2664_v0  ;;  %250 = vst.msk [vmem:[#allocation2 + $0x8] sm:$0xff] %vm248_vm0, %v2664_v0  ;;  %s2569_s18 = sshll.u32 %s3826_s16, 8  ;;  %vm754_vm3 = vcmask 97344   ;;  %vm2063_vm4 = vcmask 1041408   ;;  %vm947_vm5 = vcmask 130144   ;;  %s211_s17 = scalar_lea.vmem %s3822_s3, %s3826_s16 }
   0xd   : > { %253 = vst.msk [vmem:[#allocation2 + $0x18] sm:$0xff] %vm248_vm0, %v2664_v0  ;;  %254 = vst.msk [vmem:[#allocation2 + $0x20] sm:$0xff] %vm248_vm0, %v2664_v0  ;;  %s2778_s21 = scalar_lea.vmem %s3819_s0, %s2569_s18  ;;  %vm1140_vm6 = vcmask 162944   ;;  %vm1333_vm7 = vcmask 195744   ;;  %vm1527_vm8 = vcmask 228544   ;;  %vm1720_vm9 = vcmask 261344   ;;  %s3619_s12 = scalar_lea.vmem %s3821_s2, %s2569_s18 }
   0xe   : > { %256 = vst.msk [vmem:[#allocation2 + $0x30] sm:$0xff] %vm248_vm0, %v2664_v0  ;;  %257 = vst.msk [vmem:[#allocation2 + $0x38] sm:$0xff] %vm248_vm0, %v2664_v0  ;;  %v216_v1 = vld [vmem:[%s2778_s21] sm:$0xff]  ;;  %v217_v2 = vld [vmem:[%s2778_s21 + $0x8] sm:$0xff]  ;;  %vm1913_vm10 = vcmask 294144   ;;  %vm2014_vm11 = vcmask 293888   ;;  %s214_s20 = scalar_lea.vmem %s3823_s4, %s3826_s16 }
   0xf   : > { %259 = vst.msk [vmem:[#allocation2 + $0x48] sm:$0xff] %vm248_vm0, %v2664_v0  ;;  %260 = vst.msk [vmem:[#allocation2 + $0x50] sm:$0xff] %vm248_vm0, %v2664_v0  ;;  %v218_v3 = vld [vmem:[%s2778_s21 + $0x10] sm:$0xff]  ;;  %v219_v4 = vld [vmem:[%s2778_s21 + $0x18] sm:$0xff]  ;;  %vm2228_vm12 = vcmask 64512   ;;  %vm2330_vm13 = vcmask 57344  }
  0x10   : > { %262 = vst.msk [vmem:[#allocation2 + $0x60] sm:$0xff] %vm248_vm0, %v2664_v0  ;;  %263 = vst.msk [vmem:[#allocation2 + $0x68] sm:$0xff] %vm248_vm0, %v2664_v0  ;;  %v220_v5 = vld [vmem:[%s2778_s21 + $0x20] sm:$0xff]  ;;  %v221_v6 = vld [vmem:[%s2778_s21 + $0x28] sm:$0xff] }
  0x11   : > { %265 = vst.msk [vmem:[#allocation2 + $0x78] sm:$0xff] %vm248_vm0, %v2664_v0  ;;  %266 = vst.msk [vmem:[#allocation2 + $0x80] sm:$0xff] %vm248_vm0, %v2664_v0  ;;  %v222_v9 = vld [vmem:[%s2778_s21 + $0x30] sm:$0xff]  ;;  %v223_v10 = vld [vmem:[%s2778_s21 + $0x38] sm:$0xff] }
  0x12   : > { %268 = vst.msk [vmem:[#allocation2 + $0x90] sm:$0xff] %vm248_vm0, %v2664_v0  ;;  %269 = vst.msk [vmem:[#allocation2 + $0x98] sm:$0xff] %vm248_vm0, %v2664_v0  ;;  %v224_v11 = vld [vmem:[%s2778_s21 + $0x40] sm:$0xff]  ;;  %v225_v12 = vld [vmem:[%s2778_s21 + $0x48] sm:$0xff] }
  0x13   : > { %271 = vst.msk [vmem:[#allocation2 + $0xa8] sm:$0xff] %vm248_vm0, %v2664_v0  ;;  %272 = vst.msk [vmem:[#allocation2 + $0xb0] sm:$0xff] %vm248_vm0, %v2664_v0  ;;  %v401_v7 = vld [vmem:[#allocation2 + $0x1] sm:$0xff]  ;;  %v226_v13 = vld [vmem:[%s2778_s21 + $0x50] sm:$0xff] }
  0x14   : > { %274 = vst.msk [vmem:[#allocation2 + $0xc0] sm:$0xff] %vm248_vm0, %v2664_v0  ;;  %275 = vst.msk [vmem:[#allocation2 + $0xc8] sm:$0xff] %vm248_vm0, %v2664_v0  ;;  %465 = vrot.lane.b32.xlu0 %v401_v7, %s2665_s22  ;;  %v227_v14 = vld [vmem:[%s2778_s21 + $0x58] sm:$0xff]  ;;  %v228_v15 = vld [vmem:[%s2778_s21 + $0x60] sm:$0xff] }
  0x15   : > { %277 = vst.msk [vmem:[#allocation2 + $0xd8] sm:$0xff] %vm248_vm0, %v2664_v0  ;;  %278 = vst.msk [vmem:[#allocation2 + $0xe0] sm:$0xff] %vm248_vm0, %v2664_v0  ;;  %v229_v16 = vld [vmem:[%s2778_s21 + $0x68] sm:$0xff]  ;;  %v230_v17 = vld [vmem:[%s2778_s21 + $0x70] sm:$0xff] }
  0x16   : > { %280 = vst.msk [vmem:[#allocation2 + $0xf0] sm:$0xff] %vm248_vm0, %v2664_v0  ;;  %281 = vst.msk [vmem:[#allocation2 + $0xf8] sm:$0xff] %vm248_vm0, %v2664_v0  ;;  %v231_v18 = vld [vmem:[%s2778_s21 + $0x78] sm:$0xff]  ;;  %v232_v19 = vld [vmem:[%s2778_s21 + $0x80] sm:$0xff] }
  0x17   : > { %283 = vst.msk [vmem:[#allocation2 + $0x108] sm:$0xff] %vm248_vm0, %v2664_v0  ;;  %284 = vst.msk [vmem:[#allocation2 + $0x110] sm:$0xff] %vm248_vm0, %v2664_v0  ;;  %v233_v20 = vld [vmem:[%s2778_s21 + $0x88] sm:$0xff]  ;;  %v234_v21 = vld [vmem:[%s2778_s21 + $0x90] sm:$0xff] }
  0x18   : > { %286 = vst.msk [vmem:[#allocation2 + $0x120] sm:$0xff] %vm248_vm0, %v2664_v0  ;;  %287 = vst.msk [vmem:[#allocation2 + $0x128] sm:$0xff] %vm248_vm0, %v2664_v0  ;;  %v235_v22 = vld [vmem:[%s2778_s21 + $0x98] sm:$0xff]  ;;  %v236_v23 = vld [vmem:[%s2778_s21 + $0xa0] sm:$0xff] }
  0x19   : > { %289 = vst.msk [vmem:[#allocation2 + $0x138] sm:$0xff] %vm248_vm0, %v2664_v0  ;;  %290 = vst.msk [vmem:[#allocation2 + $0x140] sm:$0xff] %vm248_vm0, %v2664_v0  ;;  %v237_v24 = vld [vmem:[%s2778_s21 + $0xa8] sm:$0xff]  ;;  %v238_v28 = vld [vmem:[%s2778_s21 + $0xb0] sm:$0xff] }
  0x1a   : > { %292 = vst.msk [vmem:[#allocation2 + $0x150] sm:$0xff] %vm248_vm0, %v2664_v0  ;;  %293 = vst.msk [vmem:[#allocation2 + $0x158] sm:$0xff] %vm248_vm0, %v2664_v0  ;;  %v239_v29 = vld [vmem:[%s2778_s21 + $0xb8] sm:$0xff]  ;;  %v240_v33 = vld [vmem:[%s2778_s21 + $0xc0] sm:$0xff] }
  0x1b   : > { %295 = vst.msk [vmem:[#allocation2 + $0x168] sm:$0xff] %vm248_vm0, %v2664_v0  ;;  %296 = vst.msk [vmem:[#allocation2 + $0x170] sm:$0xff] %vm248_vm0, %v2664_v0  ;;  %v241_v34 = vld [vmem:[%s2778_s21 + $0xc8] sm:$0xff]  ;;  %v242_v35 = vld [vmem:[%s2778_s21 + $0xd0] sm:$0xff] }
  0x1c   : > { %298 = vst.msk [vmem:[#allocation2 + $0x180] sm:$0xff] %vm248_vm0, %v2664_v0  ;;  %299 = vst.msk [vmem:[#allocation2 + $0x188] sm:$0xff] %vm248_vm0, %v2664_v0  ;;  %v243_v36 = vld [vmem:[%s2778_s21 + $0xd8] sm:$0xff]  ;;  %v244_v37 = vld [vmem:[%s2778_s21 + $0xe0] sm:$0xff] }
  0x1d   : > { %301 = vst.msk [vmem:[#allocation2 + $0x198] sm:$0xff] %vm248_vm0, %v2664_v0  ;;  %302 = vst.msk [vmem:[#allocation2 + $0x1a0] sm:$0xff] %vm248_vm0, %v2664_v0  ;;  %v245_v38 = vld [vmem:[%s2778_s21 + $0xe8] sm:$0xff]  ;;  %v337_v45 = vld [vmem:[#allocation2] sm:$0xff] }
  0x1e   : > { %252 = vst.msk [vmem:[#allocation2 + $0x10] sm:$0x3] %vm251_vm1, %v2664_v0  ;;  %255 = vst.msk [vmem:[#allocation2 + $0x28] sm:$0x3] %vm251_vm1, %v2664_v0  ;;  %v338_v48 = vld [vmem:[#allocation2 + $0x8] sm:$0xff] }
  0x1f   : > { %258 = vst.msk [vmem:[#allocation2 + $0x40] sm:$0x3] %vm251_vm1, %v2664_v0  ;;  %261 = vst.msk [vmem:[#allocation2 + $0x58] sm:$0x3] %vm251_vm1, %v2664_v0 }
  0x20   : > { %264 = vst.msk [vmem:[#allocation2 + $0x70] sm:$0x3] %vm251_vm1, %v2664_v0  ;;  %267 = vst.msk [vmem:[#allocation2 + $0x88] sm:$0x3] %vm251_vm1, %v2664_v0 }
  0x21   : > { %270 = vst.msk [vmem:[#allocation2 + $0xa0] sm:$0x3] %vm251_vm1, %v2664_v0  ;;  %273 = vst.msk [vmem:[#allocation2 + $0xb8] sm:$0x3] %vm251_vm1, %v2664_v0 }
  0x22   : > { %276 = vst.msk [vmem:[#allocation2 + $0xd0] sm:$0x3] %vm251_vm1, %v2664_v0  ;;  %279 = vst.msk [vmem:[#allocation2 + $0xe8] sm:$0x3] %vm251_vm1, %v2664_v0 }
  0x23   : > { %282 = vst.msk [vmem:[#allocation2 + $0x100] sm:$0x3] %vm251_vm1, %v2664_v0  ;;  %285 = vst.msk [vmem:[#allocation2 + $0x118] sm:$0x3] %vm251_vm1, %v2664_v0 }
  0x24   : > { %288 = vst.msk [vmem:[#allocation2 + $0x130] sm:$0x3] %vm251_vm1, %v2664_v0  ;;  %291 = vst.msk [vmem:[#allocation2 + $0x148] sm:$0x3] %vm251_vm1, %v2664_v0 }
  0x25   : > { %294 = vst.msk [vmem:[#allocation2 + $0x160] sm:$0x3] %vm251_vm1, %v2664_v0  ;;  %297 = vst.msk [vmem:[#allocation2 + $0x178] sm:$0x3] %vm251_vm1, %v2664_v0  ;;  %v402_v8 = vld [vmem:[#allocation2 + $0x9] sm:$0xff] }
  0x26   : > { %300 = vst.msk [vmem:[#allocation2 + $0x190] sm:$0x3] %vm251_vm1, %v2664_v0  ;;  %303 = vst.msk [vmem:[#allocation2 + $0x1a8] sm:$0x3] %vm251_vm1, %v2664_v0  ;;  %467 = vrot.lane.b32.xlu0 %v402_v8, %s2665_s22 }
  0x27   : > { %305 = vst.msk [vmem:[#allocation2 + $0x19] sm:$0xff] %vm248_vm0, %v216_v1  ;;  %306 = vst.msk [vmem:[#allocation2 + $0x21] sm:$0xff] %vm248_vm0, %v217_v2 }
  0x28   : > { %307 = vst.msk [vmem:[#allocation2 + $0x31] sm:$0xff] %vm248_vm0, %v218_v3  ;;  %308 = vst.msk [vmem:[#allocation2 + $0x39] sm:$0xff] %vm248_vm0, %v219_v4 }
  0x29   : > { %309 = vst.msk [vmem:[#allocation2 + $0x49] sm:$0xff] %vm248_vm0, %v220_v5  ;;  %310 = vst.msk [vmem:[#allocation2 + $0x51] sm:$0xff] %vm248_vm0, %v221_v6 }
  0x2a   : > { %311 = vst.msk [vmem:[#allocation2 + $0x61] sm:$0xff] %vm248_vm0, %v222_v9  ;;  %312 = vst.msk [vmem:[#allocation2 + $0x69] sm:$0xff] %vm248_vm0, %v223_v10 }
  0x2b   : > { %313 = vst.msk [vmem:[#allocation2 + $0x79] sm:$0xff] %vm248_vm0, %v224_v11  ;;  %314 = vst.msk [vmem:[#allocation2 + $0x81] sm:$0xff] %vm248_vm0, %v225_v12 }
  0x2c   : > { %315 = vst.msk [vmem:[#allocation2 + $0x91] sm:$0xff] %vm248_vm0, %v226_v13  ;;  %316 = vst.msk [vmem:[#allocation2 + $0x99] sm:$0xff] %vm248_vm0, %v227_v14 }
  0x2d   : > { %317 = vst.msk [vmem:[#allocation2 + $0xa9] sm:$0xff] %vm248_vm0, %v228_v15  ;;  %318 = vst.msk [vmem:[#allocation2 + $0xb1] sm:$0xff] %vm248_vm0, %v229_v16 }
  0x2e   : > { %319 = vst.msk [vmem:[#allocation2 + $0xc1] sm:$0xff] %vm248_vm0, %v230_v17  ;;  %320 = vst.msk [vmem:[#allocation2 + $0xc9] sm:$0xff] %vm248_vm0, %v231_v18  ;;  %v2823_v25 = vld [vmem:[#allocation2 + $0x19] sm:$0xff]  ;;  %v2832_v27 = vld [vmem:[#allocation2 + $0x21] sm:$0xff] }
  0x2f   : > { %321 = vst.msk [vmem:[#allocation2 + $0xd9] sm:$0xff] %vm248_vm0, %v232_v19  ;;  %322 = vst.msk [vmem:[#allocation2 + $0xe1] sm:$0xff] %vm248_vm0, %v233_v20  ;;  %v2825_v26 = vld [vmem:[#allocation2 + $0x31] sm:$0xff]  ;;  %469 = vrot.lane.b32.xlu1 %v2823_v25, %s2665_s22  ;;  %v2844_v31 = vld [vmem:[#allocation2 + $0x39] sm:$0xff] }
  0x30   : > { %323 = vst.msk [vmem:[#allocation2 + $0xf1] sm:$0xff] %vm248_vm0, %v234_v21  ;;  %324 = vst.msk [vmem:[#allocation2 + $0xf9] sm:$0xff] %vm248_vm0, %v235_v22  ;;  %473 = vrot.lane.b32.xlu0 %v2825_v26, %s2665_s22  ;;  %v2840_v30 = vld [vmem:[#allocation2 + $0x49] sm:$0xff]  ;;  %v2861_v39 = vld [vmem:[#allocation2 + $0x51] sm:$0xff] }
  0x31   : > { %325 = vst.msk [vmem:[#allocation2 + $0x109] sm:$0xff] %vm248_vm0, %v236_v23  ;;  %326 = vst.msk [vmem:[#allocation2 + $0x111] sm:$0xff] %vm248_vm0, %v237_v24  ;;  %v2848_v32 = vld [vmem:[#allocation2 + $0x61] sm:$0xff]  ;;  %v2872_v41 = vld [vmem:[#allocation2 + $0x69] sm:$0xff] }
  0x32   : > { %327 = vst.msk [vmem:[#allocation2 + $0x121] sm:$0xff] %vm248_vm0, %v238_v28  ;;  %328 = vst.msk [vmem:[#allocation2 + $0x129] sm:$0xff] %vm248_vm0, %v239_v29  ;;  %v2868_v40 = vld [vmem:[#allocation2 + $0x79] sm:$0xff]  ;;  %v2880_v43 = vld [vmem:[#allocation2 + $0x81] sm:$0xff] }
  0x33   : > { %471 = vrot.lane.b32.xlu1 %v2832_v27, %s2665_s22  ;;  %329 = vst.msk [vmem:[#allocation2 + $0x139] sm:$0xff] %vm248_vm0, %v240_v33  ;;  %330 = vst.msk [vmem:[#allocation2 + $0x141] sm:$0xff] %vm248_vm0, %v241_v34  ;;  %v2876_v42 = vld [vmem:[#allocation2 + $0x91] sm:$0xff]  ;;  %v2890_v47 = vld [vmem:[#allocation2 + $0x99] sm:$0xff] }
  0x34   : > { %477 = vrot.lane.b32.xlu0 %v2840_v30, %s2665_s22  ;;  %331 = vst.msk [vmem:[#allocation2 + $0x151] sm:$0xff] %vm248_vm0, %v242_v35  ;;  %332 = vst.msk [vmem:[#allocation2 + $0x159] sm:$0xff] %vm248_vm0, %v243_v36  ;;  %v2884_v44 = vld [vmem:[#allocation2 + $0xa9] sm:$0xff]  ;;  %v2888_v46 = vld [vmem:[#allocation2 + $0x18] sm:$0xff] }
  0x35   : > { %333 = vst.msk [vmem:[#allocation2 + $0x169] sm:$0xff] %vm248_vm0, %v244_v37  ;;  %334 = vst.msk [vmem:[#allocation2 + $0x171] sm:$0xff] %vm248_vm0, %v245_v38  ;;  %v2898_v49 = vld [vmem:[#allocation2 + $0x20] sm:$0xff]  ;;  %v2902_v51 = vld [vmem:[#allocation2 + $0x30] sm:$0xff] }
  0x36   : > { %369 = vst.msk [vmem:[#allocation3] sm:$0xff] %vm248_vm0, %v337_v45  ;;  %371 = vst.msk [vmem:[#allocation3 + $0x10] sm:$0xff] %vm248_vm0, %v2888_v46  ;;  %v417_v50 = vld [vmem:[#allocation2 + $0xc1] sm:$0xff]  ;;  %v2904_v52 = vld [vmem:[#allocation2 + $0x38] sm:$0xff] }
  0x37   : > { %475 = vrot.lane.b32.xlu1 %v2844_v31, %s2665_s22  ;;  %370 = vst.msk [vmem:[#allocation3 + $0x8] sm:$0xff] %vm248_vm0, %v338_v48  ;;  %372 = vst.msk [vmem:[#allocation3 + $0x18] sm:$0xff] %vm248_vm0, %v2898_v49  ;;  %v2908_v53 = vld [vmem:[#allocation2 + $0xb1] sm:$0xff]  ;;  %v2914_v54 = vld [vmem:[#allocation2 + $0x48] sm:$0xff] }
  0x38   : > { %481 = vrot.lane.b32.xlu0 %v2848_v32, %s2665_s22  ;;  %373 = vst.msk [vmem:[#allocation3 + $0x20] sm:$0xff] %vm248_vm0, %v2902_v51  ;;  %374 = vst.msk [vmem:[#allocation3 + $0x28] sm:$0xff] %vm248_vm0, %v2904_v52  ;;  %v2916_v55 = vld [vmem:[#allocation2 + $0x50] sm:$0xff]  ;;  %v419_v56 = vld [vmem:[#allocation2 + $0xd9] sm:$0xff] }
  0x39   : > { %375 = vst.msk [vmem:[#allocation3 + $0x30] sm:$0xff] %vm248_vm0, %v2914_v54  ;;  %376 = vst.msk [vmem:[#allocation3 + $0x38] sm:$0xff] %vm248_vm0, %v2916_v55  ;;  %v2922_v57 = vld [vmem:[#allocation2 + $0x60] sm:$0xff]  ;;  %v2924_v58 = vld [vmem:[#allocation2 + $0x68] sm:$0xff] }
  0x3a   : > { %v2926_v59 = vld [vmem:[#allocation2 + $0x78] sm:$0xff]  ;;  %377 = vst.msk [vmem:[#allocation3 + $0x40] sm:$0xff] %vm248_vm0, %v2922_v57  ;;  %378 = vst.msk [vmem:[#allocation3 + $0x48] sm:$0xff] %vm248_vm0, %v2924_v58  ;;  %v2935_v60 = vld [vmem:[#allocation2 + $0x80] sm:$0xff] }
  0x3b   : > { %479 = vrot.lane.b32.xlu1 %v2861_v39, %s2665_s22  ;;  %379 = vst.msk [vmem:[#allocation3 + $0x50] sm:$0xff] %vm248_vm0, %v2926_v59  ;;  %v2937_v61 = vld [vmem:[#allocation2 + $0x90] sm:$0xff]  ;;  %v2939_v62 = vld [vmem:[#allocation2 + $0x98] sm:$0xff]  ;;  %380 = vst.msk [vmem:[#allocation3 + $0x58] sm:$0xff] %vm248_vm0, %v2935_v60 }
  0x3c   : > { %485 = vrot.lane.b32.xlu0 %v2868_v40, %s2665_s22  ;;  %v418_v63 = vld [vmem:[#allocation2 + $0xc9] sm:$0xff]  ;;  %381 = vst.msk [vmem:[#allocation3 + $0x60] sm:$0xff] %vm248_vm0, %v2937_v61  ;;  %382 = vst.msk [vmem:[#allocation3 + $0x68] sm:$0xff] %vm248_vm0, %v2939_v62  ;;  %v2951_v2 = vld [vmem:[#allocation2 + $0xc0] sm:$0xff] }
  0x3d   : > { %v2947_v0 = vld [vmem:[#allocation2 + $0xa8] sm:$0xff]  ;;  %v2949_v1 = vld [vmem:[#allocation2 + $0xb0] sm:$0xff]  ;;  %385 = vst.msk [vmem:[#allocation3 + $0x80] sm:$0xff] %vm248_vm0, %v2951_v2  ;;  %v2963_v4 = vld [vmem:[#allocation2 + $0xd8] sm:$0xff] }
  0x3e   : > { %383 = vst.msk [vmem:[#allocation3 + $0x70] sm:$0xff] %vm248_vm0, %v2947_v0  ;;  %384 = vst.msk [vmem:[#allocation3 + $0x78] sm:$0xff] %vm248_vm0, %v2949_v1  ;;  %v2961_v3 = vld [vmem:[#allocation2 + $0xc8] sm:$0xff]  ;;  %v2965_v5 = vld [vmem:[#allocation2 + $0xe0] sm:$0xff] }
  0x3f   : > { %483 = vrot.lane.b32.xlu1 %v2872_v41, %s2665_s22  ;;  %386 = vst.msk [vmem:[#allocation3 + $0x88] sm:$0xff] %vm248_vm0, %v2961_v3  ;;  %387 = vst.msk [vmem:[#allocation3 + $0x90] sm:$0xff] %vm248_vm0, %v2963_v4  ;;  %v2973_v6 = vld [vmem:[#allocation2 + $0xf0] sm:$0xff]  ;;  %v2975_v7 = vld [vmem:[#allocation2 + $0xf8] sm:$0xff] }
  0x40   : > { %489 = vrot.lane.b32.xlu0 %v2876_v42, %s2665_s22  ;;  %388 = vst.msk [vmem:[#allocation3 + $0x98] sm:$0xff] %vm248_vm0, %v2965_v5  ;;  %v2977_v8 = vld [vmem:[#allocation2 + $0x108] sm:$0xff]  ;;  %389 = vst.msk [vmem:[#allocation3 + $0xa0] sm:$0xff] %vm248_vm0, %v2973_v6  ;;  %v2986_v9 = vld [vmem:[#allocation2 + $0x110] sm:$0xff] }
  0x41   : > { %390 = vst.msk [vmem:[#allocation3 + $0xa8] sm:$0xff] %vm248_vm0, %v2975_v7  ;;  %391 = vst.msk [vmem:[#allocation3 + $0xb0] sm:$0xff] %vm248_vm0, %v2977_v8  ;;  %v421_v10 = vld [vmem:[#allocation2 + $0xf1] sm:$0xff]  ;;  %v2991_v11 = vld [vmem:[#allocation2 + $0x120] sm:$0xff] }
  0x42   : > { %392 = vst.msk [vmem:[#allocation3 + $0xb8] sm:$0xff] %vm248_vm0, %v2986_v9  ;;  %v2993_v12 = vld [vmem:[#allocation2 + $0x128] sm:$0xff]  ;;  %393 = vst.msk [vmem:[#allocation3 + $0xc0] sm:$0xff] %vm248_vm0, %v2991_v11  ;;  %v363_v15 = vld [vmem:[#allocation2 + $0x138] sm:$0xff] }
  0x43   : > { %487 = vrot.lane.b32.xlu1 %v2880_v43, %s2665_s22  ;;  %v420_v13 = vld [vmem:[#allocation2 + $0xe1] sm:$0xff]  ;;  %394 = vst.msk [vmem:[#allocation3 + $0xc8] sm:$0xff] %vm248_vm0, %v2993_v12  ;;  %v423_v14 = vld [vmem:[#allocation2 + $0x109] sm:$0xff]  ;;  %v422_v17 = vld [vmem:[#allocation2 + $0xf9] sm:$0xff] }
  0x44   : > { %493 = vrot.lane.b32.xlu0 %v2884_v44, %s2665_s22  ;;  %v364_v16 = vld [vmem:[#allocation2 + $0x140] sm:$0xff]  ;;  %395 = vst.msk [vmem:[#allocation3 + $0xd0] sm:$0xff] %vm248_vm0, %v363_v15  ;;  %v365_v19 = vld [vmem:[#allocation2 + $0x150] sm:$0xff]  ;;  %v366_v20 = vld [vmem:[#allocation2 + $0x158] sm:$0xff] }
  0x45   : > { %396 = vst.msk [vmem:[#allocation3 + $0xd8] sm:$0xff] %vm248_vm0, %v364_v16  ;;  %v425_v18 = vld [vmem:[#allocation2 + $0x121] sm:$0xff]  ;;  %v424_v21 = vld [vmem:[#allocation2 + $0x111] sm:$0xff]  ;;  %397 = vst.msk [vmem:[#allocation3 + $0xe0] sm:$0xff] %vm248_vm0, %v365_v19 }
  0x46   : > { %398 = vst.msk [vmem:[#allocation3 + $0xe8] sm:$0xff] %vm248_vm0, %v366_v20  ;;  %v427_v22 = vld [vmem:[#allocation2 + $0x139] sm:$0xff]  ;;  %v367_v23 = vld [vmem:[#allocation2 + $0x168] sm:$0xff]  ;;  %v368_v24 = vld [vmem:[#allocation2 + $0x170] sm:$0xff] }
  0x47   : > { %491 = vrot.lane.b32.xlu1 %v2890_v47, %s2665_s22  ;;  %v426_v28 = vld [vmem:[#allocation2 + $0x129] sm:$0xff]  ;;  %399 = vst.msk [vmem:[#allocation3 + $0xf0] sm:$0xff] %vm248_vm0, %v367_v23  ;;  %400 = vst.msk [vmem:[#allocation3 + $0xf8] sm:$0xff] %vm248_vm0, %v368_v24  ;;  %v429_v29 = vld [vmem:[#allocation2 + $0x151] sm:$0xff] }
  0x48   : > { %497 = vrot.lane.b32.xlu0 %v417_v50, %s2665_s22  ;;  %v428_v33 = vld [vmem:[#allocation2 + $0x141] sm:$0xff]  ;;  %v431_v34 = vld [vmem:[#allocation2 + $0x169] sm:$0xff]  ;;  %v430_v35 = vld [vmem:[#allocation2 + $0x159] sm:$0xff] }
  0x49   : > { %v594_v36 = vld [vmem:[#allocation2 + $0x2] sm:$0xff]  ;;  %v432_v37 = vld [vmem:[#allocation2 + $0x171] sm:$0xff]  ;;  %v3018_v38 = vld [vmem:[#allocation2 + $0x1a] sm:$0xff] }
  0x4a   : > { %v595_v45 = vld [vmem:[#allocation2 + $0xa] sm:$0xff]  ;;  %v3023_v48 = vld [vmem:[#allocation2 + $0x32] sm:$0xff]  ;;  %v3026_v50 = vld [vmem:[#allocation2 + $0x22] sm:$0xff] }
  0x4b   : > { %495 = vrot.lane.b32.xlu1 %v2908_v53, %s2665_s22  ;;  %v3050_v15 = vld [vmem:[#allocation2 + $0x6a] sm:$0xff]  ;;  %v3054_v16 = vld [vmem:[#allocation2 + $0x92] sm:$0xff]  ;;  %v3066_v19 = vld [vmem:[#allocation2 + $0x9a] sm:$0xff] }
  0x4c   : > { %501 = vrot.lane.b32.xlu0 %v419_v56, %s2665_s22  ;;  %v3030_v56 = vld [vmem:[#allocation2 + $0x4a] sm:$0xff]  ;;  %v3070_v20 = vld [vmem:[#allocation2 + $0xc2] sm:$0xff]  ;;  %v614_v24 = vld [vmem:[#allocation2 + $0xf2] sm:$0xff] }
  0x4d   : > { %v3080_v23 = vld [vmem:[#allocation2 + $0xca] sm:$0xff] }
  0x4f   : > { %499 = vrot.lane.b32.xlu1 %v418_v63, %s2665_s22  ;;  %v3034_v63 = vld [vmem:[#allocation2 + $0x3a] sm:$0xff] }
  0x50   : > { %505 = vrot.lane.b32.xlu0 %v421_v10, %s2665_s22  ;;  %v3038_v10 = vld [vmem:[#allocation2 + $0x62] sm:$0xff] }
  0x53   : > { %503 = vrot.lane.b32.xlu1 %v420_v13, %s2665_s22  ;;  %v3042_v13 = vld [vmem:[#allocation2 + $0x52] sm:$0xff] }
  0x54   : > { %509 = vrot.lane.b32.xlu0 %v423_v14, %s2665_s22  ;;  %v3046_v14 = vld [vmem:[#allocation2 + $0x7a] sm:$0xff] }
  0x57   : > { %507 = vrot.lane.b32.xlu1 %v422_v17, %s2665_s22  ;;  %v3058_v17 = vld [vmem:[#allocation2 + $0x82] sm:$0xff] }
  0x58   : > { %513 = vrot.lane.b32.xlu0 %v425_v18, %s2665_s22  ;;  %v3062_v18 = vld [vmem:[#allocation2 + $0xaa] sm:$0xff] }
  0x5b   : > { %511 = vrot.lane.b32.xlu1 %v424_v21, %s2665_s22  ;;  %v3074_v21 = vld [vmem:[#allocation2 + $0xb2] sm:$0xff] }
  0x5c   : > { %517 = vrot.lane.b32.xlu0 %v427_v22, %s2665_s22  ;;  %v612_v22 = vld [vmem:[#allocation2 + $0xda] sm:$0xff] }
  0x5f   : > { %515 = vrot.lane.b32.xlu1 %v426_v28, %s2665_s22  ;;  %v613_v28 = vld [vmem:[#allocation2 + $0xe2] sm:$0xff] }
  0x60   : > { %521 = vrot.lane.b32.xlu0 %v429_v29, %s2665_s22  ;;  %v616_v29 = vld [vmem:[#allocation2 + $0x10a] sm:$0xff] }
  0x63   : > { %519 = vrot.lane.b32.xlu1 %v428_v33, %s2665_s22  ;;  %v615_v33 = vld [vmem:[#allocation2 + $0xfa] sm:$0xff] }
  0x64   : > { %525 = vrot.lane.b32.xlu0 %v431_v34, %s2665_s22  ;;  %v618_v34 = vld [vmem:[#allocation2 + $0x122] sm:$0xff] }
  0x67   : > { %523 = vrot.lane.b32.xlu1 %v430_v35, %s2665_s22  ;;  %v617_v35 = vld [vmem:[#allocation2 + $0x112] sm:$0xff] }
  0x68   : > { %658 = vrot.lane.b32.xlu0 %v594_v36, %s2666_s23  ;;  %v620_v36 = vld [vmem:[#allocation2 + $0x13a] sm:$0xff] }
  0x6b   : > { %527 = vrot.lane.b32.xlu1 %v432_v37, %s2665_s22 }
  0x6c   : > { %662 = vrot.lane.b32.xlu0 %v3018_v38, %s2666_s23 }
  0x6f   : > { %660 = vrot.lane.b32.xlu1 %v595_v45, %s2666_s23  ;;  %v619_v45 = vld [vmem:[#allocation2 + $0x12a] sm:$0xff] }
  0x70   : > { %666 = vrot.lane.b32.xlu0 %v3023_v48, %s2666_s23 }
  0x73   : > { %664 = vrot.lane.b32.xlu1 %v3026_v50, %s2666_s23 }
  0x74   : > { %670 = vrot.lane.b32.xlu0 %v3030_v56, %s2666_s23 }
  0x77   : > { %668 = vrot.lane.b32.xlu1 %v3034_v63, %s2666_s23 }
  0x78   : > { %674 = vrot.lane.b32.xlu0 %v3038_v10, %s2666_s23 }
  0x7b   : > { %672 = vrot.lane.b32.xlu1 %v3042_v13, %s2666_s23 }
  0x7c   : > { %678 = vrot.lane.b32.xlu0 %v3046_v14, %s2666_s23 }
  0x7f   : > { %676 = vrot.lane.b32.xlu1 %v3050_v15, %s2666_s23 }
  0x80   : > { %682 = vrot.lane.b32.xlu0 %v3054_v16, %s2666_s23 }
  0x83   : > { %680 = vrot.lane.b32.xlu1 %v3058_v17, %s2666_s23 }
  0x84   : > { %686 = vrot.lane.b32.xlu0 %v3062_v18, %s2666_s23 }
  0x86   : > { %v466_v37 = vpop.permute.xlu0 %465 }
  0x87   : > { %684 = vrot.lane.b32.xlu1 %v3066_v19, %s2666_s23  ;;  %562 = vst.msk [vmem:[#allocation3] sm:$0xff] %vm561_vm2, %v466_v37 }
  0x88   : > { %690 = vrot.lane.b32.xlu0 %v3070_v20, %s2666_s23 }
  0x8b   : > { %688 = vrot.lane.b32.xlu1 %v3074_v21, %s2666_s23 }
  0x8c   : > { %694 = vrot.lane.b32.xlu0 %v612_v22, %s2666_s23  ;;  %v622_v22 = vld [vmem:[#allocation2 + $0x152] sm:$0xff] }
  0x8f   : > { %692 = vrot.lane.b32.xlu1 %v3080_v23, %s2666_s23 }
  0x90   : > { %698 = vrot.lane.b32.xlu0 %v614_v24, %s2666_s23 }
  0x93   : > { %696 = vrot.lane.b32.xlu1 %v613_v28, %s2666_s23  ;;  %v621_v28 = vld [vmem:[#allocation2 + $0x142] sm:$0xff] }
  0x94   : > { %702 = vrot.lane.b32.xlu0 %v616_v29, %s2666_s23 }
  0x97   : > { %700 = vrot.lane.b32.xlu1 %v615_v33, %s2666_s23  ;;  %v624_v33 = vld [vmem:[#allocation2 + $0x16a] sm:$0xff] }
  0x98   : > { %706 = vrot.lane.b32.xlu0 %v618_v34, %s2666_s23  ;;  %v468_v24 = vpop.permute.xlu0 %467 }
  0x99   : > { %563 = vst.msk [vmem:[#allocation3 + $0x8] sm:$0xff] %vm561_vm2, %v468_v24 }
  0x9b   : > { %704 = vrot.lane.b32.xlu1 %v617_v35, %s2666_s23  ;;  %v623_v35 = vld [vmem:[#allocation2 + $0x15a] sm:$0xff] }
  0x9c   : > { %710 = vrot.lane.b32.xlu0 %v620_v36, %s2666_s23 }
  0x9f   : > { %708 = vrot.lane.b32.xlu1 %v619_v45, %s2666_s23  ;;  %v625_v45 = vld [vmem:[#allocation2 + $0x172] sm:$0xff] }
  0xa0   : > { %714 = vrot.lane.b32.xlu0 %v622_v22, %s2666_s23 }
  0xa1   : > { %v470_v29 = vpop.permute.xlu1 %469 }
  0xa2   : > { %564 = vst.msk [vmem:[#allocation3 + $0x10] sm:$0xff] %vm561_vm2, %v470_v29  ;;  %v474_v34 = vpop.permute.xlu0 %473 }
  0xa3   : > { %712 = vrot.lane.b32.xlu1 %v621_v28, %s2666_s23  ;;  %566 = vst.msk [vmem:[#allocation3 + $0x20] sm:$0xff] %vm561_vm2, %v474_v34 }
  0xa4   : > { %718 = vrot.lane.b32.xlu0 %v624_v33, %s2666_s23 }
  0xa5   : > { %v472_v36 = vpop.permute.xlu1 %471 }
  0xa6   : > { %565 = vst.msk [vmem:[#allocation3 + $0x18] sm:$0xff] %vm561_vm2, %v472_v36  ;;  %v478_v37 = vpop.permute.xlu0 %477 }
  0xa7   : > { %716 = vrot.lane.b32.xlu1 %v623_v35, %s2666_s23  ;;  %568 = vst.msk [vmem:[#allocation3 + $0x30] sm:$0xff] %vm561_vm2, %v478_v37 }
  0xa8   : > { %851 = vrot.lane.b32.xlu0 %v2888_v46, %s2667_s24 }
  0xa9   : > { %v476_v22 = vpop.permute.xlu1 %475 }
  0xaa   : > { %567 = vst.msk [vmem:[#allocation3 + $0x28] sm:$0xff] %vm561_vm2, %v476_v22  ;;  %v482_v24 = vpop.permute.xlu0 %481 }
  0xab   : > { %720 = vrot.lane.b32.xlu1 %v625_v45, %s2666_s23  ;;  %570 = vst.msk [vmem:[#allocation3 + $0x40] sm:$0xff] %vm561_vm2, %v482_v24 }
  0xac   : > { %855 = vrot.lane.b32.xlu0 %v2902_v51, %s2667_s24 }
  0xad   : > { %v480_v28 = vpop.permute.xlu1 %479 }
  0xae   : > { %569 = vst.msk [vmem:[#allocation3 + $0x38] sm:$0xff] %vm561_vm2, %v480_v28  ;;  %v486_v29 = vpop.permute.xlu0 %485 }
  0xaf   : > { %853 = vrot.lane.b32.xlu1 %v2898_v49, %s2667_s24  ;;  %572 = vst.msk [vmem:[#allocation3 + $0x50] sm:$0xff] %vm561_vm2, %v486_v29 }
  0xb0   : > { %859 = vrot.lane.b32.xlu0 %v2914_v54, %s2667_s24 }
  0xb1   : > { %v484_v46 = vpop.permute.xlu1 %483 }
  0xb2   : > { %571 = vst.msk [vmem:[#allocation3 + $0x48] sm:$0xff] %vm561_vm2, %v484_v46  ;;  %v490_v33 = vpop.permute.xlu0 %489 }
  0xb3   : > { %857 = vrot.lane.b32.xlu1 %v2904_v52, %s2667_s24  ;;  %574 = vst.msk [vmem:[#allocation3 + $0x60] sm:$0xff] %vm561_vm2, %v490_v33 }
  0xb4   : > { %863 = vrot.lane.b32.xlu0 %v2922_v57, %s2667_s24 }
  0xb5   : > { %v488_v34 = vpop.permute.xlu1 %487 }
  0xb6   : > { %573 = vst.msk [vmem:[#allocation3 + $0x58] sm:$0xff] %vm561_vm2, %v488_v34  ;;  %v494_v49 = vpop.permute.xlu0 %493 }
  0xb7   : > { %861 = vrot.lane.b32.xlu1 %v2916_v55, %s2667_s24  ;;  %576 = vst.msk [vmem:[#allocation3 + $0x70] sm:$0xff] %vm561_vm2, %v494_v49 }
  0xb8   : > { %867 = vrot.lane.b32.xlu0 %v2926_v59, %s2667_s24 }
  0xb9   : > { %v492_v35 = vpop.permute.xlu1 %491 }
  0xba   : > { %575 = vst.msk [vmem:[#allocation3 + $0x68] sm:$0xff] %vm561_vm2, %v492_v35  ;;  %v498_v36 = vpop.permute.xlu0 %497 }
  0xbb   : > { %865 = vrot.lane.b32.xlu1 %v2924_v58, %s2667_s24  ;;  %578 = vst.msk [vmem:[#allocation3 + $0x80] sm:$0xff] %vm561_vm2, %v498_v36 }
  0xbc   : > { %871 = vrot.lane.b32.xlu0 %v2937_v61, %s2667_s24 }
  0xbd   : > { %v496_v37 = vpop.permute.xlu1 %495 }
  0xbe   : > { %577 = vst.msk [vmem:[#allocation3 + $0x78] sm:$0xff] %vm561_vm2, %v496_v37  ;;  %v502_v45 = vpop.permute.xlu0 %501 }
  0xbf   : > { %869 = vrot.lane.b32.xlu1 %v2935_v60, %s2667_s24  ;;  %580 = vst.msk [vmem:[#allocation3 + $0x90] sm:$0xff] %vm561_vm2, %v502_v45 }
  0xc0   : > { %875 = vrot.lane.b32.xlu0 %v2947_v0, %s2667_s24 }
  0xc1   : > { %v500_v22 = vpop.permute.xlu1 %499 }
  0xc2   : > { %579 = vst.msk [vmem:[#allocation3 + $0x88] sm:$0xff] %vm561_vm2, %v500_v22  ;;  %v506_v24 = vpop.permute.xlu0 %505 }
  0xc3   : > { %873 = vrot.lane.b32.xlu1 %v2939_v62, %s2667_s24  ;;  %582 = vst.msk [vmem:[#allocation3 + $0xa0] sm:$0xff] %vm561_vm2, %v506_v24 }
  0xc4   : > { %879 = vrot.lane.b32.xlu0 %v2951_v2, %s2667_s24 }
  0xc5   : > { %v504_v28 = vpop.permute.xlu1 %503 }
  0xc6   : > { %581 = vst.msk [vmem:[#allocation3 + $0x98] sm:$0xff] %vm561_vm2, %v504_v28  ;;  %v510_v29 = vpop.permute.xlu0 %509  ;;  %v2653_v28 = vld [vmem:[%s3820_s1 + $0x10] ss:$0 sps:$4 sm:$0x33]  }
  0xc7   : > { %877 = vrot.lane.b32.xlu1 %v2949_v1, %s2667_s24  ;;  %584 = vst.msk [vmem:[#allocation3 + $0xb0] sm:$0xff] %vm561_vm2, %v510_v29  ;;  %2634 = vmatprep.subr.msk.bf16.mxu0 %vm2063_vm4, %v2653_v28 }
  0xc8   : > { %883 = vrot.lane.b32.xlu0 %v2963_v4, %s2667_s24  ;;  %2635 = vmatprep.subr.msk.bf16.mxu1 %vm2063_vm4, %v2653_v28 }
  0xc9   : > { %v508_v46 = vpop.permute.xlu1 %507 }
  0xca   : > { %583 = vst.msk [vmem:[#allocation3 + $0xa8] sm:$0xff] %vm561_vm2, %v508_v46  ;;  %v514_v33 = vpop.permute.xlu0 %513 }
  0xcb   : > { %881 = vrot.lane.b32.xlu1 %v2961_v3, %s2667_s24  ;;  %586 = vst.msk [vmem:[#allocation3 + $0xc0] sm:$0xff] %vm561_vm2, %v514_v33  ;;  %v2655_v33 = vld [vmem:[%s3820_s1] sm:$0xff]  }
  0xcc   : > { %1044 = vrot.lane.b32.xlu0 %v2823_v25, %s2668_s25 }
  0xcd   : > { %v512_v34 = vpop.permute.xlu1 %511 }
  0xce   : > { %585 = vst.msk [vmem:[#allocation3 + $0xb8] sm:$0xff] %vm561_vm2, %v512_v34  ;;  %v518_v49 = vpop.permute.xlu0 %517 }
  0xcf   : > { %885 = vrot.lane.b32.xlu1 %v2965_v5, %s2667_s24  ;;  %588 = vst.msk [vmem:[#allocation3 + $0xd0] sm:$0xff] %vm561_vm2, %v518_v49 }
  0xd0   : > { %1048 = vrot.lane.b32.xlu0 %v2825_v26, %s2668_s25 }
  0xd1   : > { %v516_v35 = vpop.permute.xlu1 %515 }
  0xd2   : > { %587 = vst.msk [vmem:[#allocation3 + $0xc8] sm:$0xff] %vm561_vm2, %v516_v35  ;;  %v522_v36 = vpop.permute.xlu0 %521 }
  0xd3   : > { %1046 = vrot.lane.b32.xlu1 %v2832_v27, %s2668_s25  ;;  %590 = vst.msk [vmem:[#allocation3 + $0xe0] sm:$0xff] %vm561_vm2, %v522_v36 }
  0xd4   : > { %1237 = vrot.lane.b32.xlu0 %v3018_v38, %s2669_s26 }
  0xd5   : > { %v520_v25 = vpop.permute.xlu1 %519 }
  0xd6   : > { %589 = vst.msk [vmem:[#allocation3 + $0xd8] sm:$0xff] %vm561_vm2, %v520_v25  ;;  %v526_v37 = vpop.permute.xlu0 %525 }
  0xd7   : > { %1050 = vrot.lane.b32.xlu1 %v2844_v31, %s2668_s25  ;;  %592 = vst.msk [vmem:[#allocation3 + $0xf0] sm:$0xff] %vm561_vm2, %v526_v37 }
  0xd8   : > { %1241 = vrot.lane.b32.xlu0 %v3023_v48, %s2669_s26 }
  0xd9   : > { %v524_v45 = vpop.permute.xlu1 %523 }
  0xda   : > { %591 = vst.msk [vmem:[#allocation3 + $0xe8] sm:$0xff] %vm561_vm2, %v524_v45  ;;  %v659_v27 = vpop.permute.xlu0 %658 }
  0xdb   : > { %1239 = vrot.lane.b32.xlu1 %v3026_v50, %s2669_s26  ;;  %755 = vst.msk [vmem:[#allocation3] sm:$0xff] %vm754_vm3, %v659_v27 }
  0xdc   : > { %1431 = vrot.lane.b32.xlu0 %v2902_v51, %s2670_s27 }
  0xdd   : > { %v528_v38 = vpop.permute.xlu1 %527 }
  0xde   : > { %593 = vst.msk [vmem:[#allocation3 + $0xf8] sm:$0xff] %vm561_vm2, %v528_v38  ;;  %v663_v22 = vpop.permute.xlu0 %662 }
  0xdf   : > { %1243 = vrot.lane.b32.xlu1 %v3034_v63, %s2669_s26  ;;  %757 = vst.msk [vmem:[#allocation3 + $0x10] sm:$0xff] %vm754_vm3, %v663_v22 }
  0xe0   : > { %1435 = vrot.lane.b32.xlu0 %v2914_v54, %s2670_s27 }
  0xe1   : > { %v661_v24 = vpop.permute.xlu1 %660 }
  0xe2   : > { %756 = vst.msk [vmem:[#allocation3 + $0x8] sm:$0xff] %vm754_vm3, %v661_v24  ;;  %v667_v50 = vpop.permute.xlu0 %666 }
  0xe3   : > { %1433 = vrot.lane.b32.xlu1 %v2904_v52, %s2670_s27  ;;  %759 = vst.msk [vmem:[#allocation3 + $0x20] sm:$0xff] %vm754_vm3, %v667_v50  ;;  %v2065_v52 = vsel %vm2063_vm4, %v2653_v28, 0 }
  0xe4   : > { %1624 = vrot.lane.b32.xlu0 %v2825_v26, %s2671_s28  ;;  %2591 = vmatpush3.bf16.msra.mxu0 %v2065_v52  ;;  %v2654_v26 = vld [vmem:[%s3820_s1 + $0x8] sm:$0xff]  }
  0xe5   : > { %v665_v51 = vpop.permute.xlu1 %664  ;;  %2631 = vmatpush3.bf16.msra.mxu1 %v2065_v52  ;;  %2592 = vmatprep.subr.bf16.mxu0 %v2654_v26 }
  0xe6   : > { %758 = vst.msk [vmem:[#allocation3 + $0x18] sm:$0xff] %vm754_vm3, %v665_v51  ;;  %v671_v54 = vpop.permute.xlu0 %670  ;;  %2629 = vmatprep.subr.bf16.mxu1 %v2654_v26 }
  0xe7   : > { %1437 = vrot.lane.b32.xlu1 %v2916_v55, %s2670_s27  ;;  %761 = vst.msk [vmem:[#allocation3 + $0x30] sm:$0xff] %vm754_vm3, %v671_v54 }
  0xe8   : > { %1628 = vrot.lane.b32.xlu0 %v2840_v30, %s2671_s28  ;;  %2593 = vmatpush3.bf16.msra.mxu0 %v2654_v26 }
  0xe9   : > { %v669_v29 = vpop.permute.xlu1 %668  ;;  %2632 = vmatpush3.bf16.msra.mxu1 %v2654_v26  ;;  %2594 = vmatprep.subr.bf16.mxu0 %v2655_v33 }
  0xea   : > { %760 = vst.msk [vmem:[#allocation3 + $0x28] sm:$0xff] %vm754_vm3, %v669_v29  ;;  %v675_v55 = vpop.permute.xlu0 %674  ;;  %2630 = vmatprep.subr.bf16.mxu1 %v2655_v33 }
  0xeb   : > { %1626 = vrot.lane.b32.xlu1 %v2844_v31, %s2671_s28  ;;  %763 = vst.msk [vmem:[#allocation3 + $0x40] sm:$0xff] %vm754_vm3, %v675_v55 }
  0xec   : > { %1817 = vrot.lane.b32.xlu0 %v3023_v48, %s2672_s7  ;;  %2595 = vmatpush3.bf16.msra.mxu0 %v2655_v33 }
  0xed   : > { %v673_v46 = vpop.permute.xlu1 %672  ;;  %2633 = vmatpush3.bf16.msra.mxu1 %v2655_v33 }
  0xee   : > { %762 = vst.msk [vmem:[#allocation3 + $0x38] sm:$0xff] %vm754_vm3, %v673_v46  ;;  %v679_v31 = vpop.permute.xlu0 %678  ;;  %v993_v46 = vld [vmem:[#allocation2 + $0xb1] sm:$0xff] }
  0xef   : > { %1630 = vrot.lane.b32.xlu1 %v2861_v39, %s2671_s28  ;;  %765 = vst.msk [vmem:[#allocation3 + $0x50] sm:$0xff] %vm754_vm3, %v679_v31  ;;  %v995_v31 = vld [vmem:[#allocation2 + $0xc9] sm:$0xff] }
  0xf0   : > { %1821 = vrot.lane.b32.xlu0 %v3030_v56, %s2672_s7 }
  0xf1   : > { %v677_v34 = vpop.permute.xlu1 %676 }
  0xf2   : > { %764 = vst.msk [vmem:[#allocation3 + $0x48] sm:$0xff] %vm754_vm3, %v677_v34  ;;  %v683_v48 = vpop.permute.xlu0 %682 }
  0xf3   : > { %1819 = vrot.lane.b32.xlu1 %v3034_v63, %s2672_s7  ;;  %767 = vst.msk [vmem:[#allocation3 + $0x60] sm:$0xff] %vm754_vm3, %v683_v48 }
  0xf4   : > { %1052 = vrot.lane.b32.xlu0 %v2840_v30, %s2668_s25 }
  0xf5   : > { %v681_v49 = vpop.permute.xlu1 %680 }
  0xf6   : > { %766 = vst.msk [vmem:[#allocation3 + $0x58] sm:$0xff] %vm754_vm3, %v681_v49  ;;  %v687_v35 = vpop.permute.xlu0 %686 }
  0xf7   : > { %1823 = vrot.lane.b32.xlu1 %v3042_v13, %s2672_s7  ;;  %769 = vst.msk [vmem:[#allocation3 + $0x70] sm:$0xff] %vm754_vm3, %v687_v35 }
  0xf8   : > { %1056 = vrot.lane.b32.xlu0 %v2848_v32, %s2668_s25 }
  0xf9   : > { %v685_v36 = vpop.permute.xlu1 %684 }
  0xfa   : > { %768 = vst.msk [vmem:[#allocation3 + $0x68] sm:$0xff] %vm754_vm3, %v685_v36  ;;  %v691_v63 = vpop.permute.xlu0 %690 }
  0xfb   : > { %1054 = vrot.lane.b32.xlu1 %v2861_v39, %s2668_s25  ;;  %771 = vst.msk [vmem:[#allocation3 + $0x80] sm:$0xff] %vm754_vm3, %v691_v63 }
  0xfc   : > { %1245 = vrot.lane.b32.xlu0 %v3030_v56, %s2669_s26 }
  0xfd   : > { %v689_v30 = vpop.permute.xlu1 %688 }
  0xfe   : > { %770 = vst.msk [vmem:[#allocation3 + $0x78] sm:$0xff] %vm754_vm3, %v689_v30  ;;  %v695_v25 = vpop.permute.xlu0 %694  ;;  %v1574_v30 = vld [vmem:[#allocation2 + $0xd9] sm:$0xff] }
  0xff   : > { %1058 = vrot.lane.b32.xlu1 %v2872_v41, %s2668_s25  ;;  %773 = vst.msk [vmem:[#allocation3 + $0x90] sm:$0xff] %vm754_vm3, %v695_v25 }
 0x100   : > { %1249 = vrot.lane.b32.xlu0 %v3038_v10, %s2669_s26 }
 0x101   : > { %v693_v37 = vpop.permute.xlu1 %692 }
 0x102   : > { %772 = vst.msk [vmem:[#allocation3 + $0x88] sm:$0xff] %vm754_vm3, %v693_v37  ;;  %v699_v39 = vpop.permute.xlu0 %698  ;;  %v1575_v37 = vld [vmem:[#allocation2 + $0xe1] sm:$0xff] }
 0x103   : > { %1247 = vrot.lane.b32.xlu1 %v3042_v13, %s2669_s26  ;;  %775 = vst.msk [vmem:[#allocation3 + $0xa0] sm:$0xff] %vm754_vm3, %v699_v39 }
 0x104   : > { %1439 = vrot.lane.b32.xlu0 %v2922_v57, %s2670_s27 }
 0x105   : > { %v697_v56 = vpop.permute.xlu1 %696 }
 0x106   : > { %774 = vst.msk [vmem:[#allocation3 + $0x98] sm:$0xff] %vm754_vm3, %v697_v56  ;;  %v703_v45 = vpop.permute.xlu0 %702 }
 0x107   : > { %1251 = vrot.lane.b32.xlu1 %v3050_v15, %s2669_s26  ;;  %777 = vst.msk [vmem:[#allocation3 + $0xb0] sm:$0xff] %vm754_vm3, %v703_v45 }
 0x108   : > { %1443 = vrot.lane.b32.xlu0 %v2926_v59, %s2670_s27 }
 0x109   : > { %v701_v27 = vpop.permute.xlu1 %700 }
 0x10a   : > { %776 = vst.msk [vmem:[#allocation3 + $0xa8] sm:$0xff] %vm754_vm3, %v701_v27  ;;  %v707_v13 = vpop.permute.xlu0 %706 }
 0x10b   : > { %1441 = vrot.lane.b32.xlu1 %v2924_v58, %s2670_s27  ;;  %779 = vst.msk [vmem:[#allocation3 + $0xc0] sm:$0xff] %vm754_vm3, %v707_v13 }
 0x10c   : > { %1632 = vrot.lane.b32.xlu0 %v2848_v32, %s2671_s28 }
 0x10d   : > { %v705_v57 = vpop.permute.xlu1 %704 }
 0x10e   : > { %778 = vst.msk [vmem:[#allocation3 + $0xb8] sm:$0xff] %vm754_vm3, %v705_v57  ;;  %v711_v38 = vpop.permute.xlu0 %710  ;;  %v1768_v57 = vld [vmem:[#allocation2 + $0xe2] sm:$0xff] }
 0x10f   : > { %1445 = vrot.lane.b32.xlu1 %v2935_v60, %s2670_s27  ;;  %781 = vst.msk [vmem:[#allocation3 + $0xd0] sm:$0xff] %vm754_vm3, %v711_v38 }
 0x110   : > { %1636 = vrot.lane.b32.xlu0 %v2868_v40, %s2671_s28 }
 0x111   : > { %v709_v59 = vpop.permute.xlu1 %708 }
 0x112   : > { %780 = vst.msk [vmem:[#allocation3 + $0xc8] sm:$0xff] %vm754_vm3, %v709_v59  ;;  %v715_v58 = vpop.permute.xlu0 %714 }
 0x113   : > { %1634 = vrot.lane.b32.xlu1 %v2872_v41, %s2671_s28  ;;  %783 = vst.msk [vmem:[#allocation3 + $0xe0] sm:$0xff] %vm754_vm3, %v715_v58 }
 0x114   : > { %1825 = vrot.lane.b32.xlu0 %v3038_v10, %s2672_s7 }
 0x115   : > { %v713_v32 = vpop.permute.xlu1 %712 }
 0x116   : > { %782 = vst.msk [vmem:[#allocation3 + $0xd8] sm:$0xff] %vm754_vm3, %v713_v32  ;;  %v719_v60 = vpop.permute.xlu0 %718 }
 0x117   : > { %1638 = vrot.lane.b32.xlu1 %v2880_v43, %s2671_s28  ;;  %785 = vst.msk [vmem:[#allocation3 + $0xf0] sm:$0xff] %vm754_vm3, %v719_v60 }
 0x118   : > { %1829 = vrot.lane.b32.xlu0 %v3046_v14, %s2672_s7 }
 0x119   : > { %v717_v22 = vpop.permute.xlu1 %716 }
 0x11a   : > { %784 = vst.msk [vmem:[#allocation3 + $0xe8] sm:$0xff] %vm754_vm3, %v717_v22  ;;  %v852_v41 = vpop.permute.xlu0 %851 }
 0x11b   : > { %1827 = vrot.lane.b32.xlu1 %v3050_v15, %s2672_s7  ;;  %948 = vst.msk [vmem:[#allocation3] sm:$0xff] %vm947_vm5, %v852_v41  ;;  %v998_v41 = vld [vmem:[#allocation2 + $0xf1] sm:$0xff] }
 0x11c   : > { %1060 = vrot.lane.b32.xlu0 %v2868_v40, %s2668_s25 }
 0x11d   : > { %v721_v10 = vpop.permute.xlu1 %720 }
 0x11e   : > { %786 = vst.msk [vmem:[#allocation3 + $0xf8] sm:$0xff] %vm754_vm3, %v721_v10  ;;  %v856_v24 = vpop.permute.xlu0 %855 }
 0x11f   : > { %1831 = vrot.lane.b32.xlu1 %v3058_v17, %s2672_s7  ;;  %950 = vst.msk [vmem:[#allocation3 + $0x10] sm:$0xff] %vm947_vm5, %v856_v24 }
 0x120   : > { %1064 = vrot.lane.b32.xlu0 %v2876_v42, %s2668_s25 }
 0x121   : > { %v854_v50 = vpop.permute.xlu1 %853 }
 0x122   : > { %949 = vst.msk [vmem:[#allocation3 + $0x8] sm:$0xff] %vm947_vm5, %v854_v50  ;;  %v860_v15 = vpop.permute.xlu0 %859 }
 0x123   : > { %1062 = vrot.lane.b32.xlu1 %v2880_v43, %s2668_s25  ;;  %952 = vst.msk [vmem:[#allocation3 + $0x20] sm:$0xff] %vm947_vm5, %v860_v15  ;;  %v999_v15 = vld [vmem:[#allocation2 + $0xf9] sm:$0xff] }
 0x124   : > { %1253 = vrot.lane.b32.xlu0 %v3046_v14, %s2669_s26 }
 0x125   : > { %v858_v40 = vpop.permute.xlu1 %857 }
 0x126   : > { %951 = vst.msk [vmem:[#allocation3 + $0x18] sm:$0xff] %vm947_vm5, %v858_v40  ;;  %v864_v51 = vpop.permute.xlu0 %863 }
 0x127   : > { %1066 = vrot.lane.b32.xlu1 %v2890_v47, %s2668_s25  ;;  %954 = vst.msk [vmem:[#allocation3 + $0x30] sm:$0xff] %vm947_vm5, %v864_v51  ;;  %v1191_v51 = vld [vmem:[#allocation2 + $0xf2] sm:$0xff] }
 0x128   : > { %1257 = vrot.lane.b32.xlu0 %v3054_v16, %s2669_s26 }
 0x129   : > { %v862_v28 = vpop.permute.xlu1 %861 }
 0x12a   : > { %953 = vst.msk [vmem:[#allocation3 + $0x28] sm:$0xff] %vm947_vm5, %v862_v28  ;;  %v868_v43 = vpop.permute.xlu0 %867  ;;  %v246_v28 = vld [vmem:[%s2778_s21 + $0xf0] sm:$0xff] }
 0x12b   : > { %1255 = vrot.lane.b32.xlu1 %v3058_v17, %s2669_s26  ;;  %956 = vst.msk [vmem:[#allocation3 + $0x40] sm:$0xff] %vm947_vm5, %v868_v43 }
 0x12c   : > { %1447 = vrot.lane.b32.xlu0 %v2937_v61, %s2670_s27  ;;  %335 = vst.msk [vmem:[#allocation2 + $0x181] sm:$0xff] %vm248_vm0, %v246_v28 }
 0x12d   : > { %v866_v14 = vpop.permute.xlu1 %865 }
 0x12e   : > { %955 = vst.msk [vmem:[#allocation3 + $0x38] sm:$0xff] %vm947_vm5, %v866_v14  ;;  %v872_v54 = vpop.permute.xlu0 %871  ;;  %v247_v14 = vld [vmem:[%s2778_s21 + $0xf8] sm:$0xff] }
 0x12f   : > { %1259 = vrot.lane.b32.xlu1 %v3066_v19, %s2669_s26  ;;  %958 = vst.msk [vmem:[#allocation3 + $0x50] sm:$0xff] %vm947_vm5, %v872_v54 }
 0x130   : > { %1451 = vrot.lane.b32.xlu0 %v2947_v0, %s2670_s27  ;;  %336 = vst.msk [vmem:[#allocation2 + $0x189] sm:$0xff] %vm248_vm0, %v247_v14 }
 0x131   : > { %v870_v52 = vpop.permute.xlu1 %869 }
 0x132   : > { %957 = vst.msk [vmem:[#allocation3 + $0x48] sm:$0xff] %vm947_vm5, %v870_v52  ;;  %v876_v17 = vpop.permute.xlu0 %875 }
 0x133   : > { %1449 = vrot.lane.b32.xlu1 %v2939_v62, %s2670_s27  ;;  %960 = vst.msk [vmem:[#allocation3 + $0x60] sm:$0xff] %vm947_vm5, %v876_v17  ;;  %v1192_v17 = vld [vmem:[#allocation2 + $0xfa] sm:$0xff] }
 0x134   : > { %1640 = vrot.lane.b32.xlu0 %v2876_v42, %s2671_s28 }
 0x135   : > { %v874_v61 = vpop.permute.xlu1 %873 }
 0x136   : > { %959 = vst.msk [vmem:[#allocation3 + $0x58] sm:$0xff] %vm947_vm5, %v874_v61  ;;  %v880_v29 = vpop.permute.xlu0 %879 }
 0x137   : > { %1453 = vrot.lane.b32.xlu1 %v2949_v1, %s2670_s27  ;;  %962 = vst.msk [vmem:[#allocation3 + $0x70] sm:$0xff] %vm947_vm5, %v880_v29 }
 0x138   : > { %1644 = vrot.lane.b32.xlu0 %v2884_v44, %s2671_s28 }
 0x139   : > { %v878_v0 = vpop.permute.xlu1 %877 }
 0x13a   : > { %961 = vst.msk [vmem:[#allocation3 + $0x68] sm:$0xff] %vm947_vm5, %v878_v0  ;;  %v884_v62 = vpop.permute.xlu0 %883 }
 0x13b   : > { %1642 = vrot.lane.b32.xlu1 %v2890_v47, %s2671_s28  ;;  %964 = vst.msk [vmem:[#allocation3 + $0x80] sm:$0xff] %vm947_vm5, %v884_v62  ;;  %v992_v47 = vld [vmem:[#allocation2 + $0xa9] sm:$0xff] }
 0x13c   : > { %1833 = vrot.lane.b32.xlu0 %v3054_v16, %s2672_s7 }
 0x13d   : > { %v882_v42 = vpop.permute.xlu1 %881 }
 0x13e   : > { %963 = vst.msk [vmem:[#allocation3 + $0x78] sm:$0xff] %vm947_vm5, %v882_v42  ;;  %v1045_v1 = vpop.permute.xlu0 %1044  ;;  %v1578_v42 = vld [vmem:[#allocation2 + $0x109] sm:$0xff] }
 0x13f   : > { %1646 = vrot.lane.b32.xlu1 %v2908_v53, %s2671_s28  ;;  %1141 = vst.msk [vmem:[#allocation3] sm:$0xff] %vm1140_vm6, %v1045_v1  ;;  %v994_v53 = vld [vmem:[#allocation2 + $0xc1] sm:$0xff] }
 0x140   : > { %1837 = vrot.lane.b32.xlu0 %v3062_v18, %s2672_s7 }
 0x141   : > { %v886_v44 = vpop.permute.xlu1 %885 }
 0x142   : > { %965 = vst.msk [vmem:[#allocation3 + $0x88] sm:$0xff] %vm947_vm5, %v886_v44  ;;  %v1049_v16 = vpop.permute.xlu0 %1048 }
 0x143   : > { %1835 = vrot.lane.b32.xlu1 %v3066_v19, %s2672_s7  ;;  %1143 = vst.msk [vmem:[#allocation3 + $0x10] sm:$0xff] %vm1140_vm6, %v1049_v16 }
 0x144   : > { %1068 = vrot.lane.b32.xlu0 %v992_v47, %s2668_s25  ;;  %v1579_v47 = vld [vmem:[#allocation2 + $0x111] sm:$0xff] }
 0x145   : > { %v1047_v26 = vpop.permute.xlu1 %1046 }
 0x146   : > { %1142 = vst.msk [vmem:[#allocation3 + $0x8] sm:$0xff] %vm1140_vm6, %v1047_v26  ;;  %v1238_v55 = vpop.permute.xlu0 %1237  ;;  %v1771_v26 = vld [vmem:[#allocation2 + $0x10a] sm:$0xff] }
 0x147   : > { %1839 = vrot.lane.b32.xlu1 %v3074_v21, %s2672_s7  ;;  %1334 = vst.msk [vmem:[#allocation3] sm:$0xff] %vm1333_vm7, %v1238_v55 }
 0x148   : > { %1072 = vrot.lane.b32.xlu0 %v994_v53, %s2668_s25 }
 0x149   : > { %v1051_v33 = vpop.permute.xlu1 %1050 }
 0x14a   : > { %1144 = vst.msk [vmem:[#allocation3 + $0x18] sm:$0xff] %vm1140_vm6, %v1051_v33  ;;  %v1242_v19 = vpop.permute.xlu0 %1241 }
 0x14b   : > { %1070 = vrot.lane.b32.xlu1 %v993_v46, %s2668_s25  ;;  %1336 = vst.msk [vmem:[#allocation3 + $0x10] sm:$0xff] %vm1333_vm7, %v1242_v19 }
 0x14c   : > { %1261 = vrot.lane.b32.xlu0 %v3062_v18, %s2669_s26 }
 0x14d   : > { %v1240_v34 = vpop.permute.xlu1 %1239 }
 0x14e   : > { %1335 = vst.msk [vmem:[#allocation3 + $0x8] sm:$0xff] %vm1333_vm7, %v1240_v34  ;;  %v1432_v48 = vpop.permute.xlu0 %1431 }
 0x14f   : > { %1074 = vrot.lane.b32.xlu1 %v995_v31, %s2668_s25  ;;  %1528 = vst.msk [vmem:[#allocation3] sm:$0xff] %vm1527_vm8, %v1432_v48  ;;  %v1772_v48 = vld [vmem:[#allocation2 + $0x112] sm:$0xff] }
 0x150   : > { %1265 = vrot.lane.b32.xlu0 %v3070_v20, %s2669_s26 }
 0x151   : > { %v1244_v49 = vpop.permute.xlu1 %1243 }
 0x152   : > { %1337 = vst.msk [vmem:[#allocation3 + $0x18] sm:$0xff] %vm1333_vm7, %v1244_v49  ;;  %v1436_v35 = vpop.permute.xlu0 %1435 }
 0x153   : > { %1263 = vrot.lane.b32.xlu1 %v3074_v21, %s2669_s26  ;;  %1530 = vst.msk [vmem:[#allocation3 + $0x10] sm:$0xff] %vm1527_vm8, %v1436_v35 }
 0x154   : > { %1455 = vrot.lane.b32.xlu0 %v2951_v2, %s2670_s27 }
 0x155   : > { %v1434_v18 = vpop.permute.xlu1 %1433 }
 0x156   : > { %1529 = vst.msk [vmem:[#allocation3 + $0x8] sm:$0xff] %vm1527_vm8, %v1434_v18  ;;  %v1625_v36 = vpop.permute.xlu0 %1624 }
 0x157   : > { %1267 = vrot.lane.b32.xlu1 %v3080_v23, %s2669_s26  ;;  %1721 = vst.msk [vmem:[#allocation3] sm:$0xff] %vm1720_vm9, %v1625_v36 }
 0x158   : > { %1459 = vrot.lane.b32.xlu0 %v2963_v4, %s2670_s27 }
 0x159   : > { %v1438_v63 = vpop.permute.xlu1 %1437 }
 0x15a   : > { %1531 = vst.msk [vmem:[#allocation3 + $0x18] sm:$0xff] %vm1527_vm8, %v1438_v63  ;;  %v1629_v21 = vpop.permute.xlu0 %1628 }
 0x15b   : > { %1457 = vrot.lane.b32.xlu1 %v2961_v3, %s2670_s27  ;;  %1723 = vst.msk [vmem:[#allocation3 + $0x10] sm:$0xff] %vm1720_vm9, %v1629_v21 }
 0x15c   : > { %1648 = vrot.lane.b32.xlu0 %v994_v53, %s2671_s28 }
 0x15d   : > { %v1627_v2 = vpop.permute.xlu1 %1626 }
 0x15e   : > { %1722 = vst.msk [vmem:[#allocation3 + $0x8] sm:$0xff] %vm1720_vm9, %v1627_v2  ;;  %v1818_v25 = vpop.permute.xlu0 %1817  ;;  %v1002_v2 = vld [vmem:[#allocation2 + $0x121] sm:$0xff] }
 0x15f   : > { %1461 = vrot.lane.b32.xlu1 %v2965_v5, %s2670_s27  ;;  %1914 = vst.msk [vmem:[#allocation3] sm:$0xff] %vm1913_vm10, %v1818_v25  ;;  %v1767_v5 = vld [vmem:[#allocation2 + $0xda] sm:$0xff]  ;;  %v1003_v25 = vld [vmem:[#allocation2 + $0x129] sm:$0xff] }
 0x160   : > { %1652 = vrot.lane.b32.xlu0 %v1574_v30, %s2671_s28 }
 0x161   : > { %v1631_v4 = vpop.permute.xlu1 %1630 }
 0x162   : > { %1724 = vst.msk [vmem:[#allocation3 + $0x18] sm:$0xff] %vm1720_vm9, %v1631_v4  ;;  %v1822_v3 = vpop.permute.xlu0 %1821 }
 0x163   : > { %1650 = vrot.lane.b32.xlu1 %v995_v31, %s2671_s28  ;;  %1916 = vst.msk [vmem:[#allocation3 + $0x10] sm:$0xff] %vm1913_vm10, %v1822_v3 }
 0x164   : > { %1841 = vrot.lane.b32.xlu0 %v3070_v20, %s2672_s7 }
 0x165   : > { %v1820_v39 = vpop.permute.xlu1 %1819 }
 0x166   : > { %1915 = vst.msk [vmem:[#allocation3 + $0x8] sm:$0xff] %vm1913_vm10, %v1820_v39  ;;  %v1053_v56 = vpop.permute.xlu0 %1052  ;;  %v1946_v27 = vld [vmem:[#allocation3] sm:$0xff]  ;;  %v1387_v39 = vld [vmem:[#allocation2 + $0x120] sm:$0xff] }
 0x167   : > { %1654 = vrot.lane.b32.xlu1 %v1575_v37, %s2671_s28  ;;  %1145 = vst.msk [vmem:[#allocation3 + $0x20] sm:$0xff] %vm1140_vm6, %v1053_v56  ;;  %v1196_v56 = vld [vmem:[#allocation2 + $0x12a] sm:$0xff] }
 0x168   : > { %1845 = vrot.lane.b32.xlu0 %v1767_v5, %s2672_s7 }
 0x169   : > { %v1824_v45 = vpop.permute.xlu1 %1823 }
 0x16a   : > { %1917 = vst.msk [vmem:[#allocation3 + $0x18] sm:$0xff] %vm1913_vm10, %v1824_v45  ;;  %v1057_v13 = vpop.permute.xlu0 %1056  ;;  %v1948_v58 = vld [vmem:[#allocation3 + $0x10] sm:$0xff] }
 0x16b   : > { %1843 = vrot.lane.b32.xlu1 %v3080_v23, %s2672_s7  ;;  %1147 = vst.msk [vmem:[#allocation3 + $0x30] sm:$0xff] %vm1140_vm6, %v1057_v13 }
 0x16c   : > { %887 = vrot.lane.b32.xlu0 %v2973_v6, %s2667_s24 }
 0x16d   : > { %v1055_v20 = vpop.permute.xlu1 %1054  ;;  %v1947_v38 = vld [vmem:[#allocation3 + $0x8] sm:$0xff] }
 0x16e   : > { %1146 = vst.msk [vmem:[#allocation3 + $0x28] sm:$0xff] %vm1140_vm6, %v1055_v20  ;;  %v1978_v59 = vpack.c.bf16 %v1947_v38, %v1946_v27  ;;  %v1246_v32 = vpop.permute.xlu0 %1245  ;;  %v1389_v27 = vld [vmem:[#allocation2 + $0x138] sm:$0xff] }
 0x16f   : > { %1847 = vrot.lane.b32.xlu1 %v1768_v57, %s2672_s7  ;;  %1338 = vst.msk [vmem:[#allocation3 + $0x20] sm:$0xff] %vm1333_vm7, %v1246_v32  ;;  %v1582_v32 = vld [vmem:[#allocation2 + $0x139] sm:$0xff] }
 0x170   : > { %2596 = vmatprep.mubr.msk.bf16.mxu0 %vm2014_vm11, %v1978_v59  ;;  %1076 = vrot.lane.b32.xlu0 %v1574_v30, %s2668_s25  ;;  %v1390_v59 = vld [vmem:[#allocation2 + $0x140] sm:$0xff] }
 0x171   : > { %v1059_v23 = vpop.permute.xlu1 %1058  ;;  %v1949_v60 = vld [vmem:[#allocation3 + $0x18] sm:$0xff] }
 0x172   : > { %1148 = vst.msk [vmem:[#allocation3 + $0x38] sm:$0xff] %vm1140_vm6, %v1059_v23  ;;  %v1979_v22 = vpack.c.bf16 %v1949_v60, %v1948_v58  ;;  %v1250_v10 = vpop.permute.xlu0 %1249 }
 0x173   : > { %889 = vrot.lane.b32.xlu1 %v2975_v7, %s2667_s24  ;;  %1340 = vst.msk [vmem:[#allocation3 + $0x30] sm:$0xff] %vm1333_vm7, %v1250_v10 }
 0x174   : > { %2597 = vmatmul.mubr.msk.bf16.vlgmr.msra.gmra.mxu0 %vm2014_vm11, %v1979_v22  ;;  %1080 = vrot.lane.b32.xlu0 %v998_v41, %s2668_s25 }
 0x175   : > { %v1248_v24 = vpop.permute.xlu1 %1247 }
 0x176   : > { %1339 = vst.msk [vmem:[#allocation3 + $0x28] sm:$0xff] %vm1333_vm7, %v1248_v24  ;;  %v1440_v50 = vpop.permute.xlu0 %1439 }
 0x177   : > { %1078 = vrot.lane.b32.xlu1 %v1575_v37, %s2668_s25  ;;  %1532 = vst.msk [vmem:[#allocation3 + $0x20] sm:$0xff] %vm1527_vm8, %v1440_v50 }
 0x178   : > { %1269 = vrot.lane.b32.xlu0 %v1767_v5, %s2669_s26 }
 0x179   : > { %v1252_v40 = vpop.permute.xlu1 %1251 }
 0x17a   : > { %1341 = vst.msk [vmem:[#allocation3 + $0x38] sm:$0xff] %vm1333_vm7, %v1252_v40  ;;  %v1444_v43 = vpop.permute.xlu0 %1443 }
 0x17b   : > { %1082 = vrot.lane.b32.xlu1 %v999_v15, %s2668_s25  ;;  %1534 = vst.msk [vmem:[#allocation3 + $0x30] sm:$0xff] %vm1527_vm8, %v1444_v43  ;;  %v1775_v43 = vld [vmem:[#allocation2 + $0x13a] sm:$0xff] }
 0x17c   : > { %1273 = vrot.lane.b32.xlu0 %v1191_v51, %s2669_s26 }
 0x17d   : > { %v1442_v54 = vpop.permute.xlu1 %1441 }
 0x17e   : > { %1533 = vst.msk [vmem:[#allocation3 + $0x28] sm:$0xff] %vm1527_vm8, %v1442_v54  ;;  %v1633_v52 = vpop.permute.xlu0 %1632 }
 0x17f   : > { %1271 = vrot.lane.b32.xlu1 %v1768_v57, %s2669_s26  ;;  %1725 = vst.msk [vmem:[#allocation3 + $0x20] sm:$0xff] %vm1720_vm9, %v1633_v52  ;;  %v1388_v57 = vld [vmem:[#allocation2 + $0x128] sm:$0xff] }
 0x180   : > { %1463 = vrot.lane.b32.xlu0 %v2973_v6, %s2670_s27 }
 0x181   : > { %v1446_v61 = vpop.permute.xlu1 %1445 }
 0x182   : > { %1535 = vst.msk [vmem:[#allocation3 + $0x38] sm:$0xff] %vm1527_vm8, %v1446_v61  ;;  %v1637_v29 = vpop.permute.xlu0 %1636 }
 0x183   : > { %1275 = vrot.lane.b32.xlu1 %v1192_v17, %s2669_s26  ;;  %1727 = vst.msk [vmem:[#allocation3 + $0x30] sm:$0xff] %vm1720_vm9, %v1637_v29  ;;  %v813_v29 = vld [vmem:[#allocation2 + $0x150] sm:$0xff] }
 0x184   : > { %1467 = vrot.lane.b32.xlu0 %v2977_v8, %s2670_s27 }
 0x185   : > { %v1635_v0 = vpop.permute.xlu1 %1634 }
 0x186   : > { %1726 = vst.msk [vmem:[#allocation3 + $0x28] sm:$0xff] %vm1720_vm9, %v1635_v0  ;;  %v1826_v62 = vpop.permute.xlu0 %1825 }
 0x187   : > { %1465 = vrot.lane.b32.xlu1 %v2975_v7, %s2670_s27  ;;  %1918 = vst.msk [vmem:[#allocation3 + $0x20] sm:$0xff] %vm1913_vm10, %v1826_v62 }
 0x188   : > { %1656 = vrot.lane.b32.xlu0 %v998_v41, %s2671_s28 }
 0x189   : > { %v1639_v6 = vpop.permute.xlu1 %1638 }
 0x18a   : > { %1728 = vst.msk [vmem:[#allocation3 + $0x38] sm:$0xff] %vm1720_vm9, %v1639_v6  ;;  %v1830_v1 = vpop.permute.xlu0 %1829 }
 0x18b   : > { %1469 = vrot.lane.b32.xlu1 %v2986_v9, %s2670_s27  ;;  %1920 = vst.msk [vmem:[#allocation3 + $0x30] sm:$0xff] %vm1913_vm10, %v1830_v1 }
 0x18c   : > { %1660 = vrot.lane.b32.xlu0 %v1578_v42, %s2671_s28 }
 0x18d   : > { %v1828_v44 = vpop.permute.xlu1 %1827 }
 0x18e   : > { %1919 = vst.msk [vmem:[#allocation3 + $0x28] sm:$0xff] %vm1913_vm10, %v1828_v44  ;;  %v1061_v7 = vpop.permute.xlu0 %1060  ;;  %v1950_v53 = vld [vmem:[#allocation3 + $0x20] sm:$0xff] }
 0x18f   : > { %1658 = vrot.lane.b32.xlu1 %v999_v15, %s2671_s28  ;;  %1149 = vst.msk [vmem:[#allocation3 + $0x40] sm:$0xff] %vm1140_vm6, %v1061_v7  ;;  %v1583_v15 = vld [vmem:[#allocation2 + $0x141] sm:$0xff]  ;;  %v1006_v44 = vld [vmem:[#allocation2 + $0x151] sm:$0xff] }
 0x190   : > { %1849 = vrot.lane.b32.xlu0 %v1191_v51, %s2672_s7 }
 0x191   : > { %v1832_v16 = vpop.permute.xlu1 %1831 }
 0x192   : > { %1921 = vst.msk [vmem:[#allocation3 + $0x38] sm:$0xff] %vm1913_vm10, %v1832_v16  ;;  %v1065_v55 = vpop.permute.xlu0 %1064  ;;  %v1952_v31 = vld [vmem:[#allocation3 + $0x30] sm:$0xff] }
 0x193   : > { %1662 = vrot.lane.b32.xlu1 %v1579_v47, %s2671_s28  ;;  %1151 = vst.msk [vmem:[#allocation3 + $0x50] sm:$0xff] %vm1140_vm6, %v1065_v55  ;;  %v1199_v55 = vld [vmem:[#allocation2 + $0x152] sm:$0xff] }
 0x194   : > { %1853 = vrot.lane.b32.xlu0 %v1771_v26, %s2672_s7 }
 0x195   : > { %v1063_v46 = vpop.permute.xlu1 %1062  ;;  %v1951_v33 = vld [vmem:[#allocation3 + $0x28] sm:$0xff] }
 0x196   : > { %1150 = vst.msk [vmem:[#allocation3 + $0x48] sm:$0xff] %vm1140_vm6, %v1063_v46  ;;  %v1980_v19 = vpack.c.bf16 %v1951_v33, %v1950_v53  ;;  %v1254_v34 = vpop.permute.xlu0 %1253 }
 0x197   : > { %1851 = vrot.lane.b32.xlu1 %v1192_v17, %s2672_s7  ;;  %1342 = vst.msk [vmem:[#allocation3 + $0x40] sm:$0xff] %vm1333_vm7, %v1254_v34  ;;  %v1776_v17 = vld [vmem:[#allocation2 + $0x142] sm:$0xff] }
 0x198   : > { %2600 = vmatprep.mubr.msk.bf16.mxu0 %vm2014_vm11, %v1980_v19  ;;  %891 = vrot.lane.b32.xlu0 %v2977_v8, %s2667_s24 }
 0x199   : > { %v1067_v49 = vpop.permute.xlu1 %1066  ;;  %v1953_v35 = vld [vmem:[#allocation3 + $0x38] sm:$0xff] }
 0x19a   : > { %1152 = vst.msk [vmem:[#allocation3 + $0x58] sm:$0xff] %vm1140_vm6, %v1067_v49  ;;  %v1981_v18 = vpack.c.bf16 %v1953_v35, %v1952_v31  ;;  %v1258_v36 = vpop.permute.xlu0 %1257  ;;  %v1200_v31 = vld [vmem:[#allocation2 + $0x15a] sm:$0xff] }
 0x19b   : > { %1855 = vrot.lane.b32.xlu1 %v1772_v48, %s2672_s7  ;;  %1344 = vst.msk [vmem:[#allocation3 + $0x50] sm:$0xff] %vm1333_vm7, %v1258_v36 }
 0x19c   : > { %2601 = vmatmul.mubr.msk.bf16.gmra.mxu0 %vm2014_vm11, %v1981_v18  ;;  %895 = vrot.lane.b32.xlu0 %v2991_v11, %s2667_s24 }
 0x19d   : > { %v1256_v63 = vpop.permute.xlu1 %1255 }
 0x19e   : > { %1343 = vst.msk [vmem:[#allocation3 + $0x48] sm:$0xff] %vm1333_vm7, %v1256_v63  ;;  %v1448_v8 = vpop.permute.xlu0 %1447 }
 0x19f   : > { %893 = vrot.lane.b32.xlu1 %v2986_v9, %s2667_s24  ;;  %1536 = vst.msk [vmem:[#allocation3 + $0x40] sm:$0xff] %vm1527_vm8, %v1448_v8 }
 0x1a0   : > { %1084 = vrot.lane.b32.xlu0 %v1578_v42, %s2668_s25  ;;  %v814_v42 = vld [vmem:[#allocation2 + $0x158] sm:$0xff] }
 0x1a1   : > { %v1260_v21 = vpop.permute.xlu1 %1259 }
 0x1a2   : > { %1345 = vst.msk [vmem:[#allocation3 + $0x58] sm:$0xff] %vm1333_vm7, %v1260_v21  ;;  %v1452_v30 = vpop.permute.xlu0 %1451 }
 0x1a3   : > { %897 = vrot.lane.b32.xlu1 %v2993_v12, %s2667_s24  ;;  %1538 = vst.msk [vmem:[#allocation3 + $0x50] sm:$0xff] %vm1527_vm8, %v1452_v30  ;;  %v1195_v12 = vld [vmem:[#allocation2 + $0x122] sm:$0xff] }
 0x1a4   : > { %1088 = vrot.lane.b32.xlu0 %v1002_v2, %s2668_s25 }
 0x1a5   : > { %v1450_v11 = vpop.permute.xlu1 %1449 }
 0x1a6   : > { %1537 = vst.msk [vmem:[#allocation3 + $0x48] sm:$0xff] %vm1527_vm8, %v1450_v11  ;;  %v1641_v9 = vpop.permute.xlu0 %1640 }
 0x1a7   : > { %1086 = vrot.lane.b32.xlu1 %v1579_v47, %s2668_s25  ;;  %1729 = vst.msk [vmem:[#allocation3 + $0x40] sm:$0xff] %vm1720_vm9, %v1641_v9 }
 0x1a8   : > { %1277 = vrot.lane.b32.xlu0 %v1771_v26, %s2669_s26  ;;  %v1007_v26 = vld [vmem:[#allocation2 + $0x159] sm:$0xff] }
 0x1a9   : > { %v1454_v4 = vpop.permute.xlu1 %1453 }
 0x1aa   : > { %1539 = vst.msk [vmem:[#allocation3 + $0x58] sm:$0xff] %vm1527_vm8, %v1454_v4  ;;  %v1645_v3 = vpop.permute.xlu0 %1644 }
 0x1ab   : > { %1090 = vrot.lane.b32.xlu1 %v1003_v25, %s2668_s25  ;;  %1731 = vst.msk [vmem:[#allocation3 + $0x50] sm:$0xff] %vm1720_vm9, %v1645_v3 }
 0x1ac   : > { %1281 = vrot.lane.b32.xlu0 %v1195_v12, %s2669_s26 }
 0x1ad   : > { %v1643_v37 = vpop.permute.xlu1 %1642 }
 0x1ae   : > { %1730 = vst.msk [vmem:[#allocation3 + $0x48] sm:$0xff] %vm1720_vm9, %v1643_v37  ;;  %v1834_v5 = vpop.permute.xlu0 %1833  ;;  %v1587_v37 = vld [vmem:[#allocation2 + $0x171] sm:$0xff] }
 0x1af   : > { %1279 = vrot.lane.b32.xlu1 %v1772_v48, %s2669_s26  ;;  %1922 = vst.msk [vmem:[#allocation3 + $0x40] sm:$0xff] %vm1913_vm10, %v1834_v5  ;;  %v1393_v48 = vld [vmem:[#allocation2 + $0x168] sm:$0xff] }
 0x1b0   : > { %1471 = vrot.lane.b32.xlu0 %v1387_v39, %s2670_s27  ;;  %v1779_v5 = vld [vmem:[#allocation2 + $0x16a] sm:$0xff] }
 0x1b1   : > { %v1647_v45 = vpop.permute.xlu1 %1646 }
 0x1b2   : > { %1732 = vst.msk [vmem:[#allocation3 + $0x58] sm:$0xff] %vm1720_vm9, %v1647_v45  ;;  %v1838_v13 = vpop.permute.xlu0 %1837 }
 0x1b3   : > { %1283 = vrot.lane.b32.xlu1 %v1196_v56, %s2669_s26  ;;  %1924 = vst.msk [vmem:[#allocation3 + $0x50] sm:$0xff] %vm1913_vm10, %v1838_v13  ;;  %v1780_v13 = vld [vmem:[#allocation2 + $0x172] sm:$0xff] }
 0x1b4   : > { %1475 = vrot.lane.b32.xlu0 %v1389_v27, %s2670_s27 }
 0x1b5   : > { %v1836_v20 = vpop.permute.xlu1 %1835 }
 0x1b6   : > { %1923 = vst.msk [vmem:[#allocation3 + $0x48] sm:$0xff] %vm1913_vm10, %v1836_v20  ;;  %v1069_v38 = vpop.permute.xlu0 %1068  ;;  %v1954_v23 = vld [vmem:[#allocation3 + $0x40] sm:$0xff]  ;;  %v817_v20 = vld [vmem:[#allocation2 + $0x180] sm:$0xff] }
 0x1b7   : > { %1473 = vrot.lane.b32.xlu1 %v1388_v57, %s2670_s27  ;;  %1153 = vst.msk [vmem:[#allocation3 + $0x60] sm:$0xff] %vm1140_vm6, %v1069_v38 }
 0x1b8   : > { %1664 = vrot.lane.b32.xlu0 %v1002_v2, %s2671_s28  ;;  %v1394_v2 = vld [vmem:[#allocation2 + $0x170] sm:$0xff] }
 0x1b9   : > { %v1840_v58 = vpop.permute.xlu1 %1839 }
 0x1ba   : > { %1925 = vst.msk [vmem:[#allocation3 + $0x58] sm:$0xff] %vm1913_vm10, %v1840_v58  ;;  %v1073_v60 = vpop.permute.xlu0 %1072  ;;  %v1956_v24 = vld [vmem:[#allocation3 + $0x50] sm:$0xff] }
 0x1bb   : > { %1477 = vrot.lane.b32.xlu1 %v1390_v59, %s2670_s27  ;;  %1155 = vst.msk [vmem:[#allocation3 + $0x70] sm:$0xff] %vm1140_vm6, %v1073_v60  ;;  %v1010_v60 = vld [vmem:[#allocation2 + $0x181] sm:$0xff] }
 0x1bc   : > { %1668 = vrot.lane.b32.xlu0 %v1582_v32, %s2671_s28 }
 0x1bd   : > { %v1071_v22 = vpop.permute.xlu1 %1070  ;;  %v1955_v41 = vld [vmem:[#allocation3 + $0x48] sm:$0xff] }
 0x1be   : > { %1154 = vst.msk [vmem:[#allocation3 + $0x68] sm:$0xff] %vm1140_vm6, %v1071_v22  ;;  %v1982_v10 = vpack.c.bf16 %v1955_v41, %v1954_v23  ;;  %v1262_v50 = vpop.permute.xlu0 %1261 }
 0x1bf   : > { %1666 = vrot.lane.b32.xlu1 %v1003_v25, %s2671_s28  ;;  %1346 = vst.msk [vmem:[#allocation3 + $0x60] sm:$0xff] %vm1333_vm7, %v1262_v50  ;;  %v1586_v25 = vld [vmem:[#allocation2 + $0x169] sm:$0xff] }
 0x1c0   : > { %2604 = vmatprep.mubr.msk.bf16.mxu0 %vm2014_vm11, %v1982_v10  ;;  %1857 = vrot.lane.b32.xlu0 %v1195_v12, %s2672_s7 }
 0x1c1   : > { %v1075_v40 = vpop.permute.xlu1 %1074  ;;  %v1957_v51 = vld [vmem:[#allocation3 + $0x58] sm:$0xff] }
 0x1c2   : > { %1156 = vst.msk [vmem:[#allocation3 + $0x78] sm:$0xff] %vm1140_vm6, %v1075_v40  ;;  %v1983_v28 = vpack.c.bf16 %v1957_v51, %v1956_v24  ;;  %v1266_v14 = vpop.permute.xlu0 %1265  ;;  %v1011_v24 = vld [vmem:[#allocation2 + $0x189] sm:$0xff] }
 0x1c3   : > { %1670 = vrot.lane.b32.xlu1 %v1583_v15, %s2671_s28  ;;  %1348 = vst.msk [vmem:[#allocation3 + $0x70] sm:$0xff] %vm1333_vm7, %v1266_v14  ;;  %v1204_v14 = vld [vmem:[#allocation2 + $0x18a] sm:$0xff] }
 0x1c4   : > { %2605 = vmatmul.mubr.msk.bf16.gmra.mxu0 %vm2014_vm11, %v1983_v28  ;;  %1861 = vrot.lane.b32.xlu0 %v1775_v43, %s2672_s7 }
 0x1c5   : > { %v1264_v54 = vpop.permute.xlu1 %1263 }
 0x1c6   : > { %1347 = vst.msk [vmem:[#allocation3 + $0x68] sm:$0xff] %vm1333_vm7, %v1264_v54  ;;  %v1456_v52 = vpop.permute.xlu0 %1455 }
 0x1c7   : > { %1859 = vrot.lane.b32.xlu1 %v1196_v56, %s2672_s7  ;;  %1540 = vst.msk [vmem:[#allocation3 + $0x60] sm:$0xff] %vm1527_vm8, %v1456_v52 }
 0x1c8   : > { %899 = vrot.lane.b32.xlu0 %v1389_v27, %s2667_s24 }
 0x1c9   : > { %v1268_v61 = vpop.permute.xlu1 %1267 }
 0x1ca   : > { %1349 = vst.msk [vmem:[#allocation3 + $0x78] sm:$0xff] %vm1333_vm7, %v1268_v61  ;;  %v1460_v0 = vpop.permute.xlu0 %1459  ;;  %v1397_v61 = vld [vmem:[#allocation2 + $0x198] sm:$0xff] }
 0x1cb   : > { %1863 = vrot.lane.b32.xlu1 %v1776_v17, %s2672_s7  ;;  %1542 = vst.msk [vmem:[#allocation3 + $0x70] sm:$0xff] %vm1527_vm8, %v1460_v0 }
 0x1cc   : > { %903 = vrot.lane.b32.xlu0 %v813_v29, %s2667_s24 }
 0x1cd   : > { %v1458_v62 = vpop.permute.xlu1 %1457 }
 0x1ce   : > { %1541 = vst.msk [vmem:[#allocation3 + $0x68] sm:$0xff] %vm1527_vm8, %v1458_v62  ;;  %v1649_v6 = vpop.permute.xlu0 %1648 }
 0x1cf   : > { %901 = vrot.lane.b32.xlu1 %v1390_v59, %s2667_s24  ;;  %1733 = vst.msk [vmem:[#allocation3 + $0x60] sm:$0xff] %vm1720_vm9, %v1649_v6 }
 0x1d0   : > { %1092 = vrot.lane.b32.xlu0 %v1582_v32, %s2668_s25  ;;  %v818_v32 = vld [vmem:[#allocation2 + $0x188] sm:$0xff] }
 0x1d1   : > { %v1462_v1 = vpop.permute.xlu1 %1461 }
 0x1d2   : > { %1543 = vst.msk [vmem:[#allocation3 + $0x78] sm:$0xff] %vm1527_vm8, %v1462_v1  ;;  %v1653_v7 = vpop.permute.xlu0 %1652 }
 0x1d3   : > { %905 = vrot.lane.b32.xlu1 %v814_v42, %s2667_s24  ;;  %1735 = vst.msk [vmem:[#allocation3 + $0x70] sm:$0xff] %vm1720_vm9, %v1653_v7 }
 0x1d4   : > { %1096 = vrot.lane.b32.xlu0 %v1006_v44, %s2668_s25 }
 0x1d5   : > { %v1651_v47 = vpop.permute.xlu1 %1650 }
 0x1d6   : > { %1734 = vst.msk [vmem:[#allocation3 + $0x68] sm:$0xff] %vm1720_vm9, %v1651_v47  ;;  %v1842_v16 = vpop.permute.xlu0 %1841  ;;  %v1590_v47 = vld [vmem:[#allocation2 + $0x199] sm:$0xff] }
 0x1d7   : > { %1094 = vrot.lane.b32.xlu1 %v1583_v15, %s2668_s25  ;;  %1926 = vst.msk [vmem:[#allocation3 + $0x60] sm:$0xff] %vm1913_vm10, %v1842_v16  ;;  %v1203_v15 = vld [vmem:[#allocation2 + $0x182] sm:$0xff] }
 0x1d8   : > { %1285 = vrot.lane.b32.xlu0 %v1775_v43, %s2669_s26 }
 0x1d9   : > { %v1655_v53 = vpop.permute.xlu1 %1654 }
 0x1da   : > { %1736 = vst.msk [vmem:[#allocation3 + $0x78] sm:$0xff] %vm1720_vm9, %v1655_v53  ;;  %v1846_v46 = vpop.permute.xlu0 %1845 }
 0x1db   : > { %1098 = vrot.lane.b32.xlu1 %v1007_v26, %s2668_s25  ;;  %1928 = vst.msk [vmem:[#allocation3 + $0x70] sm:$0xff] %vm1913_vm10, %v1846_v46 }
 0x1dc   : > { %1289 = vrot.lane.b32.xlu0 %v1199_v55, %s2669_s26 }
 0x1dd   : > { %v1844_v33 = vpop.permute.xlu1 %1843 }
 0x1de   : > { %1927 = vst.msk [vmem:[#allocation3 + $0x68] sm:$0xff] %vm1913_vm10, %v1844_v33  ;;  %v888_v19 = vpop.permute.xlu0 %887  ;;  %v1958_v49 = vld [vmem:[#allocation3 + $0x60] sm:$0xff]  ;;  %v1783_v33 = vld [vmem:[#allocation2 + $0x19a] sm:$0xff] }
 0x1df   : > { %1287 = vrot.lane.b32.xlu1 %v1776_v17, %s2669_s26  ;;  %966 = vst.msk [vmem:[#allocation3 + $0x90] sm:$0xff] %vm947_vm5, %v888_v19 }
 0x1e0   : > { %1479 = vrot.lane.b32.xlu0 %v813_v29, %s2670_s27 }
 0x1e1   : > { %v1848_v34 = vpop.permute.xlu1 %1847 }
 0x1e2   : > { %1929 = vst.msk [vmem:[#allocation3 + $0x78] sm:$0xff] %vm1913_vm10, %v1848_v34  ;;  %v1077_v35 = vpop.permute.xlu0 %1076  ;;  %v1960_v8 = vld [vmem:[#allocation3 + $0x70] sm:$0xff] }
 0x1e3   : > { %1291 = vrot.lane.b32.xlu1 %v1200_v31, %s2669_s26  ;;  %1157 = vst.msk [vmem:[#allocation3 + $0x80] sm:$0xff] %vm1140_vm6, %v1077_v35 }
 0x1e4   : > { %1483 = vrot.lane.b32.xlu0 %v1393_v48, %s2670_s27 }
 0x1e5   : > { %v890_v18 = vpop.permute.xlu1 %889  ;;  %v1959_v36 = vld [vmem:[#allocation3 + $0x68] sm:$0xff] }
 0x1e6   : > { %967 = vst.msk [vmem:[#allocation3 + $0x98] sm:$0xff] %vm947_vm5, %v890_v18  ;;  %v1984_v63 = vpack.c.bf16 %v1959_v36, %v1958_v49  ;;  %v1081_v21 = vpop.permute.xlu0 %1080 }
 0x1e7   : > { %1481 = vrot.lane.b32.xlu1 %v814_v42, %s2670_s27  ;;  %1159 = vst.msk [vmem:[#allocation3 + $0x90] sm:$0xff] %vm1140_vm6, %v1081_v21 }
 0x1e8   : > { %2608 = vmatprep.mubr.msk.bf16.mxu0 %vm2014_vm11, %v1984_v63  ;;  %1672 = vrot.lane.b32.xlu0 %v1006_v44, %s2671_s28  ;;  %v1398_v44 = vld [vmem:[#allocation2 + $0x1a0] sm:$0xff] }
 0x1e9   : > { %v1079_v30 = vpop.permute.xlu1 %1078  ;;  %v1961_v11 = vld [vmem:[#allocation3 + $0x78] sm:$0xff] }
 0x1ea   : > { %1158 = vst.msk [vmem:[#allocation3 + $0x88] sm:$0xff] %vm1140_vm6, %v1079_v30  ;;  %v1985_v9 = vpack.c.bf16 %v1961_v11, %v1960_v8  ;;  %v1270_v4 = vpop.permute.xlu0 %1269 }
 0x1eb   : > { %1485 = vrot.lane.b32.xlu1 %v1394_v2, %s2670_s27  ;;  %1350 = vst.msk [vmem:[#allocation3 + $0x80] sm:$0xff] %vm1333_vm7, %v1270_v4 }
 0x1ec   : > { %2609 = vmatmul.mubr.msk.bf16.gmra.mxu0 %vm2014_vm11, %v1985_v9  ;;  %1676 = vrot.lane.b32.xlu0 %v1586_v25, %s2671_s28 }
 0x1ed   : > { %v1083_v12 = vpop.permute.xlu1 %1082 }
 0x1ee   : > { %1160 = vst.msk [vmem:[#allocation3 + $0x98] sm:$0xff] %vm1140_vm6, %v1083_v12  ;;  %v1274_v3 = vpop.permute.xlu0 %1273 }
 0x1ef   : > { %1674 = vrot.lane.b32.xlu1 %v1007_v26, %s2671_s28  ;;  %1352 = vst.msk [vmem:[#allocation3 + $0x90] sm:$0xff] %vm1333_vm7, %v1274_v3 }
 0x1f0   : > { %1865 = vrot.lane.b32.xlu0 %v1199_v55, %s2672_s7  ;;  %v1591_v55 = vld [vmem:[#allocation2 + $0x1a1] sm:$0xff] }
 0x1f1   : > { %v1272_v39 = vpop.permute.xlu1 %1271 }
 0x1f2   : > { %1351 = vst.msk [vmem:[#allocation3 + $0x88] sm:$0xff] %vm1333_vm7, %v1272_v39  ;;  %v1464_v56 = vpop.permute.xlu0 %1463 }
 0x1f3   : > { %1678 = vrot.lane.b32.xlu1 %v1587_v37, %s2671_s28  ;;  %1544 = vst.msk [vmem:[#allocation3 + $0x80] sm:$0xff] %vm1527_vm8, %v1464_v56 }
 0x1f4   : > { %1869 = vrot.lane.b32.xlu0 %v1779_v5, %s2672_s7 }
 0x1f5   : > { %v1276_v45 = vpop.permute.xlu1 %1275 }
 0x1f6   : > { %1353 = vst.msk [vmem:[#allocation3 + $0x98] sm:$0xff] %vm1333_vm7, %v1276_v45  ;;  %v1468_v27 = vpop.permute.xlu0 %1467 }
 0x1f7   : > { %1867 = vrot.lane.b32.xlu1 %v1200_v31, %s2672_s7  ;;  %1546 = vst.msk [vmem:[#allocation3 + $0x90] sm:$0xff] %vm1527_vm8, %v1468_v27 }
 0x1f8   : > { %907 = vrot.lane.b32.xlu0 %v1393_v48, %s2667_s24  ;;  %v1784_v48 = vld [vmem:[#allocation2 + $0x1a2] sm:$0xff] }
 0x1f9   : > { %v1466_v57 = vpop.permute.xlu1 %1465 }
 0x1fa   : > { %1545 = vst.msk [vmem:[#allocation3 + $0x88] sm:$0xff] %vm1527_vm8, %v1466_v57  ;;  %v1657_v38 = vpop.permute.xlu0 %1656 }
 0x1fb   : > { %1871 = vrot.lane.b32.xlu1 %v1780_v13, %s2672_s7  ;;  %1737 = vst.msk [vmem:[#allocation3 + $0x80] sm:$0xff] %vm1720_vm9, %v1657_v38 }
 0x1fc   : > { %911 = vrot.lane.b32.xlu0 %v817_v20, %s2667_s24 }
 0x1fd   : > { %v1470_v59 = vpop.permute.xlu1 %1469 }
 0x1fe   : > { %1547 = vst.msk [vmem:[#allocation3 + $0x98] sm:$0xff] %vm1527_vm8, %v1470_v59  ;;  %v1661_v58 = vpop.permute.xlu0 %1660 }
 0x1ff   : > { %909 = vrot.lane.b32.xlu1 %v1394_v2, %s2667_s24  ;;  %1739 = vst.msk [vmem:[#allocation3 + $0x90] sm:$0xff] %vm1720_vm9, %v1661_v58 }
 0x200   : > { %1100 = vrot.lane.b32.xlu0 %v1586_v25, %s2668_s25 }
 0x201   : > { %v1659_v23 = vpop.permute.xlu1 %1658 }
 0x202   : > { %1738 = vst.msk [vmem:[#allocation3 + $0x88] sm:$0xff] %vm1720_vm9, %v1659_v23  ;;  %v1850_v22 = vpop.permute.xlu0 %1849 }
 0x203   : > { %913 = vrot.lane.b32.xlu1 %v818_v32, %s2667_s24  ;;  %1930 = vst.msk [vmem:[#allocation3 + $0x80] sm:$0xff] %vm1913_vm10, %v1850_v22 }
 0x204   : > { %1104 = vrot.lane.b32.xlu0 %v1010_v60, %s2668_s25 }
 0x205   : > { %v1663_v41 = vpop.permute.xlu1 %1662 }
 0x206   : > { %1740 = vst.msk [vmem:[#allocation3 + $0x98] sm:$0xff] %vm1720_vm9, %v1663_v41  ;;  %v1854_v10 = vpop.permute.xlu0 %1853 }
 0x207   : > { %1102 = vrot.lane.b32.xlu1 %v1587_v37, %s2668_s25  ;;  %1932 = vst.msk [vmem:[#allocation3 + $0x90] sm:$0xff] %vm1913_vm10, %v1854_v10 }
 0x208   : > { %1293 = vrot.lane.b32.xlu0 %v1779_v5, %s2669_s26 }
 0x209   : > { %v1852_v50 = vpop.permute.xlu1 %1851 }
 0x20a   : > { %1931 = vst.msk [vmem:[#allocation3 + $0x88] sm:$0xff] %vm1913_vm10, %v1852_v50  ;;  %v892_v40 = vpop.permute.xlu0 %891  ;;  %v1962_v28 = vld [vmem:[#allocation3 + $0x80] sm:$0xff] }
 0x20b   : > { %1106 = vrot.lane.b32.xlu1 %v1011_v24, %s2668_s25  ;;  %968 = vst.msk [vmem:[#allocation3 + $0xa0] sm:$0xff] %vm947_vm5, %v892_v40 }
 0x20c   : > { %1297 = vrot.lane.b32.xlu0 %v1203_v15, %s2669_s26 }
 0x20d   : > { %v1856_v51 = vpop.permute.xlu1 %1855 }
 0x20e   : > { %1933 = vst.msk [vmem:[#allocation3 + $0x98] sm:$0xff] %vm1913_vm10, %v1856_v51  ;;  %v896_v43 = vpop.permute.xlu0 %895  ;;  %v1964_v29 = vld [vmem:[#allocation3 + $0x90] sm:$0xff] }
 0x20f   : > { %1295 = vrot.lane.b32.xlu1 %v1780_v13, %s2669_s26  ;;  %970 = vst.msk [vmem:[#allocation3 + $0xb0] sm:$0xff] %vm947_vm5, %v896_v43 }
 0x210   : > { %1487 = vrot.lane.b32.xlu0 %v817_v20, %s2670_s27 }
 0x211   : > { %v894_v54 = vpop.permute.xlu1 %893  ;;  %v1963_v52 = vld [vmem:[#allocation3 + $0x88] sm:$0xff] }
 0x212   : > { %969 = vst.msk [vmem:[#allocation3 + $0xa8] sm:$0xff] %vm947_vm5, %v894_v54  ;;  %v1986_v17 = vpack.c.bf16 %v1963_v52, %v1962_v28  ;;  %v1085_v0 = vpop.permute.xlu0 %1084 }
 0x213   : > { %1299 = vrot.lane.b32.xlu1 %v1204_v14, %s2669_s26  ;;  %1161 = vst.msk [vmem:[#allocation3 + $0xa0] sm:$0xff] %vm1140_vm6, %v1085_v0 }
 0x214   : > { %2612 = vmatprep.mubr.msk.bf16.mxu1 %vm2014_vm11, %v1986_v17  ;;  %1491 = vrot.lane.b32.xlu0 %v1397_v61, %s2670_s27 }
 0x215   : > { %v898_v62 = vpop.permute.xlu1 %897  ;;  %v1965_v6 = vld [vmem:[#allocation3 + $0x98] sm:$0xff] }
 0x216   : > { %971 = vst.msk [vmem:[#allocation3 + $0xb8] sm:$0xff] %vm947_vm5, %v898_v62  ;;  %v1987_v42 = vpack.c.bf16 %v1965_v6, %v1964_v29  ;;  %v1089_v1 = vpop.permute.xlu0 %1088 }
 0x217   : > { %1489 = vrot.lane.b32.xlu1 %v818_v32, %s2670_s27  ;;  %1163 = vst.msk [vmem:[#allocation3 + $0xb0] sm:$0xff] %vm1140_vm6, %v1089_v1 }
 0x218   : > { %2613 = vmatmul.mubr.msk.bf16.vlgmr.msra.gmra.mxu1 %vm2014_vm11, %v1987_v42  ;;  %1680 = vrot.lane.b32.xlu0 %v1010_v60, %s2671_s28 }
 0x219   : > { %v1087_v7 = vpop.permute.xlu1 %1086 }
 0x21a   : > { %1162 = vst.msk [vmem:[#allocation3 + $0xa8] sm:$0xff] %vm1140_vm6, %v1087_v7  ;;  %v1278_v16 = vpop.permute.xlu0 %1277 }
 0x21b   : > { %1493 = vrot.lane.b32.xlu1 %v1398_v44, %s2670_s27  ;;  %1354 = vst.msk [vmem:[#allocation3 + $0xa0] sm:$0xff] %vm1333_vm7, %v1278_v16 }
 0x21c   : > { %1684 = vrot.lane.b32.xlu0 %v1590_v47, %s2671_s28 }
 0x21d   : > { %v1091_v26 = vpop.permute.xlu1 %1090 }
 0x21e   : > { %1164 = vst.msk [vmem:[#allocation3 + $0xb8] sm:$0xff] %vm1140_vm6, %v1091_v26  ;;  %v1282_v53 = vpop.permute.xlu0 %1281 }
 0x21f   : > { %1682 = vrot.lane.b32.xlu1 %v1011_v24, %s2671_s28  ;;  %1356 = vst.msk [vmem:[#allocation3 + $0xb0] sm:$0xff] %vm1333_vm7, %v1282_v53 }
 0x220   : > { %1873 = vrot.lane.b32.xlu0 %v1203_v15, %s2672_s7 }
 0x221   : > { %v1280_v46 = vpop.permute.xlu1 %1279 }
 0x222   : > { %1355 = vst.msk [vmem:[#allocation3 + $0xa8] sm:$0xff] %vm1333_vm7, %v1280_v46  ;;  %v1472_v19 = vpop.permute.xlu0 %1471 }
 0x223   : > { %1686 = vrot.lane.b32.xlu1 %v1591_v55, %s2671_s28  ;;  %1548 = vst.msk [vmem:[#allocation3 + $0xa0] sm:$0xff] %vm1527_vm8, %v1472_v19 }
 0x224   : > { %1877 = vrot.lane.b32.xlu0 %v1783_v33, %s2672_s7 }
 0x225   : > { %v1284_v31 = vpop.permute.xlu1 %1283 }
 0x226   : > { %1357 = vst.msk [vmem:[#allocation3 + $0xb8] sm:$0xff] %vm1333_vm7, %v1284_v31  ;;  %v1476_v34 = vpop.permute.xlu0 %1475 }
 0x227   : > { %1875 = vrot.lane.b32.xlu1 %v1204_v14, %s2672_s7  ;;  %1550 = vst.msk [vmem:[#allocation3 + $0xb0] sm:$0xff] %vm1527_vm8, %v1476_v34 }
 0x229   : > { %v1474_v49 = vpop.permute.xlu1 %1473 }
 0x22a   : > { %1549 = vst.msk [vmem:[#allocation3 + $0xa8] sm:$0xff] %vm1527_vm8, %v1474_v49  ;;  %v1665_v35 = vpop.permute.xlu0 %1664 }
 0x22b   : > { %1879 = vrot.lane.b32.xlu1 %v1784_v48, %s2672_s7  ;;  %1741 = vst.msk [vmem:[#allocation3 + $0xa0] sm:$0xff] %vm1720_vm9, %v1665_v35 }
 0x22d   : > { %v1478_v18 = vpop.permute.xlu1 %1477 }
 0x22e   : > { %1551 = vst.msk [vmem:[#allocation3 + $0xb8] sm:$0xff] %vm1527_vm8, %v1478_v18  ;;  %v1669_v36 = vpop.permute.xlu0 %1668 }
 0x22f   : > { %1743 = vst.msk [vmem:[#allocation3 + $0xb0] sm:$0xff] %vm1720_vm9, %v1669_v36 }
 0x231   : > { %v1667_v63 = vpop.permute.xlu1 %1666 }
 0x232   : > { %1742 = vst.msk [vmem:[#allocation3 + $0xa8] sm:$0xff] %vm1720_vm9, %v1667_v63  ;;  %v1858_v8 = vpop.permute.xlu0 %1857 }
 0x233   : > { %1934 = vst.msk [vmem:[#allocation3 + $0xa0] sm:$0xff] %vm1913_vm10, %v1858_v8 }
 0x234   : > { %v2598_v21 = vpop.f32.mrf.mxu0 }
 0x235   : > { %2231 = vst.msk [vmem:[%s3619_s12 + $0x10] sm:$0xff] %vm2228_vm12, %v2598_v21  ;;  %v1671_v2 = vpop.permute.xlu1 %1670  ;;  %v2334_v3 = vmul.f32 %v2598_v21, %v2598_v21  ;;  %v2264_v27 = vsel %vm2228_vm12, %v2598_v21, 0.0 }
 0x236   : > { %1744 = vst.msk [vmem:[#allocation3 + $0xb8] sm:$0xff] %vm1720_vm9, %v1671_v2  ;;  %v2101_v30 = vpop.f32.mrf.mxu0  ;;  %v1862_v11 = vpop.permute.xlu0 %1861 }
 0x237   : > { %2229 = vst.msk [vmem:[%s3619_s12] sm:$0xff] %vm2228_vm12, %v2101_v30  ;;  %v2332_v25 = vmul.f32 %v2101_v30, %v2101_v30  ;;  %v2261_v37 = vsel %vm2228_vm12, %v2101_v30, 0.0  ;;  %v2367_v32 = vsel %vm2228_vm12, %v2334_v3, 0.0 }
 0x238   : > { %v2599_v9 = vpop.f32.mrf.mxu0  ;;  %1936 = vst.msk [vmem:[#allocation3 + $0xb0] sm:$0xff] %vm1913_vm10, %v1862_v11 }
 0x239   : > { %2232 = vst.msk [vmem:[%s3619_s12 + $0x18] sm:$0xff] %vm2228_vm12, %v2599_v9  ;;  %v1860_v4 = vpop.permute.xlu1 %1859  ;;  %v2364_v13 = vsel %vm2228_vm12, %v2332_v25, 0.0  ;;  %v2335_v57 = vmul.f32 %v2599_v9, %v2599_v9  ;;  %v2266_v23 = vsel %vm2228_vm12, %v2599_v9, 0.0 }
 0x23a   : > { %1935 = vst.msk [vmem:[#allocation3 + $0xa8] sm:$0xff] %vm1913_vm10, %v1860_v4  ;;  %v2104_v12 = vpop.f32.mrf.mxu0  ;;  %v900_v56 = vpop.permute.xlu0 %899  ;;  %v1966_v60 = vld [vmem:[#allocation3 + $0xa0] sm:$0xff] }
 0x23b   : > { %2230 = vst.msk [vmem:[%s3619_s12 + $0x8] sm:$0xff] %vm2228_vm12, %v2104_v12  ;;  %v2262_v39 = vsel %vm2228_vm12, %v2104_v12, 0.0  ;;  %v2333_v5 = vmul.f32 %v2104_v12, %v2104_v12  ;;  %v2369_v24 = vsel %vm2228_vm12, %v2335_v57, 0.0 }
 0x23c   : > { %v2263_v45 = vadd.f32 %v2262_v39, %v2261_v37  ;;  %972 = vst.msk [vmem:[#allocation3 + $0xc0] sm:$0xff] %vm947_vm5, %v900_v56 }
 0x23d   : > { %v2365_v20 = vsel %vm2228_vm12, %v2333_v5, 0.0  ;;  %v1864_v38 = vpop.permute.xlu1 %1863 }
 0x23e   : > { %v2265_v59 = vadd.f32 %v2264_v27, %v2263_v45  ;;  %v2366_v58 = vadd.f32 %v2365_v20, %v2364_v13  ;;  %1937 = vst.msk [vmem:[#allocation3 + $0xb8] sm:$0xff] %vm1913_vm10, %v1864_v38  ;;  %v904_v22 = vpop.permute.xlu0 %903 }
 0x23f   : > { %974 = vst.msk [vmem:[#allocation3 + $0xd0] sm:$0xff] %vm947_vm5, %v904_v22  ;;  %v1968_v28 = vld [vmem:[#allocation3 + $0xb0] sm:$0xff] }
 0x240   : > { %v2368_v41 = vadd.f32 %v2367_v32, %v2366_v58  ;;  %v2267_v10 = vadd.f32 %v2266_v23, %v2265_v59 }
 0x241   : > { %v902_v50 = vpop.permute.xlu1 %901  ;;  %v1967_v15 = vld [vmem:[#allocation3 + $0xa8] sm:$0xff] }
 0x242   : > { %973 = vst.msk [vmem:[#allocation3 + $0xc8] sm:$0xff] %vm947_vm5, %v902_v50  ;;  %v1988_v40 = vpack.c.bf16 %v1967_v15, %v1966_v60  ;;  %v2370_v51 = vadd.f32 %v2369_v24, %v2368_v41  ;;  %v1093_v43 = vpop.permute.xlu0 %1092 }
 0x243   : > { %1165 = vst.msk [vmem:[#allocation3 + $0xc0] sm:$0xff] %vm1140_vm6, %v1093_v43 }
 0x244   : > { %2616 = vmatprep.mubr.msk.bf16.mxu1 %vm2014_vm11, %v1988_v40 }
 0x245   : > { %v906_v14 = vpop.permute.xlu1 %905  ;;  %v1969_v54 = vld [vmem:[#allocation3 + $0xb8] sm:$0xff] }
 0x246   : > { %975 = vst.msk [vmem:[#allocation3 + $0xd8] sm:$0xff] %vm947_vm5, %v906_v14  ;;  %v1989_v52 = vpack.c.bf16 %v1969_v54, %v1968_v28  ;;  %v1097_v17 = vpop.permute.xlu0 %1096 }
 0x247   : > { %1167 = vst.msk [vmem:[#allocation3 + $0xd0] sm:$0xff] %vm1140_vm6, %v1097_v17 }
 0x248   : > { %2617 = vmatmul.mubr.msk.bf16.gmra.mxu1 %vm2014_vm11, %v1989_v52 }
 0x249   : > { %v1095_v61 = vpop.permute.xlu1 %1094 }
 0x24a   : > { %1166 = vst.msk [vmem:[#allocation3 + $0xc8] sm:$0xff] %vm1140_vm6, %v1095_v61  ;;  %v1286_v29 = vpop.permute.xlu0 %1285 }
 0x24b   : > { %1358 = vst.msk [vmem:[#allocation3 + $0xc0] sm:$0xff] %vm1333_vm7, %v1286_v29 }
 0x24d   : > { %v1099_v0 = vpop.permute.xlu1 %1098 }
 0x24e   : > { %1168 = vst.msk [vmem:[#allocation3 + $0xd8] sm:$0xff] %vm1140_vm6, %v1099_v0  ;;  %v1290_v62 = vpop.permute.xlu0 %1289 }
 0x24f   : > { %1360 = vst.msk [vmem:[#allocation3 + $0xd0] sm:$0xff] %vm1333_vm7, %v1290_v62 }
 0x251   : > { %v1288_v6 = vpop.permute.xlu1 %1287 }
 0x252   : > { %1359 = vst.msk [vmem:[#allocation3 + $0xc8] sm:$0xff] %vm1333_vm7, %v1288_v6  ;;  %v1480_v42 = vpop.permute.xlu0 %1479 }
 0x253   : > { %1552 = vst.msk [vmem:[#allocation3 + $0xc0] sm:$0xff] %vm1527_vm8, %v1480_v42 }
 0x255   : > { %v1292_v1 = vpop.permute.xlu1 %1291 }
 0x256   : > { %1361 = vst.msk [vmem:[#allocation3 + $0xd8] sm:$0xff] %vm1333_vm7, %v1292_v1  ;;  %v1484_v44 = vpop.permute.xlu0 %1483 }
 0x257   : > { %1554 = vst.msk [vmem:[#allocation3 + $0xd0] sm:$0xff] %vm1527_vm8, %v1484_v44 }
 0x259   : > { %v1482_v7 = vpop.permute.xlu1 %1481 }
 0x25a   : > { %1553 = vst.msk [vmem:[#allocation3 + $0xc8] sm:$0xff] %vm1527_vm8, %v1482_v7  ;;  %v1673_v47 = vpop.permute.xlu0 %1672 }
 0x25b   : > { %1745 = vst.msk [vmem:[#allocation3 + $0xc0] sm:$0xff] %vm1720_vm9, %v1673_v47 }
 0x25c   : > { %v2602_v16 = vpop.f32.mrf.mxu0 }
 0x25d   : > { %2235 = vst.msk [vmem:[%s3619_s12 + $0x30] sm:$0xff] %vm2228_vm12, %v2602_v16  ;;  %v1486_v26 = vpop.permute.xlu1 %1485  ;;  %v2338_v18 = vmul.f32 %v2602_v16, %v2602_v16  ;;  %v2272_v2 = vsel %vm2228_vm12, %v2602_v16, 0.0 }
 0x25e   : > { %1555 = vst.msk [vmem:[#allocation3 + $0xd8] sm:$0xff] %vm1527_vm8, %v1486_v26  ;;  %v2117_v53 = vpop.f32.mrf.mxu0  ;;  %v1677_v33 = vpop.permute.xlu0 %1676 }
 0x25f   : > { %2233 = vst.msk [vmem:[%s3619_s12 + $0x20] sm:$0xff] %vm2228_vm12, %v2117_v53  ;;  %v2268_v55 = vsel %vm2228_vm12, %v2117_v53, 0.0  ;;  %v2336_v46 = vmul.f32 %v2117_v53, %v2117_v53  ;;  %v2375_v12 = vsel %vm2228_vm12, %v2338_v18, 0.0 }
 0x260   : > { %v2269_v19 = vadd.f32 %v2268_v55, %v2267_v10  ;;  %v2603_v31 = vpop.f32.mrf.mxu0  ;;  %1747 = vst.msk [vmem:[#allocation3 + $0xd0] sm:$0xff] %vm1720_vm9, %v1677_v33 }
 0x261   : > { %v2371_v34 = vsel %vm2228_vm12, %v2336_v46, 0.0  ;;  %2236 = vst.msk [vmem:[%s3619_s12 + $0x38] sm:$0xff] %vm2228_vm12, %v2603_v31  ;;  %v1675_v48 = vpop.permute.xlu1 %1674  ;;  %v2339_v30 = vmul.f32 %v2603_v31, %v2603_v31  ;;  %v2274_v3 = vsel %vm2228_vm12, %v2603_v31, 0.0 }
 0x262   : > { %v2372_v49 = vadd.f32 %v2371_v34, %v2370_v51  ;;  %1746 = vst.msk [vmem:[#allocation3 + $0xc8] sm:$0xff] %vm1720_vm9, %v1675_v48  ;;  %v2120_v35 = vpop.f32.mrf.mxu0  ;;  %v1866_v8 = vpop.permute.xlu0 %1865 }
 0x263   : > { %2234 = vst.msk [vmem:[%s3619_s12 + $0x28] sm:$0xff] %vm2228_vm12, %v2120_v35  ;;  %v2270_v36 = vsel %vm2228_vm12, %v2120_v35, 0.0  ;;  %v2337_v63 = vmul.f32 %v2120_v35, %v2120_v35  ;;  %v2377_v56 = vsel %vm2228_vm12, %v2339_v30, 0.0 }
 0x264   : > { %v2271_v21 = vadd.f32 %v2270_v36, %v2269_v19  ;;  %1938 = vst.msk [vmem:[#allocation3 + $0xc0] sm:$0xff] %vm1913_vm10, %v1866_v8 }
 0x265   : > { %v2373_v11 = vsel %vm2228_vm12, %v2337_v63, 0.0  ;;  %v1679_v9 = vpop.permute.xlu1 %1678 }
 0x266   : > { %v2273_v25 = vadd.f32 %v2272_v2, %v2271_v21  ;;  %v2374_v4 = vadd.f32 %v2373_v11, %v2372_v49  ;;  %1748 = vst.msk [vmem:[#allocation3 + $0xd8] sm:$0xff] %vm1720_vm9, %v1679_v9  ;;  %v1870_v37 = vpop.permute.xlu0 %1869 }
 0x267   : > { %1940 = vst.msk [vmem:[#allocation3 + $0xd0] sm:$0xff] %vm1913_vm10, %v1870_v37 }
 0x268   : > { %v2376_v39 = vadd.f32 %v2375_v12, %v2374_v4  ;;  %v2275_v5 = vadd.f32 %v2274_v3, %v2273_v25 }
 0x269   : > { %v1868_v45 = vpop.permute.xlu1 %1867 }
 0x26a   : > { %1939 = vst.msk [vmem:[#allocation3 + $0xc8] sm:$0xff] %vm1913_vm10, %v1868_v45  ;;  %v2378_v27 = vadd.f32 %v2377_v56, %v2376_v39  ;;  %v908_v13 = vpop.permute.xlu0 %907 }
 0x26b   : > { %976 = vst.msk [vmem:[#allocation3 + $0xe0] sm:$0xff] %vm947_vm5, %v908_v13  ;;  %v1970_v20 = vld [vmem:[#allocation3 + $0xc0] sm:$0xff] }
 0x26d   : > { %v1872_v57 = vpop.permute.xlu1 %1871 }
 0x26e   : > { %1941 = vst.msk [vmem:[#allocation3 + $0xd8] sm:$0xff] %vm1913_vm10, %v1872_v57  ;;  %v912_v38 = vpop.permute.xlu0 %911  ;;  %v1972_v23 = vld [vmem:[#allocation3 + $0xd0] sm:$0xff] }
 0x26f   : > { %978 = vst.msk [vmem:[#allocation3 + $0xf0] sm:$0xff] %vm947_vm5, %v912_v38 }
 0x271   : > { %v910_v59 = vpop.permute.xlu1 %909  ;;  %v1971_v58 = vld [vmem:[#allocation3 + $0xc8] sm:$0xff] }
 0x272   : > { %977 = vst.msk [vmem:[#allocation3 + $0xe8] sm:$0xff] %vm947_vm5, %v910_v59  ;;  %v1990_v32 = vpack.c.bf16 %v1971_v58, %v1970_v20  ;;  %v1101_v60 = vpop.permute.xlu0 %1100 }
 0x273   : > { %1169 = vst.msk [vmem:[#allocation3 + $0xe0] sm:$0xff] %vm1140_vm6, %v1101_v60 }
 0x274   : > { %2620 = vmatprep.mubr.msk.bf16.mxu1 %vm2014_vm11, %v1990_v32 }
 0x275   : > { %v914_v22 = vpop.permute.xlu1 %913  ;;  %v1973_v41 = vld [vmem:[#allocation3 + $0xd8] sm:$0xff] }
 0x276   : > { %979 = vst.msk [vmem:[#allocation3 + $0xf8] sm:$0xff] %vm947_vm5, %v914_v22  ;;  %v1991_v10 = vpack.c.bf16 %v1973_v41, %v1972_v23  ;;  %v1105_v24 = vpop.permute.xlu0 %1104 }
 0x277   : > { %1171 = vst.msk [vmem:[#allocation3 + $0xf0] sm:$0xff] %vm1140_vm6, %v1105_v24 }
 0x278   : > { %2621 = vmatmul.mubr.msk.bf16.gmra.mxu1 %vm2014_vm11, %v1991_v10 }
 0x279   : > { %v1103_v50 = vpop.permute.xlu1 %1102 }
 0x27a   : > { %1170 = vst.msk [vmem:[#allocation3 + $0xe8] sm:$0xff] %vm1140_vm6, %v1103_v50  ;;  %v1294_v15 = vpop.permute.xlu0 %1293 }
 0x27b   : > { %1362 = vst.msk [vmem:[#allocation3 + $0xe0] sm:$0xff] %vm1333_vm7, %v1294_v15 }
 0x27d   : > { %v1107_v40 = vpop.permute.xlu1 %1106 }
 0x27e   : > { %1172 = vst.msk [vmem:[#allocation3 + $0xf8] sm:$0xff] %vm1140_vm6, %v1107_v40  ;;  %v1298_v51 = vpop.permute.xlu0 %1297 }
 0x27f   : > { %1364 = vst.msk [vmem:[#allocation3 + $0xf0] sm:$0xff] %vm1333_vm7, %v1298_v51 }
 0x281   : > { %v1296_v28 = vpop.permute.xlu1 %1295 }
 0x282   : > { %1363 = vst.msk [vmem:[#allocation3 + $0xe8] sm:$0xff] %vm1333_vm7, %v1296_v28  ;;  %v1488_v43 = vpop.permute.xlu0 %1487 }
 0x283   : > { %1556 = vst.msk [vmem:[#allocation3 + $0xe0] sm:$0xff] %vm1527_vm8, %v1488_v43 }
 0x284   : > { %v2606_v14 = vpop.f32.mrf.mxu0 }
 0x285   : > { %2239 = vst.msk [vmem:[%s3619_s12 + $0x50] sm:$0xff] %vm2228_vm12, %v2606_v14  ;;  %v1300_v54 = vpop.permute.xlu1 %1299  ;;  %v2342_v7 = vmul.f32 %v2606_v14, %v2606_v14  ;;  %v2280_v55 = vsel %vm2228_vm12, %v2606_v14, 0.0 }
 0x286   : > { %1365 = vst.msk [vmem:[#allocation3 + $0xf8] sm:$0xff] %vm1333_vm7, %v1300_v54  ;;  %v2133_v52 = vpop.f32.mrf.mxu0  ;;  %v1492_v29 = vpop.permute.xlu0 %1491 }
 0x287   : > { %2237 = vst.msk [vmem:[%s3619_s12 + $0x40] sm:$0xff] %vm2228_vm12, %v2133_v52  ;;  %v2276_v17 = vsel %vm2228_vm12, %v2133_v52, 0.0  ;;  %v2340_v61 = vmul.f32 %v2133_v52, %v2133_v52  ;;  %v2383_v48 = vsel %vm2228_vm12, %v2342_v7, 0.0 }
 0x288   : > { %v2277_v0 = vadd.f32 %v2276_v17, %v2275_v5  ;;  %v2607_v62 = vpop.f32.mrf.mxu0  ;;  %1558 = vst.msk [vmem:[#allocation3 + $0xf0] sm:$0xff] %vm1527_vm8, %v1492_v29 }
 0x289   : > { %v2379_v6 = vsel %vm2228_vm12, %v2340_v61, 0.0  ;;  %2240 = vst.msk [vmem:[%s3619_s12 + $0x58] sm:$0xff] %vm2228_vm12, %v2607_v62  ;;  %v1490_v42 = vpop.permute.xlu1 %1489  ;;  %v2343_v46 = vmul.f32 %v2607_v62, %v2607_v62  ;;  %v2282_v49 = vsel %vm2228_vm12, %v2607_v62, 0.0 }
 0x28a   : > { %v2380_v1 = vadd.f32 %v2379_v6, %v2378_v27  ;;  %1557 = vst.msk [vmem:[#allocation3 + $0xe8] sm:$0xff] %vm1527_vm8, %v1490_v42  ;;  %v2136_v44 = vpop.f32.mrf.mxu0  ;;  %v1681_v26 = vpop.permute.xlu0 %1680 }
 0x28b   : > { %2238 = vst.msk [vmem:[%s3619_s12 + $0x48] sm:$0xff] %vm2228_vm12, %v2136_v44  ;;  %v2278_v47 = vsel %vm2228_vm12, %v2136_v44, 0.0  ;;  %v2341_v16 = vmul.f32 %v2136_v44, %v2136_v44  ;;  %v2385_v63 = vsel %vm2228_vm12, %v2343_v46, 0.0 }
 0x28c   : > { %v2279_v53 = vadd.f32 %v2278_v47, %v2277_v0  ;;  %1749 = vst.msk [vmem:[#allocation3 + $0xe0] sm:$0xff] %vm1720_vm9, %v1681_v26 }
 0x28d   : > { %v2381_v33 = vsel %vm2228_vm12, %v2341_v16, 0.0  ;;  %v1494_v19 = vpop.permute.xlu1 %1493 }
 0x28e   : > { %v2281_v31 = vadd.f32 %v2280_v55, %v2279_v53  ;;  %v2382_v34 = vadd.f32 %v2381_v33, %v2380_v1  ;;  %1559 = vst.msk [vmem:[#allocation3 + $0xf8] sm:$0xff] %vm1527_vm8, %v1494_v19  ;;  %v1685_v35 = vpop.permute.xlu0 %1684 }
 0x28f   : > { %1751 = vst.msk [vmem:[#allocation3 + $0xf0] sm:$0xff] %vm1720_vm9, %v1685_v35 }
 0x290   : > { %v2384_v18 = vadd.f32 %v2383_v48, %v2382_v34  ;;  %v2283_v36 = vadd.f32 %v2282_v49, %v2281_v31 }
 0x291   : > { %v1683_v8 = vpop.permute.xlu1 %1682 }
 0x292   : > { %1750 = vst.msk [vmem:[#allocation3 + $0xe8] sm:$0xff] %vm1720_vm9, %v1683_v8  ;;  %v2386_v21 = vadd.f32 %v2385_v63, %v2384_v18  ;;  %v1874_v2 = vpop.permute.xlu0 %1873 }
 0x293   : > { %1942 = vst.msk [vmem:[#allocation3 + $0xe0] sm:$0xff] %vm1913_vm10, %v1874_v2 }
 0x295   : > { %v1687_v30 = vpop.permute.xlu1 %1686 }
 0x296   : > { %1752 = vst.msk [vmem:[#allocation3 + $0xf8] sm:$0xff] %vm1720_vm9, %v1687_v30  ;;  %v1878_v11 = vpop.permute.xlu0 %1877 }
 0x297   : > { %1944 = vst.msk [vmem:[#allocation3 + $0xf0] sm:$0xff] %vm1913_vm10, %v1878_v11 }
 0x299   : > { %v1876_v9 = vpop.permute.xlu1 %1875 }
 0x29a   : > { %1943 = vst.msk [vmem:[#allocation3 + $0xe8] sm:$0xff] %vm1913_vm10, %v1876_v9  ;;  %v1974_v4 = vld [vmem:[#allocation3 + $0xe0] sm:$0xff] }
 0x29d   : > { %v1880_v25 = vpop.permute.xlu1 %1879 }
 0x29e   : > { %1945 = vst.msk [vmem:[#allocation3 + $0xf8] sm:$0xff] %vm1913_vm10, %v1880_v25  ;;  %v1976_v37 = vld [vmem:[#allocation3 + $0xf0] sm:$0xff] }
 0x2a1   : > { %v1975_v12 = vld [vmem:[#allocation3 + $0xe8] sm:$0xff] }
 0x2a2   : > { %v1992_v3 = vpack.c.bf16 %v1975_v12, %v1974_v4 }
 0x2a4   : > { %2624 = vmatprep.mubr.msk.bf16.mxu1 %vm2014_vm11, %v1992_v3 }
 0x2a5   : > { %v1977_v39 = vld [vmem:[#allocation3 + $0xf8] sm:$0xff] }
 0x2a6   : > { %v1993_v5 = vpack.c.bf16 %v1977_v39, %v1976_v37 }
 0x2a8   : > { %2625 = vmatmul.mubr.msk.bf16.gmra.mxu1 %vm2014_vm11, %v1993_v5 }
 0x2ac   : > { %v2610_v56 = vpop.f32.mrf.mxu0 }
 0x2ad   : > { %2243 = vst.msk [vmem:[%s3619_s12 + $0x70] sm:$0xff] %vm2228_vm12, %v2610_v56  ;;  %v2346_v32 = vmul.f32 %v2610_v56, %v2610_v56  ;;  %v2288_v41 = vsel %vm2228_vm12, %v2610_v56, 0.0 }
 0x2ae   : > { %v2149_v45 = vpop.f32.mrf.mxu0 }
 0x2af   : > { %2241 = vst.msk [vmem:[%s3619_s12 + $0x60] sm:$0xff] %vm2228_vm12, %v2149_v45  ;;  %v2284_v27 = vsel %vm2228_vm12, %v2149_v45, 0.0  ;;  %v2344_v13 = vmul.f32 %v2149_v45, %v2149_v45  ;;  %v2391_v40 = vsel %vm2228_vm12, %v2346_v32, 0.0 }
 0x2b0   : > { %v2285_v57 = vadd.f32 %v2284_v27, %v2283_v36  ;;  %v2611_v20 = vpop.f32.mrf.mxu0 }
 0x2b1   : > { %v2387_v38 = vsel %vm2228_vm12, %v2344_v13, 0.0  ;;  %2244 = vst.msk [vmem:[%s3619_s12 + $0x78] sm:$0xff] %vm2228_vm12, %v2611_v20  ;;  %v2347_v10 = vmul.f32 %v2611_v20, %v2611_v20  ;;  %v2290_v51 = vsel %vm2228_vm12, %v2611_v20, 0.0 }
 0x2b2   : > { %v2388_v59 = vadd.f32 %v2387_v38, %v2386_v21  ;;  %v2152_v58 = vpop.f32.mrf.mxu0 }
 0x2b3   : > { %2242 = vst.msk [vmem:[%s3619_s12 + $0x68] sm:$0xff] %vm2228_vm12, %v2152_v58  ;;  %v2286_v23 = vsel %vm2228_vm12, %v2152_v58, 0.0  ;;  %v2345_v60 = vmul.f32 %v2152_v58, %v2152_v58  ;;  %v2393_v14 = vsel %vm2228_vm12, %v2347_v10, 0.0 }
 0x2b4   : > { %v2287_v22 = vadd.f32 %v2286_v23, %v2285_v57 }
 0x2b5   : > { %v2389_v24 = vsel %vm2228_vm12, %v2345_v60, 0.0 }
 0x2b6   : > { %v2289_v50 = vadd.f32 %v2288_v41, %v2287_v22  ;;  %v2390_v15 = vadd.f32 %v2389_v24, %v2388_v59 }
 0x2b8   : > { %v2392_v28 = vadd.f32 %v2391_v40, %v2390_v15  ;;  %v2291_v43 = vadd.f32 %v2290_v51, %v2289_v50 }
 0x2ba   : > { %v2394_v54 = vadd.f32 %v2393_v14, %v2392_v28 }
 0x2d8   : > { %v2614_v52 = vpop.f32.mrf.mxu1 }
 0x2d9   : > { %2247 = vst.msk [vmem:[%s3619_s12 + $0x90] sm:$0xff] %vm2228_vm12, %v2614_v52  ;;  %v2350_v44 = vmul.f32 %v2614_v52, %v2614_v52  ;;  %v2296_v26 = vsel %vm2228_vm12, %v2614_v52, 0.0 }
 0x2da   : > { %v2165_v17 = vpop.f32.mrf.mxu1 }
 0x2db   : > { %2245 = vst.msk [vmem:[%s3619_s12 + $0x80] sm:$0xff] %vm2228_vm12, %v2165_v17  ;;  %v2292_v61 = vsel %vm2228_vm12, %v2165_v17, 0.0  ;;  %v2348_v29 = vmul.f32 %v2165_v17, %v2165_v17  ;;  %v2399_v19 = vsel %vm2228_vm12, %v2350_v44, 0.0 }
 0x2dc   : > { %v2293_v0 = vadd.f32 %v2292_v61, %v2291_v43  ;;  %v2615_v62 = vpop.f32.mrf.mxu1 }
 0x2dd   : > { %v2395_v6 = vsel %vm2228_vm12, %v2348_v29, 0.0  ;;  %2248 = vst.msk [vmem:[%s3619_s12 + $0x98] sm:$0xff] %vm2228_vm12, %v2615_v62  ;;  %v2351_v53 = vmul.f32 %v2615_v62, %v2615_v62  ;;  %v2298_v31 = vsel %vm2228_vm12, %v2615_v62, 0.0 }
 0x2de   : > { %v2396_v42 = vadd.f32 %v2395_v6, %v2394_v54  ;;  %v2168_v1 = vpop.f32.mrf.mxu1 }
 0x2df   : > { %2246 = vst.msk [vmem:[%s3619_s12 + $0x88] sm:$0xff] %vm2228_vm12, %v2168_v1  ;;  %v2294_v7 = vsel %vm2228_vm12, %v2168_v1, 0.0  ;;  %v2349_v47 = vmul.f32 %v2168_v1, %v2168_v1  ;;  %v2401_v49 = vsel %vm2228_vm12, %v2351_v53, 0.0 }
 0x2e0   : > { %v2295_v16 = vadd.f32 %v2294_v7, %v2293_v0 }
 0x2e1   : > { %v2397_v55 = vsel %vm2228_vm12, %v2349_v47, 0.0 }
 0x2e2   : > { %v2297_v46 = vadd.f32 %v2296_v26, %v2295_v16  ;;  %v2398_v33 = vadd.f32 %v2397_v55, %v2396_v42 }
 0x2e4   : > { %v2400_v34 = vadd.f32 %v2399_v19, %v2398_v33  ;;  %v2299_v48 = vadd.f32 %v2298_v31, %v2297_v46 }
 0x2e6   : > { %v2402_v35 = vadd.f32 %v2401_v49, %v2400_v34 }
 0x308   : > { %v2618_v18 = vpop.f32.mrf.mxu1 }
 0x309   : > { %2251 = vst.msk [vmem:[%s3619_s12 + $0xb0] sm:$0xff] %vm2228_vm12, %v2618_v18  ;;  %v2354_v25 = vmul.f32 %v2618_v18, %v2618_v18  ;;  %v2304_v37 = vsel %vm2228_vm12, %v2618_v18, 0.0 }
 0x30a   : > { %v2181_v36 = vpop.f32.mrf.mxu1 }
 0x30b   : > { %2249 = vst.msk [vmem:[%s3619_s12 + $0xa0] sm:$0xff] %vm2228_vm12, %v2181_v36  ;;  %v2300_v63 = vsel %vm2228_vm12, %v2181_v36, 0.0  ;;  %v2352_v8 = vmul.f32 %v2181_v36, %v2181_v36  ;;  %v2407_v27 = vsel %vm2228_vm12, %v2354_v25, 0.0 }
 0x30c   : > { %v2301_v21 = vadd.f32 %v2300_v63, %v2299_v48  ;;  %v2619_v2 = vpop.f32.mrf.mxu1 }
 0x30d   : > { %v2403_v30 = vsel %vm2228_vm12, %v2352_v8, 0.0  ;;  %2252 = vst.msk [vmem:[%s3619_s12 + $0xb8] sm:$0xff] %vm2228_vm12, %v2619_v2  ;;  %v2355_v39 = vmul.f32 %v2619_v2, %v2619_v2  ;;  %v2306_v13 = vsel %vm2228_vm12, %v2619_v2, 0.0 }
 0x30e   : > { %v2404_v11 = vadd.f32 %v2403_v30, %v2402_v35  ;;  %v2184_v9 = vpop.f32.mrf.mxu1 }
 0x30f   : > { %2250 = vst.msk [vmem:[%s3619_s12 + $0xa8] sm:$0xff] %vm2228_vm12, %v2184_v9  ;;  %v2302_v4 = vsel %vm2228_vm12, %v2184_v9, 0.0  ;;  %v2353_v12 = vmul.f32 %v2184_v9, %v2184_v9  ;;  %v2409_v38 = vsel %vm2228_vm12, %v2355_v39, 0.0 }
 0x310   : > { %v2303_v3 = vadd.f32 %v2302_v4, %v2301_v21 }
 0x311   : > { %v2405_v5 = vsel %vm2228_vm12, %v2353_v12, 0.0 }
 0x312   : > { %v2305_v56 = vadd.f32 %v2304_v37, %v2303_v3  ;;  %v2406_v45 = vadd.f32 %v2405_v5, %v2404_v11 }
 0x314   : > { %v2408_v57 = vadd.f32 %v2407_v27, %v2406_v45  ;;  %v2307_v20 = vadd.f32 %v2306_v13, %v2305_v56 }
 0x316   : > { %v2410_v59 = vadd.f32 %v2409_v38, %v2408_v57 }
 0x338   : > { %v2622_v58 = vpop.f32.mrf.mxu1 }
 0x339   : > { %2255 = vst.msk [vmem:[%s3619_s12 + $0xd0] sm:$0xff] %vm2228_vm12, %v2622_v58  ;;  %v2358_v43 = vmul.f32 %v2622_v58, %v2622_v58  ;;  %v2312_v54 = vsel %vm2228_vm12, %v2622_v58, 0.0 }
 0x33a   : > { %v2197_v32 = vpop.f32.mrf.mxu1 }
 0x33b   : > { %2253 = vst.msk [vmem:[%s3619_s12 + $0xc0] sm:$0xff] %vm2228_vm12, %v2197_v32  ;;  %v2356_v22 = vmul.f32 %v2197_v32, %v2197_v32  ;;  %v2308_v41 = vsel %vm2228_vm12, %v2197_v32, 0.0  ;;  %v2415_v61 = vsel %vm2228_vm12, %v2358_v43, 0.0 }
 0x33c   : > { %v2623_v23 = vpop.f32.mrf.mxu1  ;;  %v2309_v15 = vadd.f32 %v2308_v41, %v2307_v20 }
 0x33d   : > { %2256 = vst.msk [vmem:[%s3619_s12 + $0xd8] sm:$0xff] %vm2228_vm12, %v2623_v23  ;;  %v2411_v24 = vsel %vm2228_vm12, %v2356_v22, 0.0  ;;  %v2359_v29 = vmul.f32 %v2623_v23, %v2623_v23  ;;  %v2314_v6 = vsel %vm2228_vm12, %v2623_v23, 0.0 }
 0x33e   : > { %v2200_v60 = vpop.f32.mrf.mxu1  ;;  %v2412_v51 = vadd.f32 %v2411_v24, %v2410_v59 }
 0x33f   : > { %2254 = vst.msk [vmem:[%s3619_s12 + $0xc8] sm:$0xff] %vm2228_vm12, %v2200_v60  ;;  %v2357_v10 = vmul.f32 %v2200_v60, %v2200_v60  ;;  %v2310_v50 = vsel %vm2228_vm12, %v2200_v60, 0.0  ;;  %v2417_v47 = vsel %vm2228_vm12, %v2359_v29, 0.0 }
 0x340   : > { %v2311_v28 = vadd.f32 %v2310_v50, %v2309_v15 }
 0x341   : > { %v2413_v40 = vsel %vm2228_vm12, %v2357_v10, 0.0 }
 0x342   : > { %v2414_v14 = vadd.f32 %v2413_v40, %v2412_v51  ;;  %v2313_v52 = vadd.f32 %v2312_v54, %v2311_v28 }
 0x344   : > { %v2416_v0 = vadd.f32 %v2415_v61, %v2414_v14  ;;  %v2315_v44 = vadd.f32 %v2314_v6, %v2313_v52 }
 0x346   : > { %v2418_v53 = vadd.f32 %v2417_v47, %v2416_v0 }
 0x368   : > { %v2626_v17 = vpop.f32.mrf.mxu1 }
 0x369   : > { %2259 = vst.msk [vmem:[%s3619_s12 + $0xf0] sm:$0xff] %vm2228_vm12, %v2626_v17  ;;  %v2362_v46 = vmul.f32 %v2626_v17, %v2626_v17  ;;  %v2320_v48 = vsel %vm2228_vm12, %v2626_v17, 0.0 }
 0x36a   : > { %v2213_v62 = vpop.f32.mrf.mxu1 }
 0x36b   : > { %2257 = vst.msk [vmem:[%s3619_s12 + $0xe0] sm:$0xff] %vm2228_vm12, %v2213_v62  ;;  %v2316_v42 = vsel %vm2228_vm12, %v2213_v62, 0.0  ;;  %v2360_v1 = vmul.f32 %v2213_v62, %v2213_v62  ;;  %v2423_v63 = vsel %vm2228_vm12, %v2362_v46, 0.0 }
 0x36c   : > { %v2627_v7 = vpop.f32.mrf.mxu1  ;;  %v2317_v26 = vadd.f32 %v2316_v42, %v2315_v44 }
 0x36d   : > { %v2419_v16 = vsel %vm2228_vm12, %v2360_v1, 0.0  ;;  %2260 = vst.msk [vmem:[%s3619_s12 + $0xf8] sm:$0xff] %vm2228_vm12, %v2627_v7  ;;  %v2363_v49 = vmul.f32 %v2627_v7, %v2627_v7  ;;  %v2322_v8 = vsel %vm2228_vm12, %v2627_v7, 0.0 }
 0x36e   : > { %v2216_v55 = vpop.f32.mrf.mxu1  ;;  %v2420_v31 = vadd.f32 %v2419_v16, %v2418_v53 }
 0x36f   : > { %2258 = vst.msk [vmem:[%s3619_s12 + $0xe8] sm:$0xff] %vm2228_vm12, %v2216_v55  ;;  %v2318_v33 = vsel %vm2228_vm12, %v2216_v55, 0.0  ;;  %v2361_v19 = vmul.f32 %v2216_v55, %v2216_v55  ;;  %v2425_v30 = vsel %vm2228_vm12, %v2363_v49, 0.0 }
 0x370   : > { %v2319_v34 = vadd.f32 %v2318_v33, %v2317_v26 }
 0x371   : > { %v2421_v35 = vsel %vm2228_vm12, %v2361_v19, 0.0 }
 0x372   : > { %v2321_v18 = vadd.f32 %v2320_v48, %v2319_v34  ;;  %v2422_v36 = vadd.f32 %v2421_v35, %v2420_v31 }
 0x374   : > { %v2323_v21 = vadd.f32 %v2322_v8, %v2321_v18  ;;  %v2424_v2 = vadd.f32 %v2423_v63, %v2422_v36 }
 0x376   : > { %v2324_v11 = vrot.slane %v2323_v21, 4  ;;  %v2426_v9 = vadd.f32 %v2425_v30, %v2424_v2 }
 0x378   : > { %v2325_v25 = vadd.f32 %v2324_v11, %v2323_v21  ;;  %v2427_v4 = vrot.slane %v2426_v9, 4 }
 0x37a   : > { %v2326_v12 = vrot.slane %v2325_v25, 2  ;;  %v2428_v3 = vadd.f32 %v2427_v4, %v2426_v9 }
 0x37c   : > { %v2327_v37 = vadd.f32 %v2326_v12, %v2325_v25  ;;  %v2429_v39 = vrot.slane %v2428_v3, 2 }
 0x37e   : > { %v2328_v5 = vrot.slane %v2327_v37, 1  ;;  %v2430_v56 = vadd.f32 %v2429_v39, %v2428_v3 }
 0x380   : > { %v2329_v45 = vadd.f32 %v2328_v5, %v2327_v37  ;;  %v2431_v27 = vrot.slane %v2430_v56, 1 }
 0x382   : > { %2331 = vst.msk [vmem:[%s211_s17] sm:$0x1] %vm2330_vm13, %v2329_v45  ;;  %v2432_v13 = vadd.f32 %v2431_v27, %v2430_v56 }
 0x384   : > { %2433 = vst.msk [vmem:[%s214_s20] sm:$0x1] %vm2330_vm13, %v2432_v13 }
 0x385 PF: > { %s15_s15 = sadd.s32 1, %s2662_s15  }
 0x386   : > { %p12_p4 = scmp.ge.s32.totalorder %s15_s15, 4  }
 0x388   :  { %14 = sbr.rel (!%p12_p4) target bundleno = 1 (0x1), region = 84 }

// kernel: basic_block.4
= control target key start
LH: loop header
LB: loop body
LE: loop exit
PB: predicated region body
PF: predicated region fallthrough
CT: control target
= control target key end

     0   :  { %s2905_s21 = smov 0   ;;  %s4085_s0 = inlined_call_operand.vmem [shape: f32[2,256,8], index: 0, kind: input, shape index: {}]   ;;  %s4086_s1 = inlined_call_operand.vmem [shape: f32[1,8], index: 1, kind: input, shape index: {}]   ;;  %s4087_s2 = inlined_call_operand.vmem [shape: f32[1,8], index: 2, kind: input, shape index: {}]   ;;  %s4088_s3 = inlined_call_operand.vmem [shape: bf16[72,8], index: 3, kind: input, shape index: {}]   ;;  %s4089_s4 = inlined_call_operand.vmem [shape: f32[2,256,8], index: 4, kind: output, shape index: {0}]   ;;  %s4090_s5 = inlined_call_operand.vmem [shape: f32[2,1,8], index: 5, kind: output, shape index: {1}]   ;;  %s4091_s6 = inlined_call_operand.vmem [shape: f32[2,1,8], index: 6, kind: output, shape index: {2}]  }
   0x1 LB: > { %s2718_s22 = sadd.s32 4294967295, %s2859_s21   ;;  %p2722_p0 = scmp.ge.s32.totalorder %s2859_s21, 1  ;;  %s2859_s21 = sphi %s2905_s21, %s17_s21  }
   0x2   : > { %p217_p1 = scmp.lt.s32.totalorder %s2859_s21, 3 }
   0x4   : > { %p218_p2 = pnand %p2722_p0, %p217_p1 }
   0x5   : > { %p2915_p3 = scmp.lt.s32.totalorder (!%p218_p2), %s2718_s22, 1  ;;  %s2862_s8 = smov (!%p218_p2), 8  }
   0x6   : > { %221 = sbr.rel (%p218_p2) target bundleno = 901 (0x385), region = 36  ;;  %s2863_s9 = smov (!%p218_p2), 16  }
   0x7   : > { %s2864_s10 = smov (!%p218_p2), 24   ;;  %s2865_s11 = smov (!%p218_p2), 32  }
   0x8   : > { %s2866_s12 = smov (!%p218_p2), 40   ;;  %s2867_s13 = smov (!%p218_p2), 48  }
   0x9   : > { %s2868_s18 = smov (!%p218_p2), 56   ;;  %s2869_s25 = smov (!%p218_p2), 64  }
   0xb   : > { %vm412_vm0 = vcmask 64512   ;;  %v2861_v0 = vmov 0.0   ;;  %vm415_vm1 = vcmask 58368   ;;  %s4094_s22 = smov (!%p2915_p3, %s2718_s22), 1  ;;  %v2964_v1 = vld [vmem:[%s4086_s1] ss:$0 sm:$0xff] }
   0xc   : > { %413 = vst.msk [vmem:[#allocation2] sm:$0xff] %vm412_vm0, %v2861_v0  ;;  %414 = vst.msk [vmem:[#allocation2 + $0x8] sm:$0xff] %vm412_vm0, %v2861_v0  ;;  %s2752_s26 = sshll.u32 %s4094_s22, 8  ;;  %v2995_v2 = vld [vmem:[%s4087_s2] ss:$0 sm:$0xff]  ;;  %vm725_vm2 = vcmask 130112   ;;  %s268_s16 = scalar_lea.vmem %s4091_s6, %s4094_s22 }
   0xd   : > { %417 = vst.msk [vmem:[#allocation2 + $0x18] sm:$0xff] %vm412_vm0, %v2861_v0  ;;  %418 = vst.msk [vmem:[#allocation2 + $0x20] sm:$0xff] %vm412_vm0, %v2861_v0  ;;  %s2990_s29 = scalar_lea.vmem %s4085_s0, %s2752_s26  ;;  %vm918_vm3 = vcmask 195712   ;;  %vm2243_vm4 = vcmask 1043456   ;;  %vm1111_vm5 = vcmask 261312   ;;  %vm1304_vm6 = vcmask 326912  }
   0xe   : > { %420 = vst.msk [vmem:[#allocation2 + $0x30] sm:$0xff] %vm412_vm0, %v2861_v0  ;;  %421 = vst.msk [vmem:[#allocation2 + $0x38] sm:$0xff] %vm412_vm0, %v2861_v0  ;;  %v270_v3 = vld [vmem:[%s2990_s29] sm:$0xff]  ;;  %v271_v4 = vld [vmem:[%s2990_s29 + $0x8] sm:$0xff]  ;;  %vm1497_vm7 = vcmask 392512   ;;  %vm1691_vm8 = vcmask 458112  }
   0xf   : > { %423 = vst.msk [vmem:[#allocation2 + $0x48] sm:$0xff] %vm412_vm0, %v2861_v0  ;;  %424 = vst.msk [vmem:[#allocation2 + $0x50] sm:$0xff] %vm412_vm0, %v2861_v0  ;;  %v272_v5 = vld [vmem:[%s2990_s29 + $0x10] sm:$0xff]  ;;  %v309_v6 = vmul.f32 %v2964_v1, %v270_v3  ;;  %v310_v7 = vmul.f32 %v2964_v1, %v271_v4  ;;  %v273_v9 = vld [vmem:[%s2990_s29 + $0x18] sm:$0xff]  ;;  %vm1884_vm9 = vcmask 523712   ;;  %vm2077_vm10 = vcmask 589312  }
  0x10   : > { %426 = vst.msk [vmem:[#allocation2 + $0x60] sm:$0xff] %vm412_vm0, %v2861_v0  ;;  %427 = vst.msk [vmem:[#allocation2 + $0x68] sm:$0xff] %vm412_vm0, %v2861_v0  ;;  %v311_v8 = vmul.f32 %v2964_v1, %v272_v5  ;;  %v274_v10 = vld [vmem:[%s2990_s29 + $0x20] sm:$0xff]  ;;  %v275_v11 = vld [vmem:[%s2990_s29 + $0x28] sm:$0xff]  ;;  %v312_v13 = vmul.f32 %v2964_v1, %v273_v9  ;;  %vm2194_vm11 = vcmask 588800   ;;  %vm2509_vm12 = vcmask 57344  }
  0x11   : > { %429 = vst.msk [vmem:[#allocation2 + $0x78] sm:$0xff] %vm412_vm0, %v2861_v0  ;;  %430 = vst.msk [vmem:[#allocation2 + $0x80] sm:$0xff] %vm412_vm0, %v2861_v0  ;;  %v313_v14 = vmul.f32 %v2964_v1, %v274_v10  ;;  %v314_v15 = vmul.f32 %v2964_v1, %v275_v11  ;;  %v276_v16 = vld [vmem:[%s2990_s29 + $0x30] sm:$0xff]  ;;  %v277_v17 = vld [vmem:[%s2990_s29 + $0x38] sm:$0xff]  ;;  %v348_v18 = vadd.f32 %v2995_v2, %v309_v6 }
  0x12   : > { %432 = vst.msk [vmem:[#allocation2 + $0x90] sm:$0xff] %vm412_vm0, %v2861_v0  ;;  %433 = vst.msk [vmem:[#allocation2 + $0x98] sm:$0xff] %vm412_vm0, %v2861_v0  ;;  %v349_v20 = vadd.f32 %v2995_v2, %v310_v7  ;;  %v350_v21 = vadd.f32 %v2995_v2, %v311_v8  ;;  %v315_v22 = vmul.f32 %v2964_v1, %v276_v16  ;;  %v278_v27 = vld [vmem:[%s2990_s29 + $0x40] sm:$0xff]  ;;  %v279_v28 = vld [vmem:[%s2990_s29 + $0x48] sm:$0xff] }
  0x13   : > { %435 = vst.msk [vmem:[#allocation2 + $0xa8] sm:$0xff] %vm412_vm0, %v2861_v0  ;;  %436 = vst.msk [vmem:[#allocation2 + $0xb0] sm:$0xff] %vm412_vm0, %v2861_v0  ;;  %v565_v12 = vld [vmem:[#allocation2 + $0x1] sm:$0xff]  ;;  %v351_v23 = vadd.f32 %v2995_v2, %v312_v13  ;;  %v352_v24 = vadd.f32 %v2995_v2, %v313_v14  ;;  %v353_v25 = vadd.f32 %v2995_v2, %v314_v15  ;;  %v280_v29 = vld [vmem:[%s2990_s29 + $0x50] sm:$0xff]  ;;  %v380_v30 = vmax.f32 %v348_v18, 0.0 }
  0x14   : > { %438 = vst.msk [vmem:[#allocation2 + $0xc0] sm:$0xff] %vm412_vm0, %v2861_v0  ;;  %439 = vst.msk [vmem:[#allocation2 + $0xc8] sm:$0xff] %vm412_vm0, %v2861_v0  ;;  %629 = vrot.lane.b32.xlu0 %v565_v12, %s2862_s8  ;;  %v316_v26 = vmul.f32 %v2964_v1, %v277_v17  ;;  %v381_v31 = vmax.f32 %v349_v20, 0.0  ;;  %v382_v32 = vmax.f32 %v350_v21, 0.0  ;;  %v354_v33 = vadd.f32 %v2995_v2, %v315_v22  ;;  %v281_v34 = vld [vmem:[%s2990_s29 + $0x58] sm:$0xff]  ;;  %v282_v35 = vld [vmem:[%s2990_s29 + $0x60] sm:$0xff] }
  0x15   : > { %441 = vst.msk [vmem:[#allocation2 + $0xd8] sm:$0xff] %vm412_vm0, %v2861_v0  ;;  %442 = vst.msk [vmem:[#allocation2 + $0xe0] sm:$0xff] %vm412_vm0, %v2861_v0  ;;  %v283_v36 = vld [vmem:[%s2990_s29 + $0x68] sm:$0xff]  ;;  %v383_v37 = vmax.f32 %v351_v23, 0.0  ;;  %v384_v38 = vmax.f32 %v352_v24, 0.0  ;;  %v385_v39 = vmax.f32 %v353_v25, 0.0  ;;  %v317_v43 = vmul.f32 %v2964_v1, %v278_v27 }
  0x16   : > { %444 = vst.msk [vmem:[#allocation2 + $0xf0] sm:$0xff] %vm412_vm0, %v2861_v0  ;;  %445 = vst.msk [vmem:[#allocation2 + $0xf8] sm:$0xff] %vm412_vm0, %v2861_v0  ;;  %v355_v40 = vadd.f32 %v2995_v2, %v316_v26  ;;  %v284_v41 = vld [vmem:[%s2990_s29 + $0x70] sm:$0xff]  ;;  %v386_v42 = vmax.f32 %v354_v33, 0.0  ;;  %v318_v44 = vmul.f32 %v2964_v1, %v279_v28  ;;  %v319_v45 = vmul.f32 %v2964_v1, %v280_v29  ;;  %v285_v46 = vld [vmem:[%s2990_s29 + $0x78] sm:$0xff] }
  0x17   : > { %447 = vst.msk [vmem:[#allocation2 + $0x108] sm:$0xff] %vm412_vm0, %v2861_v0  ;;  %448 = vst.msk [vmem:[#allocation2 + $0x110] sm:$0xff] %vm412_vm0, %v2861_v0  ;;  %v320_v48 = vmul.f32 %v2964_v1, %v281_v34  ;;  %v321_v49 = vmul.f32 %v2964_v1, %v282_v35  ;;  %v322_v50 = vmul.f32 %v2964_v1, %v283_v36  ;;  %v286_v55 = vld [vmem:[%s2990_s29 + $0x80] sm:$0xff]  ;;  %v287_v56 = vld [vmem:[%s2990_s29 + $0x88] sm:$0xff] }
  0x18   : > { %450 = vst.msk [vmem:[#allocation2 + $0x120] sm:$0xff] %vm412_vm0, %v2861_v0  ;;  %451 = vst.msk [vmem:[#allocation2 + $0x128] sm:$0xff] %vm412_vm0, %v2861_v0  ;;  %v387_v47 = vmax.f32 %v355_v40, 0.0  ;;  %v356_v51 = vadd.f32 %v2995_v2, %v317_v43  ;;  %v357_v52 = vadd.f32 %v2995_v2, %v318_v44  ;;  %v358_v53 = vadd.f32 %v2995_v2, %v319_v45  ;;  %v288_v61 = vld [vmem:[%s2990_s29 + $0x90] sm:$0xff]  ;;  %v289_v62 = vld [vmem:[%s2990_s29 + $0x98] sm:$0xff] }
  0x19   : > { %453 = vst.msk [vmem:[#allocation2 + $0x138] sm:$0xff] %vm412_vm0, %v2861_v0  ;;  %454 = vst.msk [vmem:[#allocation2 + $0x140] sm:$0xff] %vm412_vm0, %v2861_v0  ;;  %v323_v54 = vmul.f32 %v2964_v1, %v284_v41  ;;  %v359_v57 = vadd.f32 %v2995_v2, %v320_v48  ;;  %v360_v58 = vadd.f32 %v2995_v2, %v321_v49  ;;  %v290_v63 = vld [vmem:[%s2990_s29 + $0xa0] sm:$0xff]  ;;  %v291_v6 = vld [vmem:[%s2990_s29 + $0xa8] sm:$0xff] }
  0x1a   : > { %456 = vst.msk [vmem:[#allocation2 + $0x150] sm:$0xff] %vm412_vm0, %v2861_v0  ;;  %457 = vst.msk [vmem:[#allocation2 + $0x158] sm:$0xff] %vm412_vm0, %v2861_v0  ;;  %v361_v59 = vadd.f32 %v2995_v2, %v322_v50  ;;  %v324_v60 = vmul.f32 %v2964_v1, %v285_v46  ;;  %v389_v3 = vmax.f32 %v357_v52, 0.0  ;;  %v390_v4 = vmax.f32 %v358_v53, 0.0  ;;  %v501_v7 = vld [vmem:[#allocation2] sm:$0xff]  ;;  %v502_v8 = vld [vmem:[#allocation2 + $0x8] sm:$0xff] }
  0x1b   : > { %459 = vst.msk [vmem:[#allocation2 + $0x168] sm:$0xff] %vm412_vm0, %v2861_v0  ;;  %460 = vst.msk [vmem:[#allocation2 + $0x170] sm:$0xff] %vm412_vm0, %v2861_v0  ;;  %v362_v5 = vadd.f32 %v2995_v2, %v323_v54  ;;  %v391_v9 = vmax.f32 %v359_v57, 0.0  ;;  %v392_v10 = vmax.f32 %v360_v58, 0.0  ;;  %v325_v14 = vmul.f32 %v2964_v1, %v286_v55  ;;  %v292_v17 = vld [vmem:[%s2990_s29 + $0xb0] sm:$0xff]  ;;  %v293_v24 = vld [vmem:[%s2990_s29 + $0xb8] sm:$0xff] }
  0x1c   : > { %462 = vst.msk [vmem:[#allocation2 + $0x180] sm:$0xff] %vm412_vm0, %v2861_v0  ;;  %463 = vst.msk [vmem:[#allocation2 + $0x188] sm:$0xff] %vm412_vm0, %v2861_v0  ;;  %v393_v11 = vmax.f32 %v361_v59, 0.0  ;;  %v363_v12 = vadd.f32 %v2995_v2, %v324_v60  ;;  %v326_v15 = vmul.f32 %v2964_v1, %v287_v56  ;;  %v327_v16 = vmul.f32 %v2964_v1, %v288_v61  ;;  %v294_v28 = vld [vmem:[%s2990_s29 + $0xc0] sm:$0xff]  ;;  %v295_v35 = vld [vmem:[%s2990_s29 + $0xc8] sm:$0xff] }
  0x1d   : > { %465 = vst.msk [vmem:[#allocation2 + $0x198] sm:$0xff] %vm412_vm0, %v2861_v0  ;;  %466 = vst.msk [vmem:[#allocation2 + $0x1a0] sm:$0xff] %vm412_vm0, %v2861_v0  ;;  %v394_v13 = vmax.f32 %v362_v5, 0.0  ;;  %v328_v21 = vmul.f32 %v2964_v1, %v289_v62  ;;  %v329_v22 = vmul.f32 %v2964_v1, %v290_v63  ;;  %v330_v23 = vmul.f32 %v2964_v1, %v291_v6  ;;  %v296_v40 = vld [vmem:[%s2990_s29 + $0xd0] sm:$0xff]  ;;  %v297_v41 = vld [vmem:[%s2990_s29 + $0xd8] sm:$0xff] }
  0x1e   : > { %416 = vst.msk [vmem:[#allocation2 + $0x10] sm:$0x3] %vm415_vm1, %v2861_v0  ;;  %419 = vst.msk [vmem:[#allocation2 + $0x28] sm:$0x3] %vm415_vm1, %v2861_v0  ;;  %v395_v20 = vmax.f32 %v363_v12, 0.0  ;;  %v364_v25 = vadd.f32 %v2995_v2, %v325_v14  ;;  %v365_v26 = vadd.f32 %v2995_v2, %v326_v15  ;;  %v366_v27 = vadd.f32 %v2995_v2, %v327_v16 }
  0x1f   : > { %422 = vst.msk [vmem:[#allocation2 + $0x40] sm:$0x3] %vm415_vm1, %v2861_v0  ;;  %425 = vst.msk [vmem:[#allocation2 + $0x58] sm:$0x3] %vm415_vm1, %v2861_v0  ;;  %v369_v33 = vadd.f32 %v2995_v2, %v330_v23  ;;  %v331_v34 = vmul.f32 %v2964_v1, %v292_v17  ;;  %v333_v49 = vmul.f32 %v2964_v1, %v294_v28 }
  0x20   : > { %428 = vst.msk [vmem:[#allocation2 + $0x70] sm:$0x3] %vm415_vm1, %v2861_v0  ;;  %431 = vst.msk [vmem:[#allocation2 + $0x88] sm:$0x3] %vm415_vm1, %v2861_v0  ;;  %v396_v36 = vmax.f32 %v364_v25, 0.0  ;;  %v334_v50 = vmul.f32 %v2964_v1, %v295_v35  ;;  %v335_v56 = vmul.f32 %v2964_v1, %v296_v40  ;;  %v336_v57 = vmul.f32 %v2964_v1, %v297_v41 }
  0x21   : > { %434 = vst.msk [vmem:[#allocation2 + $0xa0] sm:$0x3] %vm415_vm1, %v2861_v0  ;;  %437 = vst.msk [vmem:[#allocation2 + $0xb8] sm:$0x3] %vm415_vm1, %v2861_v0  ;;  %v401_v45 = vmax.f32 %v369_v33, 0.0  ;;  %v370_v46 = vadd.f32 %v2995_v2, %v331_v34  ;;  %v372_v60 = vadd.f32 %v2995_v2, %v333_v49 }
  0x22   : > { %440 = vst.msk [vmem:[#allocation2 + $0xd0] sm:$0x3] %vm415_vm1, %v2861_v0  ;;  %443 = vst.msk [vmem:[#allocation2 + $0xe8] sm:$0x3] %vm415_vm1, %v2861_v0  ;;  %v373_v61 = vadd.f32 %v2995_v2, %v334_v50  ;;  %v374_v63 = vadd.f32 %v2995_v2, %v335_v56 }
  0x23   : > { %446 = vst.msk [vmem:[#allocation2 + $0x100] sm:$0x3] %vm415_vm1, %v2861_v0  ;;  %449 = vst.msk [vmem:[#allocation2 + $0x118] sm:$0x3] %vm415_vm1, %v2861_v0  ;;  %v402_v55 = vmax.f32 %v370_v46, 0.0 }
  0x24   : > { %452 = vst.msk [vmem:[#allocation2 + $0x130] sm:$0x3] %vm415_vm1, %v2861_v0  ;;  %455 = vst.msk [vmem:[#allocation2 + $0x148] sm:$0x3] %vm415_vm1, %v2861_v0  ;;  %v405_v5 = vmax.f32 %v373_v61, 0.0 }
  0x25   : > { %458 = vst.msk [vmem:[#allocation2 + $0x160] sm:$0x3] %vm415_vm1, %v2861_v0  ;;  %461 = vst.msk [vmem:[#allocation2 + $0x178] sm:$0x3] %vm415_vm1, %v2861_v0  ;;  %v566_v19 = vld [vmem:[#allocation2 + $0x9] sm:$0xff] }
  0x26   : > { %464 = vst.msk [vmem:[#allocation2 + $0x190] sm:$0x3] %vm415_vm1, %v2861_v0  ;;  %467 = vst.msk [vmem:[#allocation2 + $0x1a8] sm:$0x3] %vm415_vm1, %v2861_v0  ;;  %631 = vrot.lane.b32.xlu0 %v566_v19, %s2862_s8  ;;  %v388_v0 = vmax.f32 %v356_v51, 0.0 }
  0x27   : > { %469 = vst.msk [vmem:[#allocation2 + $0x19] sm:$0xff] %vm412_vm0, %v380_v30  ;;  %470 = vst.msk [vmem:[#allocation2 + $0x21] sm:$0xff] %vm412_vm0, %v381_v31  ;;  %v367_v31 = vadd.f32 %v2995_v2, %v328_v21 }
  0x28   : > { %471 = vst.msk [vmem:[#allocation2 + $0x31] sm:$0xff] %vm412_vm0, %v382_v32  ;;  %472 = vst.msk [vmem:[#allocation2 + $0x39] sm:$0xff] %vm412_vm0, %v383_v37  ;;  %v368_v32 = vadd.f32 %v2995_v2, %v329_v22  ;;  %v397_v37 = vmax.f32 %v365_v26, 0.0 }
  0x29   : > { %473 = vst.msk [vmem:[#allocation2 + $0x49] sm:$0xff] %vm412_vm0, %v384_v38  ;;  %474 = vst.msk [vmem:[#allocation2 + $0x51] sm:$0xff] %vm412_vm0, %v385_v39  ;;  %v398_v38 = vmax.f32 %v366_v27, 0.0  ;;  %v332_v39 = vmul.f32 %v2964_v1, %v293_v24  ;;  %v399_v43 = vmax.f32 %v367_v31, 0.0 }
  0x2a   : > { %475 = vst.msk [vmem:[#allocation2 + $0x61] sm:$0xff] %vm412_vm0, %v386_v42  ;;  %476 = vst.msk [vmem:[#allocation2 + $0x69] sm:$0xff] %vm412_vm0, %v387_v47  ;;  %v298_v42 = vld [vmem:[%s2990_s29 + $0xe0] sm:$0xff]  ;;  %v400_v44 = vmax.f32 %v368_v32, 0.0  ;;  %v299_v47 = vld [vmem:[%s2990_s29 + $0xe8] sm:$0xff] }
  0x2b   : > { %533 = vst.msk [vmem:[#allocation3] sm:$0xff] %vm412_vm0, %v501_v7  ;;  %534 = vst.msk [vmem:[#allocation3 + $0x8] sm:$0xff] %vm412_vm0, %v502_v8  ;;  %v371_v48 = vadd.f32 %v2995_v2, %v332_v39  ;;  %v337_v58 = vmul.f32 %v2964_v1, %v298_v42  ;;  %v338_v62 = vmul.f32 %v2964_v1, %v299_v47  ;;  %v406_v8 = vmax.f32 %v374_v63, 0.0 }
  0x2c   : > { %477 = vst.msk [vmem:[#allocation2 + $0x79] sm:$0xff] %vm412_vm0, %v388_v0  ;;  %478 = vst.msk [vmem:[#allocation2 + $0x81] sm:$0xff] %vm412_vm0, %v389_v3  ;;  %v375_v0 = vadd.f32 %v2995_v2, %v336_v57 }
  0x2d   : > { %479 = vst.msk [vmem:[#allocation2 + $0x91] sm:$0xff] %vm412_vm0, %v390_v4  ;;  %480 = vst.msk [vmem:[#allocation2 + $0x99] sm:$0xff] %vm412_vm0, %v391_v9  ;;  %v403_v59 = vmax.f32 %v371_v48, 0.0  ;;  %v376_v3 = vadd.f32 %v2995_v2, %v337_v58  ;;  %v404_v4 = vmax.f32 %v372_v60, 0.0  ;;  %v377_v1 = vadd.f32 %v2995_v2, %v338_v62 }
  0x2e   : > { %v3070_v18 = vld [vmem:[#allocation2 + $0x19] sm:$0xff]  ;;  %481 = vst.msk [vmem:[#allocation2 + $0xa9] sm:$0xff] %vm412_vm0, %v392_v10  ;;  %482 = vst.msk [vmem:[#allocation2 + $0xb1] sm:$0xff] %vm412_vm0, %v393_v11  ;;  %v3090_v29 = vld [vmem:[#allocation2 + $0x21] sm:$0xff]  ;;  %v407_v9 = vmax.f32 %v375_v0, 0.0 }
  0x2f   : > { %v3072_v19 = vld [vmem:[#allocation2 + $0x31] sm:$0xff]  ;;  %633 = vrot.lane.b32.xlu1 %v3070_v18, %s2862_s8  ;;  %483 = vst.msk [vmem:[#allocation2 + $0xc1] sm:$0xff] %vm412_vm0, %v394_v13  ;;  %484 = vst.msk [vmem:[#allocation2 + $0xc9] sm:$0xff] %vm412_vm0, %v395_v20  ;;  %v3118_v52 = vld [vmem:[#allocation2 + $0x20] sm:$0xff]  ;;  %v408_v10 = vmax.f32 %v376_v3, 0.0  ;;  %v409_v11 = vmax.f32 %v377_v1, 0.0 }
  0x30   : > { %637 = vrot.lane.b32.xlu0 %v3072_v19, %s2862_s8  ;;  %v3092_v30 = vld [vmem:[#allocation2 + $0x49] sm:$0xff]  ;;  %485 = vst.msk [vmem:[#allocation2 + $0xd9] sm:$0xff] %vm412_vm0, %v396_v36  ;;  %486 = vst.msk [vmem:[#allocation2 + $0xe1] sm:$0xff] %vm412_vm0, %v397_v37  ;;  %v3116_v51 = vld [vmem:[#allocation2 + $0x18] sm:$0xff] }
  0x31   : > { %487 = vst.msk [vmem:[#allocation2 + $0xf1] sm:$0xff] %vm412_vm0, %v398_v38  ;;  %v3120_v53 = vld [vmem:[#allocation2 + $0x39] sm:$0xff]  ;;  %v3122_v54 = vld [vmem:[#allocation2 + $0x61] sm:$0xff]  ;;  %488 = vst.msk [vmem:[#allocation2 + $0xf9] sm:$0xff] %vm412_vm0, %v399_v43 }
  0x32   : > { %489 = vst.msk [vmem:[#allocation2 + $0x109] sm:$0xff] %vm412_vm0, %v400_v44  ;;  %490 = vst.msk [vmem:[#allocation2 + $0x111] sm:$0xff] %vm412_vm0, %v401_v45  ;;  %v3147_v6 = vld [vmem:[#allocation2 + $0x51] sm:$0xff]  ;;  %v3169_v2 = vld [vmem:[#allocation2 + $0x69] sm:$0xff] }
  0x33   : > { %635 = vrot.lane.b32.xlu1 %v3090_v29, %s2862_s8  ;;  %535 = vst.msk [vmem:[#allocation3 + $0x10] sm:$0xff] %vm412_vm0, %v3116_v51  ;;  %536 = vst.msk [vmem:[#allocation3 + $0x18] sm:$0xff] %vm412_vm0, %v3118_v52  ;;  %v3149_v7 = vld [vmem:[#allocation2 + $0x79] sm:$0xff]  ;;  %v3153_v12 = vld [vmem:[#allocation2 + $0x30] sm:$0xff] }
  0x34   : > { %641 = vrot.lane.b32.xlu0 %v3092_v30, %s2862_s8  ;;  %491 = vst.msk [vmem:[#allocation2 + $0x121] sm:$0xff] %vm412_vm0, %v402_v55  ;;  %492 = vst.msk [vmem:[#allocation2 + $0x129] sm:$0xff] %vm412_vm0, %v403_v59  ;;  %v3155_v13 = vld [vmem:[#allocation2 + $0x38] sm:$0xff]  ;;  %v3174_v15 = vld [vmem:[#allocation2 + $0x48] sm:$0xff] }
  0x35   : > { %493 = vst.msk [vmem:[#allocation2 + $0x139] sm:$0xff] %vm412_vm0, %v404_v4  ;;  %494 = vst.msk [vmem:[#allocation2 + $0x141] sm:$0xff] %vm412_vm0, %v405_v5  ;;  %v577_v14 = vld [vmem:[#allocation2 + $0x91] sm:$0xff]  ;;  %v3178_v17 = vld [vmem:[#allocation2 + $0x81] sm:$0xff] }
  0x36   : > { %495 = vst.msk [vmem:[#allocation2 + $0x151] sm:$0xff] %vm412_vm0, %v406_v8  ;;  %496 = vst.msk [vmem:[#allocation2 + $0x159] sm:$0xff] %vm412_vm0, %v407_v9  ;;  %v3176_v16 = vld [vmem:[#allocation2 + $0x50] sm:$0xff]  ;;  %v578_v21 = vld [vmem:[#allocation2 + $0x99] sm:$0xff] }
  0x37   : > { %639 = vrot.lane.b32.xlu1 %v3120_v53, %s2862_s8  ;;  %497 = vst.msk [vmem:[#allocation2 + $0x169] sm:$0xff] %vm412_vm0, %v408_v10  ;;  %537 = vst.msk [vmem:[#allocation3 + $0x20] sm:$0xff] %vm412_vm0, %v3153_v12  ;;  %v579_v20 = vld [vmem:[#allocation2 + $0xa9] sm:$0xff]  ;;  %v581_v22 = vld [vmem:[#allocation2 + $0xc1] sm:$0xff] }
  0x38   : > { %645 = vrot.lane.b32.xlu0 %v3122_v54, %s2862_s8  ;;  %538 = vst.msk [vmem:[#allocation3 + $0x28] sm:$0xff] %vm412_vm0, %v3155_v13  ;;  %498 = vst.msk [vmem:[#allocation2 + $0x171] sm:$0xff] %vm412_vm0, %v409_v11  ;;  %v3187_v23 = vld [vmem:[#allocation2 + $0x60] sm:$0xff]  ;;  %v3189_v24 = vld [vmem:[#allocation2 + $0x68] sm:$0xff] }
  0x39   : > { %539 = vst.msk [vmem:[#allocation3 + $0x30] sm:$0xff] %vm412_vm0, %v3174_v15  ;;  %540 = vst.msk [vmem:[#allocation3 + $0x38] sm:$0xff] %vm412_vm0, %v3176_v16  ;;  %v3191_v25 = vld [vmem:[#allocation2 + $0x78] sm:$0xff]  ;;  %v3199_v26 = vld [vmem:[#allocation2 + $0x80] sm:$0xff] }
  0x3a   : > { %541 = vst.msk [vmem:[#allocation3 + $0x40] sm:$0xff] %vm412_vm0, %v3187_v23  ;;  %542 = vst.msk [vmem:[#allocation3 + $0x48] sm:$0xff] %vm412_vm0, %v3189_v24  ;;  %v3201_v27 = vld [vmem:[#allocation2 + $0x90] sm:$0xff]  ;;  %v3203_v28 = vld [vmem:[#allocation2 + $0x98] sm:$0xff] }
  0x3b   : > { %643 = vrot.lane.b32.xlu1 %v3147_v6, %s2862_s8  ;;  %543 = vst.msk [vmem:[#allocation3 + $0x50] sm:$0xff] %vm412_vm0, %v3191_v25  ;;  %v580_v31 = vld [vmem:[#allocation2 + $0xb1] sm:$0xff]  ;;  %544 = vst.msk [vmem:[#allocation3 + $0x58] sm:$0xff] %vm412_vm0, %v3199_v26  ;;  %v3211_v32 = vld [vmem:[#allocation2 + $0xa8] sm:$0xff] }
  0x3c   : > { %649 = vrot.lane.b32.xlu0 %v3149_v7, %s2862_s8  ;;  %545 = vst.msk [vmem:[#allocation3 + $0x60] sm:$0xff] %vm412_vm0, %v3201_v27  ;;  %546 = vst.msk [vmem:[#allocation3 + $0x68] sm:$0xff] %vm412_vm0, %v3203_v28  ;;  %v3213_v33 = vld [vmem:[#allocation2 + $0xb0] sm:$0xff]  ;;  %v3215_v34 = vld [vmem:[#allocation2 + $0xc0] sm:$0xff] }
  0x3d   : > { %547 = vst.msk [vmem:[#allocation3 + $0x70] sm:$0xff] %vm412_vm0, %v3211_v32  ;;  %548 = vst.msk [vmem:[#allocation3 + $0x78] sm:$0xff] %vm412_vm0, %v3213_v33  ;;  %v3225_v35 = vld [vmem:[#allocation2 + $0xc8] sm:$0xff]  ;;  %v3227_v36 = vld [vmem:[#allocation2 + $0xd8] sm:$0xff] }
  0x3e   : > { %549 = vst.msk [vmem:[#allocation3 + $0x80] sm:$0xff] %vm412_vm0, %v3215_v34  ;;  %v3229_v37 = vld [vmem:[#allocation2 + $0xe0] sm:$0xff]  ;;  %550 = vst.msk [vmem:[#allocation3 + $0x88] sm:$0xff] %vm412_vm0, %v3225_v35  ;;  %v3237_v39 = vld [vmem:[#allocation2 + $0xf0] sm:$0xff] }
  0x3f   : > { %647 = vrot.lane.b32.xlu1 %v3169_v2, %s2862_s8  ;;  %v583_v38 = vld [vmem:[#allocation2 + $0xd9] sm:$0xff]  ;;  %551 = vst.msk [vmem:[#allocation3 + $0x90] sm:$0xff] %vm412_vm0, %v3227_v36  ;;  %552 = vst.msk [vmem:[#allocation3 + $0x98] sm:$0xff] %vm412_vm0, %v3229_v37  ;;  %v3247_v41 = vld [vmem:[#allocation2 + $0x108] sm:$0xff] }
  0x40   : > { %653 = vrot.lane.b32.xlu0 %v577_v14, %s2862_s8  ;;  %v3239_v40 = vld [vmem:[#allocation2 + $0xf8] sm:$0xff]  ;;  %553 = vst.msk [vmem:[#allocation3 + $0xa0] sm:$0xff] %vm412_vm0, %v3237_v39  ;;  %v3249_v42 = vld [vmem:[#allocation2 + $0x110] sm:$0xff]  ;;  %555 = vst.msk [vmem:[#allocation3 + $0xb0] sm:$0xff] %vm412_vm0, %v3247_v41 }
  0x41   : > { %554 = vst.msk [vmem:[#allocation3 + $0xa8] sm:$0xff] %vm412_vm0, %v3239_v40  ;;  %v582_v43 = vld [vmem:[#allocation2 + $0xc9] sm:$0xff]  ;;  %v585_v44 = vld [vmem:[#allocation2 + $0xf1] sm:$0xff]  ;;  %556 = vst.msk [vmem:[#allocation3 + $0xb8] sm:$0xff] %vm412_vm0, %v3249_v42 }
  0x42   : > { %v3257_v45 = vld [vmem:[#allocation2 + $0x120] sm:$0xff]  ;;  %v3259_v46 = vld [vmem:[#allocation2 + $0x128] sm:$0xff]  ;;  %v527_v49 = vld [vmem:[#allocation2 + $0x138] sm:$0xff] }
  0x43   : > { %651 = vrot.lane.b32.xlu1 %v3178_v17, %s2862_s8  ;;  %v584_v47 = vld [vmem:[#allocation2 + $0xe1] sm:$0xff]  ;;  %v587_v48 = vld [vmem:[#allocation2 + $0x109] sm:$0xff]  ;;  %557 = vst.msk [vmem:[#allocation3 + $0xc0] sm:$0xff] %vm412_vm0, %v3257_v45  ;;  %558 = vst.msk [vmem:[#allocation3 + $0xc8] sm:$0xff] %vm412_vm0, %v3259_v46 }
  0x44   : > { %657 = vrot.lane.b32.xlu0 %v579_v20, %s2862_s8  ;;  %v528_v50 = vld [vmem:[#allocation2 + $0x140] sm:$0xff]  ;;  %559 = vst.msk [vmem:[#allocation3 + $0xd0] sm:$0xff] %vm412_vm0, %v527_v49  ;;  %v529_v57 = vld [vmem:[#allocation2 + $0x150] sm:$0xff]  ;;  %v530_v58 = vld [vmem:[#allocation2 + $0x158] sm:$0xff] }
  0x45   : > { %v586_v55 = vld [vmem:[#allocation2 + $0xf9] sm:$0xff]  ;;  %v589_v56 = vld [vmem:[#allocation2 + $0x121] sm:$0xff]  ;;  %560 = vst.msk [vmem:[#allocation3 + $0xd8] sm:$0xff] %vm412_vm0, %v528_v50  ;;  %v588_v59 = vld [vmem:[#allocation2 + $0x111] sm:$0xff] }
  0x46   : > { %v591_v60 = vld [vmem:[#allocation2 + $0x139] sm:$0xff]  ;;  %561 = vst.msk [vmem:[#allocation3 + $0xe0] sm:$0xff] %vm412_vm0, %v529_v57  ;;  %562 = vst.msk [vmem:[#allocation3 + $0xe8] sm:$0xff] %vm412_vm0, %v530_v58  ;;  %v531_v61 = vld [vmem:[#allocation2 + $0x168] sm:$0xff] }
  0x47   : > { %655 = vrot.lane.b32.xlu1 %v578_v21, %s2862_s8  ;;  %v532_v62 = vld [vmem:[#allocation2 + $0x170] sm:$0xff]  ;;  %563 = vst.msk [vmem:[#allocation3 + $0xf0] sm:$0xff] %vm412_vm0, %v531_v61  ;;  %v592_v3 = vld [vmem:[#allocation2 + $0x141] sm:$0xff]  ;;  %v594_v5 = vld [vmem:[#allocation2 + $0x159] sm:$0xff] }
  0x48   : > { %661 = vrot.lane.b32.xlu0 %v581_v22, %s2862_s8  ;;  %v590_v63 = vld [vmem:[#allocation2 + $0x129] sm:$0xff]  ;;  %v593_v0 = vld [vmem:[#allocation2 + $0x151] sm:$0xff]  ;;  %564 = vst.msk [vmem:[#allocation3 + $0xf8] sm:$0xff] %vm412_vm0, %v532_v62  ;;  %v3283_v9 = vld [vmem:[#allocation2 + $0x1a] sm:$0xff] }
  0x49   : > { %v595_v4 = vld [vmem:[#allocation2 + $0x169] sm:$0xff]  ;;  %v596_v8 = vld [vmem:[#allocation2 + $0x171] sm:$0xff]  ;;  %v3301_v21 = vld [vmem:[#allocation2 + $0x3a] sm:$0xff] }
  0x4a   : > { %v758_v1 = vld [vmem:[#allocation2 + $0x2] sm:$0xff]  ;;  %v759_v10 = vld [vmem:[#allocation2 + $0xa] sm:$0xff]  ;;  %v3288_v11 = vld [vmem:[#allocation2 + $0x32] sm:$0xff] }
  0x4b   : > { %659 = vrot.lane.b32.xlu1 %v580_v31, %s2862_s8  ;;  %v3293_v14 = vld [vmem:[#allocation2 + $0x22] sm:$0xff]  ;;  %v3295_v20 = vld [vmem:[#allocation2 + $0x4a] sm:$0xff]  ;;  %v3309_v31 = vld [vmem:[#allocation2 + $0x52] sm:$0xff] }
  0x4c   : > { %665 = vrot.lane.b32.xlu0 %v583_v38, %s2862_s8  ;;  %v3303_v22 = vld [vmem:[#allocation2 + $0x62] sm:$0xff]  ;;  %v3311_v38 = vld [vmem:[#allocation2 + $0x7a] sm:$0xff]  ;;  %v3346_v57 = vld [vmem:[#allocation2 + $0xca] sm:$0xff] }
  0x4d   : > { %v3333_v49 = vld [vmem:[#allocation2 + $0x9a] sm:$0xff]  ;;  %v3335_v50 = vld [vmem:[#allocation2 + $0xc2] sm:$0xff]  ;;  %v778_v58 = vld [vmem:[#allocation2 + $0xf2] sm:$0xff] }
  0x4e   : > { %v779_v61 = vld [vmem:[#allocation2 + $0xfa] sm:$0xff]  ;;  %v782_v62 = vld [vmem:[#allocation2 + $0x122] sm:$0xff] }
  0x4f   : > { %663 = vrot.lane.b32.xlu1 %v582_v43, %s2862_s8  ;;  %v3317_v43 = vld [vmem:[#allocation2 + $0x6a] sm:$0xff] }
  0x50   : > { %669 = vrot.lane.b32.xlu0 %v585_v44, %s2862_s8  ;;  %v3319_v44 = vld [vmem:[#allocation2 + $0x92] sm:$0xff] }
  0x53   : > { %667 = vrot.lane.b32.xlu1 %v584_v47, %s2862_s8  ;;  %v3325_v47 = vld [vmem:[#allocation2 + $0x82] sm:$0xff] }
  0x54   : > { %673 = vrot.lane.b32.xlu0 %v587_v48, %s2862_s8  ;;  %v3327_v48 = vld [vmem:[#allocation2 + $0xaa] sm:$0xff] }
  0x57   : > { %671 = vrot.lane.b32.xlu1 %v586_v55, %s2862_s8  ;;  %v3341_v55 = vld [vmem:[#allocation2 + $0xb2] sm:$0xff] }
  0x58   : > { %677 = vrot.lane.b32.xlu0 %v589_v56, %s2862_s8  ;;  %v776_v56 = vld [vmem:[#allocation2 + $0xda] sm:$0xff] }
  0x5b   : > { %675 = vrot.lane.b32.xlu1 %v588_v59, %s2862_s8  ;;  %v777_v59 = vld [vmem:[#allocation2 + $0xe2] sm:$0xff] }
  0x5c   : > { %681 = vrot.lane.b32.xlu0 %v591_v60, %s2862_s8  ;;  %v780_v60 = vld [vmem:[#allocation2 + $0x10a] sm:$0xff] }
  0x5f   : > { %679 = vrot.lane.b32.xlu1 %v590_v63, %s2862_s8 }
  0x60   : > { %685 = vrot.lane.b32.xlu0 %v593_v0, %s2862_s8  ;;  %v781_v0 = vld [vmem:[#allocation2 + $0x112] sm:$0xff] }
  0x63   : > { %683 = vrot.lane.b32.xlu1 %v592_v3, %s2862_s8  ;;  %v784_v3 = vld [vmem:[#allocation2 + $0x13a] sm:$0xff] }
  0x64   : > { %689 = vrot.lane.b32.xlu0 %v595_v4, %s2862_s8 }
  0x67   : > { %687 = vrot.lane.b32.xlu1 %v594_v5, %s2862_s8  ;;  %v783_v5 = vld [vmem:[#allocation2 + $0x12a] sm:$0xff] }
  0x68   : > { %822 = vrot.lane.b32.xlu0 %v758_v1, %s2863_s9  ;;  %v786_v1 = vld [vmem:[#allocation2 + $0x152] sm:$0xff] }
  0x6b   : > { %691 = vrot.lane.b32.xlu1 %v596_v8, %s2862_s8  ;;  %v785_v8 = vld [vmem:[#allocation2 + $0x142] sm:$0xff] }
  0x6c   : > { %826 = vrot.lane.b32.xlu0 %v3283_v9, %s2863_s9 }
  0x6f   : > { %824 = vrot.lane.b32.xlu1 %v759_v10, %s2863_s9  ;;  %v788_v10 = vld [vmem:[#allocation2 + $0x16a] sm:$0xff] }
  0x70   : > { %830 = vrot.lane.b32.xlu0 %v3288_v11, %s2863_s9 }
  0x73   : > { %828 = vrot.lane.b32.xlu1 %v3293_v14, %s2863_s9 }
  0x74   : > { %834 = vrot.lane.b32.xlu0 %v3295_v20, %s2863_s9 }
  0x77   : > { %832 = vrot.lane.b32.xlu1 %v3301_v21, %s2863_s9 }
  0x78   : > { %838 = vrot.lane.b32.xlu0 %v3303_v22, %s2863_s9 }
  0x7b   : > { %836 = vrot.lane.b32.xlu1 %v3309_v31, %s2863_s9 }
  0x7c   : > { %842 = vrot.lane.b32.xlu0 %v3311_v38, %s2863_s9 }
  0x7f   : > { %840 = vrot.lane.b32.xlu1 %v3317_v43, %s2863_s9 }
  0x80   : > { %846 = vrot.lane.b32.xlu0 %v3319_v44, %s2863_s9 }
  0x83   : > { %844 = vrot.lane.b32.xlu1 %v3325_v47, %s2863_s9 }
  0x84   : > { %850 = vrot.lane.b32.xlu0 %v3327_v48, %s2863_s9 }
  0x86   : > { %v630_v63 = vpop.permute.xlu0 %629 }
  0x87   : > { %848 = vrot.lane.b32.xlu1 %v3333_v49, %s2863_s9  ;;  %726 = vst.msk [vmem:[#allocation3] sm:$0xff] %vm725_vm2, %v630_v63 }
  0x88   : > { %854 = vrot.lane.b32.xlu0 %v3335_v50, %s2863_s9 }
  0x8b   : > { %852 = vrot.lane.b32.xlu1 %v3341_v55, %s2863_s9 }
  0x8c   : > { %858 = vrot.lane.b32.xlu0 %v776_v56, %s2863_s9 }
  0x8f   : > { %856 = vrot.lane.b32.xlu1 %v3346_v57, %s2863_s9 }
  0x90   : > { %862 = vrot.lane.b32.xlu0 %v778_v58, %s2863_s9 }
  0x93   : > { %860 = vrot.lane.b32.xlu1 %v777_v59, %s2863_s9  ;;  %v787_v59 = vld [vmem:[#allocation2 + $0x15a] sm:$0xff] }
  0x94   : > { %866 = vrot.lane.b32.xlu0 %v780_v60, %s2863_s9 }
  0x97   : > { %864 = vrot.lane.b32.xlu1 %v779_v61, %s2863_s9 }
  0x98   : > { %870 = vrot.lane.b32.xlu0 %v782_v62, %s2863_s9  ;;  %v632_v4 = vpop.permute.xlu0 %631  ;;  %v789_v62 = vld [vmem:[#allocation2 + $0x172] sm:$0xff] }
  0x99   : > { %727 = vst.msk [vmem:[#allocation3 + $0x8] sm:$0xff] %vm725_vm2, %v632_v4 }
  0x9b   : > { %868 = vrot.lane.b32.xlu1 %v781_v0, %s2863_s9 }
  0x9c   : > { %874 = vrot.lane.b32.xlu0 %v784_v3, %s2863_s9 }
  0x9f   : > { %872 = vrot.lane.b32.xlu1 %v783_v5, %s2863_s9 }
  0xa0   : > { %878 = vrot.lane.b32.xlu0 %v786_v1, %s2863_s9 }
  0xa1   : > { %v634_v56 = vpop.permute.xlu1 %633 }
  0xa2   : > { %v638_v58 = vpop.permute.xlu0 %637  ;;  %728 = vst.msk [vmem:[#allocation3 + $0x10] sm:$0xff] %vm725_vm2, %v634_v56 }
  0xa3   : > { %730 = vst.msk [vmem:[#allocation3 + $0x20] sm:$0xff] %vm725_vm2, %v638_v58  ;;  %876 = vrot.lane.b32.xlu1 %v785_v8, %s2863_s9 }
  0xa4   : > { %882 = vrot.lane.b32.xlu0 %v788_v10, %s2863_s9 }
  0xa5   : > { %v636_v60 = vpop.permute.xlu1 %635 }
  0xa6   : > { %v642_v61 = vpop.permute.xlu0 %641  ;;  %729 = vst.msk [vmem:[#allocation3 + $0x18] sm:$0xff] %vm725_vm2, %v636_v60 }
  0xa7   : > { %732 = vst.msk [vmem:[#allocation3 + $0x30] sm:$0xff] %vm725_vm2, %v642_v61  ;;  %880 = vrot.lane.b32.xlu1 %v787_v59, %s2863_s9 }
  0xa8   : > { %1015 = vrot.lane.b32.xlu0 %v3116_v51, %s2864_s10 }
  0xa9   : > { %v640_v63 = vpop.permute.xlu1 %639 }
  0xaa   : > { %v646_v0 = vpop.permute.xlu0 %645  ;;  %731 = vst.msk [vmem:[#allocation3 + $0x28] sm:$0xff] %vm725_vm2, %v640_v63 }
  0xab   : > { %734 = vst.msk [vmem:[#allocation3 + $0x40] sm:$0xff] %vm725_vm2, %v646_v0  ;;  %884 = vrot.lane.b32.xlu1 %v789_v62, %s2863_s9 }
  0xac   : > { %1019 = vrot.lane.b32.xlu0 %v3153_v12, %s2864_s10 }
  0xad   : > { %v644_v3 = vpop.permute.xlu1 %643 }
  0xae   : > { %v650_v4 = vpop.permute.xlu0 %649  ;;  %733 = vst.msk [vmem:[#allocation3 + $0x38] sm:$0xff] %vm725_vm2, %v644_v3 }
  0xaf   : > { %736 = vst.msk [vmem:[#allocation3 + $0x50] sm:$0xff] %vm725_vm2, %v650_v4  ;;  %1017 = vrot.lane.b32.xlu1 %v3118_v52, %s2864_s10 }
  0xb0   : > { %1023 = vrot.lane.b32.xlu0 %v3174_v15, %s2864_s10 }
  0xb1   : > { %v648_v51 = vpop.permute.xlu1 %647 }
  0xb2   : > { %v654_v5 = vpop.permute.xlu0 %653  ;;  %735 = vst.msk [vmem:[#allocation3 + $0x48] sm:$0xff] %vm725_vm2, %v648_v51 }
  0xb3   : > { %738 = vst.msk [vmem:[#allocation3 + $0x60] sm:$0xff] %vm725_vm2, %v654_v5  ;;  %1021 = vrot.lane.b32.xlu1 %v3155_v13, %s2864_s10 }
  0xb4   : > { %1027 = vrot.lane.b32.xlu0 %v3187_v23, %s2864_s10 }
  0xb5   : > { %v652_v1 = vpop.permute.xlu1 %651 }
  0xb6   : > { %v658_v8 = vpop.permute.xlu0 %657  ;;  %737 = vst.msk [vmem:[#allocation3 + $0x58] sm:$0xff] %vm725_vm2, %v652_v1 }
  0xb7   : > { %740 = vst.msk [vmem:[#allocation3 + $0x70] sm:$0xff] %vm725_vm2, %v658_v8  ;;  %1025 = vrot.lane.b32.xlu1 %v3176_v16, %s2864_s10 }
  0xb8   : > { %1031 = vrot.lane.b32.xlu0 %v3191_v25, %s2864_s10 }
  0xb9   : > { %v656_v52 = vpop.permute.xlu1 %655 }
  0xba   : > { %v662_v10 = vpop.permute.xlu0 %661  ;;  %739 = vst.msk [vmem:[#allocation3 + $0x68] sm:$0xff] %vm725_vm2, %v656_v52 }
  0xbb   : > { %742 = vst.msk [vmem:[#allocation3 + $0x80] sm:$0xff] %vm725_vm2, %v662_v10  ;;  %1029 = vrot.lane.b32.xlu1 %v3189_v24, %s2864_s10  ;;  %v2846_v10 = vld [vmem:[%s4088_s3 + $0x20] ss:$0 sps:$4 sm:$0xff]  }
  0xbc   : > { %1035 = vrot.lane.b32.xlu0 %v3201_v27, %s2864_s10  ;;  %2827 = vmatprep.subr.msk.bf16.mxu0 %vm2243_vm4, %v2846_v10 }
  0xbd   : > { %v660_v56 = vpop.permute.xlu1 %659  ;;  %2828 = vmatprep.subr.msk.bf16.mxu1 %vm2243_vm4, %v2846_v10 }
  0xbe   : > { %v666_v58 = vpop.permute.xlu0 %665  ;;  %741 = vst.msk [vmem:[#allocation3 + $0x78] sm:$0xff] %vm725_vm2, %v660_v56 }
  0xbf   : > { %744 = vst.msk [vmem:[#allocation3 + $0x90] sm:$0xff] %vm725_vm2, %v666_v58  ;;  %1033 = vrot.lane.b32.xlu1 %v3199_v26, %s2864_s10  ;;  %v2847_v58 = vld [vmem:[%s4088_s3 + $0x18] sm:$0xff]  }
  0xc0   : > { %1039 = vrot.lane.b32.xlu0 %v3211_v32, %s2864_s10 }
  0xc1   : > { %v664_v59 = vpop.permute.xlu1 %663 }
  0xc2   : > { %v670_v60 = vpop.permute.xlu0 %669  ;;  %743 = vst.msk [vmem:[#allocation3 + $0x88] sm:$0xff] %vm725_vm2, %v664_v59 }
  0xc3   : > { %746 = vst.msk [vmem:[#allocation3 + $0xa0] sm:$0xff] %vm725_vm2, %v670_v60  ;;  %1037 = vrot.lane.b32.xlu1 %v3203_v28, %s2864_s10  ;;  %v2848_v60 = vld [vmem:[%s4088_s3 + $0x10] sm:$0xff]  }
  0xc4   : > { %1043 = vrot.lane.b32.xlu0 %v3215_v34, %s2864_s10 }
  0xc5   : > { %v668_v61 = vpop.permute.xlu1 %667 }
  0xc6   : > { %v674_v62 = vpop.permute.xlu0 %673  ;;  %745 = vst.msk [vmem:[#allocation3 + $0x98] sm:$0xff] %vm725_vm2, %v668_v61  ;;  %v2849_v61 = vld [vmem:[%s4088_s3 + $0x8] sm:$0xff]  }
  0xc7   : > { %748 = vst.msk [vmem:[#allocation3 + $0xb0] sm:$0xff] %vm725_vm2, %v674_v62  ;;  %1041 = vrot.lane.b32.xlu1 %v3213_v33, %s2864_s10 }
  0xc8   : > { %1047 = vrot.lane.b32.xlu0 %v3227_v36, %s2864_s10 }
  0xc9   : > { %v672_v63 = vpop.permute.xlu1 %671 }
  0xca   : > { %v678_v0 = vpop.permute.xlu0 %677  ;;  %747 = vst.msk [vmem:[#allocation3 + $0xa8] sm:$0xff] %vm725_vm2, %v672_v63  ;;  %v2850_v63 = vld [vmem:[%s4088_s3] sm:$0xff]  }
  0xcb   : > { %750 = vst.msk [vmem:[#allocation3 + $0xc0] sm:$0xff] %vm725_vm2, %v678_v0  ;;  %1045 = vrot.lane.b32.xlu1 %v3225_v35, %s2864_s10 }
  0xcc   : > { %1208 = vrot.lane.b32.xlu0 %v3070_v18, %s2865_s11 }
  0xcd   : > { %v676_v3 = vpop.permute.xlu1 %675 }
  0xce   : > { %v682_v4 = vpop.permute.xlu0 %681  ;;  %749 = vst.msk [vmem:[#allocation3 + $0xb8] sm:$0xff] %vm725_vm2, %v676_v3 }
  0xcf   : > { %752 = vst.msk [vmem:[#allocation3 + $0xd0] sm:$0xff] %vm725_vm2, %v682_v4  ;;  %1049 = vrot.lane.b32.xlu1 %v3229_v37, %s2864_s10 }
  0xd0   : > { %1212 = vrot.lane.b32.xlu0 %v3072_v19, %s2865_s11 }
  0xd1   : > { %v680_v51 = vpop.permute.xlu1 %679 }
  0xd2   : > { %v686_v5 = vpop.permute.xlu0 %685  ;;  %751 = vst.msk [vmem:[#allocation3 + $0xc8] sm:$0xff] %vm725_vm2, %v680_v51 }
  0xd3   : > { %754 = vst.msk [vmem:[#allocation3 + $0xe0] sm:$0xff] %vm725_vm2, %v686_v5  ;;  %1210 = vrot.lane.b32.xlu1 %v3090_v29, %s2865_s11 }
  0xd4   : > { %1401 = vrot.lane.b32.xlu0 %v3283_v9, %s2866_s12 }
  0xd5   : > { %v684_v18 = vpop.permute.xlu1 %683 }
  0xd6   : > { %v690_v1 = vpop.permute.xlu0 %689  ;;  %753 = vst.msk [vmem:[#allocation3 + $0xd8] sm:$0xff] %vm725_vm2, %v684_v18  ;;  %v1728_v18 = vld [vmem:[#allocation2 + $0x61] sm:$0xff] }
  0xd7   : > { %756 = vst.msk [vmem:[#allocation3 + $0xf0] sm:$0xff] %vm725_vm2, %v690_v1  ;;  %1214 = vrot.lane.b32.xlu1 %v3120_v53, %s2865_s11 }
  0xd8   : > { %1405 = vrot.lane.b32.xlu0 %v3288_v11, %s2866_s12 }
  0xd9   : > { %v688_v8 = vpop.permute.xlu1 %687 }
  0xda   : > { %v823_v52 = vpop.permute.xlu0 %822  ;;  %755 = vst.msk [vmem:[#allocation3 + $0xe8] sm:$0xff] %vm725_vm2, %v688_v8 }
  0xdb   : > { %919 = vst.msk [vmem:[#allocation3] sm:$0xff] %vm918_vm3, %v823_v52  ;;  %1403 = vrot.lane.b32.xlu1 %v3293_v14, %s2866_s12  ;;  %v2245_v14 = vsel %vm2243_vm4, %v2846_v10, 0 }
  0xdc   : > { %1595 = vrot.lane.b32.xlu0 %v3153_v12, %s2867_s13  ;;  %2776 = vmatpush3.bf16.msra.mxu0 %v2245_v14 }
  0xdd   : > { %v692_v29 = vpop.permute.xlu1 %691  ;;  %2822 = vmatpush3.bf16.msra.mxu1 %v2245_v14  ;;  %2777 = vmatprep.subr.bf16.mxu0 %v2847_v58 }
  0xde   : > { %v827_v9 = vpop.permute.xlu0 %826  ;;  %757 = vst.msk [vmem:[#allocation3 + $0xf8] sm:$0xff] %vm725_vm2, %v692_v29  ;;  %2818 = vmatprep.subr.bf16.mxu1 %v2847_v58 }
  0xdf   : > { %921 = vst.msk [vmem:[#allocation3 + $0x10] sm:$0xff] %vm918_vm3, %v827_v9  ;;  %1407 = vrot.lane.b32.xlu1 %v3301_v21, %s2866_s12 }
  0xe0   : > { %1599 = vrot.lane.b32.xlu0 %v3174_v15, %s2867_s13  ;;  %2778 = vmatpush3.bf16.msra.mxu0 %v2847_v58 }
  0xe1   : > { %v825_v12 = vpop.permute.xlu1 %824  ;;  %2823 = vmatpush3.bf16.msra.mxu1 %v2847_v58  ;;  %2779 = vmatprep.subr.bf16.mxu0 %v2848_v60 }
  0xe2   : > { %v831_v56 = vpop.permute.xlu0 %830  ;;  %920 = vst.msk [vmem:[#allocation3 + $0x8] sm:$0xff] %vm918_vm3, %v825_v12  ;;  %2819 = vmatprep.subr.bf16.mxu1 %v2848_v60 }
  0xe3   : > { %923 = vst.msk [vmem:[#allocation3 + $0x20] sm:$0xff] %vm918_vm3, %v831_v56  ;;  %1597 = vrot.lane.b32.xlu1 %v3155_v13, %s2867_s13 }
  0xe4   : > { %1788 = vrot.lane.b32.xlu0 %v3072_v19, %s2868_s18  ;;  %2780 = vmatpush3.bf16.msra.mxu0 %v2848_v60 }
  0xe5   : > { %v829_v15 = vpop.permute.xlu1 %828  ;;  %2824 = vmatpush3.bf16.msra.mxu1 %v2848_v60  ;;  %2781 = vmatprep.subr.bf16.mxu0 %v2849_v61 }
  0xe6   : > { %v835_v59 = vpop.permute.xlu0 %834  ;;  %922 = vst.msk [vmem:[#allocation3 + $0x18] sm:$0xff] %vm918_vm3, %v829_v15  ;;  %2820 = vmatprep.subr.bf16.mxu1 %v2849_v61 }
  0xe7   : > { %925 = vst.msk [vmem:[#allocation3 + $0x30] sm:$0xff] %vm918_vm3, %v835_v59  ;;  %1601 = vrot.lane.b32.xlu1 %v3176_v16, %s2867_s13 }
  0xe8   : > { %1792 = vrot.lane.b32.xlu0 %v3092_v30, %s2868_s18  ;;  %2782 = vmatpush3.bf16.msra.mxu0 %v2849_v61 }
  0xe9   : > { %v833_v19 = vpop.permute.xlu1 %832  ;;  %2825 = vmatpush3.bf16.msra.mxu1 %v2849_v61  ;;  %2783 = vmatprep.subr.bf16.mxu0 %v2850_v63 }
  0xea   : > { %v839_v13 = vpop.permute.xlu0 %838  ;;  %924 = vst.msk [vmem:[#allocation3 + $0x28] sm:$0xff] %vm918_vm3, %v833_v19  ;;  %2821 = vmatprep.subr.bf16.mxu1 %v2850_v63 }
  0xeb   : > { %927 = vst.msk [vmem:[#allocation3 + $0x40] sm:$0xff] %vm918_vm3, %v839_v13  ;;  %1790 = vrot.lane.b32.xlu1 %v3120_v53, %s2868_s18 }
  0xec   : > { %1981 = vrot.lane.b32.xlu0 %v3288_v11, %s2869_s25  ;;  %2784 = vmatpush3.bf16.msra.mxu0 %v2850_v63 }
  0xed   : > { %v837_v16 = vpop.permute.xlu1 %836  ;;  %2826 = vmatpush3.bf16.msra.mxu1 %v2850_v63 }
  0xee   : > { %v843_v62 = vpop.permute.xlu0 %842  ;;  %926 = vst.msk [vmem:[#allocation3 + $0x38] sm:$0xff] %vm918_vm3, %v837_v16 }
  0xef   : > { %929 = vst.msk [vmem:[#allocation3 + $0x50] sm:$0xff] %vm918_vm3, %v843_v62  ;;  %1794 = vrot.lane.b32.xlu1 %v3147_v6, %s2868_s18 }
  0xf0   : > { %1985 = vrot.lane.b32.xlu0 %v3295_v20, %s2869_s25 }
  0xf1   : > { %v841_v53 = vpop.permute.xlu1 %840 }
  0xf2   : > { %v847_v11 = vpop.permute.xlu0 %846  ;;  %928 = vst.msk [vmem:[#allocation3 + $0x48] sm:$0xff] %vm918_vm3, %v841_v53 }
  0xf3   : > { %931 = vst.msk [vmem:[#allocation3 + $0x60] sm:$0xff] %vm918_vm3, %v847_v11  ;;  %1983 = vrot.lane.b32.xlu1 %v3301_v21, %s2869_s25 }
  0xf4   : > { %1216 = vrot.lane.b32.xlu0 %v3092_v30, %s2865_s11 }
  0xf5   : > { %v845_v0 = vpop.permute.xlu1 %844 }
  0xf6   : > { %v851_v3 = vpop.permute.xlu0 %850  ;;  %930 = vst.msk [vmem:[#allocation3 + $0x58] sm:$0xff] %vm918_vm3, %v845_v0 }
  0xf7   : > { %933 = vst.msk [vmem:[#allocation3 + $0x70] sm:$0xff] %vm918_vm3, %v851_v3  ;;  %1987 = vrot.lane.b32.xlu1 %v3309_v31, %s2869_s25 }
  0xf8   : > { %1220 = vrot.lane.b32.xlu0 %v3122_v54, %s2865_s11 }
  0xf9   : > { %v849_v4 = vpop.permute.xlu1 %848 }
  0xfa   : > { %v855_v51 = vpop.permute.xlu0 %854  ;;  %932 = vst.msk [vmem:[#allocation3 + $0x68] sm:$0xff] %vm918_vm3, %v849_v4 }
  0xfb   : > { %935 = vst.msk [vmem:[#allocation3 + $0x80] sm:$0xff] %vm918_vm3, %v855_v51  ;;  %1218 = vrot.lane.b32.xlu1 %v3147_v6, %s2865_s11 }
  0xfc   : > { %1409 = vrot.lane.b32.xlu0 %v3295_v20, %s2866_s12 }
  0xfd   : > { %v853_v30 = vpop.permute.xlu1 %852 }
  0xfe   : > { %v859_v21 = vpop.permute.xlu0 %858  ;;  %934 = vst.msk [vmem:[#allocation3 + $0x78] sm:$0xff] %vm918_vm3, %v853_v30 }
  0xff   : > { %937 = vst.msk [vmem:[#allocation3 + $0x90] sm:$0xff] %vm918_vm3, %v859_v21  ;;  %1222 = vrot.lane.b32.xlu1 %v3169_v2, %s2865_s11 }
 0x100   : > { %1413 = vrot.lane.b32.xlu0 %v3303_v22, %s2866_s12 }
 0x101   : > { %v857_v54 = vpop.permute.xlu1 %856 }
 0x102   : > { %v863_v5 = vpop.permute.xlu0 %862  ;;  %936 = vst.msk [vmem:[#allocation3 + $0x88] sm:$0xff] %vm918_vm3, %v857_v54 }
 0x103   : > { %939 = vst.msk [vmem:[#allocation3 + $0xa0] sm:$0xff] %vm918_vm3, %v863_v5  ;;  %1411 = vrot.lane.b32.xlu1 %v3309_v31, %s2866_s12 }
 0x104   : > { %1603 = vrot.lane.b32.xlu0 %v3187_v23, %s2867_s13 }
 0x105   : > { %v861_v6 = vpop.permute.xlu1 %860 }
 0x106   : > { %v867_v20 = vpop.permute.xlu0 %866  ;;  %938 = vst.msk [vmem:[#allocation3 + $0x98] sm:$0xff] %vm918_vm3, %v861_v6 }
 0x107   : > { %941 = vst.msk [vmem:[#allocation3 + $0xb0] sm:$0xff] %vm918_vm3, %v867_v20  ;;  %1415 = vrot.lane.b32.xlu1 %v3317_v43, %s2866_s12 }
 0x108   : > { %1607 = vrot.lane.b32.xlu0 %v3191_v25, %s2867_s13 }
 0x109   : > { %v865_v1 = vpop.permute.xlu1 %864 }
 0x10a   : > { %v871_v8 = vpop.permute.xlu0 %870  ;;  %940 = vst.msk [vmem:[#allocation3 + $0xa8] sm:$0xff] %vm918_vm3, %v865_v1  ;;  %v1931_v1 = vld [vmem:[#allocation2 + $0xda] sm:$0xff] }
 0x10b   : > { %943 = vst.msk [vmem:[#allocation3 + $0xc0] sm:$0xff] %vm918_vm3, %v871_v8  ;;  %1605 = vrot.lane.b32.xlu1 %v3189_v24, %s2867_s13 }
 0x10c   : > { %1796 = vrot.lane.b32.xlu0 %v1728_v18, %s2868_s18 }
 0x10d   : > { %v869_v23 = vpop.permute.xlu1 %868 }
 0x10e   : > { %v875_v31 = vpop.permute.xlu0 %874  ;;  %942 = vst.msk [vmem:[#allocation3 + $0xb8] sm:$0xff] %vm918_vm3, %v869_v23 }
 0x10f   : > { %945 = vst.msk [vmem:[#allocation3 + $0xd0] sm:$0xff] %vm918_vm3, %v875_v31  ;;  %1609 = vrot.lane.b32.xlu1 %v3199_v26, %s2867_s13 }
 0x110   : > { %1800 = vrot.lane.b32.xlu0 %v3149_v7, %s2868_s18  ;;  %v1152_v7 = vld [vmem:[#allocation2 + $0x79] sm:$0xff] }
 0x111   : > { %v873_v25 = vpop.permute.xlu1 %872 }
 0x112   : > { %v879_v52 = vpop.permute.xlu0 %878  ;;  %944 = vst.msk [vmem:[#allocation3 + $0xc8] sm:$0xff] %vm918_vm3, %v873_v25 }
 0x113   : > { %947 = vst.msk [vmem:[#allocation3 + $0xe0] sm:$0xff] %vm918_vm3, %v879_v52  ;;  %1798 = vrot.lane.b32.xlu1 %v3169_v2, %s2868_s18  ;;  %v1154_v2 = vld [vmem:[#allocation2 + $0x91] sm:$0xff] }
 0x114   : > { %1989 = vrot.lane.b32.xlu0 %v3303_v22, %s2869_s25 }
 0x115   : > { %v877_v24 = vpop.permute.xlu1 %876 }
 0x116   : > { %v883_v29 = vpop.permute.xlu0 %882  ;;  %946 = vst.msk [vmem:[#allocation3 + $0xd8] sm:$0xff] %vm918_vm3, %v877_v24  ;;  %v1932_v24 = vld [vmem:[#allocation2 + $0xe2] sm:$0xff] }
 0x117   : > { %949 = vst.msk [vmem:[#allocation3 + $0xf0] sm:$0xff] %vm918_vm3, %v883_v29  ;;  %1802 = vrot.lane.b32.xlu1 %v3178_v17, %s2868_s18  ;;  %v1153_v17 = vld [vmem:[#allocation2 + $0x81] sm:$0xff] }
 0x118   : > { %1993 = vrot.lane.b32.xlu0 %v3311_v38, %s2869_s25 }
 0x119   : > { %v881_v26 = vpop.permute.xlu1 %880 }
 0x11a   : > { %v1016_v9 = vpop.permute.xlu0 %1015  ;;  %948 = vst.msk [vmem:[#allocation3 + $0xe8] sm:$0xff] %vm918_vm3, %v881_v26 }
 0x11b   : > { %1112 = vst.msk [vmem:[#allocation3] sm:$0xff] %vm1111_vm5, %v1016_v9  ;;  %1991 = vrot.lane.b32.xlu1 %v3317_v43, %s2869_s25  ;;  %v1155_v43 = vld [vmem:[#allocation2 + $0x99] sm:$0xff] }
 0x11c   : > { %1224 = vrot.lane.b32.xlu0 %v1152_v7, %s2865_s11 }
 0x11d   : > { %v885_v22 = vpop.permute.xlu1 %884 }
 0x11e   : > { %v1020_v10 = vpop.permute.xlu0 %1019  ;;  %950 = vst.msk [vmem:[#allocation3 + $0xf8] sm:$0xff] %vm918_vm3, %v885_v22  ;;  %v1162_v22 = vld [vmem:[#allocation2 + $0xf1] sm:$0xff] }
 0x11f   : > { %1114 = vst.msk [vmem:[#allocation3 + $0x10] sm:$0xff] %vm1111_vm5, %v1020_v10  ;;  %1995 = vrot.lane.b32.xlu1 %v3325_v47, %s2869_s25 }
 0x120   : > { %1228 = vrot.lane.b32.xlu0 %v1154_v2, %s2865_s11 }
 0x121   : > { %v1018_v14 = vpop.permute.xlu1 %1017 }
 0x122   : > { %v1024_v12 = vpop.permute.xlu0 %1023  ;;  %1113 = vst.msk [vmem:[#allocation3 + $0x8] sm:$0xff] %vm1111_vm5, %v1018_v14 }
 0x123   : > { %1116 = vst.msk [vmem:[#allocation3 + $0x20] sm:$0xff] %vm1111_vm5, %v1024_v12  ;;  %1226 = vrot.lane.b32.xlu1 %v1153_v17, %s2865_s11 }
 0x124   : > { %1417 = vrot.lane.b32.xlu0 %v3311_v38, %s2866_s12 }
 0x125   : > { %v1022_v56 = vpop.permute.xlu1 %1021 }
 0x126   : > { %v1028_v58 = vpop.permute.xlu0 %1027  ;;  %1115 = vst.msk [vmem:[#allocation3 + $0x18] sm:$0xff] %vm1111_vm5, %v1022_v56  ;;  %v301_v56 = vld [vmem:[%s2990_s29 + $0xf8] sm:$0xff] }
 0x127   : > { %1118 = vst.msk [vmem:[#allocation3 + $0x30] sm:$0xff] %vm1111_vm5, %v1028_v58  ;;  %1230 = vrot.lane.b32.xlu1 %v1155_v43, %s2865_s11 }
 0x128   : > { %1421 = vrot.lane.b32.xlu0 %v3319_v44, %s2866_s12 }
 0x129   : > { %v1026_v15 = vpop.permute.xlu1 %1025 }
 0x12a   : > { %v1032_v59 = vpop.permute.xlu0 %1031  ;;  %1117 = vst.msk [vmem:[#allocation3 + $0x28] sm:$0xff] %vm1111_vm5, %v1026_v15 }
 0x12b   : > { %1120 = vst.msk [vmem:[#allocation3 + $0x40] sm:$0xff] %vm1111_vm5, %v1032_v59  ;;  %1419 = vrot.lane.b32.xlu1 %v3325_v47, %s2866_s12  ;;  %v2851_v59 = vld [vmem:[%s4086_s1] ss:$0 sm:$0xff] }
 0x12c   : > { %1611 = vrot.lane.b32.xlu0 %v3201_v27, %s2867_s13  ;;  %v1734_v27 = vld [vmem:[#allocation2 + $0xa9] sm:$0xff] }
 0x12d   : > { %v1030_v38 = vpop.permute.xlu1 %1029 }
 0x12e   : > { %v1036_v60 = vpop.permute.xlu0 %1035  ;;  %1119 = vst.msk [vmem:[#allocation3 + $0x38] sm:$0xff] %vm1111_vm5, %v1030_v38 }
 0x12f   : > { %1122 = vst.msk [vmem:[#allocation3 + $0x50] sm:$0xff] %vm1111_vm5, %v1036_v60  ;;  %1423 = vrot.lane.b32.xlu1 %v3333_v49, %s2866_s12  ;;  %v340_v60 = vmul.f32 %v2851_v59, %v301_v56  ;;  %v1746_v56 = vld [vmem:[#allocation2 + $0x139] sm:$0xff] }
 0x130   : > { %1615 = vrot.lane.b32.xlu0 %v3211_v32, %s2867_s13 }
 0x131   : > { %v1034_v19 = vpop.permute.xlu1 %1033 }
 0x132   : > { %v1040_v13 = vpop.permute.xlu0 %1039  ;;  %1121 = vst.msk [vmem:[#allocation3 + $0x48] sm:$0xff] %vm1111_vm5, %v1034_v19  ;;  %v2852_v19 = vld [vmem:[%s4087_s2] ss:$0 sm:$0xff] }
 0x133   : > { %1124 = vst.msk [vmem:[#allocation3 + $0x60] sm:$0xff] %vm1111_vm5, %v1040_v13  ;;  %1613 = vrot.lane.b32.xlu1 %v3203_v28, %s2867_s13  ;;  %v1735_v28 = vld [vmem:[#allocation2 + $0xb1] sm:$0xff] }
 0x134   : > { %1804 = vrot.lane.b32.xlu0 %v1154_v2, %s2868_s18 }
 0x135   : > { %v1038_v47 = vpop.permute.xlu1 %1037 }
 0x136   : > { %v1044_v61 = vpop.permute.xlu0 %1043  ;;  %1123 = vst.msk [vmem:[#allocation3 + $0x58] sm:$0xff] %vm1111_vm5, %v1038_v47  ;;  %v1163_v47 = vld [vmem:[#allocation2 + $0xf9] sm:$0xff] }
 0x137   : > { %1126 = vst.msk [vmem:[#allocation3 + $0x70] sm:$0xff] %vm1111_vm5, %v1044_v61  ;;  %1617 = vrot.lane.b32.xlu1 %v3213_v33, %s2867_s13  ;;  %v1355_v61 = vld [vmem:[#allocation2 + $0xf2] sm:$0xff] }
 0x138   : > { %1808 = vrot.lane.b32.xlu0 %v1734_v27, %s2868_s18 }
 0x139   : > { %v1042_v32 = vpop.permute.xlu1 %1041 }
 0x13a   : > { %v1048_v16 = vpop.permute.xlu0 %1047  ;;  %1125 = vst.msk [vmem:[#allocation3 + $0x68] sm:$0xff] %vm1111_vm5, %v1042_v32 }
 0x13b   : > { %1128 = vst.msk [vmem:[#allocation3 + $0x80] sm:$0xff] %vm1111_vm5, %v1048_v16  ;;  %1806 = vrot.lane.b32.xlu1 %v1155_v43, %s2868_s18  ;;  %v300_v43 = vld [vmem:[%s2990_s29 + $0xf0] sm:$0xff] }
 0x13c   : > { %1997 = vrot.lane.b32.xlu0 %v3319_v44, %s2869_s25  ;;  %v1158_v44 = vld [vmem:[#allocation2 + $0xc1] sm:$0xff]  ;;  %v339_v38 = vmul.f32 %v2851_v59, %v300_v43 }
 0x13d   : > { %v1046_v62 = vpop.permute.xlu1 %1045  ;;  %v1554_v43 = vld [vmem:[#allocation2 + $0x140] sm:$0xff] }
 0x13e   : > { %v1209_v63 = vpop.permute.xlu0 %1208  ;;  %1127 = vst.msk [vmem:[#allocation3 + $0x78] sm:$0xff] %vm1111_vm5, %v1046_v62  ;;  %v378_v13 = vadd.f32 %v2852_v19, %v339_v38 }
 0x13f   : > { %1305 = vst.msk [vmem:[#allocation3] sm:$0xff] %vm1304_vm6, %v1209_v63  ;;  %1810 = vrot.lane.b32.xlu1 %v1735_v28, %s2868_s18 }
 0x140   : > { %2001 = vrot.lane.b32.xlu0 %v3327_v48, %s2869_s25 }
 0x141   : > { %v1050_v33 = vpop.permute.xlu1 %1049 }
 0x142   : > { %v1213_v53 = vpop.permute.xlu0 %1212  ;;  %1129 = vst.msk [vmem:[#allocation3 + $0x88] sm:$0xff] %vm1111_vm5, %v1050_v33 }
 0x143   : > { %1307 = vst.msk [vmem:[#allocation3 + $0x10] sm:$0xff] %vm1304_vm6, %v1213_v53  ;;  %1999 = vrot.lane.b32.xlu1 %v3333_v49, %s2869_s25  ;;  %v1159_v49 = vld [vmem:[#allocation2 + $0xc9] sm:$0xff]  ;;  %v1356_v53 = vld [vmem:[#allocation2 + $0xfa] sm:$0xff] }
 0x144   : > { %1232 = vrot.lane.b32.xlu0 %v1734_v27, %s2865_s11  ;;  %v379_v27 = vadd.f32 %v2852_v19, %v340_v60 }
 0x145   : > { %v1211_v11 = vpop.permute.xlu1 %1210 }
 0x146   : > { %v1402_v0 = vpop.permute.xlu0 %1401  ;;  %1306 = vst.msk [vmem:[#allocation3 + $0x8] sm:$0xff] %vm1304_vm6, %v1211_v11  ;;  %v411_v62 = vmax.f32 %v379_v27, 0.0 }
 0x147   : > { %1498 = vst.msk [vmem:[#allocation3] sm:$0xff] %vm1497_vm7, %v1402_v0  ;;  %2003 = vrot.lane.b32.xlu1 %v3341_v55, %s2869_s25 }
 0x148   : > { %1236 = vrot.lane.b32.xlu0 %v1158_v44, %s2865_s11  ;;  %500 = vst.msk [vmem:[#allocation2 + $0x189] sm:$0xff] %vm412_vm0, %v411_v62 }
 0x149   : > { %v1215_v3 = vpop.permute.xlu1 %1214 }
 0x14a   : > { %v1406_v4 = vpop.permute.xlu0 %1405  ;;  %1308 = vst.msk [vmem:[#allocation3 + $0x18] sm:$0xff] %vm1304_vm6, %v1215_v3 }
 0x14b   : > { %1500 = vst.msk [vmem:[#allocation3 + $0x10] sm:$0xff] %vm1497_vm7, %v1406_v4  ;;  %1234 = vrot.lane.b32.xlu1 %v1735_v28, %s2865_s11  ;;  %v410_v28 = vmax.f32 %v378_v13, 0.0 }
 0x14c   : > { %1425 = vrot.lane.b32.xlu0 %v3327_v48, %s2866_s12 }
 0x14d   : > { %v1404_v51 = vpop.permute.xlu1 %1403  ;;  %499 = vst.msk [vmem:[#allocation2 + $0x181] sm:$0xff] %vm412_vm0, %v410_v28 }
 0x14e   : > { %v1596_v30 = vpop.permute.xlu0 %1595  ;;  %1499 = vst.msk [vmem:[#allocation3 + $0x8] sm:$0xff] %vm1497_vm7, %v1404_v51 }
 0x14f   : > { %1692 = vst.msk [vmem:[#allocation3] sm:$0xff] %vm1691_vm8, %v1596_v30  ;;  %1238 = vrot.lane.b32.xlu1 %v1159_v49, %s2865_s11 }
 0x150   : > { %1429 = vrot.lane.b32.xlu0 %v3335_v50, %s2866_s12 }
 0x151   : > { %v1408_v21 = vpop.permute.xlu1 %1407 }
 0x152   : > { %v1600_v54 = vpop.permute.xlu0 %1599  ;;  %1501 = vst.msk [vmem:[#allocation3 + $0x18] sm:$0xff] %vm1497_vm7, %v1408_v21  ;;  %v1935_v21 = vld [vmem:[#allocation2 + $0x10a] sm:$0xff] }
 0x153   : > { %1694 = vst.msk [vmem:[#allocation3 + $0x10] sm:$0xff] %vm1691_vm8, %v1600_v54  ;;  %1427 = vrot.lane.b32.xlu1 %v3341_v55, %s2866_s12 }
 0x154   : > { %1619 = vrot.lane.b32.xlu0 %v3215_v34, %s2867_s13  ;;  %v1738_v34 = vld [vmem:[#allocation2 + $0xd9] sm:$0xff] }
 0x155   : > { %v1598_v48 = vpop.permute.xlu1 %1597 }
 0x156   : > { %v1789_v5 = vpop.permute.xlu0 %1788  ;;  %1693 = vst.msk [vmem:[#allocation3 + $0x8] sm:$0xff] %vm1691_vm8, %v1598_v48 }
 0x157   : > { %1885 = vst.msk [vmem:[#allocation3] sm:$0xff] %vm1884_vm9, %v1789_v5  ;;  %1431 = vrot.lane.b32.xlu1 %v3346_v57, %s2866_s12 }
 0x158   : > { %1623 = vrot.lane.b32.xlu0 %v3227_v36, %s2867_s13  ;;  %v1929_v36 = vld [vmem:[#allocation2 + $0xc2] sm:$0xff] }
 0x159   : > { %v1602_v50 = vpop.permute.xlu1 %1601 }
 0x15a   : > { %v1793_v6 = vpop.permute.xlu0 %1792  ;;  %1695 = vst.msk [vmem:[#allocation3 + $0x18] sm:$0xff] %vm1691_vm8, %v1602_v50 }
 0x15b   : > { %1887 = vst.msk [vmem:[#allocation3 + $0x10] sm:$0xff] %vm1884_vm9, %v1793_v6  ;;  %1621 = vrot.lane.b32.xlu1 %v3225_v35, %s2867_s13  ;;  %v1739_v35 = vld [vmem:[#allocation2 + $0xe1] sm:$0xff] }
 0x15c   : > { %1812 = vrot.lane.b32.xlu0 %v1158_v44, %s2868_s18 }
 0x15d   : > { %v1791_v55 = vpop.permute.xlu1 %1790 }
 0x15e   : > { %v1982_v20 = vpop.permute.xlu0 %1981  ;;  %1886 = vst.msk [vmem:[#allocation3 + $0x8] sm:$0xff] %vm1884_vm9, %v1791_v55 }
 0x15f   : > { %2078 = vst.msk [vmem:[#allocation3] sm:$0xff] %vm2077_vm10, %v1982_v20  ;;  %1625 = vrot.lane.b32.xlu1 %v3229_v37, %s2867_s13  ;;  %v1930_v37 = vld [vmem:[#allocation2 + $0xca] sm:$0xff] }
 0x160   : > { %1816 = vrot.lane.b32.xlu0 %v1738_v34, %s2868_s18 }
 0x161   : > { %v1795_v57 = vpop.permute.xlu1 %1794 }
 0x162   : > { %v1986_v18 = vpop.permute.xlu0 %1985  ;;  %1888 = vst.msk [vmem:[#allocation3 + $0x18] sm:$0xff] %vm1884_vm9, %v1795_v57 }
 0x163   : > { %2080 = vst.msk [vmem:[#allocation3 + $0x10] sm:$0xff] %vm2077_vm10, %v1986_v18  ;;  %1814 = vrot.lane.b32.xlu1 %v1159_v49, %s2868_s18 }
 0x164   : > { %2005 = vrot.lane.b32.xlu0 %v1929_v36, %s2869_s25  ;;  %v1936_v36 = vld [vmem:[#allocation2 + $0x112] sm:$0xff] }
 0x165   : > { %v1984_v8 = vpop.permute.xlu1 %1983 }
 0x166   : > { %v1217_v23 = vpop.permute.xlu0 %1216  ;;  %2079 = vst.msk [vmem:[#allocation3 + $0x8] sm:$0xff] %vm2077_vm10, %v1984_v8  ;;  %v2110_v52 = vld [vmem:[#allocation3] sm:$0xff] }
 0x167   : > { %1309 = vst.msk [vmem:[#allocation3 + $0x20] sm:$0xff] %vm1304_vm6, %v1217_v23  ;;  %1818 = vrot.lane.b32.xlu1 %v1739_v35, %s2868_s18  ;;  %v1166_v23 = vld [vmem:[#allocation2 + $0x121] sm:$0xff] }
 0x168   : > { %2009 = vrot.lane.b32.xlu0 %v1931_v1, %s2869_s25 }
 0x169   : > { %v1988_v31 = vpop.permute.xlu1 %1987 }
 0x16a   : > { %v1221_v25 = vpop.permute.xlu0 %1220  ;;  %2081 = vst.msk [vmem:[#allocation3 + $0x18] sm:$0xff] %vm2077_vm10, %v1988_v31  ;;  %v2112_v2 = vld [vmem:[#allocation3 + $0x10] sm:$0xff] }
 0x16b   : > { %1311 = vst.msk [vmem:[#allocation3 + $0x30] sm:$0xff] %vm1304_vm6, %v1221_v25  ;;  %2007 = vrot.lane.b32.xlu1 %v1930_v37, %s2869_s25 }
 0x16c   : > { %1051 = vrot.lane.b32.xlu0 %v3237_v39, %s2864_s10 }
 0x16d   : > { %v1219_v29 = vpop.permute.xlu1 %1218  ;;  %v2111_v7 = vld [vmem:[#allocation3 + $0x8] sm:$0xff] }
 0x16e   : > { %v1410_v26 = vpop.permute.xlu0 %1409  ;;  %1310 = vst.msk [vmem:[#allocation3 + $0x28] sm:$0xff] %vm1304_vm6, %v1219_v29  ;;  %v2142_v9 = vpack.c.bf16 %v2111_v7, %v2110_v52  ;;  %v1359_v52 = vld [vmem:[#allocation2 + $0x122] sm:$0xff] }
 0x16f   : > { %1502 = vst.msk [vmem:[#allocation3 + $0x20] sm:$0xff] %vm1497_vm7, %v1410_v26  ;;  %2011 = vrot.lane.b32.xlu1 %v1932_v24, %s2869_s25 }
 0x170   : > { %1240 = vrot.lane.b32.xlu0 %v1738_v34, %s2865_s11  ;;  %2785 = vmatprep.mubr.msk.bf16.mxu0 %vm2194_vm11, %v2142_v9  ;;  %v1360_v9 = vld [vmem:[#allocation2 + $0x12a] sm:$0xff] }
 0x171   : > { %v1223_v10 = vpop.permute.xlu1 %1222  ;;  %v2113_v17 = vld [vmem:[#allocation3 + $0x18] sm:$0xff] }
 0x172   : > { %v1414_v14 = vpop.permute.xlu0 %1413  ;;  %1312 = vst.msk [vmem:[#allocation3 + $0x38] sm:$0xff] %vm1304_vm6, %v1223_v10  ;;  %v2143_v12 = vpack.c.bf16 %v2113_v17, %v2112_v2  ;;  %v1553_v2 = vld [vmem:[#allocation2 + $0x138] sm:$0xff]  ;;  %v1552_v17 = vld [vmem:[#allocation2 + $0x128] sm:$0xff] }
 0x173   : > { %1504 = vst.msk [vmem:[#allocation3 + $0x30] sm:$0xff] %vm1497_vm7, %v1414_v14  ;;  %1053 = vrot.lane.b32.xlu1 %v3239_v40, %s2864_s10 }
 0x174   : > { %1244 = vrot.lane.b32.xlu0 %v1162_v22, %s2865_s11  ;;  %2786 = vmatmul.mubr.msk.bf16.vlgmr.msra.gmra.mxu0 %vm2194_vm11, %v2143_v12 }
 0x175   : > { %v1412_v58 = vpop.permute.xlu1 %1411 }
 0x176   : > { %v1604_v15 = vpop.permute.xlu0 %1603  ;;  %1503 = vst.msk [vmem:[#allocation3 + $0x28] sm:$0xff] %vm1497_vm7, %v1412_v58 }
 0x177   : > { %1696 = vst.msk [vmem:[#allocation3 + $0x20] sm:$0xff] %vm1691_vm8, %v1604_v15  ;;  %1242 = vrot.lane.b32.xlu1 %v1739_v35, %s2865_s11 }
 0x178   : > { %1433 = vrot.lane.b32.xlu0 %v1931_v1, %s2866_s12 }
 0x179   : > { %v1416_v32 = vpop.permute.xlu1 %1415 }
 0x17a   : > { %v1608_v16 = vpop.permute.xlu0 %1607  ;;  %1505 = vst.msk [vmem:[#allocation3 + $0x38] sm:$0xff] %vm1497_vm7, %v1416_v32 }
 0x17b   : > { %1698 = vst.msk [vmem:[#allocation3 + $0x30] sm:$0xff] %vm1691_vm8, %v1608_v16  ;;  %1246 = vrot.lane.b32.xlu1 %v1163_v47, %s2865_s11 }
 0x17c   : > { %1437 = vrot.lane.b32.xlu0 %v1355_v61, %s2866_s12 }
 0x17d   : > { %v1606_v63 = vpop.permute.xlu1 %1605 }
 0x17e   : > { %v1797_v33 = vpop.permute.xlu0 %1796  ;;  %1697 = vst.msk [vmem:[#allocation3 + $0x28] sm:$0xff] %vm1691_vm8, %v1606_v63 }
 0x17f   : > { %1889 = vst.msk [vmem:[#allocation3 + $0x20] sm:$0xff] %vm1884_vm9, %v1797_v33  ;;  %1435 = vrot.lane.b32.xlu1 %v1932_v24, %s2866_s12 }
 0x180   : > { %1627 = vrot.lane.b32.xlu0 %v3237_v39, %s2867_s13  ;;  %v1742_v39 = vld [vmem:[#allocation2 + $0x109] sm:$0xff] }
 0x181   : > { %v1610_v44 = vpop.permute.xlu1 %1609 }
 0x182   : > { %v1801_v11 = vpop.permute.xlu0 %1800  ;;  %1699 = vst.msk [vmem:[#allocation3 + $0x38] sm:$0xff] %vm1691_vm8, %v1610_v44  ;;  %v977_v44 = vld [vmem:[#allocation2 + $0x150] sm:$0xff] }
 0x183   : > { %1891 = vst.msk [vmem:[#allocation3 + $0x30] sm:$0xff] %vm1884_vm9, %v1801_v11  ;;  %1439 = vrot.lane.b32.xlu1 %v1356_v53, %s2866_s12 }
 0x184   : > { %1631 = vrot.lane.b32.xlu0 %v3247_v41, %s2867_s13 }
 0x185   : > { %v1799_v0 = vpop.permute.xlu1 %1798 }
 0x186   : > { %v1990_v3 = vpop.permute.xlu0 %1989  ;;  %1890 = vst.msk [vmem:[#allocation3 + $0x28] sm:$0xff] %vm1884_vm9, %v1799_v0 }
 0x187   : > { %2082 = vst.msk [vmem:[#allocation3 + $0x20] sm:$0xff] %vm2077_vm10, %v1990_v3  ;;  %1629 = vrot.lane.b32.xlu1 %v3239_v40, %s2867_s13  ;;  %v1743_v40 = vld [vmem:[#allocation2 + $0x111] sm:$0xff] }
 0x188   : > { %1820 = vrot.lane.b32.xlu0 %v1162_v22, %s2868_s18 }
 0x189   : > { %v1803_v4 = vpop.permute.xlu1 %1802 }
 0x18a   : > { %v1994_v49 = vpop.permute.xlu0 %1993  ;;  %1892 = vst.msk [vmem:[#allocation3 + $0x38] sm:$0xff] %vm1884_vm9, %v1803_v4  ;;  %v978_v4 = vld [vmem:[#allocation2 + $0x158] sm:$0xff] }
 0x18b   : > { %2084 = vst.msk [vmem:[#allocation3 + $0x30] sm:$0xff] %vm2077_vm10, %v1994_v49  ;;  %1633 = vrot.lane.b32.xlu1 %v3249_v42, %s2867_s13  ;;  %v1170_v49 = vld [vmem:[#allocation2 + $0x151] sm:$0xff] }
 0x18c   : > { %1824 = vrot.lane.b32.xlu0 %v1742_v39, %s2868_s18 }
 0x18d   : > { %v1992_v51 = vpop.permute.xlu1 %1991 }
 0x18e   : > { %v1225_v30 = vpop.permute.xlu0 %1224  ;;  %2083 = vst.msk [vmem:[#allocation3 + $0x28] sm:$0xff] %vm2077_vm10, %v1992_v51  ;;  %v2114_v5 = vld [vmem:[#allocation3 + $0x20] sm:$0xff] }
 0x18f   : > { %1313 = vst.msk [vmem:[#allocation3 + $0x40] sm:$0xff] %vm1304_vm6, %v1225_v30  ;;  %1822 = vrot.lane.b32.xlu1 %v1163_v47, %s2868_s18  ;;  %v1747_v47 = vld [vmem:[#allocation2 + $0x141] sm:$0xff] }
 0x190   : > { %2013 = vrot.lane.b32.xlu0 %v1355_v61, %s2869_s25  ;;  %v1939_v61 = vld [vmem:[#allocation2 + $0x13a] sm:$0xff] }
 0x191   : > { %v1996_v54 = vpop.permute.xlu1 %1995 }
 0x192   : > { %v1229_v48 = vpop.permute.xlu0 %1228  ;;  %2085 = vst.msk [vmem:[#allocation3 + $0x38] sm:$0xff] %vm2077_vm10, %v1996_v54  ;;  %v2116_v20 = vld [vmem:[#allocation3 + $0x30] sm:$0xff] }
 0x193   : > { %1315 = vst.msk [vmem:[#allocation3 + $0x50] sm:$0xff] %vm1304_vm6, %v1229_v48  ;;  %1826 = vrot.lane.b32.xlu1 %v1743_v40, %s2868_s18  ;;  %v1171_v54 = vld [vmem:[#allocation2 + $0x159] sm:$0xff] }
 0x194   : > { %2017 = vrot.lane.b32.xlu0 %v1935_v21, %s2869_s25  ;;  %v1363_v48 = vld [vmem:[#allocation2 + $0x152] sm:$0xff] }
 0x195   : > { %v1227_v50 = vpop.permute.xlu1 %1226  ;;  %v2115_v6 = vld [vmem:[#allocation3 + $0x28] sm:$0xff] }
 0x196   : > { %v1418_v34 = vpop.permute.xlu0 %1417  ;;  %1314 = vst.msk [vmem:[#allocation3 + $0x48] sm:$0xff] %vm1304_vm6, %v1227_v50  ;;  %v2144_v55 = vpack.c.bf16 %v2115_v6, %v2114_v5 }
 0x197   : > { %1506 = vst.msk [vmem:[#allocation3 + $0x40] sm:$0xff] %vm1497_vm7, %v1418_v34  ;;  %2015 = vrot.lane.b32.xlu1 %v1356_v53, %s2869_s25  ;;  %v1940_v53 = vld [vmem:[#allocation2 + $0x142] sm:$0xff] }
 0x198   : > { %1055 = vrot.lane.b32.xlu0 %v3247_v41, %s2864_s10  ;;  %2789 = vmatprep.mubr.msk.bf16.mxu0 %vm2194_vm11, %v2144_v55  ;;  %v1364_v55 = vld [vmem:[#allocation2 + $0x15a] sm:$0xff] }
 0x199   : > { %v1231_v57 = vpop.permute.xlu1 %1230  ;;  %v2117_v18 = vld [vmem:[#allocation3 + $0x38] sm:$0xff] }
 0x19a   : > { %v1422_v35 = vpop.permute.xlu0 %1421  ;;  %1316 = vst.msk [vmem:[#allocation3 + $0x58] sm:$0xff] %vm1304_vm6, %v1231_v57  ;;  %v2145_v1 = vpack.c.bf16 %v2117_v18, %v2116_v20  ;;  %v1557_v20 = vld [vmem:[#allocation2 + $0x168] sm:$0xff] }
 0x19b   : > { %1508 = vst.msk [vmem:[#allocation3 + $0x50] sm:$0xff] %vm1497_vm7, %v1422_v35  ;;  %2019 = vrot.lane.b32.xlu1 %v1936_v36, %s2869_s25 }
 0x19c   : > { %1059 = vrot.lane.b32.xlu0 %v3257_v45, %s2864_s10  ;;  %2790 = vmatmul.mubr.msk.bf16.gmra.mxu0 %vm2194_vm11, %v2145_v1 }
 0x19d   : > { %v1420_v8 = vpop.permute.xlu1 %1419 }
 0x19e   : > { %v1612_v41 = vpop.permute.xlu0 %1611  ;;  %1507 = vst.msk [vmem:[#allocation3 + $0x48] sm:$0xff] %vm1497_vm7, %v1420_v8 }
 0x19f   : > { %1700 = vst.msk [vmem:[#allocation3 + $0x40] sm:$0xff] %vm1691_vm8, %v1612_v41  ;;  %1057 = vrot.lane.b32.xlu1 %v3249_v42, %s2864_s10  ;;  %v1167_v42 = vld [vmem:[#allocation2 + $0x129] sm:$0xff] }
 0x1a0   : > { %1248 = vrot.lane.b32.xlu0 %v1742_v39, %s2865_s11 }
 0x1a1   : > { %v1424_v37 = vpop.permute.xlu1 %1423 }
 0x1a2   : > { %v1616_v31 = vpop.permute.xlu0 %1615  ;;  %1509 = vst.msk [vmem:[#allocation3 + $0x58] sm:$0xff] %vm1497_vm7, %v1424_v37  ;;  %v1558_v37 = vld [vmem:[#allocation2 + $0x170] sm:$0xff] }
 0x1a3   : > { %1702 = vst.msk [vmem:[#allocation3 + $0x50] sm:$0xff] %vm1691_vm8, %v1616_v31  ;;  %1061 = vrot.lane.b32.xlu1 %v3259_v46, %s2864_s10  ;;  %v1551_v46 = vld [vmem:[#allocation2 + $0x120] sm:$0xff]  ;;  %v1750_v31 = vld [vmem:[#allocation2 + $0x169] sm:$0xff] }
 0x1a4   : > { %1252 = vrot.lane.b32.xlu0 %v1166_v23, %s2865_s11 }
 0x1a5   : > { %v1614_v45 = vpop.permute.xlu1 %1613 }
 0x1a6   : > { %v1805_v25 = vpop.permute.xlu0 %1804  ;;  %1701 = vst.msk [vmem:[#allocation3 + $0x48] sm:$0xff] %vm1691_vm8, %v1614_v45 }
 0x1a7   : > { %1893 = vst.msk [vmem:[#allocation3 + $0x40] sm:$0xff] %vm1884_vm9, %v1805_v25  ;;  %1250 = vrot.lane.b32.xlu1 %v1743_v40, %s2865_s11 }
 0x1a8   : > { %1441 = vrot.lane.b32.xlu0 %v1935_v21, %s2866_s12 }
 0x1a9   : > { %v1618_v24 = vpop.permute.xlu1 %1617 }
 0x1aa   : > { %v1809_v29 = vpop.permute.xlu0 %1808  ;;  %1703 = vst.msk [vmem:[#allocation3 + $0x58] sm:$0xff] %vm1691_vm8, %v1618_v24 }
 0x1ab   : > { %1895 = vst.msk [vmem:[#allocation3 + $0x50] sm:$0xff] %vm1884_vm9, %v1809_v29  ;;  %1254 = vrot.lane.b32.xlu1 %v1167_v42, %s2865_s11 }
 0x1ac   : > { %1445 = vrot.lane.b32.xlu0 %v1359_v52, %s2866_s12 }
 0x1ad   : > { %v1807_v7 = vpop.permute.xlu1 %1806 }
 0x1ae   : > { %v1998_v26 = vpop.permute.xlu0 %1997  ;;  %1894 = vst.msk [vmem:[#allocation3 + $0x48] sm:$0xff] %vm1884_vm9, %v1807_v7  ;;  %v1943_v7 = vld [vmem:[#allocation2 + $0x16a] sm:$0xff] }
 0x1af   : > { %2086 = vst.msk [vmem:[#allocation3 + $0x40] sm:$0xff] %vm2077_vm10, %v1998_v26  ;;  %1443 = vrot.lane.b32.xlu1 %v1936_v36, %s2866_s12 }
 0x1b0   : > { %1635 = vrot.lane.b32.xlu0 %v1551_v46, %s2867_s13  ;;  %v1751_v46 = vld [vmem:[#allocation2 + $0x171] sm:$0xff] }
 0x1b1   : > { %v1811_v22 = vpop.permute.xlu1 %1810 }
 0x1b2   : > { %v2002_v10 = vpop.permute.xlu0 %2001  ;;  %1896 = vst.msk [vmem:[#allocation3 + $0x58] sm:$0xff] %vm1884_vm9, %v1811_v22 }
 0x1b3   : > { %2088 = vst.msk [vmem:[#allocation3 + $0x50] sm:$0xff] %vm2077_vm10, %v2002_v10  ;;  %1447 = vrot.lane.b32.xlu1 %v1360_v9, %s2866_s12  ;;  %v1944_v10 = vld [vmem:[#allocation2 + $0x172] sm:$0xff] }
 0x1b4   : > { %1639 = vrot.lane.b32.xlu0 %v1553_v2, %s2867_s13 }
 0x1b5   : > { %v2000_v14 = vpop.permute.xlu1 %1999 }
 0x1b6   : > { %v1233_v12 = vpop.permute.xlu0 %1232  ;;  %2087 = vst.msk [vmem:[#allocation3 + $0x48] sm:$0xff] %vm2077_vm10, %v2000_v14  ;;  %v2118_v59 = vld [vmem:[#allocation3 + $0x40] sm:$0xff] }
 0x1b7   : > { %1317 = vst.msk [vmem:[#allocation3 + $0x60] sm:$0xff] %vm1304_vm6, %v1233_v12  ;;  %1637 = vrot.lane.b32.xlu1 %v1552_v17, %s2867_s13  ;;  %v981_v17 = vld [vmem:[#allocation2 + $0x180] sm:$0xff] }
 0x1b8   : > { %1828 = vrot.lane.b32.xlu0 %v1166_v23, %s2868_s18 }
 0x1b9   : > { %v2004_v58 = vpop.permute.xlu1 %2003 }
 0x1ba   : > { %v1237_v15 = vpop.permute.xlu0 %1236  ;;  %2089 = vst.msk [vmem:[#allocation3 + $0x58] sm:$0xff] %vm2077_vm10, %v2004_v58  ;;  %v2120_v27 = vld [vmem:[#allocation3 + $0x50] sm:$0xff]  ;;  %v982_v58 = vld [vmem:[#allocation2 + $0x188] sm:$0xff] }
 0x1bb   : > { %1319 = vst.msk [vmem:[#allocation3 + $0x70] sm:$0xff] %vm1304_vm6, %v1237_v15  ;;  %1641 = vrot.lane.b32.xlu1 %v1554_v43, %s2867_s13  ;;  %v1174_v15 = vld [vmem:[#allocation2 + $0x181] sm:$0xff] }
 0x1bc   : > { %1832 = vrot.lane.b32.xlu0 %v1746_v56, %s2868_s18 }
 0x1bd   : > { %v1235_v38 = vpop.permute.xlu1 %1234  ;;  %v2119_v60 = vld [vmem:[#allocation3 + $0x48] sm:$0xff] }
 0x1be   : > { %v1426_v19 = vpop.permute.xlu0 %1425  ;;  %1318 = vst.msk [vmem:[#allocation3 + $0x68] sm:$0xff] %vm1304_vm6, %v1235_v38  ;;  %v2146_v13 = vpack.c.bf16 %v2119_v60, %v2118_v59 }
 0x1bf   : > { %1510 = vst.msk [vmem:[#allocation3 + $0x60] sm:$0xff] %vm1497_vm7, %v1426_v19  ;;  %1830 = vrot.lane.b32.xlu1 %v1167_v42, %s2868_s18 }
 0x1c0   : > { %2021 = vrot.lane.b32.xlu0 %v1359_v52, %s2869_s25  ;;  %2793 = vmatprep.mubr.msk.bf16.mxu0 %vm2194_vm11, %v2146_v13  ;;  %v1175_v13 = vld [vmem:[#allocation2 + $0x189] sm:$0xff] }
 0x1c1   : > { %v1239_v32 = vpop.permute.xlu1 %1238  ;;  %v2121_v16 = vld [vmem:[#allocation3 + $0x58] sm:$0xff] }
 0x1c2   : > { %v1430_v28 = vpop.permute.xlu0 %1429  ;;  %1320 = vst.msk [vmem:[#allocation3 + $0x78] sm:$0xff] %vm1304_vm6, %v1239_v32  ;;  %v2147_v62 = vpack.c.bf16 %v2121_v16, %v2120_v27  ;;  %v1367_v27 = vld [vmem:[#allocation2 + $0x182] sm:$0xff] }
 0x1c3   : > { %1512 = vst.msk [vmem:[#allocation3 + $0x70] sm:$0xff] %vm1497_vm7, %v1430_v28  ;;  %1834 = vrot.lane.b32.xlu1 %v1747_v47, %s2868_s18 }
 0x1c4   : > { %2025 = vrot.lane.b32.xlu0 %v1939_v61, %s2869_s25  ;;  %2794 = vmatmul.mubr.msk.bf16.gmra.mxu0 %vm2194_vm11, %v2147_v62  ;;  %v1368_v62 = vld [vmem:[#allocation2 + $0x18a] sm:$0xff] }
 0x1c5   : > { %v1428_v63 = vpop.permute.xlu1 %1427 }
 0x1c6   : > { %v1620_v33 = vpop.permute.xlu0 %1619  ;;  %1511 = vst.msk [vmem:[#allocation3 + $0x68] sm:$0xff] %vm1497_vm7, %v1428_v63  ;;  %v1561_v63 = vld [vmem:[#allocation2 + $0x198] sm:$0xff] }
 0x1c7   : > { %1704 = vst.msk [vmem:[#allocation3 + $0x60] sm:$0xff] %vm1691_vm8, %v1620_v33  ;;  %2023 = vrot.lane.b32.xlu1 %v1360_v9, %s2869_s25 }
 0x1c8   : > { %1063 = vrot.lane.b32.xlu0 %v1553_v2, %s2864_s10 }
 0x1c9   : > { %v1432_v11 = vpop.permute.xlu1 %1431 }
 0x1ca   : > { %v1624_v0 = vpop.permute.xlu0 %1623  ;;  %1513 = vst.msk [vmem:[#allocation3 + $0x78] sm:$0xff] %vm1497_vm7, %v1432_v11 }
 0x1cb   : > { %1706 = vst.msk [vmem:[#allocation3 + $0x70] sm:$0xff] %vm1691_vm8, %v1624_v0  ;;  %2027 = vrot.lane.b32.xlu1 %v1940_v53, %s2869_s25 }
 0x1cc   : > { %1067 = vrot.lane.b32.xlu0 %v977_v44, %s2864_s10 }
 0x1cd   : > { %v1622_v3 = vpop.permute.xlu1 %1621 }
 0x1ce   : > { %v1813_v39 = vpop.permute.xlu0 %1812  ;;  %1705 = vst.msk [vmem:[#allocation3 + $0x68] sm:$0xff] %vm1691_vm8, %v1622_v3 }
 0x1cf   : > { %1897 = vst.msk [vmem:[#allocation3 + $0x60] sm:$0xff] %vm1884_vm9, %v1813_v39  ;;  %1065 = vrot.lane.b32.xlu1 %v1554_v43, %s2864_s10 }
 0x1d0   : > { %1256 = vrot.lane.b32.xlu0 %v1746_v56, %s2865_s11 }
 0x1d1   : > { %v1626_v51 = vpop.permute.xlu1 %1625 }
 0x1d2   : > { %v1817_v30 = vpop.permute.xlu0 %1816  ;;  %1707 = vst.msk [vmem:[#allocation3 + $0x78] sm:$0xff] %vm1691_vm8, %v1626_v51  ;;  %v1562_v51 = vld [vmem:[#allocation2 + $0x1a0] sm:$0xff] }
 0x1d3   : > { %1899 = vst.msk [vmem:[#allocation3 + $0x70] sm:$0xff] %vm1884_vm9, %v1817_v30  ;;  %1069 = vrot.lane.b32.xlu1 %v978_v4, %s2864_s10  ;;  %v1754_v30 = vld [vmem:[#allocation2 + $0x199] sm:$0xff] }
 0x1d4   : > { %1260 = vrot.lane.b32.xlu0 %v1170_v49, %s2865_s11 }
 0x1d5   : > { %v1815_v40 = vpop.permute.xlu1 %1814 }
 0x1d6   : > { %v2006_v21 = vpop.permute.xlu0 %2005  ;;  %1898 = vst.msk [vmem:[#allocation3 + $0x68] sm:$0xff] %vm1884_vm9, %v1815_v40 }
 0x1d7   : > { %2090 = vst.msk [vmem:[#allocation3 + $0x60] sm:$0xff] %vm2077_vm10, %v2006_v21  ;;  %1258 = vrot.lane.b32.xlu1 %v1747_v47, %s2865_s11 }
 0x1d8   : > { %1449 = vrot.lane.b32.xlu0 %v1939_v61, %s2866_s12 }
 0x1d9   : > { %v1819_v5 = vpop.permute.xlu1 %1818 }
 0x1da   : > { %v2010_v50 = vpop.permute.xlu0 %2009  ;;  %1900 = vst.msk [vmem:[#allocation3 + $0x78] sm:$0xff] %vm1884_vm9, %v1819_v5  ;;  %v1755_v5 = vld [vmem:[#allocation2 + $0x1a1] sm:$0xff] }
 0x1db   : > { %2092 = vst.msk [vmem:[#allocation3 + $0x70] sm:$0xff] %vm2077_vm10, %v2010_v50  ;;  %1262 = vrot.lane.b32.xlu1 %v1171_v54, %s2865_s11  ;;  %v1947_v50 = vld [vmem:[#allocation2 + $0x19a] sm:$0xff] }
 0x1dc   : > { %1453 = vrot.lane.b32.xlu0 %v1363_v48, %s2866_s12 }
 0x1dd   : > { %v2008_v6 = vpop.permute.xlu1 %2007 }
 0x1de   : > { %v1052_v34 = vpop.permute.xlu0 %1051  ;;  %2091 = vst.msk [vmem:[#allocation3 + $0x68] sm:$0xff] %vm2077_vm10, %v2008_v6  ;;  %v2122_v18 = vld [vmem:[#allocation3 + $0x60] sm:$0xff] }
 0x1df   : > { %1130 = vst.msk [vmem:[#allocation3 + $0x90] sm:$0xff] %vm1111_vm5, %v1052_v34  ;;  %1451 = vrot.lane.b32.xlu1 %v1940_v53, %s2866_s12 }
 0x1e0   : > { %1643 = vrot.lane.b32.xlu0 %v977_v44, %s2867_s13 }
 0x1e1   : > { %v2012_v36 = vpop.permute.xlu1 %2011 }
 0x1e2   : > { %v1241_v57 = vpop.permute.xlu0 %1240  ;;  %2093 = vst.msk [vmem:[#allocation3 + $0x78] sm:$0xff] %vm2077_vm10, %v2012_v36  ;;  %v2124_v23 = vld [vmem:[#allocation3 + $0x70] sm:$0xff] }
 0x1e3   : > { %1321 = vst.msk [vmem:[#allocation3 + $0x80] sm:$0xff] %vm1304_vm6, %v1241_v57  ;;  %1455 = vrot.lane.b32.xlu1 %v1364_v55, %s2866_s12  ;;  %v1948_v36 = vld [vmem:[#allocation2 + $0x1a2] sm:$0xff] }
 0x1e4   : > { %1647 = vrot.lane.b32.xlu0 %v1557_v20, %s2867_s13 }
 0x1e5   : > { %v1054_v35 = vpop.permute.xlu1 %1053  ;;  %v2123_v1 = vld [vmem:[#allocation3 + $0x68] sm:$0xff] }
 0x1e6   : > { %v1245_v8 = vpop.permute.xlu0 %1244  ;;  %1131 = vst.msk [vmem:[#allocation3 + $0x98] sm:$0xff] %vm1111_vm5, %v1054_v35  ;;  %v2148_v41 = vpack.c.bf16 %v2123_v1, %v2122_v18 }
 0x1e7   : > { %1323 = vst.msk [vmem:[#allocation3 + $0x90] sm:$0xff] %vm1304_vm6, %v1245_v8  ;;  %1645 = vrot.lane.b32.xlu1 %v978_v4, %s2867_s13 }
 0x1e8   : > { %1836 = vrot.lane.b32.xlu0 %v1170_v49, %s2868_s18  ;;  %2797 = vmatprep.mubr.msk.bf16.mxu0 %vm2194_vm11, %v2148_v41 }
 0x1e9   : > { %v1243_v45 = vpop.permute.xlu1 %1242  ;;  %v2125_v25 = vld [vmem:[#allocation3 + $0x78] sm:$0xff] }
 0x1ea   : > { %v1434_v42 = vpop.permute.xlu0 %1433  ;;  %1322 = vst.msk [vmem:[#allocation3 + $0x88] sm:$0xff] %vm1304_vm6, %v1243_v45  ;;  %v2149_v52 = vpack.c.bf16 %v2125_v25, %v2124_v23 }
 0x1eb   : > { %1514 = vst.msk [vmem:[#allocation3 + $0x80] sm:$0xff] %vm1497_vm7, %v1434_v42  ;;  %1649 = vrot.lane.b32.xlu1 %v1558_v37, %s2867_s13 }
 0x1ec   : > { %1840 = vrot.lane.b32.xlu0 %v1750_v31, %s2868_s18  ;;  %2798 = vmatmul.mubr.msk.bf16.gmra.mxu0 %vm2194_vm11, %v2149_v52 }
 0x1ed   : > { %v1247_v24 = vpop.permute.xlu1 %1246 }
 0x1ee   : > { %v1438_v29 = vpop.permute.xlu0 %1437  ;;  %1324 = vst.msk [vmem:[#allocation3 + $0x98] sm:$0xff] %vm1304_vm6, %v1247_v24 }
 0x1ef   : > { %1516 = vst.msk [vmem:[#allocation3 + $0x90] sm:$0xff] %vm1497_vm7, %v1438_v29  ;;  %1838 = vrot.lane.b32.xlu1 %v1171_v54, %s2868_s18 }
 0x1f0   : > { %2029 = vrot.lane.b32.xlu0 %v1363_v48, %s2869_s25 }
 0x1f1   : > { %v1436_v26 = vpop.permute.xlu1 %1435 }
 0x1f2   : > { %v1628_v9 = vpop.permute.xlu0 %1627  ;;  %1515 = vst.msk [vmem:[#allocation3 + $0x88] sm:$0xff] %vm1497_vm7, %v1436_v26 }
 0x1f3   : > { %1708 = vst.msk [vmem:[#allocation3 + $0x80] sm:$0xff] %vm1691_vm8, %v1628_v9  ;;  %1842 = vrot.lane.b32.xlu1 %v1751_v46, %s2868_s18 }
 0x1f4   : > { %2033 = vrot.lane.b32.xlu0 %v1943_v7, %s2869_s25 }
 0x1f5   : > { %v1440_v2 = vpop.permute.xlu1 %1439 }
 0x1f6   : > { %v1632_v22 = vpop.permute.xlu0 %1631  ;;  %1517 = vst.msk [vmem:[#allocation3 + $0x98] sm:$0xff] %vm1497_vm7, %v1440_v2 }
 0x1f7   : > { %1710 = vst.msk [vmem:[#allocation3 + $0x90] sm:$0xff] %vm1691_vm8, %v1632_v22  ;;  %2031 = vrot.lane.b32.xlu1 %v1364_v55, %s2869_s25 }
 0x1f8   : > { %1071 = vrot.lane.b32.xlu0 %v1557_v20, %s2864_s10 }
 0x1f9   : > { %v1630_v14 = vpop.permute.xlu1 %1629 }
 0x1fa   : > { %v1821_v12 = vpop.permute.xlu0 %1820  ;;  %1709 = vst.msk [vmem:[#allocation3 + $0x88] sm:$0xff] %vm1691_vm8, %v1630_v14 }
 0x1fb   : > { %1901 = vst.msk [vmem:[#allocation3 + $0x80] sm:$0xff] %vm1884_vm9, %v1821_v12  ;;  %2035 = vrot.lane.b32.xlu1 %v1944_v10, %s2869_s25 }
 0x1fc   : > { %1075 = vrot.lane.b32.xlu0 %v981_v17, %s2864_s10 }
 0x1fd   : > { %v1634_v43 = vpop.permute.xlu1 %1633 }
 0x1fe   : > { %v1825_v56 = vpop.permute.xlu0 %1824  ;;  %1711 = vst.msk [vmem:[#allocation3 + $0x98] sm:$0xff] %vm1691_vm8, %v1634_v43 }
 0x1ff   : > { %1903 = vst.msk [vmem:[#allocation3 + $0x90] sm:$0xff] %vm1884_vm9, %v1825_v56  ;;  %1073 = vrot.lane.b32.xlu1 %v1558_v37, %s2864_s10 }
 0x200   : > { %1264 = vrot.lane.b32.xlu0 %v1750_v31, %s2865_s11 }
 0x201   : > { %v1823_v59 = vpop.permute.xlu1 %1822 }
 0x202   : > { %v2014_v38 = vpop.permute.xlu0 %2013  ;;  %1902 = vst.msk [vmem:[#allocation3 + $0x88] sm:$0xff] %vm1884_vm9, %v1823_v59 }
 0x203   : > { %2094 = vst.msk [vmem:[#allocation3 + $0x80] sm:$0xff] %vm2077_vm10, %v2014_v38  ;;  %1077 = vrot.lane.b32.xlu1 %v982_v58, %s2864_s10 }
 0x204   : > { %1268 = vrot.lane.b32.xlu0 %v1174_v15, %s2865_s11 }
 0x205   : > { %v1827_v60 = vpop.permute.xlu1 %1826 }
 0x206   : > { %v2018_v19 = vpop.permute.xlu0 %2017  ;;  %1904 = vst.msk [vmem:[#allocation3 + $0x98] sm:$0xff] %vm1884_vm9, %v1827_v60 }
 0x207   : > { %2096 = vst.msk [vmem:[#allocation3 + $0x90] sm:$0xff] %vm2077_vm10, %v2018_v19  ;;  %1266 = vrot.lane.b32.xlu1 %v1751_v46, %s2865_s11 }
 0x208   : > { %1457 = vrot.lane.b32.xlu0 %v1943_v7, %s2866_s12 }
 0x209   : > { %v2016_v47 = vpop.permute.xlu1 %2015 }
 0x20a   : > { %v1056_v61 = vpop.permute.xlu0 %1055  ;;  %2095 = vst.msk [vmem:[#allocation3 + $0x88] sm:$0xff] %vm2077_vm10, %v2016_v47  ;;  %v2126_v28 = vld [vmem:[#allocation3 + $0x80] sm:$0xff] }
 0x20b   : > { %1132 = vst.msk [vmem:[#allocation3 + $0xa0] sm:$0xff] %vm1111_vm5, %v1056_v61  ;;  %1270 = vrot.lane.b32.xlu1 %v1175_v13, %s2865_s11  ;;  %s3885_s11 = scalar_lea.vmem %s4089_s4, %s2752_s26 }
 0x20c   : > { %1461 = vrot.lane.b32.xlu0 %v1367_v27, %s2866_s12 }
 0x20d   : > { %v2020_v32 = vpop.permute.xlu1 %2019 }
 0x20e   : > { %v1060_v16 = vpop.permute.xlu0 %1059  ;;  %2097 = vst.msk [vmem:[#allocation3 + $0x98] sm:$0xff] %vm2077_vm10, %v2020_v32  ;;  %v2128_v0 = vld [vmem:[#allocation3 + $0x90] sm:$0xff] }
 0x20f   : > { %1134 = vst.msk [vmem:[#allocation3 + $0xb0] sm:$0xff] %vm1111_vm5, %v1060_v16  ;;  %1459 = vrot.lane.b32.xlu1 %v1944_v10, %s2866_s12 }
 0x210   : > { %1651 = vrot.lane.b32.xlu0 %v981_v17, %s2867_s13 }
 0x211   : > { %v1058_v33 = vpop.permute.xlu1 %1057  ;;  %v2127_v53 = vld [vmem:[#allocation3 + $0x88] sm:$0xff] }
 0x212   : > { %v1249_v44 = vpop.permute.xlu0 %1248  ;;  %1133 = vst.msk [vmem:[#allocation3 + $0xa8] sm:$0xff] %vm1111_vm5, %v1058_v33  ;;  %v2150_v11 = vpack.c.bf16 %v2127_v53, %v2126_v28 }
 0x213   : > { %1325 = vst.msk [vmem:[#allocation3 + $0xa0] sm:$0xff] %vm1304_vm6, %v1249_v44  ;;  %1463 = vrot.lane.b32.xlu1 %v1368_v62, %s2866_s12 }
 0x214   : > { %1655 = vrot.lane.b32.xlu0 %v1561_v63, %s2867_s13  ;;  %2801 = vmatprep.mubr.msk.bf16.mxu1 %vm2194_vm11, %v2150_v11 }
 0x215   : > { %v1062_v3 = vpop.permute.xlu1 %1061  ;;  %v2129_v39 = vld [vmem:[#allocation3 + $0x98] sm:$0xff] }
 0x216   : > { %v1253_v4 = vpop.permute.xlu0 %1252  ;;  %1135 = vst.msk [vmem:[#allocation3 + $0xb8] sm:$0xff] %vm1111_vm5, %v1062_v3  ;;  %v2151_v49 = vpack.c.bf16 %v2129_v39, %v2128_v0 }
 0x217   : > { %1327 = vst.msk [vmem:[#allocation3 + $0xb0] sm:$0xff] %vm1304_vm6, %v1253_v4  ;;  %1653 = vrot.lane.b32.xlu1 %v982_v58, %s2867_s13 }
 0x218   : > { %1844 = vrot.lane.b32.xlu0 %v1174_v15, %s2868_s18  ;;  %2802 = vmatmul.mubr.msk.bf16.vlgmr.msra.gmra.mxu1 %vm2194_vm11, %v2151_v49 }
 0x219   : > { %v1251_v40 = vpop.permute.xlu1 %1250 }
 0x21a   : > { %v1442_v21 = vpop.permute.xlu0 %1441  ;;  %1326 = vst.msk [vmem:[#allocation3 + $0xa8] sm:$0xff] %vm1304_vm6, %v1251_v40 }
 0x21b   : > { %1518 = vst.msk [vmem:[#allocation3 + $0xa0] sm:$0xff] %vm1497_vm7, %v1442_v21  ;;  %1657 = vrot.lane.b32.xlu1 %v1562_v51, %s2867_s13  ;;  %s265_s13 = scalar_lea.vmem %s4090_s5, %s4094_s22 }
 0x21c   : > { %1848 = vrot.lane.b32.xlu0 %v1754_v30, %s2868_s18 }
 0x21d   : > { %v1255_v54 = vpop.permute.xlu1 %1254 }
 0x21e   : > { %v1446_v48 = vpop.permute.xlu0 %1445  ;;  %1328 = vst.msk [vmem:[#allocation3 + $0xb8] sm:$0xff] %vm1304_vm6, %v1255_v54 }
 0x21f   : > { %1520 = vst.msk [vmem:[#allocation3 + $0xb0] sm:$0xff] %vm1497_vm7, %v1446_v48  ;;  %1846 = vrot.lane.b32.xlu1 %v1175_v13, %s2868_s18 }
 0x220   : > { %2037 = vrot.lane.b32.xlu0 %v1367_v27, %s2869_s25 }
 0x221   : > { %v1444_v6 = vpop.permute.xlu1 %1443 }
 0x222   : > { %v1636_v34 = vpop.permute.xlu0 %1635  ;;  %1519 = vst.msk [vmem:[#allocation3 + $0xa8] sm:$0xff] %vm1497_vm7, %v1444_v6 }
 0x223   : > { %1712 = vst.msk [vmem:[#allocation3 + $0xa0] sm:$0xff] %vm1691_vm8, %v1636_v34  ;;  %1850 = vrot.lane.b32.xlu1 %v1755_v5, %s2868_s18 }
 0x224   : > { %2041 = vrot.lane.b32.xlu0 %v1947_v50, %s2869_s25 }
 0x225   : > { %v1448_v55 = vpop.permute.xlu1 %1447 }
 0x226   : > { %v1640_v20 = vpop.permute.xlu0 %1639  ;;  %1521 = vst.msk [vmem:[#allocation3 + $0xb8] sm:$0xff] %vm1497_vm7, %v1448_v55 }
 0x227   : > { %1714 = vst.msk [vmem:[#allocation3 + $0xb0] sm:$0xff] %vm1691_vm8, %v1640_v20  ;;  %2039 = vrot.lane.b32.xlu1 %v1368_v62, %s2869_s25 }
 0x229   : > { %v1638_v57 = vpop.permute.xlu1 %1637 }
 0x22a   : > { %v1829_v18 = vpop.permute.xlu0 %1828  ;;  %1713 = vst.msk [vmem:[#allocation3 + $0xa8] sm:$0xff] %vm1691_vm8, %v1638_v57 }
 0x22b   : > { %1905 = vst.msk [vmem:[#allocation3 + $0xa0] sm:$0xff] %vm1884_vm9, %v1829_v18  ;;  %2043 = vrot.lane.b32.xlu1 %v1948_v36, %s2869_s25 }
 0x22d   : > { %v1642_v35 = vpop.permute.xlu1 %1641 }
 0x22e   : > { %v1833_v1 = vpop.permute.xlu0 %1832  ;;  %1715 = vst.msk [vmem:[#allocation3 + $0xb8] sm:$0xff] %vm1691_vm8, %v1642_v35 }
 0x22f   : > { %1907 = vst.msk [vmem:[#allocation3 + $0xb0] sm:$0xff] %vm1884_vm9, %v1833_v1 }
 0x231   : > { %v1831_v8 = vpop.permute.xlu1 %1830 }
 0x232   : > { %v2022_v41 = vpop.permute.xlu0 %2021  ;;  %1906 = vst.msk [vmem:[#allocation3 + $0xa8] sm:$0xff] %vm1884_vm9, %v1831_v8 }
 0x233   : > { %2098 = vst.msk [vmem:[#allocation3 + $0xa0] sm:$0xff] %vm2077_vm10, %v2022_v41 }
 0x234   : > { %v2787_v23 = vpop.f32.mrf.mxu0 }
 0x235   : > { %2410 = vst.msk [vmem:[%s3885_s11 + $0x10] sm:$0xff] %vm412_vm0, %v2787_v23  ;;  %v1835_v37 = vpop.permute.xlu1 %1834  ;;  %v2513_v46 = vmul.f32 %v2787_v23, %v2787_v23  ;;  %v2443_v22 = vsel %vm412_vm0, %v2787_v23, 0.0 }
 0x236   : > { %v2026_v31 = vpop.permute.xlu0 %2025  ;;  %1908 = vst.msk [vmem:[#allocation3 + $0xb8] sm:$0xff] %vm1884_vm9, %v1835_v37  ;;  %v2281_v45 = vpop.f32.mrf.mxu0 }
 0x237   : > { %2100 = vst.msk [vmem:[#allocation3 + $0xb0] sm:$0xff] %vm2077_vm10, %v2026_v31  ;;  %v2511_v42 = vmul.f32 %v2281_v45, %v2281_v45  ;;  %v2440_v7 = vsel %vm412_vm0, %v2281_v45, 0.0  ;;  %v2546_v15 = vsel %vm412_vm0, %v2513_v46, 0.0 }
 0x238   : > { %2408 = vst.msk [vmem:[%s3885_s11] sm:$0xff] %vm412_vm0, %v2281_v45  ;;  %v2788_v25 = vpop.f32.mrf.mxu0 }
 0x239   : > { %2411 = vst.msk [vmem:[%s3885_s11 + $0x18] sm:$0xff] %vm412_vm0, %v2788_v25  ;;  %v2024_v52 = vpop.permute.xlu1 %2023  ;;  %v2543_v10 = vsel %vm412_vm0, %v2511_v42, 0.0  ;;  %v2514_v17 = vmul.f32 %v2788_v25, %v2788_v25  ;;  %v2445_v59 = vsel %vm412_vm0, %v2788_v25, 0.0 }
 0x23a   : > { %v1064_v24 = vpop.permute.xlu0 %1063  ;;  %2099 = vst.msk [vmem:[#allocation3 + $0xa8] sm:$0xff] %vm2077_vm10, %v2024_v52  ;;  %v2284_v29 = vpop.f32.mrf.mxu0  ;;  %v2130_v38 = vld [vmem:[#allocation3 + $0xa0] sm:$0xff] }
 0x23b   : > { %1136 = vst.msk [vmem:[#allocation3 + $0xc0] sm:$0xff] %vm1111_vm5, %v1064_v24  ;;  %v2441_v26 = vsel %vm412_vm0, %v2284_v29, 0.0  ;;  %v2512_v9 = vmul.f32 %v2284_v29, %v2284_v29  ;;  %v2548_v13 = vsel %vm412_vm0, %v2514_v17, 0.0 }
 0x23c   : > { %2409 = vst.msk [vmem:[%s3885_s11 + $0x8] sm:$0xff] %vm412_vm0, %v2284_v29  ;;  %v2442_v2 = vadd.f32 %v2441_v26, %v2440_v7 }
 0x23d   : > { %v2544_v14 = vsel %vm412_vm0, %v2512_v9, 0.0  ;;  %v2028_v12 = vpop.permute.xlu1 %2027 }
 0x23e   : > { %v1068_v43 = vpop.permute.xlu0 %1067  ;;  %v2444_v56 = vadd.f32 %v2443_v22, %v2442_v2  ;;  %v2545_v58 = vadd.f32 %v2544_v14, %v2543_v10  ;;  %2101 = vst.msk [vmem:[#allocation3 + $0xb8] sm:$0xff] %vm2077_vm10, %v2028_v12  ;;  %v2132_v28 = vld [vmem:[#allocation3 + $0xb0] sm:$0xff] }
 0x23f   : > { %1138 = vst.msk [vmem:[#allocation3 + $0xd0] sm:$0xff] %vm1111_vm5, %v1068_v43 }
 0x240   : > { %v2547_v60 = vadd.f32 %v2546_v15, %v2545_v58  ;;  %v2446_v19 = vadd.f32 %v2445_v59, %v2444_v56 }
 0x241   : > { %v1066_v27 = vpop.permute.xlu1 %1065  ;;  %v2131_v47 = vld [vmem:[#allocation3 + $0xa8] sm:$0xff] }
 0x242   : > { %v1257_v61 = vpop.permute.xlu0 %1256  ;;  %1137 = vst.msk [vmem:[#allocation3 + $0xc8] sm:$0xff] %vm1111_vm5, %v1066_v27  ;;  %v2152_v32 = vpack.c.bf16 %v2131_v47, %v2130_v38  ;;  %v2549_v16 = vadd.f32 %v2548_v13, %v2547_v60 }
 0x243   : > { %1329 = vst.msk [vmem:[#allocation3 + $0xc0] sm:$0xff] %vm1304_vm6, %v1257_v61 }
 0x244   : > { %2805 = vmatprep.mubr.msk.bf16.mxu1 %vm2194_vm11, %v2152_v32 }
 0x245   : > { %v1070_v62 = vpop.permute.xlu1 %1069  ;;  %v2133_v63 = vld [vmem:[#allocation3 + $0xb8] sm:$0xff] }
 0x246   : > { %v1261_v33 = vpop.permute.xlu0 %1260  ;;  %1139 = vst.msk [vmem:[#allocation3 + $0xd8] sm:$0xff] %vm1111_vm5, %v1070_v62  ;;  %v2153_v53 = vpack.c.bf16 %v2133_v63, %v2132_v28 }
 0x247   : > { %1331 = vst.msk [vmem:[#allocation3 + $0xd0] sm:$0xff] %vm1304_vm6, %v1261_v33 }
 0x248   : > { %2806 = vmatmul.mubr.msk.bf16.gmra.mxu1 %vm2194_vm11, %v2153_v53 }
 0x249   : > { %v1259_v44 = vpop.permute.xlu1 %1258 }
 0x24a   : > { %v1450_v11 = vpop.permute.xlu0 %1449  ;;  %1330 = vst.msk [vmem:[#allocation3 + $0xc8] sm:$0xff] %vm1304_vm6, %v1259_v44 }
 0x24b   : > { %1522 = vst.msk [vmem:[#allocation3 + $0xc0] sm:$0xff] %vm1497_vm7, %v1450_v11 }
 0x24d   : > { %v1263_v0 = vpop.permute.xlu1 %1262 }
 0x24e   : > { %v1454_v3 = vpop.permute.xlu0 %1453  ;;  %1332 = vst.msk [vmem:[#allocation3 + $0xd8] sm:$0xff] %vm1304_vm6, %v1263_v0 }
 0x24f   : > { %1524 = vst.msk [vmem:[#allocation3 + $0xd0] sm:$0xff] %vm1497_vm7, %v1454_v3 }
 0x251   : > { %v1452_v39 = vpop.permute.xlu1 %1451 }
 0x252   : > { %v1644_v4 = vpop.permute.xlu0 %1643  ;;  %1523 = vst.msk [vmem:[#allocation3 + $0xc8] sm:$0xff] %vm1497_vm7, %v1452_v39 }
 0x253   : > { %1716 = vst.msk [vmem:[#allocation3 + $0xc0] sm:$0xff] %vm1691_vm8, %v1644_v4 }
 0x255   : > { %v1456_v49 = vpop.permute.xlu1 %1455 }
 0x256   : > { %v1648_v51 = vpop.permute.xlu0 %1647  ;;  %1525 = vst.msk [vmem:[#allocation3 + $0xd8] sm:$0xff] %vm1497_vm7, %v1456_v49 }
 0x257   : > { %1718 = vst.msk [vmem:[#allocation3 + $0xd0] sm:$0xff] %vm1691_vm8, %v1648_v51 }
 0x259   : > { %v1646_v30 = vpop.permute.xlu1 %1645 }
 0x25a   : > { %v1837_v40 = vpop.permute.xlu0 %1836  ;;  %1717 = vst.msk [vmem:[#allocation3 + $0xc8] sm:$0xff] %vm1691_vm8, %v1646_v30 }
 0x25b   : > { %1909 = vst.msk [vmem:[#allocation3 + $0xc0] sm:$0xff] %vm1884_vm9, %v1837_v40 }
 0x25c   : > { %v2791_v21 = vpop.f32.mrf.mxu0 }
 0x25d   : > { %2414 = vst.msk [vmem:[%s3885_s11 + $0x30] sm:$0xff] %vm412_vm0, %v2791_v21  ;;  %v1650_v54 = vpop.permute.xlu1 %1649  ;;  %v2517_v1 = vmul.f32 %v2791_v21, %v2791_v21  ;;  %v2451_v37 = vsel %vm412_vm0, %v2791_v21, 0.0 }
 0x25e   : > { %v1841_v48 = vpop.permute.xlu0 %1840  ;;  %1719 = vst.msk [vmem:[#allocation3 + $0xd8] sm:$0xff] %vm1691_vm8, %v1650_v54  ;;  %v2297_v5 = vpop.f32.mrf.mxu0 }
 0x25f   : > { %1911 = vst.msk [vmem:[#allocation3 + $0xd0] sm:$0xff] %vm1884_vm9, %v1841_v48  ;;  %v2447_v50 = vsel %vm412_vm0, %v2297_v5, 0.0  ;;  %v2515_v6 = vmul.f32 %v2297_v5, %v2297_v5  ;;  %v2554_v29 = vsel %vm412_vm0, %v2517_v1, 0.0 }
 0x260   : > { %2412 = vst.msk [vmem:[%s3885_s11 + $0x20] sm:$0xff] %vm412_vm0, %v2297_v5  ;;  %v2448_v34 = vadd.f32 %v2447_v50, %v2446_v19  ;;  %v2792_v55 = vpop.f32.mrf.mxu0 }
 0x261   : > { %v2550_v20 = vsel %vm412_vm0, %v2515_v6, 0.0  ;;  %2415 = vst.msk [vmem:[%s3885_s11 + $0x38] sm:$0xff] %vm412_vm0, %v2792_v55  ;;  %v1839_v36 = vpop.permute.xlu1 %1838  ;;  %v2518_v31 = vmul.f32 %v2792_v55, %v2792_v55  ;;  %v2453_v46 = vsel %vm412_vm0, %v2792_v55, 0.0 }
 0x262   : > { %v2030_v57 = vpop.permute.xlu0 %2029  ;;  %v2551_v18 = vadd.f32 %v2550_v20, %v2549_v16  ;;  %1910 = vst.msk [vmem:[#allocation3 + $0xc8] sm:$0xff] %vm1884_vm9, %v1839_v36  ;;  %v2300_v35 = vpop.f32.mrf.mxu0 }
 0x263   : > { %2102 = vst.msk [vmem:[#allocation3 + $0xc0] sm:$0xff] %vm2077_vm10, %v2030_v57  ;;  %v2449_v8 = vsel %vm412_vm0, %v2300_v35, 0.0  ;;  %v2516_v41 = vmul.f32 %v2300_v35, %v2300_v35  ;;  %v2556_v9 = vsel %vm412_vm0, %v2518_v31, 0.0 }
 0x264   : > { %2413 = vst.msk [vmem:[%s3885_s11 + $0x28] sm:$0xff] %vm412_vm0, %v2300_v35  ;;  %v2450_v23 = vadd.f32 %v2449_v8, %v2448_v34 }
 0x265   : > { %v2552_v45 = vsel %vm412_vm0, %v2516_v41, 0.0  ;;  %v1843_v25 = vpop.permute.xlu1 %1842 }
 0x266   : > { %v2034_v42 = vpop.permute.xlu0 %2033  ;;  %v2452_v52 = vadd.f32 %v2451_v37, %v2450_v23  ;;  %v2553_v24 = vadd.f32 %v2552_v45, %v2551_v18  ;;  %1912 = vst.msk [vmem:[#allocation3 + $0xd8] sm:$0xff] %vm1884_vm9, %v1843_v25 }
 0x267   : > { %2104 = vst.msk [vmem:[#allocation3 + $0xd0] sm:$0xff] %vm2077_vm10, %v2034_v42 }
 0x268   : > { %v2555_v7 = vadd.f32 %v2554_v29, %v2553_v24  ;;  %v2454_v26 = vadd.f32 %v2453_v46, %v2452_v52 }
 0x269   : > { %v2032_v2 = vpop.permute.xlu1 %2031 }
 0x26a   : > { %v1072_v22 = vpop.permute.xlu0 %1071  ;;  %2103 = vst.msk [vmem:[#allocation3 + $0xc8] sm:$0xff] %vm2077_vm10, %v2032_v2  ;;  %v2557_v10 = vadd.f32 %v2556_v9, %v2555_v7  ;;  %v2134_v12 = vld [vmem:[#allocation3 + $0xc0] sm:$0xff] }
 0x26b   : > { %1140 = vst.msk [vmem:[#allocation3 + $0xe0] sm:$0xff] %vm1111_vm5, %v1072_v22 }
 0x26d   : > { %v2036_v17 = vpop.permute.xlu1 %2035 }
 0x26e   : > { %v1076_v14 = vpop.permute.xlu0 %1075  ;;  %2105 = vst.msk [vmem:[#allocation3 + $0xd8] sm:$0xff] %vm2077_vm10, %v2036_v17  ;;  %v2136_v59 = vld [vmem:[#allocation3 + $0xd0] sm:$0xff] }
 0x26f   : > { %1142 = vst.msk [vmem:[#allocation3 + $0xf0] sm:$0xff] %vm1111_vm5, %v1076_v14 }
 0x271   : > { %v1074_v43 = vpop.permute.xlu1 %1073  ;;  %v2135_v56 = vld [vmem:[#allocation3 + $0xc8] sm:$0xff] }
 0x272   : > { %v1265_v58 = vpop.permute.xlu0 %1264  ;;  %1141 = vst.msk [vmem:[#allocation3 + $0xe8] sm:$0xff] %vm1111_vm5, %v1074_v43  ;;  %v2154_v15 = vpack.c.bf16 %v2135_v56, %v2134_v12 }
 0x273   : > { %1333 = vst.msk [vmem:[#allocation3 + $0xe0] sm:$0xff] %vm1304_vm6, %v1265_v58 }
 0x274   : > { %2809 = vmatprep.mubr.msk.bf16.mxu1 %vm2194_vm11, %v2154_v15 }
 0x275   : > { %v1078_v38 = vpop.permute.xlu1 %1077  ;;  %v2137_v60 = vld [vmem:[#allocation3 + $0xd8] sm:$0xff] }
 0x276   : > { %v1269_v19 = vpop.permute.xlu0 %1268  ;;  %1143 = vst.msk [vmem:[#allocation3 + $0xf8] sm:$0xff] %vm1111_vm5, %v1078_v38  ;;  %v2155_v13 = vpack.c.bf16 %v2137_v60, %v2136_v59 }
 0x277   : > { %1335 = vst.msk [vmem:[#allocation3 + $0xf0] sm:$0xff] %vm1304_vm6, %v1269_v19 }
 0x278   : > { %2810 = vmatmul.mubr.msk.bf16.gmra.mxu1 %vm2194_vm11, %v2155_v13 }
 0x279   : > { %v1267_v27 = vpop.permute.xlu1 %1266 }
 0x27a   : > { %v1458_v47 = vpop.permute.xlu0 %1457  ;;  %1334 = vst.msk [vmem:[#allocation3 + $0xe8] sm:$0xff] %vm1304_vm6, %v1267_v27 }
 0x27b   : > { %1526 = vst.msk [vmem:[#allocation3 + $0xe0] sm:$0xff] %vm1497_vm7, %v1458_v47 }
 0x27d   : > { %v1271_v61 = vpop.permute.xlu1 %1270 }
 0x27e   : > { %v1462_v32 = vpop.permute.xlu0 %1461  ;;  %1336 = vst.msk [vmem:[#allocation3 + $0xf8] sm:$0xff] %vm1304_vm6, %v1271_v61 }
 0x27f   : > { %1528 = vst.msk [vmem:[#allocation3 + $0xf0] sm:$0xff] %vm1497_vm7, %v1462_v32 }
 0x281   : > { %v1460_v16 = vpop.permute.xlu1 %1459 }
 0x282   : > { %v1652_v28 = vpop.permute.xlu0 %1651  ;;  %1527 = vst.msk [vmem:[#allocation3 + $0xe8] sm:$0xff] %vm1497_vm7, %v1460_v16 }
 0x283   : > { %1720 = vst.msk [vmem:[#allocation3 + $0xe0] sm:$0xff] %vm1691_vm8, %v1652_v28 }
 0x284   : > { %v2795_v62 = vpop.f32.mrf.mxu0 }
 0x285   : > { %2418 = vst.msk [vmem:[%s3885_s11 + $0x50] sm:$0xff] %vm412_vm0, %v2795_v62  ;;  %v1464_v63 = vpop.permute.xlu1 %1463  ;;  %v2521_v40 = vmul.f32 %v2795_v62, %v2795_v62  ;;  %v2459_v5 = vsel %vm412_vm0, %v2795_v62, 0.0 }
 0x286   : > { %v1656_v33 = vpop.permute.xlu0 %1655  ;;  %1529 = vst.msk [vmem:[#allocation3 + $0xf8] sm:$0xff] %vm1497_vm7, %v1464_v63  ;;  %v2313_v53 = vpop.f32.mrf.mxu0 }
 0x287   : > { %1722 = vst.msk [vmem:[#allocation3 + $0xf0] sm:$0xff] %vm1691_vm8, %v1656_v33  ;;  %v2455_v44 = vsel %vm412_vm0, %v2313_v53, 0.0  ;;  %v2519_v11 = vmul.f32 %v2313_v53, %v2313_v53  ;;  %v2562_v57 = vsel %vm412_vm0, %v2521_v40, 0.0 }
 0x288   : > { %2416 = vst.msk [vmem:[%s3885_s11 + $0x40] sm:$0xff] %vm412_vm0, %v2313_v53  ;;  %v2456_v0 = vadd.f32 %v2455_v44, %v2454_v26  ;;  %v2796_v3 = vpop.f32.mrf.mxu0 }
 0x289   : > { %v2558_v39 = vsel %vm412_vm0, %v2519_v11, 0.0  ;;  %2419 = vst.msk [vmem:[%s3885_s11 + $0x58] sm:$0xff] %vm412_vm0, %v2796_v3  ;;  %v1654_v4 = vpop.permute.xlu1 %1653  ;;  %v2522_v50 = vmul.f32 %v2796_v3, %v2796_v3  ;;  %v2461_v18 = vsel %vm412_vm0, %v2796_v3, 0.0 }
 0x28a   : > { %v1845_v49 = vpop.permute.xlu0 %1844  ;;  %v2559_v51 = vadd.f32 %v2558_v39, %v2557_v10  ;;  %1721 = vst.msk [vmem:[#allocation3 + $0xe8] sm:$0xff] %vm1691_vm8, %v1654_v4  ;;  %v2316_v30 = vpop.f32.mrf.mxu0 }
 0x28b   : > { %1913 = vst.msk [vmem:[#allocation3 + $0xe0] sm:$0xff] %vm1884_vm9, %v1845_v49  ;;  %v2457_v21 = vsel %vm412_vm0, %v2316_v30, 0.0  ;;  %v2520_v54 = vmul.f32 %v2316_v30, %v2316_v30  ;;  %v2564_v8 = vsel %vm412_vm0, %v2522_v50, 0.0 }
 0x28c   : > { %2417 = vst.msk [vmem:[%s3885_s11 + $0x48] sm:$0xff] %vm412_vm0, %v2316_v30  ;;  %v2458_v48 = vadd.f32 %v2457_v21, %v2456_v0 }
 0x28d   : > { %v2560_v6 = vsel %vm412_vm0, %v2520_v54, 0.0  ;;  %v1658_v34 = vpop.permute.xlu1 %1657 }
 0x28e   : > { %v1849_v55 = vpop.permute.xlu0 %1848  ;;  %v2460_v20 = vadd.f32 %v2459_v5, %v2458_v48  ;;  %v2561_v36 = vadd.f32 %v2560_v6, %v2559_v51  ;;  %1723 = vst.msk [vmem:[#allocation3 + $0xf8] sm:$0xff] %vm1691_vm8, %v1658_v34 }
 0x28f   : > { %1915 = vst.msk [vmem:[#allocation3 + $0xf0] sm:$0xff] %vm1884_vm9, %v1849_v55 }
 0x290   : > { %v2563_v35 = vadd.f32 %v2562_v57, %v2561_v36  ;;  %v2462_v1 = vadd.f32 %v2461_v18, %v2460_v20 }
 0x291   : > { %v1847_v41 = vpop.permute.xlu1 %1846 }
 0x292   : > { %v2038_v23 = vpop.permute.xlu0 %2037  ;;  %1914 = vst.msk [vmem:[#allocation3 + $0xe8] sm:$0xff] %vm1884_vm9, %v1847_v41  ;;  %v2565_v37 = vadd.f32 %v2564_v8, %v2563_v35 }
 0x293   : > { %2106 = vst.msk [vmem:[#allocation3 + $0xe0] sm:$0xff] %vm2077_vm10, %v2038_v23 }
 0x295   : > { %v1851_v31 = vpop.permute.xlu1 %1850 }
 0x296   : > { %v2042_v45 = vpop.permute.xlu0 %2041  ;;  %1916 = vst.msk [vmem:[#allocation3 + $0xf8] sm:$0xff] %vm1884_vm9, %v1851_v31 }
 0x297   : > { %2108 = vst.msk [vmem:[#allocation3 + $0xf0] sm:$0xff] %vm2077_vm10, %v2042_v45 }
 0x299   : > { %v2040_v25 = vpop.permute.xlu1 %2039 }
 0x29a   : > { %2107 = vst.msk [vmem:[#allocation3 + $0xe8] sm:$0xff] %vm2077_vm10, %v2040_v25  ;;  %v2138_v52 = vld [vmem:[#allocation3 + $0xe0] sm:$0xff] }
 0x29d   : > { %v2044_v42 = vpop.permute.xlu1 %2043 }
 0x29e   : > { %2109 = vst.msk [vmem:[#allocation3 + $0xf8] sm:$0xff] %vm2077_vm10, %v2044_v42  ;;  %v2140_v46 = vld [vmem:[#allocation3 + $0xf0] sm:$0xff] }
 0x2a1   : > { %v2139_v24 = vld [vmem:[#allocation3 + $0xe8] sm:$0xff] }
 0x2a2   : > { %v2156_v29 = vpack.c.bf16 %v2139_v24, %v2138_v52 }
 0x2a4   : > { %2813 = vmatprep.mubr.msk.bf16.mxu1 %vm2194_vm11, %v2156_v29 }
 0x2a5   : > { %v2141_v7 = vld [vmem:[#allocation3 + $0xf8] sm:$0xff] }
 0x2a6   : > { %v2157_v26 = vpack.c.bf16 %v2141_v7, %v2140_v46 }
 0x2a8   : > { %2814 = vmatmul.mubr.msk.bf16.gmra.mxu1 %vm2194_vm11, %v2157_v26 }
 0x2ac   : > { %v2799_v9 = vpop.f32.mrf.mxu0 }
 0x2ad   : > { %2422 = vst.msk [vmem:[%s3885_s11 + $0x70] sm:$0xff] %vm412_vm0, %v2799_v9  ;;  %v2525_v58 = vmul.f32 %v2799_v9, %v2799_v9  ;;  %v2467_v60 = vsel %vm412_vm0, %v2799_v9, 0.0 }
 0x2ae   : > { %v2329_v2 = vpop.f32.mrf.mxu0 }
 0x2af   : > { %2420 = vst.msk [vmem:[%s3885_s11 + $0x60] sm:$0xff] %vm412_vm0, %v2329_v2  ;;  %v2463_v22 = vsel %vm412_vm0, %v2329_v2, 0.0  ;;  %v2523_v10 = vmul.f32 %v2329_v2, %v2329_v2  ;;  %v2570_v61 = vsel %vm412_vm0, %v2525_v58, 0.0 }
 0x2b0   : > { %v2464_v17 = vadd.f32 %v2463_v22, %v2462_v1  ;;  %v2800_v14 = vpop.f32.mrf.mxu0 }
 0x2b1   : > { %v2566_v12 = vsel %vm412_vm0, %v2523_v10, 0.0  ;;  %2423 = vst.msk [vmem:[%s3885_s11 + $0x78] sm:$0xff] %vm412_vm0, %v2800_v14  ;;  %v2526_v19 = vmul.f32 %v2800_v14, %v2800_v14  ;;  %v2469_v32 = vsel %vm412_vm0, %v2800_v14, 0.0 }
 0x2b2   : > { %v2567_v43 = vadd.f32 %v2566_v12, %v2565_v37  ;;  %v2332_v56 = vpop.f32.mrf.mxu0 }
 0x2b3   : > { %2421 = vst.msk [vmem:[%s3885_s11 + $0x68] sm:$0xff] %vm412_vm0, %v2332_v56  ;;  %v2465_v15 = vsel %vm412_vm0, %v2332_v56, 0.0  ;;  %v2524_v59 = vmul.f32 %v2332_v56, %v2332_v56  ;;  %v2572_v62 = vsel %vm412_vm0, %v2526_v19, 0.0 }
 0x2b4   : > { %v2466_v38 = vadd.f32 %v2465_v15, %v2464_v17 }
 0x2b5   : > { %v2568_v13 = vsel %vm412_vm0, %v2524_v59, 0.0 }
 0x2b6   : > { %v2468_v27 = vadd.f32 %v2467_v60, %v2466_v38  ;;  %v2569_v47 = vadd.f32 %v2568_v13, %v2567_v43 }
 0x2b8   : > { %v2571_v16 = vadd.f32 %v2570_v61, %v2569_v47  ;;  %v2470_v28 = vadd.f32 %v2469_v32, %v2468_v27 }
 0x2ba   : > { %v2573_v63 = vadd.f32 %v2572_v62, %v2571_v16 }
 0x2d8   : > { %v2803_v33 = vpop.f32.mrf.mxu1 }
 0x2d9   : > { %2426 = vst.msk [vmem:[%s3885_s11 + $0x90] sm:$0xff] %vm412_vm0, %v2803_v33  ;;  %v2529_v51 = vmul.f32 %v2803_v33, %v2803_v33  ;;  %v2475_v54 = vsel %vm412_vm0, %v2803_v33, 0.0 }
 0x2da   : > { %v2345_v53 = vpop.f32.mrf.mxu1 }
 0x2db   : > { %2424 = vst.msk [vmem:[%s3885_s11 + $0x80] sm:$0xff] %vm412_vm0, %v2345_v53  ;;  %v2471_v44 = vsel %vm412_vm0, %v2345_v53, 0.0  ;;  %v2527_v11 = vmul.f32 %v2345_v53, %v2345_v53  ;;  %v2578_v34 = vsel %vm412_vm0, %v2529_v51, 0.0 }
 0x2dc   : > { %v2472_v0 = vadd.f32 %v2471_v44, %v2470_v28  ;;  %v2804_v3 = vpop.f32.mrf.mxu1 }
 0x2dd   : > { %v2574_v39 = vsel %vm412_vm0, %v2527_v11, 0.0  ;;  %2427 = vst.msk [vmem:[%s3885_s11 + $0x98] sm:$0xff] %vm412_vm0, %v2804_v3  ;;  %v2530_v48 = vmul.f32 %v2804_v3, %v2804_v3  ;;  %v2477_v55 = vsel %vm412_vm0, %v2804_v3, 0.0 }
 0x2de   : > { %v2575_v4 = vadd.f32 %v2574_v39, %v2573_v63  ;;  %v2348_v49 = vpop.f32.mrf.mxu1 }
 0x2df   : > { %2425 = vst.msk [vmem:[%s3885_s11 + $0x88] sm:$0xff] %vm412_vm0, %v2348_v49  ;;  %v2473_v30 = vsel %vm412_vm0, %v2348_v49, 0.0  ;;  %v2528_v40 = vmul.f32 %v2348_v49, %v2348_v49  ;;  %v2580_v57 = vsel %vm412_vm0, %v2530_v48, 0.0 }
 0x2e0   : > { %v2474_v21 = vadd.f32 %v2473_v30, %v2472_v0 }
 0x2e1   : > { %v2576_v5 = vsel %vm412_vm0, %v2528_v40, 0.0 }
 0x2e2   : > { %v2476_v50 = vadd.f32 %v2475_v54, %v2474_v21  ;;  %v2577_v6 = vadd.f32 %v2576_v5, %v2575_v4 }
 0x2e4   : > { %v2579_v20 = vadd.f32 %v2578_v34, %v2577_v6  ;;  %v2478_v36 = vadd.f32 %v2477_v55, %v2476_v50 }
 0x2e6   : > { %v2581_v18 = vadd.f32 %v2580_v57, %v2579_v20 }
 0x308   : > { %v2807_v35 = vpop.f32.mrf.mxu1 }
 0x309   : > { %2430 = vst.msk [vmem:[%s3885_s11 + $0xb0] sm:$0xff] %vm412_vm0, %v2807_v35  ;;  %v2533_v42 = vmul.f32 %v2807_v35, %v2807_v35  ;;  %v2483_v46 = vsel %vm412_vm0, %v2807_v35, 0.0 }
 0x30a   : > { %v2361_v1 = vpop.f32.mrf.mxu1 }
 0x30b   : > { %2428 = vst.msk [vmem:[%s3885_s11 + $0xa0] sm:$0xff] %vm412_vm0, %v2361_v1  ;;  %v2479_v8 = vsel %vm412_vm0, %v2361_v1, 0.0  ;;  %v2531_v41 = vmul.f32 %v2361_v1, %v2361_v1  ;;  %v2586_v22 = vsel %vm412_vm0, %v2533_v42, 0.0 }
 0x30c   : > { %v2480_v23 = vadd.f32 %v2479_v8, %v2478_v36  ;;  %v2808_v37 = vpop.f32.mrf.mxu1 }
 0x30d   : > { %v2582_v31 = vsel %vm412_vm0, %v2531_v41, 0.0  ;;  %2431 = vst.msk [vmem:[%s3885_s11 + $0xb8] sm:$0xff] %vm412_vm0, %v2808_v37  ;;  %v2534_v7 = vmul.f32 %v2808_v37, %v2808_v37  ;;  %v2485_v10 = vsel %vm412_vm0, %v2808_v37, 0.0 }
 0x30e   : > { %v2583_v45 = vadd.f32 %v2582_v31, %v2581_v18  ;;  %v2364_v25 = vpop.f32.mrf.mxu1 }
 0x30f   : > { %2429 = vst.msk [vmem:[%s3885_s11 + $0xa8] sm:$0xff] %vm412_vm0, %v2364_v25  ;;  %v2481_v52 = vsel %vm412_vm0, %v2364_v25, 0.0  ;;  %v2532_v24 = vmul.f32 %v2364_v25, %v2364_v25  ;;  %v2588_v12 = vsel %vm412_vm0, %v2534_v7, 0.0 }
 0x310   : > { %v2482_v29 = vadd.f32 %v2481_v52, %v2480_v23 }
 0x311   : > { %v2584_v26 = vsel %vm412_vm0, %v2532_v24, 0.0 }
 0x312   : > { %v2484_v9 = vadd.f32 %v2483_v46, %v2482_v29  ;;  %v2585_v2 = vadd.f32 %v2584_v26, %v2583_v45 }
 0x314   : > { %v2587_v17 = vadd.f32 %v2586_v22, %v2585_v2  ;;  %v2486_v14 = vadd.f32 %v2485_v10, %v2484_v9 }
 0x316   : > { %v2589_v43 = vadd.f32 %v2588_v12, %v2587_v17 }
 0x338   : > { %v2811_v56 = vpop.f32.mrf.mxu1 }
 0x339   : > { %2434 = vst.msk [vmem:[%s3885_s11 + $0xd0] sm:$0xff] %vm412_vm0, %v2811_v56  ;;  %v2537_v28 = vmul.f32 %v2811_v56, %v2811_v56  ;;  %v2491_v63 = vsel %vm412_vm0, %v2811_v56, 0.0 }
 0x33a   : > { %v2377_v58 = vpop.f32.mrf.mxu1 }
 0x33b   : > { %2432 = vst.msk [vmem:[%s3885_s11 + $0xc0] sm:$0xff] %vm412_vm0, %v2377_v58  ;;  %v2535_v38 = vmul.f32 %v2377_v58, %v2377_v58  ;;  %v2487_v60 = vsel %vm412_vm0, %v2377_v58, 0.0  ;;  %v2594_v44 = vsel %vm412_vm0, %v2537_v28, 0.0 }
 0x33c   : > { %v2812_v15 = vpop.f32.mrf.mxu1  ;;  %v2488_v47 = vadd.f32 %v2487_v60, %v2486_v14 }
 0x33d   : > { %2435 = vst.msk [vmem:[%s3885_s11 + $0xd8] sm:$0xff] %vm412_vm0, %v2812_v15  ;;  %v2590_v13 = vsel %vm412_vm0, %v2535_v38, 0.0  ;;  %v2538_v11 = vmul.f32 %v2812_v15, %v2812_v15  ;;  %v2493_v39 = vsel %vm412_vm0, %v2812_v15, 0.0 }
 0x33e   : > { %v2380_v59 = vpop.f32.mrf.mxu1  ;;  %v2591_v32 = vadd.f32 %v2590_v13, %v2589_v43 }
 0x33f   : > { %2433 = vst.msk [vmem:[%s3885_s11 + $0xc8] sm:$0xff] %vm412_vm0, %v2380_v59  ;;  %v2536_v19 = vmul.f32 %v2380_v59, %v2380_v59  ;;  %v2489_v27 = vsel %vm412_vm0, %v2380_v59, 0.0  ;;  %v2596_v40 = vsel %vm412_vm0, %v2538_v11, 0.0 }
 0x340   : > { %v2490_v16 = vadd.f32 %v2489_v27, %v2488_v47 }
 0x341   : > { %v2592_v61 = vsel %vm412_vm0, %v2536_v19, 0.0 }
 0x342   : > { %v2593_v62 = vadd.f32 %v2592_v61, %v2591_v32  ;;  %v2492_v33 = vadd.f32 %v2491_v63, %v2490_v16 }
 0x344   : > { %v2595_v0 = vadd.f32 %v2594_v44, %v2593_v62  ;;  %v2494_v51 = vadd.f32 %v2493_v39, %v2492_v33 }
 0x346   : > { %v2597_v48 = vadd.f32 %v2596_v40, %v2595_v0 }
 0x368   : > { %v2815_v53 = vpop.f32.mrf.mxu1 }
 0x369   : > { %2438 = vst.msk [vmem:[%s3885_s11 + $0xf0] sm:$0xff] %vm412_vm0, %v2815_v53  ;;  %v2541_v50 = vmul.f32 %v2815_v53, %v2815_v53  ;;  %v2499_v36 = vsel %vm412_vm0, %v2815_v53, 0.0 }
 0x36a   : > { %v2393_v3 = vpop.f32.mrf.mxu1 }
 0x36b   : > { %2436 = vst.msk [vmem:[%s3885_s11 + $0xe0] sm:$0xff] %vm412_vm0, %v2393_v3  ;;  %v2495_v4 = vsel %vm412_vm0, %v2393_v3, 0.0  ;;  %v2539_v49 = vmul.f32 %v2393_v3, %v2393_v3  ;;  %v2602_v8 = vsel %vm412_vm0, %v2541_v50, 0.0 }
 0x36c   : > { %v2816_v30 = vpop.f32.mrf.mxu1  ;;  %v2496_v54 = vadd.f32 %v2495_v4, %v2494_v51 }
 0x36d   : > { %v2598_v21 = vsel %vm412_vm0, %v2539_v49, 0.0  ;;  %2439 = vst.msk [vmem:[%s3885_s11 + $0xf8] sm:$0xff] %vm412_vm0, %v2816_v30  ;;  %v2542_v57 = vmul.f32 %v2816_v30, %v2816_v30  ;;  %v2501_v41 = vsel %vm412_vm0, %v2816_v30, 0.0 }
 0x36e   : > { %v2396_v5 = vpop.f32.mrf.mxu1  ;;  %v2599_v55 = vadd.f32 %v2598_v21, %v2597_v48 }
 0x36f   : > { %2437 = vst.msk [vmem:[%s3885_s11 + $0xe8] sm:$0xff] %vm412_vm0, %v2396_v5  ;;  %v2497_v6 = vsel %vm412_vm0, %v2396_v5, 0.0  ;;  %v2540_v34 = vmul.f32 %v2396_v5, %v2396_v5  ;;  %v2604_v31 = vsel %vm412_vm0, %v2542_v57, 0.0 }
 0x370   : > { %v2498_v20 = vadd.f32 %v2497_v6, %v2496_v54 }
 0x371   : > { %v2600_v18 = vsel %vm412_vm0, %v2540_v34, 0.0 }
 0x372   : > { %v2500_v35 = vadd.f32 %v2499_v36, %v2498_v20  ;;  %v2601_v1 = vadd.f32 %v2600_v18, %v2599_v55 }
 0x374   : > { %v2502_v23 = vadd.f32 %v2501_v41, %v2500_v35  ;;  %v2603_v37 = vadd.f32 %v2602_v8, %v2601_v1 }
 0x376   : > { %v2503_v45 = vrot.slane %v2502_v23, 4  ;;  %v2605_v25 = vadd.f32 %v2604_v31, %v2603_v37 }
 0x378   : > { %v2504_v42 = vadd.f32 %v2503_v45, %v2502_v23  ;;  %v2606_v52 = vrot.slane %v2605_v25, 4 }
 0x37a   : > { %v2505_v24 = vrot.slane %v2504_v42, 2  ;;  %v2607_v29 = vadd.f32 %v2606_v52, %v2605_v25 }
 0x37c   : > { %v2506_v46 = vadd.f32 %v2505_v24, %v2504_v42  ;;  %v2608_v7 = vrot.slane %v2607_v29, 2 }
 0x37e   : > { %v2507_v26 = vrot.slane %v2506_v46, 1  ;;  %v2609_v9 = vadd.f32 %v2608_v7, %v2607_v29 }
 0x380   : > { %v2508_v2 = vadd.f32 %v2507_v26, %v2506_v46  ;;  %v2610_v22 = vrot.slane %v2609_v9, 1 }
 0x382   : > { %2510 = vst.msk [vmem:[%s265_s13] sm:$0x1] %vm2509_vm12, %v2508_v2  ;;  %v2611_v10 = vadd.f32 %v2610_v22, %v2609_v9 }
 0x384   : > { %2612 = vst.msk [vmem:[%s268_s16] sm:$0x1] %vm2509_vm12, %v2611_v10 }
 0x385 PF: > { %s17_s21 = sadd.s32 1, %s2859_s21  }
 0x386   : > { %p14_p4 = scmp.ge.s32.totalorder %s17_s21, 4  }
 0x388   :  { %16 = sbr.rel (!%p14_p4) target bundleno = 1 (0x1), region = 92 }

</bundles_post_ra>
